<compile_context>
chip_gen: v6e
topology: v6e:2x2x1
jax: 0.10.0
libtpu: 0.0.40
codegen_flags: <defaults>
</compile_context>

<pallas_src>
import jax
import jax.numpy as jnp
from jax import lax
from jax.experimental import pallas as pl
from jax.experimental.pallas import tpu as pltpu


# ----------------------------------------------------------------------------
# Pallas kernel: one batch element per grid step, all four branches fused.
# ----------------------------------------------------------------------------
def _inception_kernel(
    x_ref,                           # (1, H, W, Cin)                  bf16
    wf_ref, bf_ref,                  # (Cin, C1+R3+R5) bf16, (1, C1+R3+R5) f32
    w2_ref, b2_ref,                  # (3, 3*R3, C3) bf16, (1, C3) f32
    w3_ref, b3_ref,                  # (5, 5*R5, C5) bf16, (1, C5) f32
    w4_ref, b4_ref,                  # (Cin, C4) bf16, (1, C4) f32
    o1_ref, o2_ref, o3_ref, o4_ref,  # (1, H, W, Ci)                   bf16
    acc3_ref, acc5_ref,              # VMEM scratch (H*W, C3)/(H*W, C5) f32
):
    H, W, Cin = x_ref.shape[1], x_ref.shape[2], x_ref.shape[3]
    C1 = o1_ref.shape[3]
    R3 = w2_ref.shape[1] // w2_ref.shape[0]
    R5 = w3_ref.shape[1] // w3_ref.shape[0]
    C4 = o4_ref.shape[3]

    x = x_ref[0]                                   # (H, W, Cin) bf16
    x2d = x.reshape(H * W, Cin)                    # bf16 (MXU operand)

    # ---- fused 1x1 convs: branch1 + 3x3-reduce + 5x5-reduce share the LHS --
    f = jnp.maximum(
        jnp.dot(x2d, wf_ref[...], preferred_element_type=jnp.float32)
        + bf_ref[...], 0.0)                        # (H*W, C1+R3+R5) f32
    o1_ref[0] = f[:, 0:C1].reshape(H, W, C1).astype(o1_ref.dtype)
    # cast reduces to bf16 once, BEFORE padding/shifting
    r3 = f[:, C1:C1 + R3].astype(jnp.bfloat16).reshape(H, W, R3)
    r5 = f[:, C1 + R3:C1 + R3 + R5].astype(jnp.bfloat16).reshape(H, W, R5)

    # ---- kxk conv (zero pad k//2, stride 1) with kh-packed contraction -----
    def conv_kxk(r, wk_ref, bk_ref, acc_ref, out_ref):
        k = wk_ref.shape[0]
        R = wk_ref.shape[1] // k
        C = wk_ref.shape[2]
        pad = (k - 1) // 2
        Hp = H + 2 * pad
        # zero-pad spatially (already bf16 -> half the copy bytes)
        zr = jnp.zeros((pad, W, R), jnp.bfloat16)
        zc = jnp.zeros((Hp, pad, R), jnp.bfloat16)
        p = jnp.concatenate([zr, r, zr], axis=0)            # (Hp, W, R)
        p = jnp.concatenate([zc, p, zc], axis=1)            # (Hp, W+2p, R)
        # k column shifts; per shift, pack the k row offsets along lanes so
        # each kw does ONE dot with contraction K = k*R.
        for kw in range(k):
            col = p[:, kw:kw + W, :]                        # (Hp, W, R)
            a = jnp.concatenate([col[kh:kh + H] for kh in range(k)],
                                axis=-1).reshape(H * W, k * R)
            contrib = jnp.dot(a, wk_ref[kw],
                              preferred_element_type=jnp.float32)
            if kw == 0:
                acc_ref[...] = contrib                      # no bias-init store
            else:
                acc_ref[...] += contrib
        o = jnp.maximum(acc_ref[...] + bk_ref[...], 0.0)    # bias folded here
        out_ref[0] = o.reshape(H, W, C).astype(out_ref.dtype)

    conv_kxk(r3, w2_ref, b2_ref, acc3_ref, o2_ref)
    conv_kxk(r5, w3_ref, b3_ref, acc5_ref, o3_ref)

    # ---- branch 4: 3x3 maxpool (stride 1, pad 1) -> 1x1 conv + ReLU --------
    # Separable max with replicate borders (== -inf padding for max).
    up = jnp.concatenate([x[1:], x[H - 1:H]], axis=0)
    dn = jnp.concatenate([x[0:1], x[:H - 1]], axis=0)
    mv = jnp.maximum(x, jnp.maximum(up, dn))                # column (H) max
    lf = jnp.concatenate([mv[:, 0:1, :], mv[:, :W - 1, :]], axis=1)
    rt = jnp.concatenate([mv[:, 1:, :], mv[:, W - 1:W, :]], axis=1)
    mp = jnp.maximum(mv, jnp.maximum(lf, rt))               # row (W) max, bf16
    o4 = jnp.maximum(
        jnp.dot(mp.reshape(H * W, Cin), w4_ref[...],
                preferred_element_type=jnp.float32) + b4_ref[...], 0.0)
    o4_ref[0] = o4.reshape(H, W, C4).astype(o4_ref.dtype)


# ----------------------------------------------------------------------------
# Wrapper
# ----------------------------------------------------------------------------
def inception_forward(x_nchw, params):
    (w1, b1, w2r, b2r, w2, b2, w3r, b3r, w3, b3, w4, b4) = params
    # bf16 I/O at the kernel boundary (block is memory-bound); NHWC layout.
    x = jnp.transpose(x_nchw, (0, 2, 3, 1)).astype(jnp.bfloat16)
    N, H, W, Cin = x.shape
    C1, R3, R5 = w1.shape[1], w2r.shape[1], w3r.shape[1]
    C3, C5, C4 = w2.shape[2], w3.shape[2], w4.shape[1]

    bf16 = jnp.bfloat16
    # fuse the three shared-LHS 1x1 convs along output channels
    wf = jnp.concatenate([w1, w2r, w3r], axis=1).astype(bf16)  # (Cin, C1+R3+R5)
    bf_ = jnp.concatenate([b1, b2r, b3r], axis=1)              # (1,  C1+R3+R5)
    param_list = [wf, bf_, w2.astype(bf16), b2, w3.astype(bf16), b3,
                  w4.astype(bf16), b4]

    def full_spec(arr):
        nd = arr.ndim
        return pl.BlockSpec(arr.shape, lambda n, _nd=nd: (0,) * _nd)

    in_specs = ([pl.BlockSpec((1, H, W, Cin), lambda n: (n, 0, 0, 0))]
                + [full_spec(p) for p in param_list])

    out_shapes = tuple(jax.ShapeDtypeStruct((N, H, W, c), bf16)
                       for c in (C1, C3, C5, C4))
    out_specs = [pl.BlockSpec((1, H, W, c), lambda n: (n, 0, 0, 0))
                 for c in (C1, C3, C5, C4)]

    o1, o2, o3, o4 = pl.pallas_call(
        _inception_kernel,
        out_shape=out_shapes,
        grid=(N,),
        in_specs=in_specs,
        out_specs=out_specs,
        scratch_shapes=[
            pltpu.VMEM((H * W, C3), jnp.float32),
            pltpu.VMEM((H * W, C5), jnp.float32),
        ],
        compiler_params=pltpu.CompilerParams(
            dimension_semantics=("parallel",),       # batch elems independent
            vmem_limit_bytes=48 * 1024 * 1024,       # headroom on v7x (64 MiB)
        ),
    )(x, *param_list)

    # channel concat + NCHW + f32 only at the model boundary
    out = jnp.concatenate(
        [jnp.transpose(o, (0, 3, 1, 2)).astype(jnp.float32)
         for o in (o1, o2, o3, o4)], axis=1)
    return out


# ----------------------------------------------------------------------------
# Deterministic parameter init (Conv2d weight+bias, BN eval-mode, folded)
# ----------------------------------------------------------------------------
def _init_conv_bn(key, cin, cout, k):
    k1, k2, k3, k4 = jax.random.split(key, 4)
    w = 0.1 * jax.random.normal(k1, (cout, cin, k, k), jnp.float32)   # OIHW
    b = 0.1 * jax.random.normal(k2, (cout,), jnp.float32)
    gamma = 1.0 + 0.1 * jax.random.normal(k3, (cout,), jnp.float32)
    beta = 0.1 * jax.random.normal(k4, (cout,), jnp.float32)
    mean = jnp.zeros((cout,), jnp.float32)
    var = jnp.ones((cout,), jnp.float32)
    eps = 1e-5
    scale = gamma / jnp.sqrt(var + eps)
    wf = w * scale[:, None, None, None]
    bf = (b - mean) * scale + beta
    if k == 1:
        wk = wf[:, :, 0, 0].T                             # (cin, cout)
    else:
        # kw-major, kh-packed layout: wk[kw, kh*cin + r, cout]
        wk = jnp.transpose(wf, (3, 2, 1, 0)).reshape(k, k * cin, cout)
    return wk, bf.reshape(1, cout)


def make_inception_params(key, in_ch, out_1x1, red_3x3, out_3x3,
                          red_5x5, out_5x5, out_1x1pool):
    keys = jax.random.split(key, 6)
    w1, b1 = _init_conv_bn(keys[0], in_ch, out_1x1, 1)
    w2r, b2r = _init_conv_bn(keys[1], in_ch, red_3x3, 1)
    w2, b2 = _init_conv_bn(keys[2], red_3x3, out_3x3, 3)
    w3r, b3r = _init_conv_bn(keys[3], in_ch, red_5x5, 1)
    w3, b3 = _init_conv_bn(keys[4], red_5x5, out_5x5, 5)
    w4, b4 = _init_conv_bn(keys[5], in_ch, out_1x1pool, 1)
    return (w1, b1, w2r, b2r, w2, b2, w3r, b3r, w3, b3, w4, b4)


# ----------------------------------------------------------------------------
# Pure-JAX reference (same folded params, f32) for the correctness check
# ----------------------------------------------------------------------------
def _ref_forward(x_nchw, params):
    (w1, b1, w2r, b2r, w2, b2, w3r, b3r, w3, b3, w4, b4) = params
    x = jnp.transpose(x_nchw, (0, 2, 3, 1)).astype(jnp.float32)
    dn = ("NHWC", "HWIO", "NHWC")

    def conv1x1(inp, w, b):
        return jnp.maximum(jnp.einsum("nhwc,co->nhwo", inp, w) + b[0], 0.0)

    def convkxk(inp, w, b):
        k = w.shape[0]
        cin = w.shape[1] // k
        cout = w.shape[2]
        # unpack (kw, kh*cin + r, cout) -> HWIO (kh, kw, cin, cout)
        wk = jnp.transpose(w.reshape(k, k, cin, cout), (1, 0, 2, 3))
        y = lax.conv_general_dilated(inp, wk, (1, 1), "SAME",
                                     dimension_numbers=dn)
        return jnp.maximum(y + b[0], 0.0)

    o1 = conv1x1(x, w1, b1)
    o2 = convkxk(conv1x1(x, w2r, b2r), w2, b2)
    o3 = convkxk(conv1x1(x, w3r, b3r), w3, b3)
    mp = lax.reduce_window(x, -jnp.inf, lax.max, (1, 3, 3, 1), (1, 1, 1, 1),
                           ((0, 0), (1, 1), (1, 1), (0, 0)))
    o4 = conv1x1(mp, w4, b4)
    out = jnp.concatenate([o1, o2, o3, o4], axis=-1)
    return jnp.transpose(out, (0, 3, 1, 2))


if __name__ == "__main__":
    key = jax.random.PRNGKey(0)
    kx, kp = jax.random.split(key)

    # small shapes consistent with the module
    N, Cin, H, W = 2, 4, 16, 16
    out_1x1, red_3x3, out_3x3 = 8, 4, 8
    red_5x5, out_5x5, out_1x1pool = 4, 8, 8

    x = jax.random.normal(kx, (N, Cin, H, W), jnp.float32)   # NCHW like PyTorch
    params = make_inception_params(kp, Cin, out_1x1, red_3x3, out_3x3,
                                   red_5x5, out_5x5, out_1x1pool)

    out = jax.block_until_ready(inception_forward(x, params))

    expected_channels = out_1x1 + out_3x3 + out_5x5 + out_1x1pool
    assert out.shape == (N, expected_channels, H, W), out.shape

    ref = jax.block_until_ready(_ref_forward(x, params))
    # Kernel uses bf16 I/O and bf16 MXU operands (f32 accumulation) across two
    # conv stages vs. the all-f32 reference, so tolerance is inference-grade.
    assert jnp.allclose(out, ref, atol=8e-2, rtol=5e-2), (
        float(jnp.max(jnp.abs(out - ref))))

    print("KERNEL_OK")
</pallas_src>

<mosaic_0001>
module attributes {stable_mosaic.version = 11 : i64} {
  func.func @_inception_kernel(%arg0: i32, %arg1: memref<1x16x16x4xbf16, #tpu.memory_space<vmem>>, %arg2: memref<4x16xbf16, #tpu.memory_space<vmem>>, %arg3: memref<1x16xf32, #tpu.memory_space<vmem>>, %arg4: memref<3x12x8xbf16, #tpu.memory_space<vmem>>, %arg5: memref<1x8xf32, #tpu.memory_space<vmem>>, %arg6: memref<5x20x8xbf16, #tpu.memory_space<vmem>>, %arg7: memref<1x8xf32, #tpu.memory_space<vmem>>, %arg8: memref<4x8xbf16, #tpu.memory_space<vmem>>, %arg9: memref<1x8xf32, #tpu.memory_space<vmem>>, %arg10: memref<1x16x16x8xbf16, #tpu.memory_space<vmem>>, %arg11: memref<1x16x16x8xbf16, #tpu.memory_space<vmem>>, %arg12: memref<1x16x16x8xbf16, #tpu.memory_space<vmem>>, %arg13: memref<1x16x16x8xbf16, #tpu.memory_space<vmem>>, %arg14: memref<256x8xf32, #tpu.memory_space<vmem>>, %arg15: memref<256x8xf32, #tpu.memory_space<vmem>>) attributes {dimension_semantics = [#tpu.dimension_semantics<parallel>], iteration_bounds = array<i64: 2>, scalar_prefetch = 0 : i64, scratch_operands = 2 : i64, tpu.core_type = #tpu.core_type<tc>, window_params = [{transform_indices = @transform_0, window_bounds = array<i64: 1, 16, 16, 4>}, {pipeline_mode = #tpu.pipeline_mode<synchronous>, transform_indices = @transform_1, window_bounds = array<i64: 4, 16>}, {pipeline_mode = #tpu.pipeline_mode<synchronous>, transform_indices = @transform_2, window_bounds = array<i64: 1, 16>}, {pipeline_mode = #tpu.pipeline_mode<synchronous>, transform_indices = @transform_3, window_bounds = array<i64: 3, 12, 8>}, {pipeline_mode = #tpu.pipeline_mode<synchronous>, transform_indices = @transform_4, window_bounds = array<i64: 1, 8>}, {pipeline_mode = #tpu.pipeline_mode<synchronous>, transform_indices = @transform_5, window_bounds = array<i64: 5, 20, 8>}, {pipeline_mode = #tpu.pipeline_mode<synchronous>, transform_indices = @transform_6, window_bounds = array<i64: 1, 8>}, {pipeline_mode = #tpu.pipeline_mode<synchronous>, transform_indices = @transform_7, window_bounds = array<i64: 4, 8>}, {pipeline_mode = #tpu.pipeline_mode<synchronous>, transform_indices = @transform_8, window_bounds = array<i64: 1, 8>}, {transform_indices = @transform_9, window_bounds = array<i64: 1, 16, 16, 8>}, {transform_indices = @transform_10, window_bounds = array<i64: 1, 16, 16, 8>}, {transform_indices = @transform_11, window_bounds = array<i64: 1, 16, 16, 8>}, {transform_indices = @transform_12, window_bounds = array<i64: 1, 16, 16, 8>}]} {
    %c0 = arith.constant 0 : index
    %c0_0 = arith.constant 0 : index
    %c0_1 = arith.constant 0 : index
    %c0_2 = arith.constant 0 : index
    %0 = vector.load %arg1[%c0, %c0_0, %c0_1, %c0_2] : memref<1x16x16x4xbf16, #tpu.memory_space<vmem>>, vector<1x16x16x4xbf16>
    %1 = vector.shape_cast %0 : vector<1x16x16x4xbf16> to vector<16x16x4xbf16>
    %2 = vector.shape_cast %1 : vector<16x16x4xbf16> to vector<256x4xbf16>
    %c0_3 = arith.constant 0 : index
    %c0_4 = arith.constant 0 : index
    %3 = vector.load %arg2[%c0_3, %c0_4] : memref<4x16xbf16, #tpu.memory_space<vmem>>, vector<4x16xbf16>
    %cst = arith.constant dense<0.000000e+00> : vector<256x16xf32>
    %4 = tpu.matmul %2, %3, %cst {dimension_numbers = #tpu.dot_dimension_numbers<[1], [0], [0], [1], [0, 0, 1, 1], [], []>} : vector<256x4xbf16>, vector<4x16xbf16>, vector<256x16xf32> -> vector<256x16xf32>
    %c0_5 = arith.constant 0 : index
    %c0_6 = arith.constant 0 : index
    %5 = vector.load %arg3[%c0_5, %c0_6] : memref<1x16xf32, #tpu.memory_space<vmem>>, vector<1x16xf32>
    %6 = vector.broadcast %5 : vector<1x16xf32> to vector<256x16xf32>
    %7 = arith.addf %4, %6 : vector<256x16xf32>
    %cst_7 = arith.constant 0.000000e+00 : f32
    %8 = vector.broadcast %cst_7 : f32 to vector<256x16xf32>
    %9 = arith.maximumf %7, %8 : vector<256x16xf32>
    %10 = vector.extract_strided_slice %9 {offsets = [0, 0], sizes = [256, 8], strides = [1, 1]} : vector<256x16xf32> to vector<256x8xf32>
    %11 = vector.shape_cast %10 : vector<256x8xf32> to vector<16x16x8xf32>
    %12 = arith.truncf %11 : vector<16x16x8xf32> to vector<16x16x8xbf16>
    %c0_8 = arith.constant 0 : index
    %c0_9 = arith.constant 0 : index
    %c0_10 = arith.constant 0 : index
    %c0_11 = arith.constant 0 : index
    %13 = vector.load %arg10[%c0_8, %c0_9, %c0_10, %c0_11] : memref<1x16x16x8xbf16, #tpu.memory_space<vmem>>, vector<1x16x16x8xbf16>
    %14 = vector.shape_cast %13 : vector<1x16x16x8xbf16> to vector<16x16x8xbf16>
    %15 = vector.shape_cast %12 : vector<16x16x8xbf16> to vector<1x16x16x8xbf16>
    tpu.vector_store %arg10[%c0_8, %c0_9, %c0_10, %c0_11], %15 {strides = array<i32>} : memref<1x16x16x8xbf16, #tpu.memory_space<vmem>>, vector<1x16x16x8xbf16>,
    %16 = vector.extract_strided_slice %9 {offsets = [0, 8], sizes = [256, 4], strides = [1, 1]} : vector<256x16xf32> to vector<256x4xf32>
    %17 = arith.truncf %16 : vector<256x4xf32> to vector<256x4xbf16>
    %18 = vector.shape_cast %17 : vector<256x4xbf16> to vector<16x16x4xbf16>
    %19 = vector.extract_strided_slice %9 {offsets = [0, 12], sizes = [256, 4], strides = [1, 1]} : vector<256x16xf32> to vector<256x4xf32>
    %20 = arith.truncf %19 : vector<256x4xf32> to vector<256x4xbf16>
    %21 = vector.shape_cast %20 : vector<256x4xbf16> to vector<16x16x4xbf16>
    %cst_12 = arith.constant 0.000000e+00 : bf16
    %22 = vector.broadcast %cst_12 : bf16 to vector<1x16x4xbf16>
    %cst_13 = arith.constant 0.000000e+00 : bf16
    %23 = vector.broadcast %cst_13 : bf16 to vector<18x1x4xbf16>
    %24 = tpu.concatenate %22, %18, %22 in 0 : vector<1x16x4xbf16>, vector<16x16x4xbf16>, vector<1x16x4xbf16> -> vector<18x16x4xbf16>
    %25 = tpu.concatenate %23, %24, %23 in 1 : vector<18x1x4xbf16>, vector<18x16x4xbf16>, vector<18x1x4xbf16> -> vector<18x18x4xbf16>
    %26 = vector.extract_strided_slice %25 {offsets = [0, 0, 0], sizes = [18, 16, 4], strides = [1, 1, 1]} : vector<18x18x4xbf16> to vector<18x16x4xbf16>
    %27 = vector.extract_strided_slice %26 {offsets = [0, 0, 0], sizes = [16, 16, 4], strides = [1, 1, 1]} : vector<18x16x4xbf16> to vector<16x16x4xbf16>
    %28 = vector.extract_strided_slice %26 {offsets = [1, 0, 0], sizes = [16, 16, 4], strides = [1, 1, 1]} : vector<18x16x4xbf16> to vector<16x16x4xbf16>
    %29 = vector.extract_strided_slice %26 {offsets = [2, 0, 0], sizes = [16, 16, 4], strides = [1, 1, 1]} : vector<18x16x4xbf16> to vector<16x16x4xbf16>
    %30 = tpu.concatenate %27, %28, %29 in 2 : vector<16x16x4xbf16>, vector<16x16x4xbf16>, vector<16x16x4xbf16> -> vector<16x16x12xbf16>
    %31 = vector.shape_cast %30 : vector<16x16x12xbf16> to vector<256x12xbf16>
    %c0_14 = arith.constant 0 : index
    %c0_15 = arith.constant 0 : index
    %c0_16 = arith.constant 0 : index
    %32 = vector.load %arg4[%c0_14, %c0_15, %c0_16] : memref<3x12x8xbf16, #tpu.memory_space<vmem>>, vector<1x12x8xbf16>
    %33 = vector.shape_cast %32 : vector<1x12x8xbf16> to vector<12x8xbf16>
    %cst_17 = arith.constant dense<0.000000e+00> : vector<256x8xf32>
    %34 = tpu.matmul %31, %33, %cst_17 {dimension_numbers = #tpu.dot_dimension_numbers<[1], [0], [0], [1], [0, 0, 1, 1], [], []>} : vector<256x12xbf16>, vector<12x8xbf16>, vector<256x8xf32> -> vector<256x8xf32>
    %c0_18 = arith.constant 0 : index
    %c0_19 = arith.constant 0 : index
    %35 = vector.load %arg14[%c0_18, %c0_19] : memref<256x8xf32, #tpu.memory_space<vmem>>, vector<256x8xf32>
    tpu.vector_store %arg14[%c0_18, %c0_19], %34 {strides = array<i32>} : memref<256x8xf32, #tpu.memory_space<vmem>>, vector<256x8xf32>,
    %36 = vector.extract_strided_slice %25 {offsets = [0, 1, 0], sizes = [18, 16, 4], strides = [1, 1, 1]} : vector<18x18x4xbf16> to vector<18x16x4xbf16>
    %37 = vector.extract_strided_slice %36 {offsets = [0, 0, 0], sizes = [16, 16, 4], strides = [1, 1, 1]} : vector<18x16x4xbf16> to vector<16x16x4xbf16>
    %38 = vector.extract_strided_slice %36 {offsets = [1, 0, 0], sizes = [16, 16, 4], strides = [1, 1, 1]} : vector<18x16x4xbf16> to vector<16x16x4xbf16>
    %39 = vector.extract_strided_slice %36 {offsets = [2, 0, 0], sizes = [16, 16, 4], strides = [1, 1, 1]} : vector<18x16x4xbf16> to vector<16x16x4xbf16>
    %40 = tpu.concatenate %37, %38, %39 in 2 : vector<16x16x4xbf16>, vector<16x16x4xbf16>, vector<16x16x4xbf16> -> vector<16x16x12xbf16>
    %41 = vector.shape_cast %40 : vector<16x16x12xbf16> to vector<256x12xbf16>
    %c1 = arith.constant 1 : index
    %c0_20 = arith.constant 0 : index
    %c0_21 = arith.constant 0 : index
    %42 = vector.load %arg4[%c1, %c0_20, %c0_21] : memref<3x12x8xbf16, #tpu.memory_space<vmem>>, vector<1x12x8xbf16>
    %43 = vector.shape_cast %42 : vector<1x12x8xbf16> to vector<12x8xbf16>
    %cst_22 = arith.constant dense<0.000000e+00> : vector<256x8xf32>
    %44 = tpu.matmul %41, %43, %cst_22 {dimension_numbers = #tpu.dot_dimension_numbers<[1], [0], [0], [1], [0, 0, 1, 1], [], []>} : vector<256x12xbf16>, vector<12x8xbf16>, vector<256x8xf32> -> vector<256x8xf32>
    %c0_23 = arith.constant 0 : index
    %c0_24 = arith.constant 0 : index
    %45 = vector.load %arg14[%c0_23, %c0_24] : memref<256x8xf32, #tpu.memory_space<vmem>>, vector<256x8xf32>
    %46 = arith.addf %45, %44 : vector<256x8xf32>
    %c0_25 = arith.constant 0 : index
    %c0_26 = arith.constant 0 : index
    %47 = vector.load %arg14[%c0_25, %c0_26] : memref<256x8xf32, #tpu.memory_space<vmem>>, vector<256x8xf32>
    tpu.vector_store %arg14[%c0_25, %c0_26], %46 {strides = array<i32>} : memref<256x8xf32, #tpu.memory_space<vmem>>, vector<256x8xf32>,
    %48 = vector.extract_strided_slice %25 {offsets = [0, 2, 0], sizes = [18, 16, 4], strides = [1, 1, 1]} : vector<18x18x4xbf16> to vector<18x16x4xbf16>
    %49 = vector.extract_strided_slice %48 {offsets = [0, 0, 0], sizes = [16, 16, 4], strides = [1, 1, 1]} : vector<18x16x4xbf16> to vector<16x16x4xbf16>
    %50 = vector.extract_strided_slice %48 {offsets = [1, 0, 0], sizes = [16, 16, 4], strides = [1, 1, 1]} : vector<18x16x4xbf16> to vector<16x16x4xbf16>
    %51 = vector.extract_strided_slice %48 {offsets = [2, 0, 0], sizes = [16, 16, 4], strides = [1, 1, 1]} : vector<18x16x4xbf16> to vector<16x16x4xbf16>
    %52 = tpu.concatenate %49, %50, %51 in 2 : vector<16x16x4xbf16>, vector<16x16x4xbf16>, vector<16x16x4xbf16> -> vector<16x16x12xbf16>
    %53 = vector.shape_cast %52 : vector<16x16x12xbf16> to vector<256x12xbf16>
    %c2 = arith.constant 2 : index
    %c0_27 = arith.constant 0 : index
    %c0_28 = arith.constant 0 : index
    %54 = vector.load %arg4[%c2, %c0_27, %c0_28] : memref<3x12x8xbf16, #tpu.memory_space<vmem>>, vector<1x12x8xbf16>
    %55 = vector.shape_cast %54 : vector<1x12x8xbf16> to vector<12x8xbf16>
    %cst_29 = arith.constant dense<0.000000e+00> : vector<256x8xf32>
    %56 = tpu.matmul %53, %55, %cst_29 {dimension_numbers = #tpu.dot_dimension_numbers<[1], [0], [0], [1], [0, 0, 1, 1], [], []>} : vector<256x12xbf16>, vector<12x8xbf16>, vector<256x8xf32> -> vector<256x8xf32>
    %c0_30 = arith.constant 0 : index
    %c0_31 = arith.constant 0 : index
    %57 = vector.load %arg14[%c0_30, %c0_31] : memref<256x8xf32, #tpu.memory_space<vmem>>, vector<256x8xf32>
    %58 = arith.addf %57, %56 : vector<256x8xf32>
    %c0_32 = arith.constant 0 : index
    %c0_33 = arith.constant 0 : index
    %59 = vector.load %arg14[%c0_32, %c0_33] : memref<256x8xf32, #tpu.memory_space<vmem>>, vector<256x8xf32>
    tpu.vector_store %arg14[%c0_32, %c0_33], %58 {strides = array<i32>} : memref<256x8xf32, #tpu.memory_space<vmem>>, vector<256x8xf32>,
    %c0_34 = arith.constant 0 : index
    %c0_35 = arith.constant 0 : index
    %60 = vector.load %arg14[%c0_34, %c0_35] : memref<256x8xf32, #tpu.memory_space<vmem>>, vector<256x8xf32>
    %c0_36 = arith.constant 0 : index
    %c0_37 = arith.constant 0 : index
    %61 = vector.load %arg5[%c0_36, %c0_37] : memref<1x8xf32, #tpu.memory_space<vmem>>, vector<1x8xf32>
    %62 = vector.broadcast %61 : vector<1x8xf32> to vector<256x8xf32>
    %63 = arith.addf %60, %62 : vector<256x8xf32>
    %cst_38 = arith.constant 0.000000e+00 : f32
    %64 = vector.broadcast %cst_38 : f32 to vector<256x8xf32>
    %65 = arith.maximumf %63, %64 : vector<256x8xf32>
    %66 = vector.shape_cast %65 : vector<256x8xf32> to vector<16x16x8xf32>
    %67 = arith.truncf %66 : vector<16x16x8xf32> to vector<16x16x8xbf16>
    %c0_39 = arith.constant 0 : index
    %c0_40 = arith.constant 0 : index
    %c0_41 = arith.constant 0 : index
    %c0_42 = arith.constant 0 : index
    %68 = vector.load %arg11[%c0_39, %c0_40, %c0_41, %c0_42] : memref<1x16x16x8xbf16, #tpu.memory_space<vmem>>, vector<1x16x16x8xbf16>
    %69 = vector.shape_cast %68 : vector<1x16x16x8xbf16> to vector<16x16x8xbf16>
    %70 = vector.shape_cast %67 : vector<16x16x8xbf16> to vector<1x16x16x8xbf16>
    tpu.vector_store %arg11[%c0_39, %c0_40, %c0_41, %c0_42], %70 {strides = array<i32>} : memref<1x16x16x8xbf16, #tpu.memory_space<vmem>>, vector<1x16x16x8xbf16>,
    %cst_43 = arith.constant 0.000000e+00 : bf16
    %71 = vector.broadcast %cst_43 : bf16 to vector<2x16x4xbf16>
    %cst_44 = arith.constant 0.000000e+00 : bf16
    %72 = vector.broadcast %cst_44 : bf16 to vector<20x2x4xbf16>
    %73 = tpu.concatenate %71, %21, %71 in 0 : vector<2x16x4xbf16>, vector<16x16x4xbf16>, vector<2x16x4xbf16> -> vector<20x16x4xbf16>
    %74 = tpu.concatenate %72, %73, %72 in 1 : vector<20x2x4xbf16>, vector<20x16x4xbf16>, vector<20x2x4xbf16> -> vector<20x20x4xbf16>
    %75 = vector.extract_strided_slice %74 {offsets = [0, 0, 0], sizes = [20, 16, 4], strides = [1, 1, 1]} : vector<20x20x4xbf16> to vector<20x16x4xbf16>
    %76 = vector.extract_strided_slice %75 {offsets = [0, 0, 0], sizes = [16, 16, 4], strides = [1, 1, 1]} : vector<20x16x4xbf16> to vector<16x16x4xbf16>
    %77 = vector.extract_strided_slice %75 {offsets = [1, 0, 0], sizes = [16, 16, 4], strides = [1, 1, 1]} : vector<20x16x4xbf16> to vector<16x16x4xbf16>
    %78 = vector.extract_strided_slice %75 {offsets = [2, 0, 0], sizes = [16, 16, 4], strides = [1, 1, 1]} : vector<20x16x4xbf16> to vector<16x16x4xbf16>
    %79 = vector.extract_strided_slice %75 {offsets = [3, 0, 0], sizes = [16, 16, 4], strides = [1, 1, 1]} : vector<20x16x4xbf16> to vector<16x16x4xbf16>
    %80 = vector.extract_strided_slice %75 {offsets = [4, 0, 0], sizes = [16, 16, 4], strides = [1, 1, 1]} : vector<20x16x4xbf16> to vector<16x16x4xbf16>
    %81 = tpu.concatenate %76, %77, %78, %79, %80 in 2 : vector<16x16x4xbf16>, vector<16x16x4xbf16>, vector<16x16x4xbf16>, vector<16x16x4xbf16>, vector<16x16x4xbf16> -> vector<16x16x20xbf16>
    %82 = vector.shape_cast %81 : vector<16x16x20xbf16> to vector<256x20xbf16>
    %c0_45 = arith.constant 0 : index
    %c0_46 = arith.constant 0 : index
    %c0_47 = arith.constant 0 : index
    %83 = vector.load %arg6[%c0_45, %c0_46, %c0_47] : memref<5x20x8xbf16, #tpu.memory_space<vmem>>, vector<1x20x8xbf16>
    %84 = vector.shape_cast %83 : vector<1x20x8xbf16> to vector<20x8xbf16>
    %cst_48 = arith.constant dense<0.000000e+00> : vector<256x8xf32>
    %85 = tpu.matmul %82, %84, %cst_48 {dimension_numbers = #tpu.dot_dimension_numbers<[1], [0], [0], [1], [0, 0, 1, 1], [], []>} : vector<256x20xbf16>, vector<20x8xbf16>, vector<256x8xf32> -> vector<256x8xf32>
    %c0_49 = arith.constant 0 : index
    %c0_50 = arith.constant 0 : index
    %86 = vector.load %arg15[%c0_49, %c0_50] : memref<256x8xf32, #tpu.memory_space<vmem>>, vector<256x8xf32>
    tpu.vector_store %arg15[%c0_49, %c0_50], %85 {strides = array<i32>} : memref<256x8xf32, #tpu.memory_space<vmem>>, vector<256x8xf32>,
    %87 = vector.extract_strided_slice %74 {offsets = [0, 1, 0], sizes = [20, 16, 4], strides = [1, 1, 1]} : vector<20x20x4xbf16> to vector<20x16x4xbf16>
    %88 = vector.extract_strided_slice %87 {offsets = [0, 0, 0], sizes = [16, 16, 4], strides = [1, 1, 1]} : vector<20x16x4xbf16> to vector<16x16x4xbf16>
    %89 = vector.extract_strided_slice %87 {offsets = [1, 0, 0], sizes = [16, 16, 4], strides = [1, 1, 1]} : vector<20x16x4xbf16> to vector<16x16x4xbf16>
    %90 = vector.extract_strided_slice %87 {offsets = [2, 0, 0], sizes = [16, 16, 4], strides = [1, 1, 1]} : vector<20x16x4xbf16> to vector<16x16x4xbf16>
    %91 = vector.extract_strided_slice %87 {offsets = [3, 0, 0], sizes = [16, 16, 4], strides = [1, 1, 1]} : vector<20x16x4xbf16> to vector<16x16x4xbf16>
    %92 = vector.extract_strided_slice %87 {offsets = [4, 0, 0], sizes = [16, 16, 4], strides = [1, 1, 1]} : vector<20x16x4xbf16> to vector<16x16x4xbf16>
    %93 = tpu.concatenate %88, %89, %90, %91, %92 in 2 : vector<16x16x4xbf16>, vector<16x16x4xbf16>, vector<16x16x4xbf16>, vector<16x16x4xbf16>, vector<16x16x4xbf16> -> vector<16x16x20xbf16>
    %94 = vector.shape_cast %93 : vector<16x16x20xbf16> to vector<256x20xbf16>
    %c1_51 = arith.constant 1 : index
    %c0_52 = arith.constant 0 : index
    %c0_53 = arith.constant 0 : index
    %95 = vector.load %arg6[%c1_51, %c0_52, %c0_53] : memref<5x20x8xbf16, #tpu.memory_space<vmem>>, vector<1x20x8xbf16>
    %96 = vector.shape_cast %95 : vector<1x20x8xbf16> to vector<20x8xbf16>
    %cst_54 = arith.constant dense<0.000000e+00> : vector<256x8xf32>
    %97 = tpu.matmul %94, %96, %cst_54 {dimension_numbers = #tpu.dot_dimension_numbers<[1], [0], [0], [1], [0, 0, 1, 1], [], []>} : vector<256x20xbf16>, vector<20x8xbf16>, vector<256x8xf32> -> vector<256x8xf32>
    %c0_55 = arith.constant 0 : index
    %c0_56 = arith.constant 0 : index
    %98 = vector.load %arg15[%c0_55, %c0_56] : memref<256x8xf32, #tpu.memory_space<vmem>>, vector<256x8xf32>
    %99 = arith.addf %98, %97 : vector<256x8xf32>
    %c0_57 = arith.constant 0 : index
    %c0_58 = arith.constant 0 : index
    %100 = vector.load %arg15[%c0_57, %c0_58] : memref<256x8xf32, #tpu.memory_space<vmem>>, vector<256x8xf32>
    tpu.vector_store %arg15[%c0_57, %c0_58], %99 {strides = array<i32>} : memref<256x8xf32, #tpu.memory_space<vmem>>, vector<256x8xf32>,
    %101 = vector.extract_strided_slice %74 {offsets = [0, 2, 0], sizes = [20, 16, 4], strides = [1, 1, 1]} : vector<20x20x4xbf16> to vector<20x16x4xbf16>
    %102 = vector.extract_strided_slice %101 {offsets = [0, 0, 0], sizes = [16, 16, 4], strides = [1, 1, 1]} : vector<20x16x4xbf16> to vector<16x16x4xbf16>
    %103 = vector.extract_strided_slice %101 {offsets = [1, 0, 0], sizes = [16, 16, 4], strides = [1, 1, 1]} : vector<20x16x4xbf16> to vector<16x16x4xbf16>
    %104 = vector.extract_strided_slice %101 {offsets = [2, 0, 0], sizes = [16, 16, 4], strides = [1, 1, 1]} : vector<20x16x4xbf16> to vector<16x16x4xbf16>
    %105 = vector.extract_strided_slice %101 {offsets = [3, 0, 0], sizes = [16, 16, 4], strides = [1, 1, 1]} : vector<20x16x4xbf16> to vector<16x16x4xbf16>
    %106 = vector.extract_strided_slice %101 {offsets = [4, 0, 0], sizes = [16, 16, 4], strides = [1, 1, 1]} : vector<20x16x4xbf16> to vector<16x16x4xbf16>
    %107 = tpu.concatenate %102, %103, %104, %105, %106 in 2 : vector<16x16x4xbf16>, vector<16x16x4xbf16>, vector<16x16x4xbf16>, vector<16x16x4xbf16>, vector<16x16x4xbf16> -> vector<16x16x20xbf16>
    %108 = vector.shape_cast %107 : vector<16x16x20xbf16> to vector<256x20xbf16>
    %c2_59 = arith.constant 2 : index
    %c0_60 = arith.constant 0 : index
    %c0_61 = arith.constant 0 : index
    %109 = vector.load %arg6[%c2_59, %c0_60, %c0_61] : memref<5x20x8xbf16, #tpu.memory_space<vmem>>, vector<1x20x8xbf16>
    %110 = vector.shape_cast %109 : vector<1x20x8xbf16> to vector<20x8xbf16>
    %cst_62 = arith.constant dense<0.000000e+00> : vector<256x8xf32>
    %111 = tpu.matmul %108, %110, %cst_62 {dimension_numbers = #tpu.dot_dimension_numbers<[1], [0], [0], [1], [0, 0, 1, 1], [], []>} : vector<256x20xbf16>, vector<20x8xbf16>, vector<256x8xf32> -> vector<256x8xf32>
    %c0_63 = arith.constant 0 : index
    %c0_64 = arith.constant 0 : index
    %112 = vector.load %arg15[%c0_63, %c0_64] : memref<256x8xf32, #tpu.memory_space<vmem>>, vector<256x8xf32>
    %113 = arith.addf %112, %111 : vector<256x8xf32>
    %c0_65 = arith.constant 0 : index
    %c0_66 = arith.constant 0 : index
    %114 = vector.load %arg15[%c0_65, %c0_66] : memref<256x8xf32, #tpu.memory_space<vmem>>, vector<256x8xf32>
    tpu.vector_store %arg15[%c0_65, %c0_66], %113 {strides = array<i32>} : memref<256x8xf32, #tpu.memory_space<vmem>>, vector<256x8xf32>,
    %115 = vector.extract_strided_slice %74 {offsets = [0, 3, 0], sizes = [20, 16, 4], strides = [1, 1, 1]} : vector<20x20x4xbf16> to vector<20x16x4xbf16>
    %116 = vector.extract_strided_slice %115 {offsets = [0, 0, 0], sizes = [16, 16, 4], strides = [1, 1, 1]} : vector<20x16x4xbf16> to vector<16x16x4xbf16>
    %117 = vector.extract_strided_slice %115 {offsets = [1, 0, 0], sizes = [16, 16, 4], strides = [1, 1, 1]} : vector<20x16x4xbf16> to vector<16x16x4xbf16>
    %118 = vector.extract_strided_slice %115 {offsets = [2, 0, 0], sizes = [16, 16, 4], strides = [1, 1, 1]} : vector<20x16x4xbf16> to vector<16x16x4xbf16>
    %119 = vector.extract_strided_slice %115 {offsets = [3, 0, 0], sizes = [16, 16, 4], strides = [1, 1, 1]} : vector<20x16x4xbf16> to vector<16x16x4xbf16>
    %120 = vector.extract_strided_slice %115 {offsets = [4, 0, 0], sizes = [16, 16, 4], strides = [1, 1, 1]} : vector<20x16x4xbf16> to vector<16x16x4xbf16>
    %121 = tpu.concatenate %116, %117, %118, %119, %120 in 2 : vector<16x16x4xbf16>, vector<16x16x4xbf16>, vector<16x16x4xbf16>, vector<16x16x4xbf16>, vector<16x16x4xbf16> -> vector<16x16x20xbf16>
    %122 = vector.shape_cast %121 : vector<16x16x20xbf16> to vector<256x20xbf16>
    %c3 = arith.constant 3 : index
    %c0_67 = arith.constant 0 : index
    %c0_68 = arith.constant 0 : index
    %123 = vector.load %arg6[%c3, %c0_67, %c0_68] : memref<5x20x8xbf16, #tpu.memory_space<vmem>>, vector<1x20x8xbf16>
    %124 = vector.shape_cast %123 : vector<1x20x8xbf16> to vector<20x8xbf16>
    %cst_69 = arith.constant dense<0.000000e+00> : vector<256x8xf32>
    %125 = tpu.matmul %122, %124, %cst_69 {dimension_numbers = #tpu.dot_dimension_numbers<[1], [0], [0], [1], [0, 0, 1, 1], [], []>} : vector<256x20xbf16>, vector<20x8xbf16>, vector<256x8xf32> -> vector<256x8xf32>
    %c0_70 = arith.constant 0 : index
    %c0_71 = arith.constant 0 : index
    %126 = vector.load %arg15[%c0_70, %c0_71] : memref<256x8xf32, #tpu.memory_space<vmem>>, vector<256x8xf32>
    %127 = arith.addf %126, %125 : vector<256x8xf32>
    %c0_72 = arith.constant 0 : index
    %c0_73 = arith.constant 0 : index
    %128 = vector.load %arg15[%c0_72, %c0_73] : memref<256x8xf32, #tpu.memory_space<vmem>>, vector<256x8xf32>
    tpu.vector_store %arg15[%c0_72, %c0_73], %127 {strides = array<i32>} : memref<256x8xf32, #tpu.memory_space<vmem>>, vector<256x8xf32>,
    %129 = vector.extract_strided_slice %74 {offsets = [0, 4, 0], sizes = [20, 16, 4], strides = [1, 1, 1]} : vector<20x20x4xbf16> to vector<20x16x4xbf16>
    %130 = vector.extract_strided_slice %129 {offsets = [0, 0, 0], sizes = [16, 16, 4], strides = [1, 1, 1]} : vector<20x16x4xbf16> to vector<16x16x4xbf16>
    %131 = vector.extract_strided_slice %129 {offsets = [1, 0, 0], sizes = [16, 16, 4], strides = [1, 1, 1]} : vector<20x16x4xbf16> to vector<16x16x4xbf16>
    %132 = vector.extract_strided_slice %129 {offsets = [2, 0, 0], sizes = [16, 16, 4], strides = [1, 1, 1]} : vector<20x16x4xbf16> to vector<16x16x4xbf16>
    %133 = vector.extract_strided_slice %129 {offsets = [3, 0, 0], sizes = [16, 16, 4], strides = [1, 1, 1]} : vector<20x16x4xbf16> to vector<16x16x4xbf16>
    %134 = vector.extract_strided_slice %129 {offsets = [4, 0, 0], sizes = [16, 16, 4], strides = [1, 1, 1]} : vector<20x16x4xbf16> to vector<16x16x4xbf16>
    %135 = tpu.concatenate %130, %131, %132, %133, %134 in 2 : vector<16x16x4xbf16>, vector<16x16x4xbf16>, vector<16x16x4xbf16>, vector<16x16x4xbf16>, vector<16x16x4xbf16> -> vector<16x16x20xbf16>
    %136 = vector.shape_cast %135 : vector<16x16x20xbf16> to vector<256x20xbf16>
    %c4 = arith.constant 4 : index
    %c0_74 = arith.constant 0 : index
    %c0_75 = arith.constant 0 : index
    %137 = vector.load %arg6[%c4, %c0_74, %c0_75] : memref<5x20x8xbf16, #tpu.memory_space<vmem>>, vector<1x20x8xbf16>
    %138 = vector.shape_cast %137 : vector<1x20x8xbf16> to vector<20x8xbf16>
    %cst_76 = arith.constant dense<0.000000e+00> : vector<256x8xf32>
    %139 = tpu.matmul %136, %138, %cst_76 {dimension_numbers = #tpu.dot_dimension_numbers<[1], [0], [0], [1], [0, 0, 1, 1], [], []>} : vector<256x20xbf16>, vector<20x8xbf16>, vector<256x8xf32> -> vector<256x8xf32>
    %c0_77 = arith.constant 0 : index
    %c0_78 = arith.constant 0 : index
    %140 = vector.load %arg15[%c0_77, %c0_78] : memref<256x8xf32, #tpu.memory_space<vmem>>, vector<256x8xf32>
    %141 = arith.addf %140, %139 : vector<256x8xf32>
    %c0_79 = arith.constant 0 : index
    %c0_80 = arith.constant 0 : index
    %142 = vector.load %arg15[%c0_79, %c0_80] : memref<256x8xf32, #tpu.memory_space<vmem>>, vector<256x8xf32>
    tpu.vector_store %arg15[%c0_79, %c0_80], %141 {strides = array<i32>} : memref<256x8xf32, #tpu.memory_space<vmem>>, vector<256x8xf32>,
    %c0_81 = arith.constant 0 : index
    %c0_82 = arith.constant 0 : index
    %143 = vector.load %arg15[%c0_81, %c0_82] : memref<256x8xf32, #tpu.memory_space<vmem>>, vector<256x8xf32>
    %c0_83 = arith.constant 0 : index
    %c0_84 = arith.constant 0 : index
    %144 = vector.load %arg7[%c0_83, %c0_84] : memref<1x8xf32, #tpu.memory_space<vmem>>, vector<1x8xf32>
    %145 = vector.broadcast %144 : vector<1x8xf32> to vector<256x8xf32>
    %146 = arith.addf %143, %145 : vector<256x8xf32>
    %cst_85 = arith.constant 0.000000e+00 : f32
    %147 = vector.broadcast %cst_85 : f32 to vector<256x8xf32>
    %148 = arith.maximumf %146, %147 : vector<256x8xf32>
    %149 = vector.shape_cast %148 : vector<256x8xf32> to vector<16x16x8xf32>
    %150 = arith.truncf %149 : vector<16x16x8xf32> to vector<16x16x8xbf16>
    %c0_86 = arith.constant 0 : index
    %c0_87 = arith.constant 0 : index
    %c0_88 = arith.constant 0 : index
    %c0_89 = arith.constant 0 : index
    %151 = vector.load %arg12[%c0_86, %c0_87, %c0_88, %c0_89] : memref<1x16x16x8xbf16, #tpu.memory_space<vmem>>, vector<1x16x16x8xbf16>
    %152 = vector.shape_cast %151 : vector<1x16x16x8xbf16> to vector<16x16x8xbf16>
    %153 = vector.shape_cast %150 : vector<16x16x8xbf16> to vector<1x16x16x8xbf16>
    tpu.vector_store %arg12[%c0_86, %c0_87, %c0_88, %c0_89], %153 {strides = array<i32>} : memref<1x16x16x8xbf16, #tpu.memory_space<vmem>>, vector<1x16x16x8xbf16>,
    %154 = vector.extract_strided_slice %1 {offsets = [1, 0, 0], sizes = [15, 16, 4], strides = [1, 1, 1]} : vector<16x16x4xbf16> to vector<15x16x4xbf16>
    %155 = vector.extract_strided_slice %1 {offsets = [15, 0, 0], sizes = [1, 16, 4], strides = [1, 1, 1]} : vector<16x16x4xbf16> to vector<1x16x4xbf16>
    %156 = tpu.concatenate %154, %155 in 0 : vector<15x16x4xbf16>, vector<1x16x4xbf16> -> vector<16x16x4xbf16>
    %157 = vector.extract_strided_slice %1 {offsets = [0, 0, 0], sizes = [1, 16, 4], strides = [1, 1, 1]} : vector<16x16x4xbf16> to vector<1x16x4xbf16>
    %158 = vector.extract_strided_slice %1 {offsets = [0, 0, 0], sizes = [15, 16, 4], strides = [1, 1, 1]} : vector<16x16x4xbf16> to vector<15x16x4xbf16>
    %159 = tpu.concatenate %157, %158 in 0 : vector<1x16x4xbf16>, vector<15x16x4xbf16> -> vector<16x16x4xbf16>
    %160 = arith.maximumf %156, %159 : vector<16x16x4xbf16>
    %161 = arith.maximumf %1, %160 : vector<16x16x4xbf16>
    %162 = vector.extract_strided_slice %161 {offsets = [0, 0, 0], sizes = [16, 1, 4], strides = [1, 1, 1]} : vector<16x16x4xbf16> to vector<16x1x4xbf16>
    %163 = vector.extract_strided_slice %161 {offsets = [0, 0, 0], sizes = [16, 15, 4], strides = [1, 1, 1]} : vector<16x16x4xbf16> to vector<16x15x4xbf16>
    %164 = tpu.concatenate %162, %163 in 1 : vector<16x1x4xbf16>, vector<16x15x4xbf16> -> vector<16x16x4xbf16>
    %165 = vector.extract_strided_slice %161 {offsets = [0, 1, 0], sizes = [16, 15, 4], strides = [1, 1, 1]} : vector<16x16x4xbf16> to vector<16x15x4xbf16>
    %166 = vector.extract_strided_slice %161 {offsets = [0, 15, 0], sizes = [16, 1, 4], strides = [1, 1, 1]} : vector<16x16x4xbf16> to vector<16x1x4xbf16>
    %167 = tpu.concatenate %165, %166 in 1 : vector<16x15x4xbf16>, vector<16x1x4xbf16> -> vector<16x16x4xbf16>
    %168 = arith.maximumf %164, %167 : vector<16x16x4xbf16>
    %169 = arith.maximumf %161, %168 : vector<16x16x4xbf16>
    %170 = vector.shape_cast %169 : vector<16x16x4xbf16> to vector<256x4xbf16>
    %c0_90 = arith.constant 0 : index
    %c0_91 = arith.constant 0 : index
    %171 = vector.load %arg8[%c0_90, %c0_91] : memref<4x8xbf16, #tpu.memory_space<vmem>>, vector<4x8xbf16>
    %cst_92 = arith.constant dense<0.000000e+00> : vector<256x8xf32>
    %172 = tpu.matmul %170, %171, %cst_92 {dimension_numbers = #tpu.dot_dimension_numbers<[1], [0], [0], [1], [0, 0, 1, 1], [], []>} : vector<256x4xbf16>, vector<4x8xbf16>, vector<256x8xf32> -> vector<256x8xf32>
    %c0_93 = arith.constant 0 : index
    %c0_94 = arith.constant 0 : index
    %173 = vector.load %arg9[%c0_93, %c0_94] : memref<1x8xf32, #tpu.memory_space<vmem>>, vector<1x8xf32>
    %174 = vector.broadcast %173 : vector<1x8xf32> to vector<256x8xf32>
    %175 = arith.addf %172, %174 : vector<256x8xf32>
    %cst_95 = arith.constant 0.000000e+00 : f32
    %176 = vector.broadcast %cst_95 : f32 to vector<256x8xf32>
    %177 = arith.maximumf %175, %176 : vector<256x8xf32>
    %178 = vector.shape_cast %177 : vector<256x8xf32> to vector<16x16x8xf32>
    %179 = arith.truncf %178 : vector<16x16x8xf32> to vector<16x16x8xbf16>
    %c0_96 = arith.constant 0 : index
    %c0_97 = arith.constant 0 : index
    %c0_98 = arith.constant 0 : index
    %c0_99 = arith.constant 0 : index
    %180 = vector.load %arg13[%c0_96, %c0_97, %c0_98, %c0_99] : memref<1x16x16x8xbf16, #tpu.memory_space<vmem>>, vector<1x16x16x8xbf16>
    %181 = vector.shape_cast %180 : vector<1x16x16x8xbf16> to vector<16x16x8xbf16>
    %182 = vector.shape_cast %179 : vector<16x16x8xbf16> to vector<1x16x16x8xbf16>
    tpu.vector_store %arg13[%c0_96, %c0_97, %c0_98, %c0_99], %182 {strides = array<i32>} : memref<1x16x16x8xbf16, #tpu.memory_space<vmem>>, vector<1x16x16x8xbf16>,
    return
  }
  func.func @transform_0(%arg0: i32) -> (i32, i32, i32, i32) {
    %c0_i32 = arith.constant 0 : i32
    %c0_i32_0 = arith.constant 0 : i32
    %c0_i32_1 = arith.constant 0 : i32
    %c0_i32_2 = arith.constant 0 : i32
    return %arg0, %c0_i32, %c0_i32_0, %c0_i32_1 : i32, i32, i32, i32
  }
  func.func @transform_1(%arg0: i32) -> (i32, i32) {
    %c0_i32 = arith.constant 0 : i32
    %c0_i32_0 = arith.constant 0 : i32
    %c0_i32_1 = arith.constant 0 : i32
    return %c0_i32, %c0_i32_0 : i32, i32
  }
  func.func @transform_2(%arg0: i32) -> (i32, i32) {
    %c0_i32 = arith.constant 0 : i32
    %c0_i32_0 = arith.constant 0 : i32
    %c0_i32_1 = arith.constant 0 : i32
    return %c0_i32, %c0_i32_0 : i32, i32
  }
  func.func @transform_3(%arg0: i32) -> (i32, i32, i32) {
    %c0_i32 = arith.constant 0 : i32
    %c0_i32_0 = arith.constant 0 : i32
    %c0_i32_1 = arith.constant 0 : i32
    %c0_i32_2 = arith.constant 0 : i32
    return %c0_i32, %c0_i32_0, %c0_i32_1 : i32, i32, i32
  }
  func.func @transform_4(%arg0: i32) -> (i32, i32) {
    %c0_i32 = arith.constant 0 : i32
    %c0_i32_0 = arith.constant 0 : i32
    %c0_i32_1 = arith.constant 0 : i32
    return %c0_i32, %c0_i32_0 : i32, i32
  }
  func.func @transform_5(%arg0: i32) -> (i32, i32, i32) {
    %c0_i32 = arith.constant 0 : i32
    %c0_i32_0 = arith.constant 0 : i32
    %c0_i32_1 = arith.constant 0 : i32
    %c0_i32_2 = arith.constant 0 : i32
    return %c0_i32, %c0_i32_0, %c0_i32_1 : i32, i32, i32
  }
  func.func @transform_6(%arg0: i32) -> (i32, i32) {
    %c0_i32 = arith.constant 0 : i32
    %c0_i32_0 = arith.constant 0 : i32
    %c0_i32_1 = arith.constant 0 : i32
    return %c0_i32, %c0_i32_0 : i32, i32
  }
  func.func @transform_7(%arg0: i32) -> (i32, i32) {
    %c0_i32 = arith.constant 0 : i32
    %c0_i32_0 = arith.constant 0 : i32
    %c0_i32_1 = arith.constant 0 : i32
    return %c0_i32, %c0_i32_0 : i32, i32
  }
  func.func @transform_8(%arg0: i32) -> (i32, i32) {
    %c0_i32 = arith.constant 0 : i32
    %c0_i32_0 = arith.constant 0 : i32
    %c0_i32_1 = arith.constant 0 : i32
    return %c0_i32, %c0_i32_0 : i32, i32
  }
  func.func @transform_9(%arg0: i32) -> (i32, i32, i32, i32) {
    %c0_i32 = arith.constant 0 : i32
    %c0_i32_0 = arith.constant 0 : i32
    %c0_i32_1 = arith.constant 0 : i32
    %c0_i32_2 = arith.constant 0 : i32
    return %arg0, %c0_i32, %c0_i32_0, %c0_i32_1 : i32, i32, i32, i32
  }
  func.func @transform_10(%arg0: i32) -> (i32, i32, i32, i32) {
    %c0_i32 = arith.constant 0 : i32
    %c0_i32_0 = arith.constant 0 : i32
    %c0_i32_1 = arith.constant 0 : i32
    %c0_i32_2 = arith.constant 0 : i32
    return %arg0, %c0_i32, %c0_i32_0, %c0_i32_1 : i32, i32, i32, i32
  }
  func.func @transform_11(%arg0: i32) -> (i32, i32, i32, i32) {
    %c0_i32 = arith.constant 0 : i32
    %c0_i32_0 = arith.constant 0 : i32
    %c0_i32_1 = arith.constant 0 : i32
    %c0_i32_2 = arith.constant 0 : i32
    return %arg0, %c0_i32, %c0_i32_0, %c0_i32_1 : i32, i32, i32, i32
  }
  func.func @transform_12(%arg0: i32) -> (i32, i32, i32, i32) {
    %c0_i32 = arith.constant 0 : i32
    %c0_i32_0 = arith.constant 0 : i32
    %c0_i32_1 = arith.constant 0 : i32
    %c0_i32_2 = arith.constant 0 : i32
    return %arg0, %c0_i32, %c0_i32_0, %c0_i32_1 : i32, i32, i32, i32
  }
}

</mosaic_0001>

<bundles_post_ra>
// kernel: tpu_custom_call.1
= control target key start
LH: loop header
LB: loop body
LE: loop exit
PB: predicated region body
PF: predicated region fallthrough
CT: control target
= control target key end

     0   :  { %s8205_s21 = smov 0   ;;  %s11999_s0 = inlined_call_operand.vmem [shape: bf16[2,16,16,4], index: 0, kind: input, shape index: {}]   ;;  %s12000_s1 = inlined_call_operand.vmem [shape: bf16[4,16], index: 1, kind: input, shape index: {}]   ;;  %s12001_s2 = inlined_call_operand.vmem [shape: f32[1,16], index: 2, kind: input, shape index: {}]   ;;  %s12002_s3 = inlined_call_operand.vmem [shape: bf16[3,12,8], index: 3, kind: input, shape index: {}]   ;;  %s12003_s4 = inlined_call_operand.vmem [shape: f32[1,8], index: 4, kind: input, shape index: {}]   ;;  %s12004_s5 = inlined_call_operand.vmem [shape: bf16[5,20,8], index: 5, kind: input, shape index: {}]   ;;  %s12005_s6 = inlined_call_operand.vmem [shape: f32[1,8], index: 6, kind: input, shape index: {}]   ;;  %s12006_s7 = inlined_call_operand.vmem [shape: bf16[4,8], index: 7, kind: input, shape index: {}]   ;;  %s12007_s8 = inlined_call_operand.vmem [shape: f32[1,8], index: 8, kind: input, shape index: {}]   ;;  %s12008_s9 = inlined_call_operand.vmem [shape: bf16[2,16,16,8], index: 9, kind: output, shape index: {0}]   ;;  %s12009_s10 = inlined_call_operand.vmem [shape: bf16[2,16,16,8], index: 10, kind: output, shape index: {1}]   ;;  %s12010_s11 = inlined_call_operand.vmem [shape: bf16[2,16,16,8], index: 11, kind: output, shape index: {2}]   ;;  %s12011_s12 = inlined_call_operand.vmem [shape: bf16[2,16,16,8], index: 12, kind: output, shape index: {3}]  }
   0x1 LB: > { %s6955_s22 = sadd.s32 4294967295, %s8131_s21   ;;  %p6959_p0 = scmp.ge.s32.totalorder %s8131_s21, 1  ;;  %s8131_s21 = sphi %s8205_s21, %s23_s21  }
   0x2   : > { %p369_p1 = scmp.lt.s32.totalorder %s8131_s21, 3 }
   0x4   : > { %p370_p2 = pnand %p6959_p0, %p369_p1 }
   0x6   : > { %373 = sbr.rel (%p370_p2) target bundleno = 1215 (0x4bf), region = 56 }
   0xb   : > { %v484_v0 = vld [vmem:[%s12000_s1] sm:$0x3]  ;;  %vm621_vm0 = vcmask 1041408   ;;  %p426_p3 = scmp.lt.s32.totalorder %s6955_s22, 1  ;;  %vm572_vm1 = vcmask 31744   ;;  %vm1164_vm4 = vcmask 1040384  }
   0xc   : > { %8047 = vmatprep.subr.msk.bf16.mxu0 %vm621_vm0, %v484_v0  ;;  %v623_v1 = vsel %vm621_vm0, %v484_v0, 0  ;;  %vm1165_vm2 = vsmask.f32 256  ;;  %vm1761_vm3 = vsmask.f32 7424  ;;  %vm6131_vm5 = vcmask 1047552  }
   0xd   : > { %7698 = vmatpush3.bf16.msra.mxu0 %v623_v1  ;;  %s12690_s22 = smov (!%p426_p3, %s6955_s22), 1  ;;  %vm8299_vm6 = vmand %vm1164_vm4, %vm1165_vm2  ;;  %v12240_v44 = vmov 0  ;;  %v12243_v50 = vmov 0  ;;  %s8134_s29 = smov 4   ;;  %vm946_vm8 = vcmask 60416   ;;  %vm1403_vm9 = vcmask 1045504  }
   0xe   : > { %s8218_s25 = sshll.u32 %s12690_s22, 7  ;;  %v12241_v44 = vsel %vm8299_vm6, 4294967295, %v12240_v44  ;;  %vm8309_vm7 = vmand %vm6131_vm5, %vm1761_vm3  ;;  %s8135_s30 = smov 8   ;;  %vm1330_vm10 = vcmask 64512   ;;  %vm1370_vm11 = vcmask 97280   ;;  %vm2270_vm12 = vcmask 1046528  }
   0xf   : > { %s8224_s28 = scalar_lea.vmem %s11999_s0, %s8218_s25  ;;  %12242 = vst [vmem:[#allocation16_spill] sm:$0xff] %v12241_v44  ;;  %v12244_v50 = vsel %vm8309_vm7, 4294967295, %v12243_v50  ;;  %s8515_s17 = scalar_lea.vmem %s12008_s9, %s8218_s25  ;;  %vm3239_vm13 = vcmask 130048   ;;  %vm4664_vm14 = vsmask.f32 6400  ;;  %vm3283_vm15 = vcmask 162816  }
  0x10   : > { %v452_v2 = vld [vmem:[%s8224_s28] sm:$0xf]  ;;  %v453_v3 = vld [vmem:[%s8224_s28 + $0x4] sm:$0xf]  ;;  %v8229_v4 = vld [vmem:[%s8224_s28 + $0x8] sm:$0xf]  ;;  %s11764_s15 = scalar_lea.vmem %s12010_s11, %s8218_s25  ;;  %s11793_s23 = scalar_lea.vmem %s12011_s12, %s8218_s25 }
  0x11   : > { %12228 = vst [vmem:[#allocation4_spill] sm:$0xff] %v8229_v4  ;;  %v8232_v5 = vld [vmem:[%s8224_s28 + $0xc] sm:$0xf]  ;;  %v456_v6 = vld [vmem:[%s8224_s28 + $0x10] sm:$0xf]  ;;  %v6971_v8 = vcombine.low %v452_v2, %v453_v3  ;;  %v5763_v9 = vmax.bf16 %v8229_v4, %v452_v2  ;;  %12245 = vst [vmem:[#allocation17_spill] sm:$0xff] %v12244_v50 }
  0x12   : > { %12229 = vst [vmem:[#allocation5_spill] sm:$0xff] %v8232_v5  ;;  %v457_v7 = vld [vmem:[%s8224_s28 + $0x14] sm:$0xf]  ;;  %v5764_v10 = vmax.bf16 %v8232_v5, %v453_v3  ;;  %v5765_v11 = vmax.bf16 %v456_v6, %v452_v2  ;;  %v6972_v13 = vcombine.low %v8229_v4, %v8232_v5  ;;  %v8241_v14 = vld [vmem:[%s8224_s28 + $0x18] sm:$0xf]  ;;  %s8136_s18 = smov 116  }
  0x13   : > { %v5766_v12 = vmax.bf16 %v457_v7, %v453_v3  ;;  %12230 = vst [vmem:[#allocation6_spill] sm:$0xff] %v8241_v14  ;;  %7699 = vmatprep.mubr.msk.bf16.mxu0 %vm572_vm1, %v6971_v8  ;;  %v8244_v15 = vmax.bf16 %v5763_v9, %v452_v2  ;;  %v6973_v16 = vcombine.low %v456_v6, %v457_v7  ;;  %v8247_v17 = vld [vmem:[%s8224_s28 + $0x1c] sm:$0xf]  ;;  %v460_v23 = vld [vmem:[%s8224_s28 + $0x20] sm:$0xf]  ;;  %s8137_s19 = smov 120  }
  0x14   : > { %12232 = vst [vmem:[#allocation8_spill] sm:$0xff] %v8247_v17  ;;  %v8251_v19 = vmax.bf16 %v5764_v10, %v453_v3  ;;  %v8254_v20 = vmax.bf16 %v5765_v11, %v8229_v4  ;;  %7700 = vmatmul.mubr.msk.bf16.vlgmr.msra.gmra.mxu0 %vm572_vm1, %v6972_v13  ;;  %v461_v24 = vld [vmem:[%s8224_s28 + $0x24] sm:$0xf]  ;;  %v5769_v25 = vmax.bf16 %v460_v23, %v456_v6  ;;  %v8272_v29 = vld [vmem:[%s8224_s28 + $0x28] sm:$0xf]  ;;  %s8138_s20 = smov 12  }
  0x15   : > { %12231 = vst [vmem:[#allocation7_spill] sm:$0xff] %v8244_v15  ;;  %v8257_v21 = vmax.bf16 %v5766_v12, %v8232_v5  ;;  %7703 = vmatprep.mubr.msk.bf16.mxu0 %vm572_vm1, %v6973_v16  ;;  %v5770_v26 = vmax.bf16 %v461_v24, %v457_v7  ;;  %12235 = vst [vmem:[#allocation11_spill] sm:$0xff] %v8272_v29  ;;  %v8275_v30 = vld [vmem:[%s8224_s28 + $0x2c] sm:$0xf]  ;;  %v6974_v38 = vcombine.low %v8241_v14, %v8247_v17  ;;  %v464_v39 = vld [vmem:[%s8224_s28 + $0x30] sm:$0xf] }
  0x16   : > { %12233 = vst [vmem:[#allocation9_spill] sm:$0xff] %v8251_v19  ;;  %v8267_v27 = vcombine.low %v8244_v15, %v8251_v19  ;;  %12236 = vst [vmem:[#allocation12_spill] sm:$0xff] %v8275_v30  ;;  %v8278_v31 = vmax.bf16 %v5769_v25, %v8241_v14  ;;  %v6975_v41 = vcombine.low %v460_v23, %v461_v24  ;;  %v465_v49 = vld [vmem:[%s8224_s28 + $0x34] sm:$0xf]  ;;  %v8317_v53 = vld [vmem:[%s8224_s28 + $0x38] sm:$0xf] }
  0x17   : > { %v7259_v28 = vcombine.low %v8254_v20, %v8257_v21  ;;  %v8281_v32 = vmax.bf16 %v5770_v26, %v8247_v17  ;;  %v7275_v40 = vcombine.low %v8257_v21, %v8257_v21  ;;  %v5773_v43 = vmax.bf16 %v464_v39, %v460_v23  ;;  %12247 = vst [vmem:[#allocation19_spill] sm:$0xff] %v8317_v53  ;;  %v8320_v54 = vld [vmem:[%s8224_s28 + $0x3c] sm:$0xf]  ;;  %v8328_v58 = vld [vmem:[%s8224_s28 + $0x40] sm:$0xf]  ;;  %s8139_s22 = smov 16  }
  0x18   : > { %12234 = vst [vmem:[#allocation10_spill] sm:$0xff] %v8267_v27  ;;  %12237 = vst [vmem:[#allocation13_spill] sm:$0xff] %v8278_v31  ;;  %v12012_v35 = vshrl.u32 %v8267_v27, 16  ;;  %v12013_v46 = vshll.u32 %v8267_v27, 16  ;;  %v5774_v51 = vmax.bf16 %v465_v49, %v461_v24  ;;  %v469_v62 = vld [vmem:[%s8224_s28 + $0x44] sm:$0xf]  ;;  %v5777_v8 = vmax.bf16 %v8328_v58, %v464_v39 }
  0x19   : > { %12238 = vst [vmem:[#allocation14_spill] sm:$0xff] %v8281_v32  ;;  %v5915_v36 = vshrl.u32 %v7259_v28, 16  ;;  %v5918_v37 = vshll.u32 %v7259_v28, 16  ;;  %v8295_v42 = vcombine.low %v8278_v31, %v8281_v32  ;;  %v8314_v52 = vmax.bf16 %v5773_v43, %v8272_v29  ;;  %12248 = vst [vmem:[#allocation20_spill] sm:$0xff] %v8320_v54  ;;  %v8340_v63 = vld [vmem:[%s8224_s28 + $0x48] sm:$0xf] }
  0x1a   : > { %v5910_v45 = vrot.slane %v12012_v35, 7  ;;  %v8332_v59 = vmax.bf16 %v5774_v51, %v8275_v30  ;;  %12251 = vst [vmem:[#allocation23_spill] sm:$0xff] %v8340_v63  ;;  %v8343_v0 = vld [vmem:[%s8224_s28 + $0x4c] sm:$0xf]  ;;  %v6976_v9 = vcombine.low %v8272_v29, %v8275_v30  ;;  %v5778_v10 = vmax.bf16 %v469_v62, %v465_v49  ;;  %v472_v24 = vld [vmem:[%s8224_s28 + $0x50] sm:$0xf] }
  0x1b   : > { %12239 = vst [vmem:[#allocation15_spill] sm:$0xff] %v8295_v42  ;;  %v5917_v47 = vrot.slane %v5915_v36, 7  ;;  %v6053_v48 = vrot.slane %v5918_v37, 1  ;;  %12246 = vst [vmem:[#allocation18_spill] sm:$0xff] %v8314_v52  ;;  %v6977_v23 = vcombine.low %v464_v39, %v465_v49  ;;  %v8367_v25 = vmax.bf16 %v5777_v8, %v8317_v53  ;;  %v473_v28 = vld [vmem:[%s8224_s28 + $0x54] sm:$0xf] }
  0x1c   : > { %v8324_v55 = vor.u32 %v12013_v46, %v5910_v45  ;;  %7704 = vmatmul.mubr.msk.bf16.gmra.mxu0 %vm572_vm1, %v6974_v38  ;;  %12250 = vst [vmem:[#allocation22_spill] sm:$0xff] %v8332_v59  ;;  %12252 = vst [vmem:[#allocation24_spill] sm:$0xff] %v8343_v0  ;;  %v8356_v7 = vcombine.low %v8314_v52, %v8332_v59  ;;  %v8370_v26 = vmax.bf16 %v5778_v10, %v8320_v54  ;;  %v8392_v45 = vld [vmem:[%s8224_s28 + $0x5c] sm:$0xf]  ;;  %v476_v49 = vld [vmem:[%s8224_s28 + $0x60] sm:$0xf] }
  0x1d   : > { %v5920_v56 = vor.u32 %v5918_v37, %v5917_v47  ;;  %v6054_v57 = vor.u32 %v6053_v48, %v5915_v36  ;;  %7707 = vmatprep.mubr.msk.bf16.mxu0 %vm572_vm1, %v6975_v41  ;;  %12254 = vst [vmem:[#allocation26_spill] sm:$0xff] %v8367_v25  ;;  %v5781_v36 = vmax.bf16 %v472_v24, %v8328_v58  ;;  %12261 = vst [vmem:[#allocation33_spill] sm:$0xff] %v8392_v45  ;;  %v477_v51 = vld [vmem:[%s8224_s28 + $0x64] sm:$0xf] }
  0x1e   : > { %12249 = vst [vmem:[#allocation21_spill] sm:$0xff] %v8324_v55  ;;  %12253 = vst [vmem:[#allocation25_spill] sm:$0xff] %v8356_v7  ;;  %v5782_v39 = vmax.bf16 %v473_v28, %v469_v62  ;;  %v8386_v41 = vcombine.low %v8367_v25, %v8370_v26  ;;  %v6981_v61 = vcombine.low %v472_v24, %v473_v28 }
  0x1f   : > { %v6036_v2 = vsel %vm8299_vm6, %v8254_v20, %v5920_v56  ;;  %v6134_v3 = vsel %vm8309_vm7, %v6054_v57, %v7275_v40  ;;  %12255 = vst [vmem:[#allocation27_spill] sm:$0xff] %v8370_v26  ;;  %v8381_v40 = vld [vmem:[%s8224_s28 + $0x58] sm:$0xf]  ;;  %v8389_v43 = vmax.bf16 %v5781_v36, %v8340_v63  ;;  %v5785_v56 = vmax.bf16 %v476_v49, %v472_v24  ;;  %v481_v36 = vld [vmem:[%s8224_s28 + $0x74] sm:$0xf] }
  0x20   : > { %v6150_v6 = vmax.bf16 %v6134_v3, %v6036_v2  ;;  %12258 = vst [vmem:[#allocation30_spill] sm:$0xff] %v8381_v40  ;;  %12259 = vst [vmem:[#allocation31_spill] sm:$0xff] %v8386_v41  ;;  %v8400_v47 = vmax.bf16 %v5782_v39, %v8343_v0  ;;  %v5786_v57 = vmax.bf16 %v477_v51, %v473_v28  ;;  %v8407_v2 = vld [vmem:[%s8224_s28 + $0x68] sm:$0xf] }
  0x21   : > { %12260 = vst [vmem:[#allocation32_spill] sm:$0xff] %v8389_v43  ;;  %12263 = vst [vmem:[#allocation35_spill] sm:$0xff] %v8407_v2  ;;  %v8421_v10 = vmax.bf16 %v5785_v56, %v8381_v40  ;;  %v6979_v39 = vcombine.low %v8328_v58, %v469_v62  ;;  %v5790_v48 = vmax.bf16 %v481_v36, %v477_v51  ;;  %v8439_v56 = vld [vmem:[%s8224_s28 + $0x7c] sm:$0xf] }
  0x22   : > { %v7292_v13 = vcombine.low %v6150_v6, %v6150_v6  ;;  %v7293_v16 = vcombine.high %v6150_v6, %v6150_v6  ;;  %12262 = vst [vmem:[#allocation34_spill] sm:$0xff] %v8400_v47  ;;  %v8411_v3 = vcombine.low %v8389_v43, %v8400_v47  ;;  %v8414_v6 = vld [vmem:[%s8224_s28 + $0x6c] sm:$0xf]  ;;  %12270 = vst [vmem:[#allocation42_spill] sm:$0xff] %v8439_v56 }
  0x23   : > { %12265 = vst [vmem:[#allocation37_spill] sm:$0xff] %v8414_v6  ;;  %12266 = vst [vmem:[#allocation38_spill] sm:$0xff] %v8421_v10  ;;  %v5794_v11 = vmax.bf16 %v8439_v56, %v481_v36  ;;  %v6980_v58 = vcombine.low %v8340_v63, %v8343_v0  ;;  %v8098_v0 = vld [vmem:[%s12002_s3] sm:$0x3f]  }
  0x24   : > { %v8375_v37 = vmax.bf16 %v7292_v13, %v8254_v20  ;;  %v8378_v38 = vmax.bf16 %v7293_v16, %v8257_v21  ;;  %7708 = vmatmul.mubr.msk.bf16.gmra.mxu0 %vm572_vm1, %v6976_v9  ;;  %12264 = vst [vmem:[#allocation36_spill] sm:$0xff] %v8411_v3  ;;  %v6978_v9 = vcombine.low %v8317_v53, %v8320_v54  ;;  %v8432_v20 = vld [vmem:[%s8224_s28 + $0x78] sm:$0xf]  ;;  %v1405_v63 = vsel %vm1403_vm9, %v8098_v0, 0  ;;  %v8099_v53 = vld [vmem:[%s12002_s3 + $0x8] sm:$0x3f]  }
  0x25   : > { %7711 = vmatprep.mubr.msk.bf16.mxu0 %vm572_vm1, %v6977_v23  ;;  %v8424_v13 = vmax.bf16 %v5786_v57, %v8392_v45  ;;  %v480_v23 = vld [vmem:[%s8224_s28 + $0x70] sm:$0xf]  ;;  %12268 = vst [vmem:[#allocation40_spill] sm:$0xff] %v8432_v20  ;;  %v8447_v16 = vmax.bf16 %v5790_v48, %v8414_v6  ;;  %v8463_v48 = vmax.bf16 %v5794_v11, %v8439_v56 }
  0x26   : > { %12256 = vst [vmem:[#allocation28_spill] sm:$0xff] %v8375_v37  ;;  %12257 = vst [vmem:[#allocation29_spill] sm:$0xff] %v8378_v38  ;;  %v5789_v21 = vmax.bf16 %v480_v23, %v476_v49  ;;  %v5793_v62 = vmax.bf16 %v8432_v20, %v480_v23  ;;  %v6984_v11 = vcombine.low %v8407_v2, %v8414_v6  ;;  %8048 = vmatprep.subr.msk.bf16.mxu1 %vm1403_vm9, %v8098_v0 }
  0x27   : > { %12267 = vst [vmem:[#allocation39_spill] sm:$0xff] %v8424_v13  ;;  %v8436_v8 = vcombine.low %v8421_v10, %v8424_v13  ;;  %12272 = vst [vmem:[#allocation44_spill] sm:$0xff] %v8447_v16  ;;  %v6985_v60 = vcombine.low %v480_v23, %v481_v36  ;;  %v6986_v24 = vcombine.low %v8432_v20, %v8439_v56  ;;  %7732 = vmatpush3.bf16.msra.mxu1 %v1405_v63 }
  0x28   : > { %v8444_v12 = vmax.bf16 %v5789_v21, %v8407_v2  ;;  %v8460_v21 = vmax.bf16 %v5793_v62, %v8432_v20  ;;  %12275 = vst [vmem:[#allocation47_spill] sm:$0xff] %v8463_v48  ;;  %v6983_v62 = vcombine.low %v476_v49, %v477_v51  ;;  %v1979_v63 = vsel %vm1403_vm9, %v8099_v53, 0  ;;  %8049 = vmatprep.subr.msk.bf16.mxu0 %vm1403_vm9, %v8099_v53 }
  0x29   : > { %12269 = vst [vmem:[#allocation41_spill] sm:$0xff] %v8436_v8  ;;  %7766 = vmatpush3.bf16.msra.mxu0 %v1979_v63 }
  0x2a   : > { %12271 = vst [vmem:[#allocation43_spill] sm:$0xff] %v8444_v12  ;;  %v8457_v57 = vcombine.low %v8444_v12, %v8447_v16  ;;  %12274 = vst [vmem:[#allocation46_spill] sm:$0xff] %v8460_v21 }
  0x2c   : > { %7712 = vmatmul.mubr.msk.bf16.gmra.mxu0 %vm572_vm1, %v6978_v9  ;;  %12273 = vst [vmem:[#allocation45_spill] sm:$0xff] %v8457_v57  ;;  %v8469_v9 = vcombine.low %v8460_v21, %v8463_v48 }
  0x2d   : > { %7715 = vmatprep.mubr.msk.bf16.mxu0 %vm572_vm1, %v6979_v39  ;;  %v6982_v39 = vcombine.low %v8381_v40, %v8392_v45 }
  0x2e   : > { %12276 = vst [vmem:[#allocation48_spill] sm:$0xff] %v8469_v9 }
  0x34   : > { %7716 = vmatmul.mubr.msk.bf16.gmra.mxu0 %vm572_vm1, %v6980_v58 }
  0x35   : > { %7719 = vmatprep.mubr.msk.bf16.mxu0 %vm572_vm1, %v6981_v61  ;;  %v8133_v61 = vmov 0  }
  0x36   : > { %v1014_v28 = vrot.slane %v8133_v61, 7 }
  0x38   : > { %v8485_v49 = vsel %vm1164_vm4, 0, %v1014_v28  ;;  %v8488_v51 = vsel %vm1164_vm4, %v1014_v28, 0  ;;  %v8492_v23 = vsel %vm8299_vm6, 0, %v1014_v28 }
  0x39   : > { %12277 = vst [vmem:[#allocation49_spill] sm:$0xff] %v8485_v49  ;;  %12278 = vst [vmem:[#allocation50_spill] sm:$0xff] %v8488_v51  ;;  %v8077_v36 = vpack.i.bf16 %v8488_v51, %v8485_v49 }
  0x3b   : > { %8078 = vrot.lane.b32.xlu1 %v8077_v36, %s8134_s29 }
  0x3c   : > { %7720 = vmatmul.mubr.msk.bf16.gmra.mxu0 %vm572_vm1, %v6982_v39  ;;  %v8507_v39 = vld [vmem:[%s12001_s2] ss:$0 sm:$0xff] }
  0x3d   : > { %7723 = vmatprep.mubr.msk.bf16.mxu0 %vm572_vm1, %v6983_v62 }
  0x44   : > { %7724 = vmatmul.mubr.msk.bf16.gmra.mxu0 %vm572_vm1, %v6984_v11 }
  0x45   : > { %7727 = vmatprep.mubr.msk.bf16.mxu0 %vm572_vm1, %v6985_v60  ;;  %v8496_v60 = vsel %vm8299_vm6, %v1014_v28, 0 }
  0x46   : > { %v8072_v58 = vpack.i.bf16 %v8496_v60, %v8492_v23 }
  0x48   : > { %8073 = vrot.lane.b32.xlu0 %v8072_v58, %s8135_s30 }
  0x4c   : > { %7728 = vmatmul.mubr.msk.bf16.gmra.mxu0 %vm572_vm1, %v6986_v24 }
  0xd4   : > { %v7701_v62 = vpop.f32.mrf.mxu0 }
  0xd5   : > { %v668_v11 = vadd.f32 %v7701_v62, %v8507_v39 }
  0xd6   : > { %v659_v24 = vpop.f32.mrf.mxu0 }
  0xd7   : > { %v788_v61 = vmax.f32 %v668_v11, 0.0  ;;  %v660_v28 = vadd.f32 %v8507_v39, %v659_v24 }
  0xd8   : > { %v7702_v36 = vpop.f32.mrf.mxu0 }
  0xd9   : > { %v7396_v58 = vpack.c.bf16 %v788_v61, %v788_v61  ;;  %v786_v34 = vmax.f32 %v660_v28, 0.0  ;;  %v671_v33 = vadd.f32 %v7702_v36, %v8507_v39 }
  0xda   : > { %v662_v1 = vpop.f32.mrf.mxu0 }
  0xdb   : > { %949 = vst.msk [vmem:[%s8515_s17 + $0x8] sm:$0xf] %vm946_vm8, %v7396_v58  ;;  %v7394_v62 = vpack.c.bf16 %v786_v34, %v786_v34  ;;  %v789_v11 = vmax.f32 %v671_v33, 0.0  ;;  %v663_v24 = vadd.f32 %v8507_v39, %v662_v1 }
  0xdc   : > { %v7705_v22 = vpop.f32.mrf.mxu0 }
  0xdd   : > { %947 = vst.msk [vmem:[%s8515_s17] sm:$0xf] %vm946_vm8, %v7394_v62  ;;  %v819_v18 = vpack.c.bf16 %v789_v11, %v788_v61  ;;  %v7397_v35 = vpack.c.bf16 %v789_v11, %v789_v11  ;;  %v787_v46 = vmax.f32 %v663_v24, 0.0  ;;  %v684_v38 = vadd.f32 %v7705_v22, %v8507_v39 }
  0xde   : > { %v675_v37 = vpop.f32.mrf.mxu0 }
  0xdf   : > { %950 = vst.msk [vmem:[%s8515_s17 + $0xc] sm:$0xf] %vm946_vm8, %v7397_v35  ;;  %v7395_v28 = vpack.c.bf16 %v787_v46, %v787_v46  ;;  %2900 = vrot.lane.b32.xlu1 %v819_v18, %s8136_s18  ;;  %981 = vrot.lane.b32.xlu0 %v819_v18, %s8137_s19  ;;  %v792_v33 = vmax.f32 %v684_v38, 0.0  ;;  %v676_v1 = vadd.f32 %v8507_v39, %v675_v37 }
  0xe0   : > { %v7706_v61 = vpop.f32.mrf.mxu0  ;;  %v818_v58 = vpack.c.bf16 %v787_v46, %v786_v34 }
  0xe1   : > { %948 = vst.msk [vmem:[%s8515_s17 + $0x4] sm:$0xf] %vm946_vm8, %v7395_v28  ;;  %v7400_v36 = vpack.c.bf16 %v792_v33, %v792_v33  ;;  %v790_v22 = vmax.f32 %v676_v1, 0.0  ;;  %v687_v35 = vadd.f32 %v7706_v61, %v8507_v39 }
  0xe2   : > { %v678_v62 = vpop.f32.mrf.mxu0 }
  0xe3   : > { %953 = vst.msk [vmem:[%s8515_s17 + $0x18] sm:$0xf] %vm946_vm8, %v7400_v36  ;;  %v7398_v11 = vpack.c.bf16 %v790_v22, %v790_v22  ;;  %2898 = vrot.lane.b32.xlu1 %v818_v58, %s8136_s18  ;;  %979 = vrot.lane.b32.xlu0 %v818_v58, %s8137_s19  ;;  %v793_v18 = vmax.f32 %v687_v35, 0.0  ;;  %v679_v37 = vadd.f32 %v8507_v39, %v678_v62 }
  0xe4   : > { %v7709_v38 = vpop.f32.mrf.mxu0 }
  0xe5   : > { %951 = vst.msk [vmem:[%s8515_s17 + $0x10] sm:$0xf] %vm946_vm8, %v7398_v11  ;;  %v821_v24 = vpack.c.bf16 %v793_v18, %v792_v33  ;;  %v7401_v34 = vpack.c.bf16 %v793_v18, %v793_v18  ;;  %v791_v46 = vmax.f32 %v679_v37, 0.0  ;;  %v700_v28 = vadd.f32 %v7709_v38, %v8507_v39 }
  0xe6   : > { %v691_v1 = vpop.f32.mrf.mxu0 }
  0xe7   : > { %954 = vst.msk [vmem:[%s8515_s17 + $0x1c] sm:$0xf] %vm946_vm8, %v7401_v34  ;;  %985 = vrot.lane.b32.xlu1 %v821_v24, %s8137_s19  ;;  %v7399_v61 = vpack.c.bf16 %v791_v46, %v791_v46  ;;  %v796_v36 = vmax.f32 %v700_v28, 0.0  ;;  %v692_v58 = vadd.f32 %v8507_v39, %v691_v1  ;;  %v820_v37 = vpack.c.bf16 %v791_v46, %v790_v22 }
  0xe8   : > { %v7710_v35 = vpop.f32.mrf.mxu0 }
  0xe9   : > { %952 = vst.msk [vmem:[%s8515_s17 + $0x14] sm:$0xf] %vm946_vm8, %v7399_v61  ;;  %v7404_v62 = vpack.c.bf16 %v796_v36, %v796_v36  ;;  %v794_v33 = vmax.f32 %v692_v58, 0.0  ;;  %v703_v11 = vadd.f32 %v7710_v35, %v8507_v39 }
  0xea   : > { %v694_v18 = vpop.f32.mrf.mxu0 }
  0xeb   : > { %2904 = vrot.lane.b32.xlu1 %v821_v24, %s8136_s18  ;;  %957 = vst.msk [vmem:[%s8515_s17 + $0x28] sm:$0xf] %vm946_vm8, %v7404_v62  ;;  %v7402_v38 = vpack.c.bf16 %v794_v33, %v794_v33  ;;  %v797_v34 = vmax.f32 %v703_v11, 0.0  ;;  %v695_v28 = vadd.f32 %v8507_v39, %v694_v18 }
  0xec   : > { %v7713_v1 = vpop.f32.mrf.mxu0 }
  0xed   : > { %955 = vst.msk [vmem:[%s8515_s17 + $0x20] sm:$0xf] %vm946_vm8, %v7402_v38  ;;  %v7405_v61 = vpack.c.bf16 %v797_v34, %v797_v34  ;;  %v795_v21 = vmax.f32 %v695_v28, 0.0  ;;  %v716_v58 = vadd.f32 %v7713_v1, %v8507_v39  ;;  %v823_v1 = vpack.c.bf16 %v797_v34, %v796_v36 }
  0xee   : > { %v707_v56 = vpop.f32.mrf.mxu0 }
  0xef   : > { %983 = vrot.lane.b32.xlu1 %v820_v37, %s8137_s19  ;;  %958 = vst.msk [vmem:[%s8515_s17 + $0x2c] sm:$0xf] %vm946_vm8, %v7405_v61  ;;  %v7403_v22 = vpack.c.bf16 %v795_v21, %v795_v21  ;;  %v800_v24 = vmax.f32 %v716_v58, 0.0  ;;  %v708_v46 = vadd.f32 %v8507_v39, %v707_v56  ;;  %v822_v35 = vpack.c.bf16 %v795_v21, %v794_v33 }
  0xf0   : > { %v7714_v62 = vpop.f32.mrf.mxu0 }
  0xf1   : > { %956 = vst.msk [vmem:[%s8515_s17 + $0x24] sm:$0xf] %vm946_vm8, %v7403_v22  ;;  %v7408_v11 = vpack.c.bf16 %v800_v24, %v800_v24  ;;  %v798_v18 = vmax.f32 %v708_v46, 0.0  ;;  %v719_v38 = vadd.f32 %v7714_v62, %v8507_v39  ;;  %987 = vrot.lane.b32.xlu0 %v822_v35, %s8137_s19 }
  0xf2   : > { %v710_v28 = vpop.f32.mrf.mxu0 }
  0xf3   : > { %2902 = vrot.lane.b32.xlu1 %v820_v37, %s8136_s18  ;;  %961 = vst.msk [vmem:[%s8515_s17 + $0x38] sm:$0xf] %vm946_vm8, %v7408_v11  ;;  %v7406_v61 = vpack.c.bf16 %v798_v18, %v798_v18  ;;  %v801_v56 = vmax.f32 %v719_v38, 0.0  ;;  %v711_v21 = vadd.f32 %v8507_v39, %v710_v28 }
  0xf4   : > { %v7717_v33 = vpop.f32.mrf.mxu0 }
  0xf5   : > { %959 = vst.msk [vmem:[%s8515_s17 + $0x30] sm:$0xf] %vm946_vm8, %v7406_v61  ;;  %v7409_v58 = vpack.c.bf16 %v801_v56, %v801_v56  ;;  %v799_v22 = vmax.f32 %v711_v21, 0.0  ;;  %v732_v46 = vadd.f32 %v7717_v33, %v8507_v39 }
  0xf6   : > { %v723_v62 = vpop.f32.mrf.mxu0 }
  0xf7   : > { %989 = vrot.lane.b32.xlu1 %v823_v1, %s8137_s19  ;;  %962 = vst.msk [vmem:[%s8515_s17 + $0x3c] sm:$0xf] %vm946_vm8, %v7409_v58  ;;  %v7407_v36 = vpack.c.bf16 %v799_v22, %v799_v22  ;;  %v804_v37 = vmax.f32 %v732_v46, 0.0  ;;  %v724_v34 = vadd.f32 %v8507_v39, %v723_v62  ;;  %v824_v11 = vpack.c.bf16 %v799_v22, %v798_v18 }
  0xf8   : > { %v7718_v38 = vpop.f32.mrf.mxu0 }
  0xf9   : > { %960 = vst.msk [vmem:[%s8515_s17 + $0x34] sm:$0xf] %vm946_vm8, %v7407_v36  ;;  %v7412_v28 = vpack.c.bf16 %v804_v37, %v804_v37  ;;  %v802_v61 = vmax.f32 %v724_v34, 0.0  ;;  %v735_v21 = vadd.f32 %v7718_v38, %v8507_v39  ;;  %991 = vrot.lane.b32.xlu0 %v824_v11, %s8137_s19  ;;  %v825_v38 = vpack.c.bf16 %v801_v56, %v800_v24 }
  0xfa   : > { %v726_v33 = vpop.f32.mrf.mxu0 }
  0xfb   : > { %2908 = vrot.lane.b32.xlu1 %v823_v1, %s8136_s18  ;;  %965 = vst.msk [vmem:[%s8515_s17 + $0x48] sm:$0xf] %vm946_vm8, %v7412_v28  ;;  %v7410_v58 = vpack.c.bf16 %v802_v61, %v802_v61  ;;  %v805_v46 = vmax.f32 %v735_v21, 0.0  ;;  %v727_v18 = vadd.f32 %v8507_v39, %v726_v33 }
  0xfc   : > { %v7721_v22 = vpop.f32.mrf.mxu0 }
  0xfd   : > { %963 = vst.msk [vmem:[%s8515_s17 + $0x40] sm:$0xf] %vm946_vm8, %v7410_v58  ;;  %v7413_v62 = vpack.c.bf16 %v805_v46, %v805_v46  ;;  %v803_v36 = vmax.f32 %v727_v18, 0.0  ;;  %v748_v34 = vadd.f32 %v7721_v22, %v8507_v39 }
  0xfe   : > { %v739_v12 = vpop.f32.mrf.mxu0 }
  0xff   : > { %2906 = vrot.lane.b32.xlu1 %v822_v35, %s8136_s18  ;;  %966 = vst.msk [vmem:[%s8515_s17 + $0x4c] sm:$0xf] %vm946_vm8, %v7413_v62  ;;  %v7411_v1 = vpack.c.bf16 %v803_v36, %v803_v36  ;;  %v8587_v28 = vmax.f32 %v748_v34, 0.0  ;;  %v740_v21 = vadd.f32 %v8507_v39, %v739_v12  ;;  %v8590_v33 = vpack.c.bf16 %v803_v36, %v802_v61 }
 0x100   : > { %v7722_v58 = vpop.f32.mrf.mxu0 }
 0x101   : > { %964 = vst.msk [vmem:[%s8515_s17 + $0x44] sm:$0xf] %vm946_vm8, %v7411_v1  ;;  %v7416_v24 = vpack.c.bf16 %v8587_v28, %v8587_v28  ;;  %v806_v56 = vmax.f32 %v740_v21, 0.0  ;;  %v751_v35 = vadd.f32 %v7722_v58, %v8507_v39  ;;  %995 = vrot.lane.b32.xlu0 %v8590_v33, %s8137_s19 }
 0x102   : > { %v742_v18 = vpop.f32.mrf.mxu0 }
 0x103   : > { %993 = vrot.lane.b32.xlu1 %v825_v38, %s8137_s19  ;;  %969 = vst.msk [vmem:[%s8515_s17 + $0x58] sm:$0xf] %vm946_vm8, %v7416_v24  ;;  %v7414_v12 = vpack.c.bf16 %v806_v56, %v806_v56  ;;  %v809_v61 = vmax.f32 %v751_v35, 0.0  ;;  %v743_v22 = vadd.f32 %v8507_v39, %v742_v18 }
 0x104   : > { %v7725_v62 = vpop.f32.mrf.mxu0 }
 0x105   : > { %967 = vst.msk [vmem:[%s8515_s17 + $0x50] sm:$0xf] %vm946_vm8, %v7414_v12  ;;  %v7417_v36 = vpack.c.bf16 %v809_v61, %v809_v61  ;;  %v807_v34 = vmax.f32 %v743_v22, 0.0  ;;  %v764_v1 = vadd.f32 %v7725_v62, %v8507_v39 }
 0x106   : > { %v755_v21 = vpop.f32.mrf.mxu0 }
 0x107   : > { %2912 = vrot.lane.b32.xlu1 %v825_v38, %s8136_s18  ;;  %970 = vst.msk [vmem:[%s8515_s17 + $0x5c] sm:$0xf] %vm946_vm8, %v7417_v36  ;;  %v7415_v58 = vpack.c.bf16 %v807_v34, %v807_v34  ;;  %v812_v24 = vmax.f32 %v764_v1, 0.0  ;;  %v756_v20 = vadd.f32 %v8507_v39, %v755_v21  ;;  %v828_v35 = vpack.c.bf16 %v807_v34, %v806_v56 }
 0x108   : > { %v7726_v18 = vpop.f32.mrf.mxu0  ;;  %v827_v38 = vpack.c.bf16 %v805_v46, %v804_v37 }
 0x109   : > { %968 = vst.msk [vmem:[%s8515_s17 + $0x54] sm:$0xf] %vm946_vm8, %v7415_v58  ;;  %v7420_v12 = vpack.c.bf16 %v812_v24, %v812_v24  ;;  %v810_v6 = vmax.f32 %v756_v20, 0.0  ;;  %v767_v22 = vadd.f32 %v7726_v18, %v8507_v39  ;;  %999 = vrot.lane.b32.xlu0 %v828_v35, %s8137_s19 }
 0x10a   : > { %v758_v62 = vpop.f32.mrf.mxu0 }
 0x10b   : > { %2910 = vrot.lane.b32.xlu1 %v824_v11, %s8136_s18  ;;  %973 = vst.msk [vmem:[%s8515_s17 + $0x68] sm:$0xf] %vm946_vm8, %v7420_v12  ;;  %v7418_v36 = vpack.c.bf16 %v810_v6, %v810_v6  ;;  %v813_v1 = vmax.f32 %v767_v22, 0.0  ;;  %v759_v56 = vadd.f32 %v8507_v39, %v758_v62 }
 0x10c   : > { %v7729_v34 = vpop.f32.mrf.mxu0 }
 0x10d   : > { %971 = vst.msk [vmem:[%s8515_s17 + $0x60] sm:$0xf] %vm946_vm8, %v7418_v36  ;;  %v7421_v20 = vpack.c.bf16 %v813_v1, %v813_v1  ;;  %v811_v21 = vmax.f32 %v759_v56, 0.0  ;;  %v780_v58 = vadd.f32 %v7729_v34, %v8507_v39 }
 0x10e   : > { %v771_v18 = vpop.f32.mrf.mxu0 }
 0x10f   : > { %997 = vrot.lane.b32.xlu1 %v827_v38, %s8137_s19  ;;  %974 = vst.msk [vmem:[%s8515_s17 + $0x6c] sm:$0xf] %vm946_vm8, %v7421_v20  ;;  %v7419_v37 = vpack.c.bf16 %v811_v21, %v811_v21  ;;  %v816_v11 = vmax.f32 %v780_v58, 0.0  ;;  %v772_v46 = vadd.f32 %v8507_v39, %v771_v18  ;;  %v830_v12 = vpack.c.bf16 %v811_v21, %v810_v6 }
 0x110   : > { %v7730_v22 = vpop.f32.mrf.mxu0 }
 0x111   : > { %972 = vst.msk [vmem:[%s8515_s17 + $0x64] sm:$0xf] %vm946_vm8, %v7419_v37  ;;  %v7424_v62 = vpack.c.bf16 %v816_v11, %v816_v11  ;;  %v814_v36 = vmax.f32 %v772_v46, 0.0  ;;  %v783_v56 = vadd.f32 %v7730_v22, %v8507_v39  ;;  %1003 = vrot.lane.b32.xlu0 %v830_v12, %s8137_s19  ;;  %v829_v46 = vpack.c.bf16 %v809_v61, %v8587_v28  ;;  %v8652_v28 = vpop.permute.xlu1 %8078 }
 0x112   : > { %v774_v34 = vpop.f32.mrf.mxu0 }
 0x113   : > { %2916 = vrot.lane.b32.xlu1 %v827_v38, %s8136_s18  ;;  %977 = vst.msk [vmem:[%s8515_s17 + $0x78] sm:$0xf] %vm946_vm8, %v7424_v62  ;;  %v7422_v20 = vpack.c.bf16 %v814_v36, %v814_v36  ;;  %v817_v58 = vmax.f32 %v783_v56, 0.0  ;;  %v775_v6 = vadd.f32 %v8507_v39, %v774_v34  ;;  %v831_v39 = vpack.c.bf16 %v813_v1, %v812_v24 }
 0x115   : > { %975 = vst.msk [vmem:[%s8515_s17 + $0x70] sm:$0xf] %vm946_vm8, %v7422_v20  ;;  %v833_v21 = vpack.c.bf16 %v817_v58, %v816_v11  ;;  %v7425_v18 = vpack.c.bf16 %v817_v58, %v817_v58  ;;  %v815_v37 = vmax.f32 %v775_v6, 0.0 }
 0x117   : > { %2914 = vrot.lane.b32.xlu1 %v8590_v33, %s8136_s18  ;;  %978 = vst.msk [vmem:[%s8515_s17 + $0x7c] sm:$0xf] %vm946_vm8, %v7425_v18  ;;  %v7423_v22 = vpack.c.bf16 %v815_v37, %v815_v37  ;;  %2928 = vrot.lane.b32.xlu0 %v833_v21, %s8136_s18  ;;  %v832_v38 = vpack.c.bf16 %v815_v37, %v814_v36  ;;  %v8654_v33 = vpop.permute.xlu0 %8073 }
 0x118   : > { %12279 = vst [vmem:[#allocation51_spill] sm:$0xff] %v8654_v33 }
 0x119   : > { %976 = vst.msk [vmem:[%s8515_s17 + $0x74] sm:$0xf] %vm946_vm8, %v7423_v22 }
 0x11b   : > { %1001 = vrot.lane.b32.xlu1 %v829_v46, %s8137_s19  ;;  %1007 = vrot.lane.b32.xlu0 %v832_v38, %s8137_s19 }
 0x11f   : > { %2920 = vrot.lane.b32.xlu1 %v829_v46, %s8136_s18 }
 0x123   : > { %2918 = vrot.lane.b32.xlu1 %v828_v35, %s8136_s18 }
 0x127   : > { %1005 = vrot.lane.b32.xlu1 %v831_v39, %s8137_s19 }
 0x12b   : > { %2924 = vrot.lane.b32.xlu1 %v831_v39, %s8136_s18 }
 0x12f   : > { %2922 = vrot.lane.b32.xlu1 %v830_v12, %s8136_s18 }
 0x133   : > { %1009 = vrot.lane.b32.xlu1 %v833_v21, %s8137_s19 }
 0x137   : > { %2926 = vrot.lane.b32.xlu1 %v832_v38, %s8136_s18 }
 0x151   : > { %v2901_v61 = vpop.permute.xlu1 %2900  ;;  %v982_v35 = vpop.permute.xlu0 %981 }
 0x152   : > { %v2933_v11 = vrot.slane %v2901_v61, 7  ;;  %v1026_v12 = vshrl.u32 %v982_v35, 16  ;;  %v1029_v22 = vshll.u32 %v982_v35, 16 }
 0x154   : > { %v8657_v24 = vsel %vm1164_vm4, 0, %v2933_v11  ;;  %v8664_v62 = vsel %vm1164_vm4, %v2933_v11, 0  ;;  %v1028_v56 = vrot.slane %v1026_v12, 7 }
 0x155   : > { %3081 = vrot.lane.b32.xlu1 %v8657_v24, %s8138_s20  ;;  %v2899_v1 = vpop.permute.xlu1 %2898  ;;  %3051 = vrot.lane.b32.xlu0 %v8657_v24, %s8135_s30  ;;  %v980_v6 = vpop.permute.xlu0 %979 }
 0x156   : > { %v2932_v20 = vrot.slane %v2899_v1, 7  ;;  %v8678_v58 = vsel %vm8299_vm6, %v1028_v56, 0  ;;  %v1019_v18 = vshrl.u32 %v980_v6, 16  ;;  %v1031_v39 = vor.u32 %v1029_v22, %v1028_v56 }
 0x157   : > { %v1022_v1 = vshll.u32 %v980_v6, 16 }
 0x158   : > { %v8687_v37 = vsel %vm1164_vm4, 0, %v2932_v20  ;;  %v8694_v38 = vsel %vm1164_vm4, %v2932_v20, 0  ;;  %v1021_v61 = vrot.slane %v1019_v18, 7  ;;  %v8704_v12 = vsel %vm8299_vm6, 0, %v1031_v39 }
 0x159   : > { %3563 = vrot.lane.b32.xlu1 %v8664_v62, %s8135_s30  ;;  %3593 = vrot.lane.b32.xlu0 %v8664_v62, %s8138_s20  ;;  %v8670_v36 = vpop.permute.xlu1 %985 }
 0x15a   : > { %v1024_v10 = vor.u32 %v1022_v1, %v1021_v61  ;;  %v8714_v20 = vsel %vm8299_vm6, %v1021_v61, 0  ;;  %v1040_v39 = vshrl.u32 %v8670_v36, 16  ;;  %v1043_v40 = vshll.u32 %v8670_v36, 16 }
 0x15c   : > { %v8718_v6 = vsel %vm8299_vm6, 0, %v1024_v10  ;;  %v1042_v1 = vrot.slane %v1040_v39, 7 }
 0x15d   : > { %3020 = vrot.lane.b32.xlu1 %v8657_v24, %s8134_s29  ;;  %3532 = vrot.lane.b32.xlu0 %v8664_v62, %s8134_s29  ;;  %v2905_v34 = vpop.permute.xlu1 %2904 }
 0x15e   : > { %v2935_v56 = vrot.slane %v2905_v34, 7  ;;  %v1045_v36 = vor.u32 %v1043_v40, %v1042_v1 }
 0x160   : > { %v8727_v22 = vsel %vm1164_vm4, 0, %v2935_v56  ;;  %v8736_v34 = vsel %vm1164_vm4, %v2935_v56, 0  ;;  %v8751_v56 = vsel %vm8299_vm6, %v1042_v1, 0  ;;  %v8800_v0 = vsel %vm8299_vm6, 0, %v1045_v36 }
 0x161   : > { %1618 = vrot.lane.b32.xlu1 %v8678_v58, %s8134_s29  ;;  %1649 = vrot.lane.b32.xlu0 %v8678_v58, %s8135_s30  ;;  %v8684_v21 = vpop.permute.xlu1 %983  ;;  %12280 = vst [vmem:[#allocation52_spill] sm:$0xff] %v8736_v34 }
 0x162   : > { %v1033_v25 = vshrl.u32 %v8684_v21, 16  ;;  %v1036_v52 = vshll.u32 %v8684_v21, 16 }
 0x164   : > { %v1035_v40 = vrot.slane %v1033_v25, 7 }
 0x165   : > { %3049 = vrot.lane.b32.xlu1 %v8687_v37, %s8135_s30  ;;  %3018 = vrot.lane.b32.xlu0 %v8687_v37, %s8134_s29  ;;  %v2903_v46 = vpop.permute.xlu1 %2902 }
 0x166   : > { %v2934_v2 = vrot.slane %v2903_v46, 7  ;;  %v8810_v1 = vsel %vm8299_vm6, %v1035_v40, 0  ;;  %v1038_v21 = vor.u32 %v1036_v52, %v1035_v40  ;;  %v988_v40 = vpop.permute.xlu0 %987 }
 0x167   : > { %v1047_v16 = vshrl.u32 %v988_v40, 16  ;;  %v1050_v8 = vshll.u32 %v988_v40, 16 }
 0x168   : > { %v8760_v45 = vsel %vm1164_vm4, 0, %v2934_v2  ;;  %v8769_v39 = vsel %vm1164_vm4, %v2934_v2, 0  ;;  %v8821_v30 = vsel %vm8299_vm6, 0, %v1038_v21 }
 0x169   : > { %3530 = vrot.lane.b32.xlu1 %v8694_v38, %s8134_s29  ;;  %3561 = vrot.lane.b32.xlu0 %v8694_v38, %s8135_s30  ;;  %v8700_v11 = vpop.permute.xlu1 %989  ;;  %12281 = vst [vmem:[#allocation53_spill] sm:$0xff] %v8760_v45  ;;  %12282 = vst [vmem:[#allocation54_spill] sm:$0xff] %v8769_v39 }
 0x16a   : > { %v1054_v21 = vshrl.u32 %v8700_v11, 16  ;;  %v1057_v48 = vshll.u32 %v8700_v11, 16 }
 0x16b   : > { %v8850_v31 = vpop.permute.xlu0 %991 }
 0x16d   : > { %1219 = vrot.lane.b32.xlu1 %v8704_v12, %s8134_s29  ;;  %1250 = vrot.lane.b32.xlu0 %v8704_v12, %s8135_s30  ;;  %v8710_v35 = vpop.permute.xlu1 %2908 }
 0x16e   : > { %v2937_v36 = vrot.slane %v8710_v35, 7 }
 0x170   : > { %v8830_v53 = vsel %vm1164_vm4, 0, %v2937_v36  ;;  %v8843_v63 = vsel %vm1164_vm4, %v2937_v36, 0  ;;  %v1056_v36 = vrot.slane %v1054_v21, 7 }
 0x171   : > { %1616 = vrot.lane.b32.xlu1 %v8714_v20, %s8134_s29  ;;  %1217 = vrot.lane.b32.xlu0 %v8718_v6, %s8134_s29  ;;  %v8724_v18 = vpop.permute.xlu1 %2906  ;;  %12283 = vst [vmem:[#allocation55_spill] sm:$0xff] %v8830_v53  ;;  %12284 = vst [vmem:[#allocation56_spill] sm:$0xff] %v8843_v63 }
 0x172   : > { %v2936_v15 = vrot.slane %v8724_v18, 7  ;;  %v8863_v50 = vsel %vm8299_vm6, %v1056_v36, 0  ;;  %v1059_v9 = vor.u32 %v1057_v48, %v1056_v36 }
 0x173   : > { %v8858_v55 = vpop.permute.xlu0 %995  ;;  %12285 = vst [vmem:[#allocation57_spill] sm:$0xff] %v8863_v50 }
 0x174   : > { %v8874_v21 = vsel %vm1164_vm4, 0, %v2936_v15  ;;  %v8885_v14 = vsel %vm1164_vm4, %v2936_v15, 0  ;;  %v1049_v15 = vrot.slane %v1047_v16, 7  ;;  %v8910_v47 = vsel %vm8299_vm6, 0, %v1059_v9 }
 0x175   : > { %3055 = vrot.lane.b32.xlu1 %v8727_v22, %s8135_s30  ;;  %3115 = vrot.lane.b32.xlu0 %v8727_v22, %s8139_s22  ;;  %v8733_v10 = vpop.permute.xlu1 %993  ;;  %12287 = vst [vmem:[#allocation59_spill] sm:$0xff] %v8874_v21  ;;  %12289 = vst [vmem:[#allocation61_spill] sm:$0xff] %v8885_v14 }
 0x176   : > { %12293 = vst [vmem:[#allocation65_spill] sm:$0xff] %v8910_v47  ;;  %v1052_v26 = vor.u32 %v1050_v8, %v1049_v15  ;;  %v8946_v59 = vsel %vm8299_vm6, %v1049_v15, 0  ;;  %v1068_v7 = vshrl.u32 %v8733_v10, 16 }
 0x177   : > { %12295 = vst [vmem:[#allocation67_spill] sm:$0xff] %v8946_v59 }
 0x178   : > { %v8923_v36 = vsel %vm8299_vm6, 0, %v1052_v26  ;;  %v1070_v15 = vrot.slane %v1068_v7, 7 }
 0x179   : > { %3567 = vrot.lane.b32.xlu1 %v8736_v34, %s8135_s30  ;;  %3627 = vrot.lane.b32.xlu0 %v8736_v34, %s8139_s22  ;;  %v8743_v61 = vpop.permute.xlu1 %2912  ;;  %12294 = vst [vmem:[#allocation66_spill] sm:$0xff] %v8923_v36 }
 0x17a   : > { %v2939_v40 = vrot.slane %v8743_v61, 7 }
 0x17b   : > { %v8871_v17 = vpop.permute.xlu0 %999 }
 0x17c   : > { %v8934_v41 = vsel %vm1164_vm4, 0, %v2939_v40  ;;  %v8956_v19 = vsel %vm1164_vm4, %v2939_v40, 0 }
 0x17d   : > { %3024 = vrot.lane.b32.xlu1 %v8727_v22, %s8134_s29  ;;  %3085 = vrot.lane.b32.xlu0 %v8727_v22, %s8138_s20  ;;  %v8757_v43 = vpop.permute.xlu1 %2910  ;;  %12296 = vst [vmem:[#allocation68_spill] sm:$0xff] %v8956_v19 }
 0x17e   : > { %v2938_v33 = vrot.slane %v8757_v43, 7 }
 0x180   : > { %v8980_v7 = vsel %vm1164_vm4, 0, %v2938_v33 }
 0x181   : > { %1622 = vrot.lane.b32.xlu1 %v8751_v56, %s8134_s29  ;;  %3597 = vrot.lane.b32.xlu0 %v8736_v34, %s8138_s20  ;;  %v8766_v46 = vpop.permute.xlu1 %997  ;;  %12298 = vst [vmem:[#allocation70_spill] sm:$0xff] %v8980_v7 }
 0x183   : > { %v8880_v18 = vpop.permute.xlu0 %1003 }
 0x185   : > { %3113 = vrot.lane.b32.xlu1 %v8760_v45, %s8139_s22  ;;  %3536 = vrot.lane.b32.xlu0 %v8736_v34, %s8134_s29  ;;  %v8783_v2 = vpop.permute.xlu1 %2916 }
 0x189   : > { %3625 = vrot.lane.b32.xlu1 %v8769_v39, %s8139_s22  ;;  %1653 = vrot.lane.b32.xlu0 %v8751_v56, %s8135_s30  ;;  %v8792_v54 = vpop.permute.xlu1 %2914  ;;  %v8892_v57 = vpop.permute.xlu0 %2928 }
 0x18a   : > { %12290 = vst [vmem:[#allocation62_spill] sm:$0xff] %v8892_v57 }
 0x18d   : > { %3053 = vrot.lane.b32.xlu1 %v8760_v45, %s8135_s30  ;;  %3083 = vrot.lane.b32.xlu0 %v8760_v45, %s8138_s20  ;;  %v8816_v25 = vpop.permute.xlu1 %1001  ;;  %v8904_v11 = vpop.permute.xlu0 %1007 }
 0x18e   : > { %12291 = vst [vmem:[#allocation63_spill] sm:$0xff] %v8904_v11 }
 0x191   : > { %3534 = vrot.lane.b32.xlu1 %v8769_v39, %s8134_s29  ;;  %3595 = vrot.lane.b32.xlu0 %v8769_v39, %s8138_s20  ;;  %v8827_v52 = vpop.permute.xlu1 %2920 }
 0x195   : > { %1223 = vrot.lane.b32.xlu1 %v8800_v0, %s8134_s29  ;;  %3022 = vrot.lane.b32.xlu0 %v8760_v45, %s8134_s29  ;;  %v8840_v35 = vpop.permute.xlu1 %2918 }
 0x199   : > { %1651 = vrot.lane.b32.xlu1 %v8810_v1, %s8135_s30  ;;  %3565 = vrot.lane.b32.xlu0 %v8769_v39, %s8135_s30  ;;  %v8852_v29 = vpop.permute.xlu1 %1005 }
 0x19d   : > { %1252 = vrot.lane.b32.xlu1 %v8821_v30, %s8135_s30  ;;  %1254 = vrot.lane.b32.xlu0 %v8800_v0, %s8135_s30  ;;  %v8865_v5 = vpop.permute.xlu1 %2924 }
 0x19e   : > { %12286 = vst [vmem:[#allocation58_spill] sm:$0xff] %v8865_v5 }
 0x1a1   : > { %3119 = vrot.lane.b32.xlu1 %v8830_v53, %s8139_s22  ;;  %1620 = vrot.lane.b32.xlu0 %v8810_v1, %s8134_s29  ;;  %v8882_v4 = vpop.permute.xlu1 %2922 }
 0x1a2   : > { %12288 = vst [vmem:[#allocation60_spill] sm:$0xff] %v8882_v4 }
 0x1a5   : > { %3059 = vrot.lane.b32.xlu1 %v8830_v53, %s8135_s30  ;;  %1221 = vrot.lane.b32.xlu0 %v8821_v30, %s8134_s29  ;;  %v8894_v13 = vpop.permute.xlu1 %1009 }
 0x1a9   : > { %3571 = vrot.lane.b32.xlu1 %v8843_v63, %s8135_s30  ;;  %3631 = vrot.lane.b32.xlu0 %v8843_v63, %s8139_s22  ;;  %v8906_v3 = vpop.permute.xlu1 %2926 }
 0x1aa   : > { %12292 = vst [vmem:[#allocation64_spill] sm:$0xff] %v8906_v3 }
 0x1ad   : > { %3028 = vrot.lane.b32.xlu1 %v8830_v53, %s8134_s29  ;;  %3089 = vrot.lane.b32.xlu0 %v8830_v53, %s8138_s20  ;;  %v1061_v53 = vshrl.u32 %v8850_v31, 16 }
 0x1b1   : > { %1626 = vrot.lane.b32.xlu1 %v8863_v50, %s8134_s29  ;;  %3601 = vrot.lane.b32.xlu0 %v8843_v63, %s8138_s20 }
 0x1b5   : > { %3087 = vrot.lane.b32.xlu1 %v8874_v21, %s8138_s20  ;;  %3540 = vrot.lane.b32.xlu0 %v8843_v63, %s8134_s29 }
 0x1b9   : > { %3629 = vrot.lane.b32.xlu1 %v8885_v14, %s8139_s22  ;;  %1657 = vrot.lane.b32.xlu0 %v8863_v50, %s8135_s30  ;;  %v8989_v50 = vsel %vm1164_vm4, %v2938_v33, 0 }
 0x1ba   : > { %12299 = vst [vmem:[#allocation71_spill] sm:$0xff] %v8989_v50 }
 0x1bd   : > { %3057 = vrot.lane.b32.xlu1 %v8874_v21, %s8135_s30  ;;  %3117 = vrot.lane.b32.xlu0 %v8874_v21, %s8139_s22 }
 0x1c1   : > { %3538 = vrot.lane.b32.xlu1 %v8885_v14, %s8134_s29  ;;  %3599 = vrot.lane.b32.xlu0 %v8885_v14, %s8138_s20 }
 0x1c5   : > { %1227 = vrot.lane.b32.xlu1 %v8910_v47, %s8134_s29  ;;  %3026 = vrot.lane.b32.xlu0 %v8874_v21, %s8134_s29 }
 0x1c7   : > { %v8916_v16 = vpop.permute.xlu1 %3081  ;;  %v8918_v48 = vpop.permute.xlu0 %3051 }
 0x1c9   : > { %3569 = vrot.lane.b32.xlu0 %v8885_v14, %s8135_s30  ;;  %1256 = vrot.lane.b32.xlu1 %v8923_v36, %s8135_s30  ;;  %v8969_v14 = vsel %vm8299_vm6, %v1070_v15, 0 }
 0x1ca   : > { %12297 = vst [vmem:[#allocation69_spill] sm:$0xff] %v8969_v14 }
 0x1cb   : > { %v8929_v8 = vpop.permute.xlu1 %3563  ;;  %v8931_v9 = vpop.permute.xlu0 %3593 }
 0x1cd   : > { %1258 = vrot.lane.b32.xlu0 %v8910_v47, %s8135_s30  ;;  %3123 = vrot.lane.b32.xlu1 %v8934_v41, %s8139_s22 }
 0x1cf   : > { %v8940_v26 = vpop.permute.xlu1 %3020  ;;  %v8942_v61 = vpop.permute.xlu0 %3532 }
 0x1d1   : > { %1655 = vrot.lane.b32.xlu0 %v8946_v59, %s8135_s30  ;;  %3063 = vrot.lane.b32.xlu1 %v8934_v41, %s8135_s30 }
 0x1d3   : > { %v8953_v32 = vpop.permute.xlu1 %1618  ;;  %v1650_v42 = vpop.permute.xlu0 %1649 }
 0x1d5   : > { %1624 = vrot.lane.b32.xlu0 %v8946_v59, %s8134_s29  ;;  %3575 = vrot.lane.b32.xlu1 %v8956_v19, %s8135_s30  ;;  %v1071_v59 = vshll.u32 %v8733_v10, 16 }
 0x1d7   : > { %v8962_v27 = vpop.permute.xlu1 %3049  ;;  %v8964_v63 = vpop.permute.xlu0 %3018  ;;  %v1073_v4 = vor.u32 %v1071_v59, %v1070_v15 }
 0x1d9   : > { %1225 = vrot.lane.b32.xlu0 %v8923_v36, %s8134_s29  ;;  %1630 = vrot.lane.b32.xlu1 %v8969_v14, %s8134_s29 }
 0x1db   : > { %v8975_v40 = vpop.permute.xlu1 %3530  ;;  %v8977_v21 = vpop.permute.xlu0 %3561 }
 0x1dd   : > { %3635 = vrot.lane.b32.xlu0 %v8956_v19, %s8139_s22  ;;  %3091 = vrot.lane.b32.xlu1 %v8980_v7, %s8138_s20 }
 0x1df   : > { %v8986_v43 = vpop.permute.xlu1 %1219  ;;  %v1251_v47 = vpop.permute.xlu0 %1250 }
 0x1e1   : > { %3093 = vrot.lane.b32.xlu0 %v8934_v41, %s8138_s20  ;;  %3633 = vrot.lane.b32.xlu1 %v8989_v50, %s8139_s22 }
 0x1e3   : > { %v1617_v57 = vpop.permute.xlu1 %1616  ;;  %v1218_v3 = vpop.permute.xlu0 %1217 }
 0x1e4   : > { %v1683_v36 = vsel %vm572_vm1, %v8496_v60, %v1617_v57  ;;  %v1284_v33 = vsel %vm572_vm1, %v8492_v23, %v1218_v3  ;;  %v1064_v57 = vshll.u32 %v8850_v31, 16  ;;  %v9013_v60 = vrot.slane %v1061_v53, 7 }
 0x1e5   : > { %v1730_v34 = vsel %vm1330_vm10, %v1683_v36, %v1650_v42  ;;  %3605 = vrot.lane.b32.xlu0 %v8956_v19, %s8138_s20  ;;  %3061 = vrot.lane.b32.xlu1 %v8980_v7, %s8135_s30  ;;  %v1332_v45 = vsel %vm1330_vm10, %v1284_v33, %v1251_v47 }
 0x1e6   : > { %v1768_v10 = vshll.u32 %v1730_v34, 16  ;;  %v2272_v5 = vrot.slane %v1730_v34, 1  ;;  %7733 = vmatprep.mubr.msk.bf16.mxu1 %vm1370_vm11, %v1332_v45  ;;  %v1764_v39 = vshll.u32 %v1332_v45, 16  ;;  %v2271_v3 = vrot.slane %v1332_v45, 1 }
 0x1e7   : > { %v9009_v23 = vpop.permute.xlu1 %3055  ;;  %v9011_v42 = vpop.permute.xlu0 %3115  ;;  %v1762_v36 = vshrl.u32 %v1332_v45, 16  ;;  %v9028_v45 = vsel %vm8299_vm6, 0, %v1073_v4  ;;  %v12107_v4 = vrot.slane %v8783_v2, 7 }
 0x1e8   : > { %v1766_v19 = vrot.slane %v1764_v39, 1  ;;  %v9020_v47 = vsel %vm2270_vm12, %v2271_v3, %v2272_v5  ;;  %v1770_v31 = vrot.slane %v1768_v10, 1  ;;  %v1066_v39 = vor.u32 %v1064_v57, %v9013_v60 }
 0x1e9   : > { %1661 = vrot.lane.b32.xlu0 %v8969_v14, %s8135_s30  ;;  %3542 = vrot.lane.b32.xlu1 %v8989_v50, %s8134_s29  ;;  %12300 = vst [vmem:[#allocation72_spill] sm:$0xff] %v9020_v47  ;;  %v8080_v5 = vunpack.i.l.bf16 %v8652_v28  ;;  %v1082_v10 = vshrl.u32 %v8766_v46, 16  ;;  %v8081_v57 = vunpack.i.h.bf16 %v8652_v28 }
 0x1ea   : > { %v1767_v34 = vor.u32 %v1766_v19, %v1762_v36  ;;  %v9045_v15 = vsel %vm8299_vm6, 0, %v1066_v39  ;;  %v1085_v39 = vshll.u32 %v8766_v46, 16 }
 0x1eb   : > { %v9022_v33 = vpop.permute.xlu1 %3567  ;;  %v9024_v11 = vpop.permute.xlu0 %3627  ;;  %v3144_v3 = vsel %vm572_vm1, %v8485_v49, %v8080_v5  ;;  %v1084_v28 = vrot.slane %v1082_v10, 7  ;;  %v1075_v5 = vshrl.u32 %v8858_v55, 16  ;;  %v3656_v47 = vsel %vm572_vm1, %v8488_v51, %v8081_v57 }
 0x1ec   : > { %v1771_v59 = vsel %vm1761_vm3, %v1767_v34, %v1770_v31  ;;  %v9062_v34 = vsel %vm1164_vm4, 0, %v12107_v4 }
 0x1ed   : > { %3121 = vrot.lane.b32.xlu0 %v8980_v7, %s8139_s22  ;;  %1231 = vrot.lane.b32.xlu1 %v9028_v45, %s8134_s29  ;;  %12302 = vst [vmem:[#allocation74_spill] sm:$0xff] %v9062_v34  ;;  %v9086_v46 = vsel %vm8299_vm6, %v1084_v28, 0 }
 0x1ee   : > { %7767 = vmatprep.mubr.msk.bf16.mxu0 %vm1370_vm11, %v1771_v59  ;;  %v3176_v59 = vsel %vm1330_vm10, %v3144_v3, %v8962_v27  ;;  %12305 = vst [vmem:[#allocation77_spill] sm:$0xff] %v9086_v46 }
 0x1ef   : > { %v9038_v19 = vpop.permute.xlu1 %3024  ;;  %v9040_v53 = vpop.permute.xlu0 %3085  ;;  %v3208_v4 = vsel %vm1370_vm11, %v3176_v59, %v8916_v16  ;;  %v1078_v16 = vshll.u32 %v8858_v55, 16  ;;  %v3146_v55 = vsel %vm572_vm1, %v8485_v49, %v8964_v63 }
 0x1f0   : > { %12301 = vst [vmem:[#allocation73_spill] sm:$0xff] %v9038_v19 }
 0x1f1   : > { %3603 = vrot.lane.b32.xlu0 %v8989_v50, %s8138_s20  ;;  %1260 = vrot.lane.b32.xlu1 %v9045_v15, %s8135_s30 }
 0x1f3   : > { %v9055_v36 = vpop.permute.xlu1 %1622  ;;  %v9057_v31 = vpop.permute.xlu0 %3597 }
 0x1f5   : > { %3030 = vrot.lane.b32.xlu0 %v8980_v7, %s8134_s29  ;;  %3127 = vrot.lane.b32.xlu1 %v9062_v34, %s8139_s22  ;;  %v3688_v7 = vsel %vm1330_vm10, %v3656_v47, %v8977_v21  ;;  %v9095_v21 = vrot.slane %v1075_v5, 7 }
 0x1f6   : > { %v3720_v47 = vsel %vm1370_vm11, %v3688_v7, %v8931_v9  ;;  %v1087_v9 = vor.u32 %v1085_v39, %v1084_v28  ;;  %v3178_v28 = vsel %vm1330_vm10, %v3146_v55, %v8918_v48  ;;  %v3658_v48 = vsel %vm572_vm1, %v8488_v51, %v8975_v40 }
 0x1f7   : > { %v3114_v14 = vpop.permute.xlu1 %3113  ;;  %v9076_v27 = vpop.permute.xlu0 %3536  ;;  %v1099_v55 = vshll.u32 %v8816_v25, 16 }
 0x1f8   : > { %12303 = vst [vmem:[#allocation75_spill] sm:$0xff] %v9076_v27  ;;  %v9082_v10 = vsel %vm3239_vm13, %v3208_v4, %v3114_v14 }
 0x1f9   : > { %12304 = vst [vmem:[#allocation76_spill] sm:$0xff] %v9082_v10  ;;  %v12111_v57 = vshrl.u32 %v9082_v10, 16  ;;  %v12112_v19 = vshll.u32 %v9082_v10, 16  ;;  %3573 = vrot.lane.b32.xlu0 %v8989_v50, %s8135_s30  ;;  %1634 = vrot.lane.b32.xlu1 %v9086_v46, %s8134_s29  ;;  %v12306_v50 = vrot.slane %v8792_v54, 7 }
 0x1fb   : > { %v3626_v14 = vpop.permute.xlu1 %3625  ;;  %v9099_v4 = vpop.permute.xlu0 %1653  ;;  %v4665_v59 = vrot.slane %v12111_v57, 1  ;;  %v4666_v3 = vrot.slane %v12112_v19, 2  ;;  %v9108_v27 = vsel %vm1164_vm4, 0, %v12306_v50 }
 0x1fc   : > { %12307 = vst [vmem:[#allocation78_spill] sm:$0xff] %v9108_v27  ;;  %v9114_v5 = vsel %vm3239_vm13, %v3720_v47, %v3626_v14  ;;  %v1080_v14 = vor.u32 %v1078_v16, %v9095_v21  ;;  %v1096_v47 = vshrl.u32 %v8816_v25, 16  ;;  %v3690_v25 = vsel %vm1330_vm10, %v3658_v48, %v8929_v8 }
 0x1fd   : > { %12308 = vst [vmem:[#allocation79_spill] sm:$0xff] %v9114_v5  ;;  %v12117_v7 = vshll.u32 %v9114_v5, 16  ;;  %v4668_v57 = vshrl.u32 %v9114_v5, 16  ;;  %1262 = vrot.lane.b32.xlu0 %v9028_v45, %s8135_s30  ;;  %3095 = vrot.lane.b32.xlu1 %v9108_v27, %s8138_s20  ;;  %v4667_v50 = vor.u32 %v4666_v3, %v4665_v59  ;;  %v9134_v3 = vsel %vm8299_vm6, %v9013_v60, 0 }
 0x1ff   : > { %v4670_v19 = vrot.slane %v4668_v57, 1  ;;  %v4671_v10 = vrot.slane %v12117_v7, 2  ;;  %v9124_v63 = vpop.permute.xlu1 %3053  ;;  %v3084_v39 = vpop.permute.xlu0 %3083  ;;  %v9138_v57 = vsel %vm8299_vm6, 0, %v1087_v9  ;;  %v1089_v9 = vshrl.u32 %v8871_v17, 16 }
 0x200   : > { %v3210_v49 = vsel %vm1370_vm11, %v3178_v28, %v3084_v39  ;;  %v1098_v39 = vrot.slane %v1096_v47, 7 }
 0x201   : > { %v9145_v16 = vsel %vm3239_vm13, %v3210_v49, %v9011_v42  ;;  %1659 = vrot.lane.b32.xlu0 %v9134_v3, %s8135_s30  ;;  %1235 = vrot.lane.b32.xlu1 %v9138_v57, %s8134_s29  ;;  %v9159_v49 = vsel %vm8299_vm6, 0, %v1080_v14  ;;  %v4672_v42 = vor.u32 %v4671_v10, %v4670_v19 }
 0x202   : > { %12309 = vst [vmem:[#allocation80_spill] sm:$0xff] %v9145_v16  ;;  %v12122_v60 = vshrl.u32 %v9145_v16, 16  ;;  %v12123_v59 = vshll.u32 %v9145_v16, 16 }
 0x203   : > { %v9155_v40 = vpop.permute.xlu1 %3534  ;;  %v3596_v28 = vpop.permute.xlu0 %3595  ;;  %v9173_v19 = vsel %vm4664_vm14, %v4667_v50, %v4672_v42  ;;  %v9190_v50 = vsel %vm8299_vm6, %v1098_v39, 0  ;;  %v1101_v42 = vor.u32 %v1099_v55, %v1098_v39  ;;  %v1686_v39 = vsel %vm572_vm1, %v8714_v20, %v8953_v32 }
 0x204   : > { %v4674_v7 = vrot.slane %v12122_v60, 1  ;;  %v4675_v5 = vrot.slane %v12123_v59, 2  ;;  %v3722_v51 = vsel %vm1370_vm11, %v3690_v25, %v3596_v28  ;;  %12310 = vst [vmem:[#allocation81_spill] sm:$0xff] %v9173_v19  ;;  %v9185_v25 = vrot.slane %v1089_v9, 7 }
 0x205   : > { %1264 = vrot.lane.b32.xlu1 %v9159_v49, %s8135_s30  ;;  %1628 = vrot.lane.b32.xlu0 %v9134_v3, %s8134_s29  ;;  %v9177_v10 = vsel %vm3239_vm13, %v3722_v51, %v9024_v11  ;;  %v1092_v60 = vshll.u32 %v8871_v17, 16  ;;  %v1110_v17 = vshrl.u32 %v8852_v29, 16  ;;  %v9203_v59 = vsel %vm8299_vm6, 0, %v1101_v42 }
 0x206   : > { %12311 = vst [vmem:[#allocation82_spill] sm:$0xff] %v9177_v10  ;;  %v4676_v14 = vor.u32 %v4675_v5, %v4674_v7  ;;  %v12124_v47 = vshll.u32 %v9177_v10, 16  ;;  %v4677_v8 = vshrl.u32 %v9177_v10, 16  ;;  %v1103_v42 = vshrl.u32 %v8880_v18, 16 }
 0x207   : > { %v9181_v48 = vpop.permute.xlu1 %1223  ;;  %v9183_v28 = vpop.permute.xlu0 %3022  ;;  %v1094_v55 = vor.u32 %v1092_v60, %v9185_v25  ;;  %v1287_v60 = vsel %vm572_vm1, %v8718_v6, %v8986_v43  ;;  %v1112_v32 = vrot.slane %v1110_v17, 7  ;;  %v1113_v20 = vshll.u32 %v8852_v29, 16 }
 0x208   : > { %v4679_v51 = vrot.slane %v4677_v8, 1  ;;  %v4680_v11 = vrot.slane %v12124_v47, 2  ;;  %v1106_v6 = vshll.u32 %v8880_v18, 16  ;;  %v9233_v29 = vrot.slane %v1103_v42, 7 }
 0x209   : > { %1638 = vrot.lane.b32.xlu1 %v9190_v50, %s8134_s29  ;;  %1229 = vrot.lane.b32.xlu0 %v9045_v15, %s8134_s29  ;;  %v9225_v10 = vsel %vm8299_vm6, 0, %v1094_v55  ;;  %v1115_v18 = vor.u32 %v1113_v20, %v1112_v32 }
 0x20a   : > { %v4681_v5 = vor.u32 %v4680_v11, %v4679_v51 }
 0x20b   : > { %v1652_v7 = vpop.permute.xlu1 %1651  ;;  %v9198_v9 = vpop.permute.xlu0 %3565  ;;  %v9261_v20 = vsel %vm8299_vm6, 0, %v1115_v18 }
 0x20c   : > { %v9214_v8 = vsel %vm4664_vm14, %v4676_v14, %v4681_v5  ;;  %v1732_v51 = vsel %vm1330_vm10, %v1686_v39, %v1652_v7 }
 0x20d   : > { %1239 = vrot.lane.b32.xlu1 %v9203_v59, %s8134_s29  ;;  %1665 = vrot.lane.b32.xlu0 %v9086_v46, %s8135_s30  ;;  %12312 = vst [vmem:[#allocation83_spill] sm:$0xff] %v9214_v8  ;;  %v1778_v14 = vshll.u32 %v1732_v51, 16  ;;  %v2275_v5 = vrot.slane %v1732_v51, 1  ;;  %v9244_v8 = vsel %vm8299_vm6, %v1112_v32, 0 }
 0x20f   : > { %v1253_v11 = vpop.permute.xlu1 %1252  ;;  %v1255_v47 = vpop.permute.xlu0 %1254  ;;  %v1780_v16 = vrot.slane %v1778_v14, 1 }
 0x210   : > { %v1334_v19 = vsel %vm1330_vm10, %v1287_v60, %v1253_v11 }
 0x211   : > { %v1774_v7 = vshll.u32 %v1334_v19, 16  ;;  %v2274_v39 = vrot.slane %v1334_v19, 1  ;;  %1268 = vrot.lane.b32.xlu1 %v9225_v10, %s8135_s30  ;;  %3125 = vrot.lane.b32.xlu0 %v9108_v27, %s8139_s22  ;;  %v1772_v43 = vshrl.u32 %v1334_v19, 16 }
 0x212   : > { %7734 = vmatmul.mubr.msk.bf16.vlgmr.msra.gmra.mxu1 %vm1370_vm11, %v1334_v19 }
 0x213   : > { %v1776_v17 = vrot.slane %v1774_v7, 1  ;;  %v9235_v55 = vpop.permute.xlu1 %3119  ;;  %v1621_v60 = vpop.permute.xlu0 %1620  ;;  %v9238_v51 = vsel %vm2270_vm12, %v2274_v39, %v2275_v5  ;;  %v1108_v7 = vor.u32 %v1106_v6, %v9233_v29 }
 0x214   : > { %v1689_v11 = vsel %vm572_vm1, %v8678_v58, %v1621_v60 }
 0x215   : > { %v1777_v46 = vor.u32 %v1776_v17, %v1772_v43  ;;  %1642 = vrot.lane.b32.xlu1 %v9244_v8, %s8134_s29  ;;  %1266 = vrot.lane.b32.xlu0 %v9138_v57, %s8135_s30  ;;  %v1734_v19 = vsel %vm1330_vm10, %v1689_v11, %v9099_v4  ;;  %v9266_v4 = vsel %vm8299_vm6, %v9095_v21, 0  ;;  %v9280_v21 = vsel %vm8299_vm6, 0, %v1108_v7 }
 0x216   : > { %v1124_v17 = vshrl.u32 %v8894_v13, 16 }
 0x217   : > { %v9252_v42 = vpop.permute.xlu1 %3059  ;;  %v1222_v5 = vpop.permute.xlu0 %1221  ;;  %v1781_v58 = vsel %vm1761_vm3, %v1777_v46, %v1780_v16  ;;  %v2278_v16 = vrot.slane %v1734_v19, 1 }
 0x218   : > { %v1290_v32 = vsel %vm572_vm1, %v8704_v12, %v1222_v5  ;;  %7768 = vmatmul.mubr.msk.bf16.vlgmr.msra.gmra.mxu0 %vm1370_vm11, %v1781_v58  ;;  %v1788_v12 = vshll.u32 %v1734_v19, 16  ;;  %v1126_v7 = vrot.slane %v1124_v17, 7  ;;  %v8100_v17 = vld [vmem:[%s12002_s3 + $0x10] sm:$0x3f]  }
 0x219   : > { %1243 = vrot.lane.b32.xlu1 %v9261_v20, %s8134_s29  ;;  %1663 = vrot.lane.b32.xlu0 %v9266_v4, %s8135_s30  ;;  %v1336_v46 = vsel %vm1330_vm10, %v1290_v32, %v1255_v47  ;;  %v1127_v32 = vshll.u32 %v8894_v13, 16 }
 0x21a   : > { %7737 = vmatprep.mubr.msk.bf16.mxu1 %vm1370_vm11, %v1336_v46  ;;  %v1784_v14 = vshll.u32 %v1336_v46, 16  ;;  %v2277_v39 = vrot.slane %v1336_v46, 1  ;;  %v1782_v60 = vshrl.u32 %v1336_v46, 16  ;;  %v1790_v18 = vrot.slane %v1788_v12, 1  ;;  %8050 = vmatprep.subr.msk.bf16.mxu1 %vm1403_vm9, %v8100_v17 }
 0x21b   : > { %v9274_v6 = vpop.permute.xlu1 %3571  ;;  %v9276_v43 = vpop.permute.xlu0 %3631  ;;  %v9310_v13 = vsel %vm8299_vm6, %v1126_v7, 0 }
 0x21c   : > { %v1786_v11 = vrot.slane %v1784_v14, 1  ;;  %v9284_v47 = vsel %vm2270_vm12, %v2277_v39, %v2278_v16  ;;  %v3150_v14 = vsel %vm572_vm1, %v8657_v24, %v9183_v28  ;;  %v1129_v39 = vor.u32 %v1127_v32, %v1126_v7 }
 0x21d   : > { %12313 = vst [vmem:[#allocation84_spill] sm:$0xff] %v9284_v47  ;;  %1272 = vrot.lane.b32.xlu1 %v9280_v21, %s8135_s30  ;;  %1632 = vrot.lane.b32.xlu0 %v9266_v4, %s8134_s29  ;;  %v3660_v24 = vsel %vm572_vm1, %v8694_v38, %v8942_v61 }
 0x21e   : > { %v1787_v19 = vor.u32 %v1786_v11, %v1782_v60  ;;  %v2376_v60 = vsel %vm1403_vm9, %v8100_v17, 0  ;;  %v3182_v11 = vsel %vm1330_vm10, %v3150_v14, %v9009_v23  ;;  %v9333_v32 = vsel %vm8299_vm6, 0, %v1129_v39 }
 0x21f   : > { %v9290_v5 = vpop.permute.xlu1 %3028  ;;  %v9292_v58 = vpop.permute.xlu0 %3089  ;;  %7800 = vmatpush3.bf16.msra.mxu1 %v2376_v60  ;;  %v12315_v23 = vrot.slane %v8792_v54, 7  ;;  %v9360_v60 = vsel %vm8299_vm6, %v9185_v25, 0 }
 0x220   : > { %v1791_v46 = vsel %vm1761_vm3, %v1787_v19, %v1790_v18  ;;  %v3692_v19 = vsel %vm1330_vm10, %v3660_v24, %v9198_v9 }
 0x221   : > { %3032 = vrot.lane.b32.xlu1 %v8934_v41, %s8134_s29  ;;  %1233 = vrot.lane.b32.xlu0 %v9159_v49, %s8134_s29  ;;  %v9348_v9 = vsel %vm1164_vm4, %v12315_v23, 0  ;;  %v3724_v39 = vsel %vm1370_vm11, %v3692_v19, %v9057_v31 }
 0x222   : > { %7771 = vmatprep.mubr.msk.bf16.mxu0 %vm1370_vm11, %v1791_v46  ;;  %12316 = vst [vmem:[#allocation86_spill] sm:$0xff] %v9348_v9 }
 0x223   : > { %v9301_v16 = vpop.permute.xlu1 %1626  ;;  %v9303_v12 = vpop.permute.xlu0 %3601 }
 0x225   : > { %1646 = vrot.lane.b32.xlu1 %v9310_v13, %s8134_s29  ;;  %1669 = vrot.lane.b32.xlu0 %v9190_v50, %s8135_s30 }
 0x227   : > { %v3088_v28 = vpop.permute.xlu1 %3087  ;;  %v9326_v18 = vpop.permute.xlu0 %3540 }
 0x228   : > { %v3214_v7 = vsel %vm1370_vm11, %v3182_v11, %v3088_v28 }
 0x229   : > { %v9337_v46 = vsel %vm3239_vm13, %v3214_v7, %v9235_v55  ;;  %1278 = vrot.lane.b32.xlu1 %v9333_v32, %s8135_s30  ;;  %1270 = vrot.lane.b32.xlu0 %v9203_v59, %s8135_s30  ;;  %v3148_v55 = vsel %vm572_vm1, %v8687_v37, %v8940_v26 }
 0x22a   : > { %12314 = vst [vmem:[#allocation85_spill] sm:$0xff] %v9337_v46  ;;  %v12133_v38 = vshll.u32 %v9337_v46, 16  ;;  %v12130_v61 = vshrl.u32 %v9337_v46, 16  ;;  %v3180_v54 = vsel %vm1330_vm10, %v3148_v55, %v9124_v63  ;;  %v3662_v63 = vsel %vm572_vm1, %v8664_v62, %v9155_v40 }
 0x22b   : > { %v3630_v14 = vpop.permute.xlu1 %3629  ;;  %v9355_v17 = vpop.permute.xlu0 %1657  ;;  %v3212_v19 = vsel %vm1370_vm11, %v3180_v54, %v9040_v53  ;;  %v3694_v62 = vsel %vm1330_vm10, %v3662_v63, %v9022_v33 }
 0x22c   : > { %v9365_v24 = vsel %vm3239_vm13, %v3724_v39, %v3630_v14  ;;  %v4692_v37 = vrot.slane %v12130_v61, 1  ;;  %v4693_v26 = vrot.slane %v12133_v38, 2 }
 0x22d   : > { %12317 = vst [vmem:[#allocation87_spill] sm:$0xff] %v9365_v24  ;;  %3637 = vrot.lane.b32.xlu1 %v9348_v9, %s8139_s22  ;;  %1667 = vrot.lane.b32.xlu0 %v9360_v60, %s8135_s30  ;;  %v12131_v25 = vshll.u32 %v9365_v24, 16  ;;  %v4686_v28 = vshrl.u32 %v9365_v24, 16 }
 0x22e   : > { %v4694_v31 = vor.u32 %v4693_v26, %v4692_v37 }
 0x22f   : > { %v9380_v11 = vpop.permute.xlu1 %3057  ;;  %v3118_v7 = vpop.permute.xlu0 %3117  ;;  %v4688_v40 = vrot.slane %v4686_v28, 1  ;;  %v4689_v53 = vrot.slane %v12131_v25, 2 }
 0x230   : > { %v9385_v23 = vsel %vm3239_vm13, %v3212_v19, %v3118_v7  ;;  %v2942_v19 = vrot.slane %v8840_v35, 7 }
 0x231   : > { %12318 = vst [vmem:[#allocation88_spill] sm:$0xff] %v9385_v23  ;;  %v12132_v55 = vshrl.u32 %v9385_v23, 16  ;;  %v12134_v14 = vshll.u32 %v9385_v23, 16  ;;  %3065 = vrot.lane.b32.xlu1 %v9108_v27, %s8135_s30  ;;  %1636 = vrot.lane.b32.xlu0 %v9360_v60, %s8134_s29  ;;  %v9627_v23 = vld [vmem:[%s12004_s5 + $0x14] ss:$0 sps:$4 sm:$0x33]  }
 0x232   : > { %8052 = vmatprep.subr.msk.bf16.mxu1 %vm621_vm0, %v9627_v23 }
 0x233   : > { %v9397_v39 = vpop.permute.xlu1 %3538  ;;  %v3600_v54 = vpop.permute.xlu0 %3599  ;;  %v4683_v37 = vrot.slane %v12132_v55, 1  ;;  %v4684_v26 = vrot.slane %v12134_v14, 2  ;;  %v4690_v55 = vor.u32 %v4689_v53, %v4688_v40  ;;  %v1293_v40 = vsel %vm572_vm1, %v8821_v30, %v9181_v48 }
 0x234   : > { %v3726_v7 = vsel %vm1370_vm11, %v3694_v62, %v3600_v54  ;;  %v12136_v62 = vrot.slane %v8827_v52, 7 }
 0x235   : > { %v9407_v33 = vsel %vm3239_vm13, %v3726_v7, %v9276_v43  ;;  %3067 = vrot.lane.b32.xlu1 %v9062_v34, %s8135_s30  ;;  %1237 = vrot.lane.b32.xlu0 %v9225_v10, %s8134_s29  ;;  %v4685_v35 = vor.u32 %v4684_v26, %v4683_v37  ;;  %v9419_v43 = vsel %vm1164_vm4, 0, %v2942_v19 }
 0x236   : > { %12319 = vst [vmem:[#allocation89_spill] sm:$0xff] %v9407_v33  ;;  %v12135_v63 = vshll.u32 %v9407_v33, 16  ;;  %v4695_v28 = vshrl.u32 %v9407_v33, 16  ;;  %12320 = vst [vmem:[#allocation90_spill] sm:$0xff] %v9419_v43 }
 0x237   : > { %v9415_v61 = vpop.permute.xlu1 %1227  ;;  %v3027_v25 = vpop.permute.xlu0 %3026  ;;  %v9426_v7 = vsel %vm4664_vm14, %v4685_v35, %v4690_v55  ;;  %v9452_v35 = vsel %vm8299_vm6, %v9233_v29, 0 }
 0x238   : > { %v4697_v54 = vrot.slane %v4695_v28, 1  ;;  %12321 = vst [vmem:[#allocation91_spill] sm:$0xff] %v9426_v7  ;;  %v4698_v38 = vrot.slane %v12135_v63, 2  ;;  %v9438_v28 = vsel %vm1164_vm4, 0, %v12136_v62 }
 0x239   : > { %3099 = vrot.lane.b32.xlu1 %v9419_v43, %s8138_s20  ;;  %1673 = vrot.lane.b32.xlu0 %v9244_v8, %s8135_s30  ;;  %12322 = vst [vmem:[#allocation92_spill] sm:$0xff] %v9438_v28 }
 0x23a   : > { %v4699_v26 = vor.u32 %v4698_v38, %v4697_v54  ;;  %v1692_v54 = vsel %vm572_vm1, %v8810_v1, %v9055_v36 }
 0x23b   : > { %v1257_v53 = vpop.permute.xlu1 %1256  ;;  %v9433_v37 = vpop.permute.xlu0 %3569 }
 0x23c   : > { %v1338_v14 = vsel %vm1330_vm10, %v1293_v40, %v1257_v53  ;;  %v9447_v30 = vsel %vm4664_vm14, %v4694_v31, %v4699_v26  ;;  %v12324_v26 = vrot.slane %v8783_v2, 7 }
 0x23d   : > { %3131 = vrot.lane.b32.xlu1 %v9438_v28, %s8139_s22  ;;  %1274 = vrot.lane.b32.xlu0 %v9261_v20, %s8135_s30  ;;  %12323 = vst [vmem:[#allocation93_spill] sm:$0xff] %v9447_v30  ;;  %v1794_v48 = vshll.u32 %v1338_v14, 16  ;;  %v1792_v62 = vshrl.u32 %v1338_v14, 16  ;;  %v2280_v30 = vrot.slane %v1338_v14, 1 }
 0x23e   : > { %7738 = vmatmul.mubr.msk.bf16.gmra.mxu1 %vm1370_vm11, %v1338_v14  ;;  %v9466_v63 = vsel %vm1164_vm4, %v12324_v26, 0 }
 0x23f   : > { %v3124_v38 = vpop.permute.xlu1 %3123  ;;  %v1259_v55 = vpop.permute.xlu0 %1258  ;;  %v1796_v31 = vrot.slane %v1794_v48, 1  ;;  %12325 = vst [vmem:[#allocation94_spill] sm:$0xff] %v9466_v63 }
 0x241   : > { %3546 = vrot.lane.b32.xlu1 %v9348_v9, %s8134_s29  ;;  %1671 = vrot.lane.b32.xlu0 %v9452_v35, %s8135_s30  ;;  %v1797_v1 = vor.u32 %v1796_v31, %v1792_v62 }
 0x243   : > { %v9461_v40 = vpop.permute.xlu1 %3063  ;;  %v1656_v53 = vpop.permute.xlu0 %1655 }
 0x244   : > { %v1736_v29 = vsel %vm1330_vm10, %v1692_v54, %v1656_v53  ;;  %v12328_v53 = vld [vmem:[#allocation63_spill] sm:$0xff] }
 0x245   : > { %v1798_v7 = vshll.u32 %v1736_v29, 16  ;;  %v2281_v33 = vrot.slane %v1736_v29, 1  ;;  %3579 = vrot.lane.b32.xlu1 %v9466_v63, %s8135_s30  ;;  %1640 = vrot.lane.b32.xlu0 %v9452_v35, %s8134_s29  ;;  %v1117_v29 = vshrl.u32 %v12328_v53, 16 }
 0x247   : > { %v1800_v36 = vrot.slane %v1798_v7, 1  ;;  %v9473_v48 = vpop.permute.xlu1 %3575  ;;  %v1625_v2 = vpop.permute.xlu0 %1624  ;;  %v9476_v26 = vsel %vm2270_vm12, %v2280_v30, %v2281_v33  ;;  %v9491_v30 = vsel %vm1164_vm4, %v2942_v19, 0 }
 0x248   : > { %12326 = vst [vmem:[#allocation95_spill] sm:$0xff] %v9476_v26  ;;  %v1695_v54 = vsel %vm572_vm1, %v8751_v56, %v1625_v2  ;;  %12327 = vst [vmem:[#allocation96_spill] sm:$0xff] %v9491_v30  ;;  %v3154_v56 = vsel %vm572_vm1, %v8727_v22, %v3027_v25 }
 0x249   : > { %3036 = vrot.lane.b32.xlu1 %v9062_v34, %s8134_s29  ;;  %1241 = vrot.lane.b32.xlu0 %v9280_v21, %s8134_s29  ;;  %v1801_v14 = vsel %vm1761_vm3, %v1797_v1, %v1800_v36  ;;  %v1738_v62 = vsel %vm1330_vm10, %v1695_v54, %v9355_v17 }
 0x24a   : > { %7772 = vmatmul.mubr.msk.bf16.gmra.mxu0 %vm1370_vm11, %v1801_v14  ;;  %v1808_v1 = vshll.u32 %v1738_v62, 16  ;;  %v2284_v36 = vrot.slane %v1738_v62, 1 }
 0x24b   : > { %v9488_v7 = vpop.permute.xlu1 %1630  ;;  %v1226_v33 = vpop.permute.xlu0 %1225 }
 0x24c   : > { %v1296_v31 = vsel %vm572_vm1, %v8800_v0, %v1226_v33  ;;  %v3186_v0 = vsel %vm1330_vm10, %v3154_v56, %v9252_v42  ;;  %v1810_v42 = vrot.slane %v1808_v1, 1  ;;  %v12332_v1 = vld [vmem:[#allocation75_spill] sm:$0xff] }
 0x24d   : > { %3641 = vrot.lane.b32.xlu1 %v9491_v30, %s8139_s22  ;;  %1677 = vrot.lane.b32.xlu0 %v9310_v13, %s8135_s30  ;;  %v1340_v17 = vsel %vm1330_vm10, %v1296_v31, %v1259_v55  ;;  %v1119_v55 = vrot.slane %v1117_v29, 7  ;;  %v12331_v29 = vld [vmem:[#allocation60_spill] sm:$0xff] }
 0x24e   : > { %7741 = vmatprep.mubr.msk.bf16.mxu1 %vm1370_vm11, %v1340_v17  ;;  %v1804_v19 = vshll.u32 %v1340_v17, 16  ;;  %v2283_v2 = vrot.slane %v1340_v17, 1  ;;  %v1802_v54 = vshrl.u32 %v1340_v17, 16  ;;  %v12335_v24 = vrot.slane %v12331_v29, 7 }
 0x24f   : > { %v3092_v22 = vpop.permute.xlu1 %3091  ;;  %v9506_v25 = vpop.permute.xlu0 %3635 }
 0x250   : > { %v1806_v14 = vrot.slane %v1804_v19, 1  ;;  %v3218_v33 = vsel %vm1370_vm11, %v3186_v0, %v3092_v22  ;;  %v9510_v13 = vsel %vm2270_vm12, %v2283_v2, %v2284_v36  ;;  %v1120_v19 = vshll.u32 %v12328_v53, 16 }
 0x251   : > { %12329 = vst [vmem:[#allocation63_spill] sm:$0xff] %v9510_v13  ;;  %v9513_v62 = vsel %vm3239_vm13, %v3218_v33, %v3124_v38  ;;  %3069 = vrot.lane.b32.xlu1 %v9419_v43, %s8135_s30  ;;  %1247 = vrot.lane.b32.xlu0 %v9333_v32, %s8134_s29  ;;  %v9527_v22 = vsel %vm8299_vm6, %v1119_v55, 0  ;;  %v9554_v46 = vsel %vm1164_vm4, 0, %v12335_v24 }
 0x252   : > { %12330 = vst [vmem:[#allocation97_spill] sm:$0xff] %v9513_v62  ;;  %v12144_v56 = vshll.u32 %v9513_v62, 16  ;;  %v1807_v31 = vor.u32 %v1806_v14, %v1802_v54  ;;  %v12139_v17 = vshrl.u32 %v9513_v62, 16  ;;  %v12333_v54 = vld [vmem:[#allocation54_spill] sm:$0xff]  ;;  %12336 = vst [vmem:[#allocation60_spill] sm:$0xff] %v9554_v46 }
 0x253   : > { %v3634_v36 = vpop.permute.xlu1 %3633  ;;  %v9522_v2 = vpop.permute.xlu0 %3093  ;;  %v3664_v14 = vsel %vm572_vm1, %v12333_v54, %v12332_v1 }
 0x254   : > { %v1811_v0 = vsel %vm1761_vm3, %v1807_v31, %v1810_v42  ;;  %v9532_v32 = vrot.slane %v12139_v17, 1  ;;  %v9541_v53 = vrot.slane %v12144_v56, 2  ;;  %v1122_v31 = vor.u32 %v1120_v19, %v1119_v55  ;;  %v12334_v17 = vld [vmem:[#allocation58_spill] sm:$0xff]  ;;  %v12337_v55 = vld [vmem:[#allocation73_spill] sm:$0xff] }
 0x255   : > { %3071 = vrot.lane.b32.xlu1 %v9438_v28, %s8135_s30  ;;  %1675 = vrot.lane.b32.xlu0 %v9527_v22, %s8135_s30  ;;  %v12338_v19 = vld [vmem:[#allocation53_spill] sm:$0xff] }
 0x256   : > { %7775 = vmatprep.mubr.msk.bf16.mxu0 %vm1370_vm11, %v1811_v0  ;;  %v3696_v0 = vsel %vm1330_vm10, %v3664_v14, %v9433_v37  ;;  %v3152_v1 = vsel %vm572_vm1, %v12338_v19, %v12337_v55  ;;  %v12339_v37 = vrot.slane %v12334_v17, 7  ;;  %v9585_v55 = vsel %vm8299_vm6, 0, %v1122_v31 }
 0x257   : > { %v9546_v33 = vpop.permute.xlu1 %3061  ;;  %v9548_v42 = vpop.permute.xlu0 %3605  ;;  %v3728_v24 = vsel %vm1370_vm11, %v3696_v0, %v9303_v12  ;;  %v3184_v56 = vsel %vm1330_vm10, %v3152_v1, %v9380_v11  ;;  %v8101_v12 = vld [vmem:[%s12004_s5 + $0x8] ss:$0 sps:$4 sm:$0x33]   ;;  %v12342_v1 = vld [vmem:[#allocation52_spill] sm:$0xff] }
 0x258   : > { %v9576_v14 = vsel %vm1164_vm4, 0, %v12339_v37  ;;  %v9581_v62 = vsel %vm3239_vm13, %v3728_v24, %v3634_v36  ;;  %v3216_v36 = vsel %vm1370_vm11, %v3184_v56, %v9292_v58  ;;  %8051 = vmatprep.subr.msk.bf16.mxu0 %vm621_vm0, %v8101_v12  ;;  %v3317_v31 = vsel %vm621_vm0, %v8101_v12, 0  ;;  %v12345_v56 = vld [vmem:[#allocation66_spill] sm:$0xff] }
 0x259   : > { %3103 = vrot.lane.b32.xlu1 %v9554_v46, %s8138_s20  ;;  %1644 = vrot.lane.b32.xlu0 %v9527_v22, %s8134_s29  ;;  %12340 = vst [vmem:[#allocation75_spill] sm:$0xff] %v9576_v14  ;;  %12341 = vst [vmem:[#allocation54_spill] sm:$0xff] %v9581_v62  ;;  %v4704_v0 = vshrl.u32 %v9581_v62, 16  ;;  %v3666_v24 = vsel %vm572_vm1, %v12342_v1, %v9397_v39  ;;  %v12151_v37 = vshll.u32 %v9581_v62, 16  ;;  %v12344_v58 = vrot.slane %v8827_v52, 7 }
 0x25a   : > { %7834 = vmatpush3.bf16.msra.mxu0 %v3317_v31  ;;  %v1299_v12 = vsel %vm572_vm1, %v12345_v56, %v9415_v61  ;;  %v3698_v31 = vsel %vm1330_vm10, %v3666_v24, %v9274_v6  ;;  %v8103_v6 = vld [vmem:[%s12004_s5] sm:$0xff]  }
 0x25b   : > { %v9569_v54 = vpop.permute.xlu1 %3542  ;;  %v9571_v38 = vpop.permute.xlu0 %1661  ;;  %v9617_v39 = vsel %vm1164_vm4, %v12344_v58, 0  ;;  %v4707_v58 = vrot.slane %v12151_v37, 2  ;;  %7835 = vmatprep.subr.bf16.mxu0 %v8103_v6 }
 0x25d   : > { %3135 = vrot.lane.b32.xlu1 %v9576_v14, %s8139_s22  ;;  %1276 = vrot.lane.b32.xlu0 %v9585_v55, %s8135_s30 }
 0x25e   : > { %7836 = vmatpush3.bf16.msra.mxu0 %v8103_v6 }
 0x25f   : > { %v9595_v11 = vpop.permute.xlu1 %1231  ;;  %v3122_v19 = vpop.permute.xlu0 %3121 }
 0x260   : > { %v9606_v44 = vsel %vm3239_vm13, %v3216_v36, %v3122_v19  ;;  %v4706_v36 = vrot.slane %v4704_v0, 1 }
 0x261   : > { %12343 = vst [vmem:[#allocation58_spill] sm:$0xff] %v9606_v44  ;;  %v12152_v13 = vshrl.u32 %v9606_v44, 16  ;;  %3550 = vrot.lane.b32.xlu1 %v9491_v30, %s8134_s29  ;;  %3607 = vrot.lane.b32.xlu0 %v9348_v9, %s8138_s20  ;;  %v12346_v0 = vshll.u32 %v9606_v44, 16 }
 0x263   : > { %v1261_v19 = vpop.permute.xlu1 %1260  ;;  %v3604_v1 = vpop.permute.xlu0 %3603  ;;  %v4701_v52 = vrot.slane %v12152_v13, 1  ;;  %v4702_v24 = vrot.slane %v12346_v0, 2  ;;  %v4708_v0 = vor.u32 %v4707_v58, %v4706_v36  ;;  %v12351_v58 = vld [vmem:[#allocation55_spill] sm:$0xff] }
 0x264   : > { %v1342_v26 = vsel %vm1330_vm10, %v1299_v12, %v1261_v19  ;;  %v3730_v61 = vsel %vm1370_vm11, %v3698_v31, %v3604_v1 }
 0x265   : > { %v9642_v56 = vsel %vm3239_vm13, %v3730_v61, %v9506_v25  ;;  %3583 = vrot.lane.b32.xlu1 %v9617_v39, %s8135_s30  ;;  %1245 = vrot.lane.b32.xlu0 %v9585_v55, %s8134_s29  ;;  %v4703_v25 = vor.u32 %v4702_v24, %v4701_v52  ;;  %v12349_v52 = vrot.slane %v12331_v29, 7  ;;  %v12352_v24 = vor.u32 %v9541_v53, %v9532_v32  ;;  %v12355_v53 = vld [vmem:[#allocation67_spill] sm:$0xff] }
 0x266   : > { %12347 = vst [vmem:[#allocation73_spill] sm:$0xff] %v9642_v56  ;;  %v12157_v12 = vshll.u32 %v9642_v56, 16  ;;  %v4713_v19 = vshrl.u32 %v9642_v56, 16  ;;  %7742 = vmatmul.mubr.msk.bf16.gmra.mxu1 %vm1370_vm11, %v1342_v26 }
 0x267   : > { %v3128_v31 = vpop.permute.xlu1 %3127  ;;  %v3031_v1 = vpop.permute.xlu0 %3030  ;;  %v9660_v13 = vsel %vm4664_vm14, %v4703_v25, %v4708_v0  ;;  %v9669_v36 = vsel %vm1164_vm4, %v12349_v52, 0 }
 0x268   : > { %v4715_v61 = vrot.slane %v4713_v19, 1  ;;  %v4716_v37 = vrot.slane %v12157_v12, 2  ;;  %12348 = vst [vmem:[#allocation53_spill] sm:$0xff] %v9660_v13  ;;  %12350 = vst [vmem:[#allocation52_spill] sm:$0xff] %v9669_v36  ;;  %v3158_v6 = vsel %vm572_vm1, %v12351_v58, %v3031_v1 }
 0x269   : > { %3040 = vrot.lane.b32.xlu1 %v9438_v28, %s8134_s29  ;;  %3034 = vrot.lane.b32.xlu0 %v9108_v27, %s8134_s29  ;;  %v3190_v29 = vsel %vm1330_vm10, %v3158_v6, %v9461_v40  ;;  %v1698_v40 = vsel %vm572_vm1, %v12355_v53, %v9301_v16  ;;  %v12356_v6 = vld [vmem:[#allocation64_spill] sm:$0xff]  ;;  %v12359_v27 = vld [vmem:[#allocation57_spill] sm:$0xff] }
 0x26a   : > { %v4717_v62 = vor.u32 %v4716_v37, %v4715_v61  ;;  %v1814_v61 = vshll.u32 %v1342_v26, 16 }
 0x26b   : > { %v9662_v44 = vpop.permute.xlu1 %1634  ;;  %v9664_v47 = vpop.permute.xlu0 %3573 }
 0x26c   : > { %v9677_v19 = vsel %vm4664_vm14, %v12352_v24, %v4717_v62  ;;  %v1816_v24 = vrot.slane %v1814_v61, 1  ;;  %v1812_v61 = vshrl.u32 %v1342_v26, 16 }
 0x26d   : > { %12353 = vst [vmem:[#allocation66_spill] sm:$0xff] %v9677_v19  ;;  %3645 = vrot.lane.b32.xlu1 %v9669_v36, %s8139_s22  ;;  %3639 = vrot.lane.b32.xlu0 %v9466_v63, %s8139_s22  ;;  %v12358_v19 = vld [vmem:[#allocation62_spill] sm:$0xff] }
 0x26e   : > { %v12165_v13 = vrot.slane %v12358_v19, 7  ;;  %v1817_v56 = vor.u32 %v1816_v24, %v1812_v61 }
 0x26f   : > { %v3096_v37 = vpop.permute.xlu1 %3095  ;;  %v1263_v25 = vpop.permute.xlu0 %1262 }
 0x270   : > { %v3222_v1 = vsel %vm1370_vm11, %v3190_v29, %v3096_v37 }
 0x271   : > { %v9687_v0 = vsel %vm3239_vm13, %v3222_v1, %v3128_v31  ;;  %3073 = vrot.lane.b32.xlu1 %v9554_v46, %s8135_s30  ;;  %3097 = vrot.lane.b32.xlu0 %v9062_v34, %s8138_s20  ;;  %v2286_v1 = vrot.slane %v1342_v26, 1  ;;  %v12361_v26 = vld [vmem:[#allocation68_spill] sm:$0xff] }
 0x272   : > { %12354 = vst [vmem:[#allocation55_spill] sm:$0xff] %v9687_v0  ;;  %v12158_v32 = vshrl.u32 %v9687_v0, 16  ;;  %v12357_v16 = vshll.u32 %v9687_v0, 16  ;;  %v12360_v0 = vrot.slane %v12356_v6, 7 }
 0x273   : > { %v9698_v52 = vpop.permute.xlu1 %1235  ;;  %v1660_v58 = vpop.permute.xlu0 %1659 }
 0x274   : > { %v1740_v37 = vsel %vm1330_vm10, %v1698_v40, %v1660_v58  ;;  %v9704_v29 = vrot.slane %v12158_v32, 1  ;;  %v9712_v53 = vrot.slane %v12357_v16, 2  ;;  %v9725_v16 = vsel %vm1164_vm4, 0, %v12360_v0 }
 0x275   : > { %v1818_v12 = vshll.u32 %v1740_v37, 16  ;;  %v2287_v62 = vrot.slane %v1740_v37, 1  ;;  %3075 = vrot.lane.b32.xlu1 %v9576_v14, %s8135_s30  ;;  %3129 = vrot.lane.b32.xlu0 %v9419_v43, %s8139_s22  ;;  %v1305_v0 = vsel %vm572_vm1, %v9045_v15, %v9595_v11 }
 0x277   : > { %v1820_v31 = vrot.slane %v1818_v12, 1  ;;  %v1265_v40 = vpop.permute.xlu1 %1264  ;;  %v1629_v58 = vpop.permute.xlu0 %1628  ;;  %v9715_v32 = vsel %vm2270_vm12, %v2286_v1, %v2287_v62  ;;  %v12362_v1 = vld [vmem:[#allocation65_spill] sm:$0xff] }
 0x278   : > { %v1701_v34 = vsel %vm572_vm1, %v12359_v27, %v1629_v58  ;;  %v9745_v58 = vsel %vm1164_vm4, 0, %v12165_v13 }
 0x279   : > { %3107 = vrot.lane.b32.xlu1 %v9725_v16, %s8138_s20  ;;  %3544 = vrot.lane.b32.xlu0 %v12361_v26, %s8134_s29  ;;  %v1821_v12 = vsel %vm1761_vm3, %v1817_v56, %v1820_v31  ;;  %v1742_v62 = vsel %vm1330_vm10, %v1701_v34, %v9571_v38  ;;  %v1346_v56 = vsel %vm1330_vm10, %v1305_v0, %v1265_v40 }
 0x27a   : > { %7776 = vmatmul.mubr.msk.bf16.gmra.mxu0 %vm1370_vm11, %v1821_v12  ;;  %v1828_v38 = vshll.u32 %v1742_v62, 16  ;;  %v2290_v15 = vrot.slane %v1742_v62, 1  ;;  %v12363_v12 = vld [vmem:[#allocation59_spill] sm:$0xff] }
 0x27b   : > { %v9735_v24 = vpop.permute.xlu1 %1638  ;;  %v1230_v27 = vpop.permute.xlu0 %1229 }
 0x27c   : > { %v1302_v61 = vsel %vm572_vm1, %v12362_v1, %v1230_v27  ;;  %v3156_v27 = vsel %vm572_vm1, %v12363_v12, %v9290_v5  ;;  %v1830_v5 = vrot.slane %v1828_v38, 1 }
 0x27d   : > { %3139 = vrot.lane.b32.xlu1 %v9745_v58, %s8139_s22  ;;  %3577 = vrot.lane.b32.xlu0 %v9348_v9, %s8135_s30  ;;  %v1344_v34 = vsel %vm1330_vm10, %v1302_v61, %v1263_v25  ;;  %v3188_v0 = vsel %vm1330_vm10, %v3156_v27, %v9546_v33  ;;  %v12364_v33 = vrot.slane %v12334_v17, 7 }
 0x27e   : > { %7745 = vmatprep.mubr.msk.bf16.mxu1 %vm1370_vm11, %v1344_v34  ;;  %v1824_v11 = vshll.u32 %v1344_v34, 16  ;;  %v2289_v31 = vrot.slane %v1344_v34, 1  ;;  %v1822_v37 = vshrl.u32 %v1344_v34, 16  ;;  %v3220_v13 = vsel %vm1370_vm11, %v3188_v0, %v9522_v2 }
 0x27f   : > { %v9757_v1 = vpop.permute.xlu1 %1239  ;;  %7746 = vmatmul.mubr.msk.bf16.gmra.mxu1 %vm1370_vm11, %v1346_v56  ;;  %v1666_v40 = vpop.permute.xlu0 %1665  ;;  %v9774_v34 = vsel %vm1164_vm4, %v12364_v33, 0  ;;  %v1704_v0 = vsel %vm572_vm1, %v9134_v3, %v9488_v7  ;;  %v1832_v3 = vshrl.u32 %v1346_v56, 16 }
 0x280   : > { %v1826_v25 = vrot.slane %v1824_v11, 1  ;;  %v9763_v62 = vsel %vm2270_vm12, %v2289_v31, %v2290_v15  ;;  %12365 = vst [vmem:[#allocation67_spill] sm:$0xff] %v9774_v34 }
 0x281   : > { %3554 = vrot.lane.b32.xlu1 %v9669_v36, %s8134_s29  ;;  %3609 = vrot.lane.b32.xlu0 %v9466_v63, %s8138_s20 }
 0x282   : > { %v1827_v61 = vor.u32 %v1826_v25, %v1822_v37 }
 0x283   : > { %v1269_v12 = vpop.permute.xlu1 %1268  ;;  %v3126_v9 = vpop.permute.xlu0 %3125 }
 0x284   : > { %v9777_v15 = vsel %vm3239_vm13, %v3220_v13, %v3126_v9  ;;  %v1831_v11 = vsel %vm1761_vm3, %v1827_v61, %v1830_v5  ;;  %v1834_v13 = vshll.u32 %v1346_v56, 16 }
 0x285   : > { %12366 = vst [vmem:[#allocation64_spill] sm:$0xff] %v9777_v15  ;;  %v12167_v31 = vshrl.u32 %v9777_v15, 16  ;;  %3587 = vrot.lane.b32.xlu1 %v9774_v34, %s8135_s30  ;;  %3611 = vrot.lane.b32.xlu0 %v9491_v30, %s8138_s20  ;;  %v12168_v2 = vshll.u32 %v9777_v15, 16 }
 0x286   : > { %7779 = vmatprep.mubr.msk.bf16.mxu0 %vm1370_vm11, %v1831_v11  ;;  %v1836_v61 = vrot.slane %v1834_v13, 1  ;;  %v12367_v11 = vrot.slane %v12356_v6, 7 }
 0x287   : > { %v9787_v17 = vpop.permute.xlu1 %1642  ;;  %v1267_v37 = vpop.permute.xlu0 %1266  ;;  %v9791_v9 = vrot.slane %v12167_v31, 1  ;;  %v9795_v38 = vrot.slane %v12168_v2, 2  ;;  %v2292_v2 = vrot.slane %v1346_v56, 1 }
 0x288   : > { %v9812_v31 = vsel %vm1164_vm4, %v12367_v11, 0  ;;  %v1837_v6 = vor.u32 %v1836_v61, %v1832_v3 }
 0x289   : > { %3044 = vrot.lane.b32.xlu1 %v9576_v14, %s8134_s29  ;;  %3038 = vrot.lane.b32.xlu0 %v9419_v43, %s8134_s29 }
 0x28b   : > { %v9806_v25 = vpop.permute.xlu1 %1243  ;;  %v1664_v5 = vpop.permute.xlu0 %1663 }
 0x28c   : > { %v1744_v33 = vsel %vm1330_vm10, %v1704_v0, %v1664_v5  ;;  %v12369_v5 = vld [vmem:[#allocation69_spill] sm:$0xff] }
 0x28d   : > { %v1838_v43 = vshll.u32 %v1744_v33, 16  ;;  %v2293_v15 = vrot.slane %v1744_v33, 1  ;;  %3649 = vrot.lane.b32.xlu1 %v9812_v31, %s8139_s22  ;;  %3643 = vrot.lane.b32.xlu0 %v9617_v39, %s8139_s22 }
 0x28f   : > { %v1840_v7 = vrot.slane %v1838_v43, 1  ;;  %v9818_v27 = vpop.permute.xlu1 %1272  ;;  %v1633_v13 = vpop.permute.xlu0 %1632  ;;  %v9821_v0 = vsel %vm2270_vm12, %v2292_v2, %v2293_v15  ;;  %v1311_v2 = vsel %vm572_vm1, %v9159_v49, %v9698_v52 }
 0x290   : > { %12368 = vst [vmem:[#allocation62_spill] sm:$0xff] %v9821_v0  ;;  %v1707_v11 = vsel %vm572_vm1, %v12369_v5, %v1633_v13  ;;  %v1350_v3 = vsel %vm1330_vm10, %v1311_v2, %v1269_v12  ;;  %v12372_v2 = vld [vmem:[#allocation61_spill] sm:$0xff] }
 0x291   : > { %3077 = vrot.lane.b32.xlu1 %v9725_v16, %s8135_s30  ;;  %3101 = vrot.lane.b32.xlu0 %v9438_v28, %s8138_s20  ;;  %v1841_v33 = vsel %vm1761_vm3, %v1837_v6, %v1840_v7  ;;  %v1746_v43 = vsel %vm1330_vm10, %v1707_v11, %v1666_v40 }
 0x292   : > { %7780 = vmatmul.mubr.msk.bf16.gmra.mxu0 %vm1370_vm11, %v1841_v33  ;;  %v1848_v7 = vshll.u32 %v1746_v43, 16  ;;  %v2296_v13 = vrot.slane %v1746_v43, 1  ;;  %v12371_v33 = vld [vmem:[#allocation49_spill] sm:$0xff] }
 0x293   : > { %v9832_v56 = vpop.permute.xlu1 %3032  ;;  %v1234_v15 = vpop.permute.xlu0 %1233 }
 0x294   : > { %v1308_v61 = vsel %vm572_vm1, %v9028_v45, %v1234_v15  ;;  %v1850_v43 = vrot.slane %v1848_v7, 1 }
 0x295   : > { %3079 = vrot.lane.b32.xlu1 %v9745_v58, %s8135_s30  ;;  %3133 = vrot.lane.b32.xlu0 %v9554_v46, %s8139_s22  ;;  %v1348_v40 = vsel %vm1330_vm10, %v1308_v61, %v1267_v37  ;;  %v9855_v37 = vld [vmem:[%s12004_s5 + $0x20] ss:$0 sps:$4 sm:$0x33]   ;;  %v3668_v61 = vsel %vm572_vm1, %v12372_v2, %v9326_v18  ;;  %v1710_v18 = vsel %vm572_vm1, %v9266_v4, %v9662_v44  ;;  %v1852_v44 = vshrl.u32 %v1350_v3, 16 }
 0x296   : > { %7749 = vmatprep.mubr.msk.bf16.mxu1 %vm1370_vm11, %v1348_v40  ;;  %v1844_v6 = vshll.u32 %v1348_v40, 16  ;;  %v2295_v5 = vrot.slane %v1348_v40, 1  ;;  %v1842_v52 = vshrl.u32 %v1348_v40, 16  ;;  %8053 = vmatprep.subr.msk.bf16.mxu0 %vm621_vm0, %v9855_v37  ;;  %v2298_v4 = vrot.slane %v1350_v3, 1 }
 0x297   : > { %v9846_v49 = vpop.permute.xlu1 %1646  ;;  %7750 = vmatmul.mubr.msk.bf16.gmra.mxu1 %vm1370_vm11, %v1350_v3  ;;  %v1670_v45 = vpop.permute.xlu0 %1669 }
 0x298   : > { %v1846_v12 = vrot.slane %v1844_v6, 1  ;;  %v9850_v11 = vsel %vm2270_vm12, %v2295_v5, %v2296_v13  ;;  %v3700_v6 = vsel %vm1330_vm10, %v3668_v61, %v9664_v47  ;;  %v1854_v5 = vshll.u32 %v1350_v3, 16 }
 0x299   : > { %12370 = vst [vmem:[#allocation57_spill] sm:$0xff] %v9850_v11  ;;  %3111 = vrot.lane.b32.xlu1 %v12371_v33, %s8138_s20  ;;  %3548 = vrot.lane.b32.xlu0 %v9466_v63, %s8134_s29  ;;  %v12375_v11 = vld [vmem:[#allocation77_spill] sm:$0xff] }
 0x29a   : > { %v1847_v15 = vor.u32 %v1846_v12, %v1842_v52  ;;  %v3732_v52 = vsel %vm1370_vm11, %v3700_v6, %v9548_v42  ;;  %v1856_v12 = vrot.slane %v1854_v5, 1 }
 0x29b   : > { %v9866_v40 = vpop.permute.xlu1 %1278  ;;  %v1271_v13 = vpop.permute.xlu0 %1270 }
 0x29c   : > { %v1851_v28 = vsel %vm1761_vm3, %v1847_v15, %v1850_v43 }
 0x29d   : > { %3556 = vrot.lane.b32.xlu1 %v9774_v34, %s8134_s29  ;;  %3581 = vrot.lane.b32.xlu0 %v9491_v30, %s8135_s30  ;;  %v1857_v30 = vor.u32 %v1856_v12, %v1852_v44 }
 0x29e   : > { %7783 = vmatprep.mubr.msk.bf16.mxu0 %vm1370_vm11, %v1851_v28 }
 0x29f   : > { %v3638_v7 = vpop.permute.xlu1 %3637  ;;  %v1668_v47 = vpop.permute.xlu0 %1667 }
 0x2a0   : > { %v9882_v43 = vsel %vm3239_vm13, %v3732_v52, %v3638_v7  ;;  %v1748_v15 = vsel %vm1330_vm10, %v1710_v18, %v1668_v47  ;;  %v12374_v52 = vrot.slane %v12358_v19, 7 }
 0x2a1   : > { %12373 = vst [vmem:[#allocation68_spill] sm:$0xff] %v9882_v43  ;;  %v12180_v2 = vshll.u32 %v9882_v43, 16  ;;  %v4722_v61 = vshrl.u32 %v9882_v43, 16  ;;  %3589 = vrot.lane.b32.xlu1 %v9812_v31, %s8135_s30  ;;  %3613 = vrot.lane.b32.xlu0 %v9617_v39, %s8138_s20  ;;  %v1858_v28 = vshll.u32 %v1748_v15, 16  ;;  %v2299_v42 = vrot.slane %v1748_v15, 1 }
 0x2a2   : > { %v9898_v47 = vsel %vm1164_vm4, %v12374_v52, 0 }
 0x2a3   : > { %v4724_v6 = vrot.slane %v4722_v61, 1  ;;  %v4725_v5 = vrot.slane %v12180_v2, 2  ;;  %v9893_v7 = vpop.permute.xlu1 %3065  ;;  %v1637_v18 = vpop.permute.xlu0 %1636  ;;  %v1860_v63 = vrot.slane %v1858_v28, 1  ;;  %v9903_v3 = vsel %vm2270_vm12, %v2298_v4, %v2299_v42 }
 0x2a4   : > { %v1713_v0 = vsel %vm572_vm1, %v12375_v11, %v1637_v18  ;;  %v12376_v11 = vor.u32 %v9795_v38, %v9791_v9  ;;  %v1317_v28 = vsel %vm572_vm1, %v9225_v10, %v9757_v1 }
 0x2a5   : > { %3621 = vrot.lane.b32.xlu1 %v9898_v47, %s8138_s20  ;;  %3615 = vrot.lane.b32.xlu0 %v9669_v36, %s8138_s20  ;;  %v4726_v15 = vor.u32 %v4725_v5, %v4724_v6  ;;  %v1861_v19 = vsel %vm1761_vm3, %v1857_v30, %v1860_v63  ;;  %v1750_v61 = vsel %vm1330_vm10, %v1713_v0, %v1670_v45  ;;  %v12378_v0 = vld [vmem:[#allocation50_spill] sm:$0xff] }
 0x2a6   : > { %7784 = vmatmul.mubr.msk.bf16.gmra.mxu0 %vm1370_vm11, %v1861_v19  ;;  %v1354_v30 = vsel %vm1330_vm10, %v1317_v28, %v9818_v27  ;;  %v1868_v38 = vshll.u32 %v1750_v61, 16  ;;  %v2302_v45 = vrot.slane %v1750_v61, 1 }
 0x2a7   : > { %v9912_v12 = vpop.permute.xlu1 %3067  ;;  %v1238_v44 = vpop.permute.xlu0 %1237  ;;  %v9918_v4 = vsel %vm4664_vm14, %v12376_v11, %v4726_v15  ;;  %v1874_v52 = vshll.u32 %v1354_v30, 16 }
 0x2a8   : > { %12377 = vst [vmem:[#allocation65_spill] sm:$0xff] %v9918_v4  ;;  %v1314_v63 = vsel %vm572_vm1, %v9138_v57, %v1238_v44  ;;  %v1716_v44 = vsel %vm572_vm1, %v9360_v60, %v9735_v24 }
 0x2a9   : > { %3653 = vrot.lane.b32.xlu1 %v12378_v0, %s8139_s22  ;;  %3042 = vrot.lane.b32.xlu0 %v9554_v46, %s8134_s29  ;;  %v1352_v9 = vsel %vm1330_vm10, %v1314_v63, %v1271_v13  ;;  %v1870_v13 = vrot.slane %v1868_v38, 1  ;;  %v1876_v11 = vrot.slane %v1874_v52, 1  ;;  %v1872_v38 = vshrl.u32 %v1354_v30, 16 }
 0x2aa   : > { %7753 = vmatprep.mubr.msk.bf16.mxu1 %vm1370_vm11, %v1352_v9  ;;  %v1864_v42 = vshll.u32 %v1352_v9, 16  ;;  %v2301_v10 = vrot.slane %v1352_v9, 1  ;;  %v1862_v27 = vshrl.u32 %v1352_v9, 16 }
 0x2ab   : > { %v9933_v1 = vpop.permute.xlu1 %3099  ;;  %7754 = vmatmul.mubr.msk.bf16.gmra.mxu1 %vm1370_vm11, %v1354_v30  ;;  %v1674_v57 = vpop.permute.xlu0 %1673 }
 0x2ac   : > { %v1866_v6 = vrot.slane %v1864_v42, 1  ;;  %v9937_v5 = vsel %vm2270_vm12, %v2301_v10, %v2302_v45  ;;  %v2304_v45 = vrot.slane %v1354_v30, 1 }
 0x2ad   : > { %3647 = vrot.lane.b32.xlu0 %v9774_v34, %s8139_s22 }
 0x2ae   : > { %v1867_v18 = vor.u32 %v1866_v6, %v1862_v27  ;;  %v1877_v27 = vor.u32 %v1876_v11, %v1872_v38 }
 0x2af   : > { %v9941_v15 = vpop.permute.xlu1 %3131  ;;  %v1275_v19 = vpop.permute.xlu0 %1274 }
 0x2b0   : > { %v1871_v61 = vsel %vm1761_vm3, %v1867_v18, %v1870_v13 }
 0x2b1   : > { %3105 = vrot.lane.b32.xlu0 %v9576_v14, %s8138_s20  ;;  %7787 = vmatprep.mubr.msk.bf16.mxu0 %vm1370_vm11, %v1871_v61 }
 0x2b3   : > { %v3547_v28 = vpop.permute.xlu1 %3546  ;;  %v1672_v63 = vpop.permute.xlu0 %1671 }
 0x2b4   : > { %v1752_v9 = vsel %vm1330_vm10, %v1716_v44, %v1672_v63  ;;  %v3674_v6 = vsel %vm572_vm1, %v12361_v26, %v3547_v28 }
 0x2b5   : > { %v1878_v42 = vshll.u32 %v1752_v9, 16  ;;  %v2305_v10 = vrot.slane %v1752_v9, 1  ;;  %3137 = vrot.lane.b32.xlu0 %v9725_v16, %s8139_s22 }
 0x2b7   : > { %v1880_v13 = vrot.slane %v1878_v42, 1  ;;  %v3580_v18 = vpop.permute.xlu1 %3579  ;;  %v1641_v61 = vpop.permute.xlu0 %1640  ;;  %v9956_v60 = vsel %vm2270_vm12, %v2304_v45, %v2305_v10 }
 0x2b8   : > { %v9959_v24 = vsel %vm1330_vm10, %v3674_v6, %v3580_v18  ;;  %v1719_v30 = vsel %vm572_vm1, %v9190_v50, %v1641_v61 }
 0x2b9   : > { %3552 = vrot.lane.b32.xlu0 %v9617_v39, %s8134_s29  ;;  %v1881_v52 = vsel %vm1761_vm3, %v1877_v27, %v1880_v13  ;;  %v1754_v26 = vsel %vm1330_vm10, %v1719_v30, %v1674_v57 }
 0x2ba   : > { %7788 = vmatmul.mubr.msk.bf16.gmra.mxu0 %vm1370_vm11, %v1881_v52  ;;  %v1888_v63 = vshll.u32 %v1754_v26, 16  ;;  %v2308_v9 = vrot.slane %v1754_v26, 1 }
 0x2bb   : > { %v9968_v44 = vpop.permute.xlu1 %3036  ;;  %v1242_v11 = vpop.permute.xlu0 %1241 }
 0x2bc   : > { %v1320_v28 = vsel %vm572_vm1, %v9203_v59, %v1242_v11  ;;  %v1890_v59 = vrot.slane %v1888_v63, 1 }
 0x2bd   : > { %3585 = vrot.lane.b32.xlu0 %v9669_v36, %s8135_s30  ;;  %v1356_v50 = vsel %vm1330_vm10, %v1320_v28, %v1275_v19  ;;  %v1722_v28 = vsel %vm572_vm1, %v9452_v35, %v9787_v17  ;;  %v12380_v35 = vld [vmem:[#allocation56_spill] sm:$0xff] }
 0x2be   : > { %7757 = vmatprep.mubr.msk.bf16.mxu1 %vm1370_vm11, %v1356_v50  ;;  %v1884_v38 = vshll.u32 %v1356_v50, 16  ;;  %v2307_v45 = vrot.slane %v1356_v50, 1  ;;  %v1882_v10 = vshrl.u32 %v1356_v50, 16  ;;  %v3670_v17 = vsel %vm572_vm1, %v12380_v35, %v9569_v54 }
 0x2bf   : > { %v9976_v42 = vpop.permute.xlu1 %3641  ;;  %v1678_v57 = vpop.permute.xlu0 %1677 }
 0x2c0   : > { %v1886_v27 = vrot.slane %v1884_v38, 1  ;;  %v9979_v6 = vsel %vm2270_vm12, %v2307_v45, %v2308_v9  ;;  %v12379_v9 = vld [vmem:[#allocation51_spill] sm:$0xff] }
 0x2c1   : > { %3617 = vrot.lane.b32.xlu0 %v9774_v34, %s8138_s20  ;;  %v8075_v38 = vunpack.i.l.bf16 %v12379_v9 }
 0x2c2   : > { %v1887_v13 = vor.u32 %v1886_v27, %v1882_v10 }
 0x2c3   : > { %v9983_v19 = vpop.permute.xlu1 %3069  ;;  %v1248_v18 = vpop.permute.xlu0 %1247 }
 0x2c4   : > { %v1891_v61 = vsel %vm1761_vm3, %v1887_v13, %v1890_v59  ;;  %v1329_v50 = vsel %vm572_vm1, %v9585_v55, %v1248_v18 }
 0x2c5   : > { %3619 = vrot.lane.b32.xlu0 %v9812_v31, %s8138_s20  ;;  %7791 = vmatprep.mubr.msk.bf16.mxu0 %vm1370_vm11, %v1891_v61  ;;  %v3702_v61 = vsel %vm1330_vm10, %v3670_v17, %v9473_v48 }
 0x2c7   : > { %v9989_v30 = vpop.permute.xlu1 %3071  ;;  %v1676_v52 = vpop.permute.xlu0 %1675 }
 0x2c8   : > { %v10003_v63 = vsel %vm1330_vm10, %v1722_v28, %v1676_v52 }
 0x2c9   : > { %3046 = vrot.lane.b32.xlu0 %v9725_v16, %s8134_s29  ;;  %v1323_v16 = vsel %vm572_vm1, %v9280_v21, %v9806_v25  ;;  %v1898_v55 = vshll.u32 %v10003_v63, 16  ;;  %v10024_v21 = vsel %vm1330_vm10, %v1329_v50, %v8075_v38 }
 0x2cb   : > { %v9993_v26 = vpop.permute.xlu1 %3103  ;;  %v1645_v11 = vpop.permute.xlu0 %1644  ;;  %v1900_v35 = vrot.slane %v1898_v55, 1 }
 0x2cc   : > { %v1725_v28 = vsel %vm572_vm1, %v9244_v8, %v1645_v11 }
 0x2cd   : > { %3651 = vrot.lane.b32.xlu0 %v9898_v47, %s8139_s22  ;;  %v10047_v8 = vsel %vm1330_vm10, %v1725_v28, %v1678_v57 }
 0x2cf   : > { %v10009_v45 = vpop.permute.xlu1 %3135  ;;  %v1277_v10 = vpop.permute.xlu0 %1276 }
 0x2d0   : > { %v10015_v27 = vsel %vm1330_vm10, %v1323_v16, %v1277_v10  ;;  %v1914_v16 = vshll.u32 %v10024_v21, 16  ;;  %v8076_v10 = vunpack.i.h.bf16 %v12379_v9 }
 0x2d1   : > { %v1894_v59 = vshll.u32 %v10015_v27, 16  ;;  %3109 = vrot.lane.b32.xlu0 %v9745_v58, %s8138_s20  ;;  %7758 = vmatmul.mubr.msk.bf16.gmra.mxu1 %vm1370_vm11, %v10015_v27  ;;  %v1892_v13 = vshrl.u32 %v10015_v27, 16  ;;  %v1728_v58 = vsel %vm572_vm1, %v9527_v22, %v9846_v49 }
 0x2d2   : > { %v7735_v25 = vpop.f32.mrf.mxu1  ;;  %v10044_v22 = vsel %vm1330_vm10, %v1728_v58, %v8076_v10  ;;  %v1912_v58 = vshrl.u32 %v10024_v21, 16 }
 0x2d3   : > { %v1896_v54 = vrot.slane %v1894_v59, 1  ;;  %1570 = vst.msk [vmem:[#allocation2 + $0x10] sm:$0xff] %vm1330_vm10, %v7735_v25  ;;  %v10028_v18 = vpop.permute.xlu1 %3550  ;;  %v3608_v52 = vpop.permute.xlu0 %3607 }
 0x2d4   : > { %v1441_v50 = vpop.f32.mrf.mxu1  ;;  %v3734_v38 = vsel %vm1370_vm11, %v3702_v61, %v3608_v52 }
 0x2d5   : > { %v1897_v59 = vor.u32 %v1896_v54, %v1892_v13  ;;  %1568 = vst.msk [vmem:[#allocation2] sm:$0xff] %vm1330_vm10, %v1441_v50  ;;  %3141 = vrot.lane.b32.xlu0 %v12371_v33, %s8139_s22  ;;  %v1916_v33 = vrot.slane %v1914_v16, 1  ;;  %v1918_v13 = vshll.u32 %v10044_v22, 16  ;;  %v1908_v54 = vshll.u32 %v10047_v8, 16 }
 0x2d6   : > { %v7736_v48 = vpop.f32.mrf.mxu1 }
 0x2d7   : > { %1571 = vst.msk [vmem:[#allocation2 + $0x18] sm:$0xff] %vm1330_vm10, %v7736_v48  ;;  %v10050_v49 = vpop.permute.xlu1 %3583  ;;  %v1246_v11 = vpop.permute.xlu0 %1245  ;;  %v1901_v9 = vsel %vm1761_vm3, %v1897_v59, %v1900_v35  ;;  %v12381_v48 = vld [vmem:[#allocation72_spill] sm:$0xff] }
 0x2d8   : > { %v1444_v17 = vpop.f32.mrf.mxu1  ;;  %v1326_v55 = vsel %vm572_vm1, %v9261_v20, %v1246_v11  ;;  %v7769_v25 = vpop.f32.mrf.mxu0  ;;  %7792 = vmatmul.mubr.msk.bf16.gmra.mxu0 %vm1370_vm11, %v1901_v9  ;;  %v1917_v11 = vor.u32 %v1916_v33, %v1912_v58 }
 0x2d9   : > { %1569 = vst.msk [vmem:[#allocation2 + $0x8] sm:$0xff] %vm1330_vm10, %v1444_v17  ;;  %3558 = vrot.lane.b32.xlu0 %v9812_v31, %s8134_s29  ;;  %v10061_v57 = vsel %vm1330_vm10, %v1326_v55, %v9866_v40  ;;  %v1920_v55 = vrot.slane %v1918_v13, 1 }
 0x2da   : > { %v2144_v61 = vld [vmem:[#allocation2 + $0x10] sm:$0xff]  ;;  %7761 = vmatprep.mubr.msk.bf16.mxu1 %vm1370_vm11, %v10061_v57  ;;  %v1904_v20 = vshll.u32 %v10061_v57, 16  ;;  %v2015_v52 = vpop.f32.mrf.mxu0  ;;  %v1902_v40 = vshrl.u32 %v10061_v57, 16 }
 0x2db   : > { %v2176_v28 = vadd.f32 %v7769_v25, %v2144_v61  ;;  %v10069_v50 = vpop.permute.xlu1 %3040  ;;  %7762 = vmatmul.mubr.msk.bf16.gmra.mxu1 %vm1370_vm11, %v10024_v21  ;;  %v3035_v31 = vpop.permute.xlu0 %3034  ;;  %v1910_v25 = vrot.slane %v1908_v54, 1 }
 0x2dc   : > { %v1906_v16 = vrot.slane %v1904_v20, 1  ;;  %v2142_v10 = vld [vmem:[#allocation2] sm:$0xff]  ;;  %v3162_v35 = vsel %vm572_vm1, %v8934_v41, %v3035_v31  ;;  %v7770_v59 = vpop.f32.mrf.mxu0  ;;  %7801 = vmatprep.mubr.msk.bf16.mxu1 %vm1370_vm11, %v12381_v48 }
 0x2dd   : > { %2208 = vst.msk [vmem:[#allocation2 + $0x10] sm:$0xff] %vm1330_vm10, %v2176_v28  ;;  %v2174_v9 = vadd.f32 %v2142_v10, %v2015_v52  ;;  %v3194_v17 = vsel %vm1330_vm10, %v3162_v35, %v9912_v12  ;;  %3591 = vrot.lane.b32.xlu0 %v9898_v47, %s8135_s30  ;;  %v4004_v12 = vsel %vm621_vm0, %v9627_v23, 0  ;;  %v1921_v28 = vsel %vm1761_vm3, %v1917_v11, %v1920_v55  ;;  %v12384_v55 = vld [vmem:[#allocation70_spill] sm:$0xff] }
 0x2de   : > { %v3226_v61 = vsel %vm1370_vm11, %v3194_v17, %v9933_v1  ;;  %v2145_v41 = vld [vmem:[#allocation2 + $0x18] sm:$0xff]  ;;  %v2018_v20 = vpop.f32.mrf.mxu0  ;;  %v1907_v31 = vor.u32 %v1906_v16, %v1902_v40  ;;  %v12383_v17 = vld [vmem:[#allocation84_spill] sm:$0xff] }
 0x2df   : > { %2206 = vst.msk [vmem:[#allocation2] sm:$0xff] %vm1330_vm10, %v2174_v9  ;;  %v2177_v33 = vadd.f32 %v7770_v59, %v2145_v41  ;;  %v10086_v58 = vpop.permute.xlu1 %3645  ;;  %v3640_v52 = vpop.permute.xlu0 %3639  ;;  %v10092_v47 = vsel %vm3239_vm13, %v3226_v61, %v9941_v15  ;;  %v8104_v15 = vld [vmem:[%s12004_s5 + $0xc] sm:$0xff]  }
 0x2e0   : > { %v2143_v13 = vld [vmem:[#allocation2 + $0x8] sm:$0xff]  ;;  %v10095_v1 = vsel %vm3239_vm13, %v3734_v38, %v3640_v52  ;;  %v1911_v54 = vsel %vm1761_vm3, %v1907_v31, %v1910_v25  ;;  %v12175_v40 = vshrl.u32 %v10092_v47, 16  ;;  %v12179_v38 = vshll.u32 %v10092_v47, 16 }
 0x2e1   : > { %2209 = vst.msk [vmem:[#allocation2 + $0x18] sm:$0xff] %vm1330_vm10, %v2177_v33  ;;  %v2175_v16 = vadd.f32 %v2143_v13, %v2018_v20  ;;  %v12178_v10 = vshll.u32 %v10095_v1, 16  ;;  %v4731_v23 = vshrl.u32 %v10095_v1, 16  ;;  %3623 = vrot.lane.b32.xlu0 %v12378_v0, %s8138_s20  ;;  %7795 = vmatprep.mubr.msk.bf16.mxu0 %vm1370_vm11, %v1911_v54  ;;  %v12382_v0 = vld [vmem:[#allocation76_spill] sm:$0xff]  ;;  %v3160_v25 = vsel %vm572_vm1, %v12384_v55, %v9832_v56  ;;  %v12432_v13 = vld [vmem:[#allocation55_spill] sm:$0xff]  ;;  %s11445_s20 = scalar_lea.vmem %s12009_s10, %s8218_s25 }
 0x2e2   : > { %7796 = vmatmul.mubr.msk.bf16.gmra.mxu0 %vm1370_vm11, %v1921_v28  ;;  %v10122_v9 = vrot.slane %v12175_v40, 1  ;;  %v10136_v41 = vrot.slane %v12179_v38, 2  ;;  %v3192_v20 = vsel %vm1330_vm10, %v3160_v25, %v9893_v7  ;;  %v12385_v56 = vor.u32 %v9712_v53, %v9704_v29  ;;  %v8107_v29 = vld [vmem:[%s12004_s5 + $0x18] sm:$0xff]   ;;  %v12387_v53 = vld [vmem:[#allocation80_spill] sm:$0xff] }
 0x2e3   : > { %2207 = vst.msk [vmem:[#allocation2 + $0x8] sm:$0xff] %vm1330_vm10, %v2175_v16  ;;  %v4733_v35 = vrot.slane %v4731_v23, 1  ;;  %v4734_v59 = vrot.slane %v12178_v10, 2  ;;  %v10114_v48 = vpop.permute.xlu1 %3073  ;;  %7802 = vmatmul.mubr.msk.bf16.vlgmr.msra.gmra.mxu1 %vm1370_vm11, %v9238_v51  ;;  %7837 = vmatprep.mubr.msk.bf16.mxu0 %vm3283_vm15, %v12382_v0  ;;  %v3098_v11 = vpop.permute.xlu0 %3097  ;;  %v10132_v51 = vld [vmem:[%s12004_s5 + $0x2c] ss:$0 sps:$4 sm:$0x33]  }
 0x2e4   : > { %7870 = vmatpush3.bf16.msra.mxu1 %v4004_v12  ;;  %7805 = vmatprep.mubr.msk.bf16.mxu1 %vm1370_vm11, %v12383_v17  ;;  %v3224_v31 = vsel %vm1370_vm11, %v3192_v20, %v3098_v11  ;;  %v4405_v16 = vsel %vm621_vm0, %v9855_v37, 0  ;;  %v12391_v17 = vld [vmem:[#allocation63_spill] sm:$0xff]  ;;  %v12415_v10 = vld [vmem:[#allocation62_spill] sm:$0xff] }
 0x2e5   : > { %7871 = vmatprep.subr.bf16.mxu1 %v8104_v15  ;;  %v4735_v61 = vor.u32 %v4734_v59, %v4733_v35  ;;  %v12390_v35 = vld [vmem:[#allocation88_spill] sm:$0xff]  ;;  %v10184_v55 = vld [vmem:[%s12004_s5 + $0x38] ss:$0 sps:$4 sm:$0x33]  }
 0x2e6   : > { %12392 = vst [vmem:[#allocation49_spill] sm:$0xff] %v10184_v55 }
 0x2e7   : > { %v10141_v33 = vpop.permute.xlu1 %3075  ;;  %v3130_v52 = vpop.permute.xlu0 %3129  ;;  %v10147_v12 = vsel %vm4664_vm14, %v12385_v56, %v4735_v61  ;;  %v12393_v61 = vld [vmem:[#allocation71_spill] sm:$0xff] }
 0x2e8   : > { %12386 = vst [vmem:[#allocation59_spill] sm:$0xff] %v10147_v12  ;;  %v10152_v54 = vsel %vm3239_vm13, %v3224_v31, %v3130_v52  ;;  %7872 = vmatpush3.bf16.msra.mxu1 %v8104_v15  ;;  %v12389_v15 = vld [vmem:[#allocation95_spill] sm:$0xff]  ;;  %v4295_v12 = vrot.slane %v12382_v0, 1 }
 0x2e9   : > { %v12176_v7 = vshrl.u32 %v10152_v54, 16  ;;  %v12177_v28 = vshll.u32 %v10152_v54, 16  ;;  %8054 = vmatprep.subr.msk.bf16.mxu1 %vm621_vm0, %v10132_v51 }
 0x2ea   : > { %7838 = vmatmul.mubr.msk.bf16.vlgmr.msra.gmra.mxu0 %vm3283_vm15, %v12387_v53 }
 0x2eb   : > { %v10165_v23 = vpop.permute.xlu1 %3107  ;;  %7806 = vmatmul.mubr.msk.bf16.gmra.mxu1 %vm1370_vm11, %v12389_v15  ;;  %7841 = vmatprep.mubr.msk.bf16.mxu0 %vm3283_vm15, %v12390_v35  ;;  %v3545_v59 = vpop.permute.xlu0 %3544  ;;  %v10173_v37 = vrot.slane %v12176_v7, 1  ;;  %v10177_v11 = vrot.slane %v12177_v28, 2  ;;  %v12396_v15 = vld [vmem:[#allocation10_spill] sm:$0xff] }
 0x2ec   : > { %12388 = vst [vmem:[#allocation69_spill] sm:$0xff] %v10165_v23  ;;  %7809 = vmatprep.mubr.msk.bf16.mxu1 %vm1370_vm11, %v12391_v17  ;;  %7906 = vmatpush3.bf16.msra.mxu0 %v4405_v16  ;;  %v3672_v20 = vsel %vm572_vm1, %v12393_v61, %v3545_v59  ;;  %v12395_v16 = vld [vmem:[#allocation85_spill] sm:$0xff]  ;;  %v12397_v17 = vshll.u32 %v12396_v15, 16  ;;  %v12398_v59 = vld [vmem:[#allocation58_spill] sm:$0xff] }
 0x2ed   : > { %7907 = vmatprep.subr.bf16.mxu0 %v8107_v29  ;;  %v4739_v25 = vor.u32 %v10177_v11, %v10173_v37  ;;  %v12399_v11 = vld [vmem:[#allocation9_spill] sm:$0xff] }
 0x2ee   : > { %v6051_v40 = vrot.slane %v12397_v17, 1 }
 0x2ef   : > { %v10190_v31 = vpop.permute.xlu1 %3139  ;;  %v3578_v52 = vpop.permute.xlu0 %3577 }
 0x2f0   : > { %12394 = vst [vmem:[#allocation61_spill] sm:$0xff] %v10190_v31  ;;  %v3704_v56 = vsel %vm1330_vm10, %v3672_v20, %v3578_v52  ;;  %7908 = vmatpush3.bf16.msra.mxu0 %v8107_v29  ;;  %v12416_v20 = vld [vmem:[#allocation64_spill] sm:$0xff] }
 0x2f1   : > { %8055 = vmatprep.subr.msk.bf16.mxu0 %vm621_vm0, %v10184_v55 }
 0x2f2   : > { %7842 = vmatmul.mubr.msk.bf16.gmra.mxu0 %vm3283_vm15, %v12395_v16 }
 0x2f3   : > { %v10199_v7 = vpop.permute.xlu1 %3554  ;;  %7810 = vmatmul.mubr.msk.bf16.gmra.mxu1 %vm1370_vm11, %v9715_v32  ;;  %7845 = vmatprep.mubr.msk.bf16.mxu0 %vm3283_vm15, %v12398_v59  ;;  %v3610_v37 = vpop.permute.xlu0 %3609 }
 0x2f4   : > { %v3736_v29 = vsel %vm1370_vm11, %v3704_v56, %v3610_v37  ;;  %7813 = vmatprep.mubr.msk.bf16.mxu1 %vm1370_vm11, %v9763_v62  ;;  %v12402_v37 = vshrl.u32 %v12396_v15, 16 }
 0x2f5   : > { %v10215_v32 = vsel %vm3239_vm13, %v3736_v29, %v9976_v42  ;;  %v4319_v42 = vrot.slane %v10152_v54, 1  ;;  %v5155_v29 = vrot.slane %v10152_v54, 2 }
 0x2f6   : > { %v4740_v38 = vshrl.u32 %v10215_v32, 16  ;;  %v4320_v56 = vrot.slane %v10215_v32, 1  ;;  %v5156_v62 = vrot.slane %v10215_v32, 2  ;;  %v10223_v61 = vor.u32 %v6051_v40, %v12402_v37  ;;  %v12413_v40 = vld [vmem:[#allocation48_spill] sm:$0xff] }
 0x2f7   : > { %v10226_v2 = vpop.permute.xlu1 %3587  ;;  %v3612_v28 = vpop.permute.xlu0 %3611  ;;  %v12406_v52 = vshll.u32 %v10215_v32, 16 }
 0x2f8   : > { %v4742_v34 = vrot.slane %v4740_v38, 1  ;;  %v3738_v15 = vsel %vm1370_vm11, %v9959_v24, %v3612_v28  ;;  %v10237_v37 = vsel %vm2270_vm12, %v4319_v42, %v4320_v56  ;;  %v10242_v14 = vsel %vm1403_vm9, %v5155_v29, %v5156_v62  ;;  %v12411_v28 = vld [vmem:[#allocation97_spill] sm:$0xff] }
 0x2f9   : > { %12405 = vst [vmem:[#allocation77_spill] sm:$0xff] %v10237_v37  ;;  %v4743_v55 = vrot.slane %v12406_v52, 2  ;;  %12407 = vst [vmem:[#allocation50_spill] sm:$0xff] %v10242_v14  ;;  %v12419_v52 = vld [vmem:[#allocation74_spill] sm:$0xff]  ;;  %v12420_v56 = vld [vmem:[#allocation57_spill] sm:$0xff]  ;;  %v4322_v42 = vrot.slane %v10092_v47, 1 }
 0x2fa   : > { %7846 = vmatmul.mubr.msk.bf16.gmra.mxu0 %vm3283_vm15, %v12411_v28  ;;  %v12430_v37 = vld [vmem:[#allocation79_spill] sm:$0xff] }
 0x2fb   : > { %v10255_v29 = vpop.permute.xlu1 %3044  ;;  %7814 = vmatmul.mubr.msk.bf16.gmra.mxu1 %vm1370_vm11, %v12415_v10  ;;  %7849 = vmatprep.mubr.msk.bf16.mxu0 %vm3283_vm15, %v12416_v20  ;;  %v3039_v38 = vpop.permute.xlu0 %3038  ;;  %v4744_v14 = vor.u32 %v4743_v55, %v4742_v34  ;;  %v12425_v10 = vshrl.u32 %v12413_v40, 16 }
 0x2fc   : > { %12414 = vst [vmem:[#allocation51_spill] sm:$0xff] %v10255_v29  ;;  %v3166_v62 = vsel %vm572_vm1, %v12419_v52, %v3039_v38  ;;  %7817 = vmatprep.mubr.msk.bf16.mxu1 %vm1370_vm11, %v12420_v56 }
 0x2fd   : > { %v3198_v34 = vsel %vm1330_vm10, %v3166_v62, %v9989_v30  ;;  %v10275_v55 = vsel %vm4664_vm14, %v4739_v25, %v4744_v14  ;;  %v10285_v36 = vrot.slane %v12425_v10, 7  ;;  %v12428_v62 = vshll.u32 %v12382_v0, 16 }
 0x2fe   : > { %12423 = vst [vmem:[#allocation56_spill] sm:$0xff] %v10275_v55  ;;  %v3230_v56 = vsel %vm1370_vm11, %v3198_v34, %v9993_v26  ;;  %v7739_v52 = vpop.f32.mrf.mxu1 }
 0x2ff   : > { %12426 = vst [vmem:[#allocation72_spill] sm:$0xff] %v10285_v36  ;;  %1574 = vst.msk [vmem:[#allocation2 + $0x30] sm:$0xff] %vm1330_vm10, %v7739_v52  ;;  %v10288_v30 = vpop.permute.xlu1 %3649  ;;  %v3644_v14 = vpop.permute.xlu0 %3643  ;;  %v10292_v25 = vsel %vm3239_vm13, %v3230_v56, %v10009_v45  ;;  %v3786_v38 = vrot.slane %v12428_v62, 1  ;;  %v12431_v36 = vshll.u32 %v12430_v37, 16 }
 0x300   : > { %12427 = vst [vmem:[#allocation84_spill] sm:$0xff] %v10288_v30  ;;  %v1457_v26 = vpop.f32.mrf.mxu1  ;;  %v10298_v34 = vsel %vm3239_vm13, %v3738_v15, %v3644_v14  ;;  %v4296_v14 = vrot.slane %v12430_v37, 1  ;;  %v12433_v52 = vshrl.u32 %v10292_v25, 16  ;;  %v12434_v45 = vshll.u32 %v10292_v25, 16 }
 0x301   : > { %12429 = vst [vmem:[#allocation70_spill] sm:$0xff] %v10298_v34  ;;  %1572 = vst.msk [vmem:[#allocation2 + $0x20] sm:$0xff] %vm1330_vm10, %v1457_v26  ;;  %v4323_v56 = vrot.slane %v10298_v34, 1  ;;  %v4749_v62 = vshrl.u32 %v10298_v34, 16  ;;  %v5159_v55 = vrot.slane %v10298_v34, 2  ;;  %v3790_v15 = vrot.slane %v12431_v36, 1 }
 0x302   : > { %v7740_v10 = vpop.f32.mrf.mxu1  ;;  %7850 = vmatmul.mubr.msk.bf16.gmra.mxu0 %vm3283_vm15, %v12432_v13  ;;  %v10315_v26 = vrot.slane %v12433_v52, 1  ;;  %v10319_v4 = vrot.slane %v12434_v45, 2  ;;  %v12435_v24 = vshll.u32 %v10298_v34, 16  ;;  %v5158_v45 = vrot.slane %v10092_v47, 2 }
 0x303   : > { %v4751_v17 = vrot.slane %v4749_v62, 1  ;;  %1575 = vst.msk [vmem:[#allocation2 + $0x38] sm:$0xff] %vm1330_vm10, %v7740_v10  ;;  %v10324_v36 = vpop.permute.xlu1 %3077  ;;  %7818 = vmatmul.mubr.msk.bf16.gmra.mxu1 %vm1370_vm11, %v9903_v3  ;;  %7853 = vmatprep.mubr.msk.bf16.mxu0 %vm3283_vm15, %v10152_v54  ;;  %v3102_v52 = vpop.permute.xlu0 %3101  ;;  %v10331_v37 = vsel %vm2270_vm12, %v4322_v42, %v4323_v56  ;;  %v12438_v62 = vshll.u32 %v12387_v53, 16  ;;  %v12440_v3 = vshrl.u32 %v12382_v0, 16  ;;  %v12441_v42 = vld [vmem:[#allocation78_spill] sm:$0xff] }
 0x304   : > { %v4752_v30 = vrot.slane %v12435_v24, 2  ;;  %12436 = vst [vmem:[#allocation95_spill] sm:$0xff] %v10324_v36  ;;  %12437 = vst [vmem:[#allocation63_spill] sm:$0xff] %v10331_v37  ;;  %v12439_v24 = vld [vmem:[#allocation82_spill] sm:$0xff]  ;;  %v1460_v10 = vpop.f32.mrf.mxu1  ;;  %7821 = vmatprep.mubr.msk.bf16.mxu1 %vm1370_vm11, %v9937_v5  ;;  %v3164_v56 = vsel %vm572_vm1, %v12441_v42, %v9968_v44  ;;  %v10350_v29 = vsel %vm1403_vm9, %v5158_v45, %v5159_v55  ;;  %v12444_v5 = vshll.u32 %v12413_v40, 16  ;;  %v12466_v40 = vld [vmem:[#allocation73_spill] sm:$0xff] }
 0x305   : > { %v3796_v34 = vrot.slane %v12438_v62, 1  ;;  %v4299_v31 = vrot.slane %v12439_v24, 1  ;;  %v3787_v36 = vor.u32 %v3786_v38, %v12440_v3  ;;  %1573 = vst.msk [vmem:[#allocation2 + $0x28] sm:$0xff] %vm1330_vm10, %v1460_v10  ;;  %v12442_v62 = vshll.u32 %v12390_v35, 16  ;;  %12443 = vst [vmem:[#allocation71_spill] sm:$0xff] %v10350_v29 }
 0x306   : > { %v4753_v37 = vor.u32 %v4752_v30, %v4751_v17  ;;  %v10354_v0 = vrot.slane %v12444_v5, 1  ;;  %v4298_v38 = vrot.slane %v12387_v53, 1  ;;  %v12446_v3 = vshll.u32 %v12439_v24, 16 }
 0x307   : > { %v3806_v46 = vrot.slane %v12442_v62, 1  ;;  %v3196_v44 = vsel %vm1330_vm10, %v3164_v56, %v9983_v19  ;;  %v3134_v30 = vpop.permute.xlu0 %3133  ;;  %v10363_v10 = vsel %vm1761_vm3, %v3787_v36, %v3790_v15  ;;  %v10366_v55 = vsel %vm2270_vm12, %v4295_v12, %v4296_v14 }
 0x308   : > { %12445 = vst [vmem:[#allocation10_spill] sm:$0xff] %v10354_v0  ;;  %v3800_v23 = vrot.slane %v12446_v3, 1  ;;  %v3228_v17 = vsel %vm1370_vm11, %v3196_v44, %v3102_v52  ;;  %v12447_v45 = vor.u32 %v10136_v41, %v10122_v9  ;;  %v12449_v62 = vshrl.u32 %v12387_v53, 16  ;;  %v10376_v3 = vpop.permute.xlu1 %3079  ;;  %v12453_v52 = vld [vmem:[#allocation87_spill] sm:$0xff] }
 0x309   : > { %v10379_v19 = vsel %vm3239_vm13, %v3228_v17, %v3134_v30  ;;  %v12450_v15 = vshll.u32 %v12395_v16, 16  ;;  %v10384_v12 = vsel %vm2270_vm12, %v4298_v38, %v4299_v31  ;;  %v12452_v41 = vshrl.u32 %v12390_v35, 16  ;;  %v2148_v17 = vld [vmem:[#allocation2 + $0x30] sm:$0xff]  ;;  %v12454_v31 = vld [vmem:[#allocation89_spill] sm:$0xff] }
 0x30a   : > { %v10372_v42 = vsel %vm4664_vm14, %v12447_v45, %v4753_v37  ;;  %v3797_v5 = vor.u32 %v3796_v34, %v12449_v62  ;;  %12451 = vst [vmem:[#allocation62_spill] sm:$0xff] %v10384_v12  ;;  %v12198_v14 = vshrl.u32 %v10379_v19, 16  ;;  %v4301_v34 = vrot.slane %v12390_v35, 1  ;;  %v7773_v44 = vpop.f32.mrf.mxu0  ;;  %7854 = vmatmul.mubr.msk.bf16.gmra.mxu0 %vm3283_vm15, %v10092_v47 }
 0x30b   : > { %12448 = vst [vmem:[#allocation9_spill] sm:$0xff] %v10372_v42  ;;  %v3816_v36 = vrot.slane %v12450_v15, 1  ;;  %v3807_v37 = vor.u32 %v3806_v46, %v12452_v41  ;;  %v4302_v56 = vrot.slane %v12453_v52, 1  ;;  %v12455_v38 = vshll.u32 %v12454_v31, 16  ;;  %7822 = vmatmul.mubr.msk.bf16.gmra.mxu1 %vm1370_vm11, %v9956_v60  ;;  %7857 = vmatprep.mubr.msk.bf16.mxu0 %vm3283_vm15, %v10379_v19  ;;  %v3549_v9 = vpop.permute.xlu0 %3548 }
 0x30c   : > { %v10395_v30 = vsel %vm1761_vm3, %v3797_v5, %v3800_v23  ;;  %v4305_v62 = vrot.slane %v12454_v31, 1  ;;  %v12456_v15 = vshll.u32 %v12453_v52, 16  ;;  %v2180_v41 = vadd.f32 %v7773_v44, %v2148_v17  ;;  %v2031_v29 = vpop.f32.mrf.mxu0  ;;  %v2146_v31 = vld [vmem:[#allocation2 + $0x20] sm:$0xff]  ;;  %7825 = vmatprep.mubr.msk.bf16.mxu1 %vm1370_vm11, %v9979_v6 }
 0x30d   : > { %v3820_v45 = vrot.slane %v12455_v38, 1  ;;  %v10408_v23 = vrot.slane %v12198_v14, 1  ;;  %v12457_v5 = vshll.u32 %v10379_v19, 16  ;;  %v12458_v44 = vshrl.u32 %v12395_v16, 16 }
 0x30e   : > { %v3810_v46 = vrot.slane %v12456_v15, 1  ;;  %v12459_v17 = vshll.u32 %v12398_v59, 16  ;;  %v12460_v52 = vshll.u32 %v12411_v28, 16  ;;  %v4304_v14 = vrot.slane %v12395_v16, 1  ;;  %2212 = vst.msk [vmem:[#allocation2 + $0x30] sm:$0xff] %vm1330_vm10, %v2180_v41 }
 0x30f   : > { %v10412_v38 = vrot.slane %v12457_v5, 2  ;;  %v3817_v60 = vor.u32 %v3816_v36, %v12458_v44  ;;  %v2178_v5 = vadd.f32 %v2146_v31, %v2031_v29  ;;  %v10428_v24 = vsel %vm2270_vm12, %v4301_v34, %v4302_v56  ;;  %v10433_v44 = vpop.permute.xlu1 %3111  ;;  %v12463_v31 = vld [vmem:[#allocation54_spill] sm:$0xff] }
 0x310   : > { %v3826_v15 = vrot.slane %v12459_v17, 1  ;;  %v3836_v53 = vrot.slane %v12460_v52, 1  ;;  %v10425_v35 = vsel %vm1761_vm3, %v3807_v37, %v3810_v46  ;;  %12461 = vst [vmem:[#allocation74_spill] sm:$0xff] %v10428_v24  ;;  %v2310_v36 = vrot.slane %v10015_v27, 1  ;;  %v7774_v17 = vpop.f32.mrf.mxu0  ;;  %v2149_v52 = vld [vmem:[#allocation2 + $0x38] sm:$0xff]  ;;  %v3582_v27 = vpop.permute.xlu0 %3581 }
 0x311   : > { %v10436_v16 = vsel %vm1761_vm3, %v3817_v60, %v3820_v45  ;;  %v10439_v29 = vsel %vm2270_vm12, %v4304_v14, %v4305_v62  ;;  %v4307_v37 = vrot.slane %v12398_v59, 1  ;;  %v4308_v34 = vrot.slane %v12463_v31, 1  ;;  %2210 = vst.msk [vmem:[#allocation2 + $0x20] sm:$0xff] %vm1330_vm10, %v2178_v5  ;;  %v2147_v45 = vld [vmem:[#allocation2 + $0x28] sm:$0xff] }
 0x312   : > { %12462 = vst [vmem:[#allocation57_spill] sm:$0xff] %v10439_v29  ;;  %v2313_v56 = vrot.slane %v10061_v57, 1  ;;  %v2181_v46 = vadd.f32 %v7774_v17, %v2149_v52  ;;  %v4310_v41 = vrot.slane %v12411_v28, 1  ;;  %v2311_v6 = vrot.slane %v10003_v63, 1  ;;  %v2034_v42 = vpop.f32.mrf.mxu0  ;;  %7858 = vmatmul.mubr.msk.bf16.gmra.mxu0 %vm3283_vm15, %v10292_v25 }
 0x313   : > { %v12464_v60 = vshrl.u32 %v12398_v59, 16  ;;  %v12465_v62 = vshrl.u32 %v12411_v28, 16  ;;  %v12467_v29 = vshll.u32 %v12466_v40, 16  ;;  %v2314_v57 = vrot.slane %v10047_v8, 1  ;;  %v12485_v28 = vld [vmem:[#allocation8_spill] sm:$0xff] }
 0x314   : > { %2213 = vst.msk [vmem:[#allocation2 + $0x38] sm:$0xff] %vm1330_vm10, %v2181_v46  ;;  %v2179_v5 = vadd.f32 %v2147_v45, %v2034_v42  ;;  %v12468_v17 = vshll.u32 %v12416_v20, 16  ;;  %v4311_v63 = vrot.slane %v12466_v40, 1  ;;  %v12469_v12 = vshll.u32 %v12463_v31, 16 }
 0x315   : > { %v3827_v14 = vor.u32 %v3826_v15, %v12464_v60  ;;  %v3837_v0 = vor.u32 %v3836_v53, %v12465_v62  ;;  %v3840_v24 = vrot.slane %v12467_v29, 1  ;;  %v12470_v15 = vld [vmem:[#allocation86_spill] sm:$0xff]  ;;  %v2312_v53 = vsel %vm2270_vm12, %v2310_v36, %v2311_v6  ;;  %v10477_v36 = vpop.permute.xlu1 %3556 }
 0x316   : > { %v3846_v52 = vrot.slane %v12468_v17, 1  ;;  %v3830_v59 = vrot.slane %v12469_v12, 1  ;;  %v3676_v60 = vsel %vm572_vm1, %v12470_v15, %v3549_v9  ;;  %v10466_v8 = vsel %vm2270_vm12, %v4307_v37, %v4308_v34  ;;  %2211 = vst.msk [vmem:[#allocation2 + $0x28] sm:$0xff] %vm1330_vm10, %v2179_v5  ;;  %7826 = vmatmul.mubr.msk.bf16.gmra.mxu1 %vm1370_vm11, %v2312_v53  ;;  %v3614_v12 = vpop.permute.xlu0 %3613 }
 0x317   : > { %v4314_v42 = vrot.slane %v9882_v43, 1  ;;  %v3708_v29 = vsel %vm1330_vm10, %v3676_v60, %v3582_v27  ;;  %v2315_v46 = vsel %vm2270_vm12, %v2313_v56, %v2314_v57  ;;  %v12471_v9 = vshll.u32 %v12432_v13, 16 }
 0x318   : > { %v12472_v62 = vshll.u32 %v9882_v43, 16  ;;  %v3740_v37 = vsel %vm1370_vm11, %v3708_v29, %v3614_v12  ;;  %7829 = vmatprep.mubr.msk.bf16.mxu1 %vm1370_vm11, %v2315_v46  ;;  %v10482_v34 = vsel %vm1761_vm3, %v3827_v14, %v3830_v59  ;;  %v10485_v27 = vsel %vm1761_vm3, %v3837_v0, %v3840_v24  ;;  %v12486_v43 = vld [vmem:[#allocation5_spill] sm:$0xff] }
 0x319   : > { %v3856_v45 = vrot.slane %v12471_v9, 1  ;;  %v10489_v56 = vsel %vm3239_vm13, %v3740_v37, %v10086_v58  ;;  %v12474_v57 = vshrl.u32 %v12416_v20, 16  ;;  %v10494_v17 = vsel %vm2270_vm12, %v4310_v41, %v4311_v63 }
 0x31a   : > { %v3850_v6 = vrot.slane %v12472_v62, 1  ;;  %12473 = vst [vmem:[#allocation55_spill] sm:$0xff] %v10489_v56  ;;  %v4313_v15 = vrot.slane %v12416_v20, 1  ;;  %v2316_v60 = vrot.slane %v10024_v21, 1  ;;  %v12207_v59 = vshll.u32 %v10489_v56, 16  ;;  %v3616_v58 = vpop.permute.xlu0 %3615 }
 0x31b   : > { %v3847_v5 = vor.u32 %v3846_v52, %v12474_v57  ;;  %v4758_v14 = vshrl.u32 %v10489_v56, 16  ;;  %v5162_v0 = vrot.slane %v10489_v56, 2  ;;  %v2317_v24 = vrot.slane %v10044_v22, 1 }
 0x31c   : > { %v12475_v53 = vshrl.u32 %v12432_v13, 16  ;;  %v10505_v41 = vsel %vm2270_vm12, %v4313_v15, %v4314_v42  ;;  %v5161_v63 = vrot.slane %v10379_v19, 2  ;;  %v4871_v29 = vsel %vm621_vm0, %v10132_v51, 0  ;;  %v12481_v51 = vld [vmem:[#allocation94_spill] sm:$0xff] }
 0x31d   : > { %12476 = vst [vmem:[#allocation78_spill] sm:$0xff] %v10505_v41  ;;  %v4760_v21 = vrot.slane %v4758_v14, 1  ;;  %v10511_v12 = vsel %vm1761_vm3, %v3847_v5, %v3850_v6  ;;  %v12477_v22 = vshll.u32 %v10092_v47, 16  ;;  %v12478_v9 = vshll.u32 %v10095_v1, 16  ;;  %v3590_v5 = vpop.permute.xlu1 %3589  ;;  %v8111_v14 = vld [vmem:[%s8224_s28 + $0x10] sm:$0xf] }
 0x31e   : > { %v3857_v52 = vor.u32 %v3856_v45, %v12475_v53  ;;  %v12479_v45 = vshll.u32 %v10152_v54, 16  ;;  %v4761_v42 = vrot.slane %v12207_v59, 2  ;;  %v10522_v57 = vsel %vm1403_vm9, %v5161_v63, %v5162_v0  ;;  %v12482_v53 = vld [vmem:[#allocation6_spill] sm:$0xff] }
 0x31f   : > { %v3876_v46 = vrot.slane %v12477_v22, 1  ;;  %v3860_v62 = vrot.slane %v12478_v9, 1  ;;  %12480 = vst [vmem:[#allocation86_spill] sm:$0xff] %v10522_v57  ;;  %v3678_v6 = vsel %vm572_vm1, %v12481_v51, %v10028_v18  ;;  %v2318_v15 = vsel %vm2270_vm12, %v2316_v60, %v2317_v24  ;;  %v12483_v22 = vld [vmem:[#allocation4_spill] sm:$0xff]  ;;  %v12488_v18 = vld [vmem:[#allocation90_spill] sm:$0xff]  ;;  %v3043_v60 = vpop.permute.xlu0 %3042 }
 0x320   : > { %v3866_v37 = vrot.slane %v12479_v45, 1  ;;  %v12484_v9 = vmax.bf16 %v12482_v53, %v12483_v22  ;;  %v8112_v45 = vld [vmem:[%s8224_s28 + $0x14] sm:$0xf]  ;;  %v12487_v59 = vmax.bf16 %v12485_v28, %v12486_v43  ;;  %v3710_v0 = vsel %vm1330_vm10, %v3678_v6, %v10050_v49  ;;  %7830 = vmatmul.mubr.msk.bf16.gmra.mxu1 %vm1370_vm11, %v2318_v15  ;;  %v12490_v43 = vld [vmem:[#allocation92_spill] sm:$0xff] }
 0x321   : > { %v3168_v63 = vsel %vm572_vm1, %v12488_v18, %v10069_v50  ;;  %v12489_v24 = vshll.u32 %v10215_v32, 16  ;;  %7873 = vmatprep.mubr.msk.bf16.mxu1 %vm3283_vm15, %v10363_v10  ;;  %v12491_v49 = vcombine.low %v12399_v11, %v12399_v11  ;;  %v12493_v10 = vshrl.u32 %v10152_v54, 16  ;;  %v12498_v54 = vld [vmem:[#allocation7_spill] sm:$0xff]  ;;  %v12502_v18 = vld [vmem:[#allocation60_spill] sm:$0xff]  ;;  %v12638_v50 = vld [vmem:[#allocation65_spill] sm:$0xff] }
 0x322   : > { %v10532_v20 = vmax.bf16 %v8111_v14, %v12484_v9  ;;  %v10538_v40 = vmax.bf16 %v8112_v45, %v12487_v59  ;;  %v4762_v14 = vor.u32 %v4761_v42, %v4760_v21  ;;  %v3200_v22 = vsel %vm1330_vm10, %v3168_v63, %v10114_v48  ;;  %v12528_v57 = vld [vmem:[#allocation96_spill] sm:$0xff] }
 0x323   : > { %v3870_v51 = vrot.slane %v12489_v24, 1  ;;  %v3170_v59 = vsel %vm572_vm1, %v12490_v43, %v3043_v60  ;;  %v6133_v6 = vsel %vm8309_vm7, %v10223_v61, %v12491_v49  ;;  %v3682_v48 = vsel %vm572_vm1, %v9617_v39, %v10199_v7  ;;  %v12503_v60 = vld [vmem:[#allocation69_spill] sm:$0xff]  ;;  %v3648_v24 = vpop.permute.xlu0 %3647 }
 0x324   : > { %v10562_v32 = vcombine.low %v10532_v20, %v10538_v40  ;;  %v10568_v21 = vsel %vm1761_vm3, %v3857_v52, %v3860_v62  ;;  %v3867_v42 = vor.u32 %v3866_v37, %v12493_v10  ;;  %v12494_v15 = vshrl.u32 %v10092_v47, 16  ;;  %v12499_v62 = vld [vmem:[#allocation21_spill] sm:$0xff]  ;;  %v12501_v37 = vld [vmem:[#allocation51_spill] sm:$0xff]  ;;  %v12637_v52 = vld [vmem:[#allocation66_spill] sm:$0xff] }
 0x325   : > { %v10578_v61 = vsel %vm1330_vm10, %v3682_v48, %v10226_v2  ;;  %v3202_v45 = vsel %vm1330_vm10, %v3170_v59, %v10141_v33  ;;  %v12495_v39 = vor.u32 %v10412_v38, %v10408_v23  ;;  %v12500_v47 = vsel %vm8299_vm6, %v12498_v54, %v12499_v62  ;;  %v3622_v38 = vpop.permute.xlu1 %3621  ;;  %v12504_v43 = vld [vmem:[#allocation61_spill] sm:$0xff] }
 0x326   : > { %v10574_v9 = vor.u32 %v3876_v46, %v12494_v15  ;;  %v6149_v46 = vmax.bf16 %v6133_v6, %v12500_v47  ;;  %v3172_v2 = vsel %vm572_vm1, %v12502_v18, %v12501_v37  ;;  %v3742_v63 = vsel %vm1370_vm11, %v3710_v0, %v3616_v58  ;;  %v12506_v15 = vld [vmem:[#allocation70_spill] sm:$0xff]  ;;  %v12508_v18 = vld [vmem:[#allocation95_spill] sm:$0xff] }
 0x327   : > { %v10586_v7 = vsel %vm4664_vm14, %v12495_v39, %v4762_v14  ;;  %v3234_v33 = vsel %vm1370_vm11, %v3202_v45, %v12503_v60  ;;  %v10600_v23 = vsel %vm1761_vm3, %v3867_v42, %v3870_v51  ;;  %v10603_v14 = vsel %vm3239_vm13, %v3742_v63, %v3648_v24  ;;  %v8108_v51 = vld [vmem:[%s12004_s5 + $0x24] sm:$0xff]  }
 0x328   : > { %12496 = vst [vmem:[#allocation94_spill] sm:$0xff] %v10586_v7  ;;  %v10607_v59 = vsel %vm3239_vm13, %v3234_v33, %v12504_v43  ;;  %v12505_v49 = vshll.u32 %v10292_v25, 16  ;;  %v12211_v0 = vshll.u32 %v10603_v14, 16  ;;  %v4767_v48 = vshrl.u32 %v10603_v14, 16  ;;  %v12509_v60 = vld [vmem:[#allocation52_spill] sm:$0xff]  ;;  %7874 = vmatmul.mubr.msk.bf16.vlgmr.msra.gmra.mxu1 %vm3283_vm15, %v10395_v30  ;;  %v3106_v43 = vpop.permute.xlu0 %3105 }
 0x329   : > { %v7290_v10 = vcombine.low %v6149_v46, %v6149_v46  ;;  %v7291_v42 = vcombine.high %v6149_v46, %v6149_v46  ;;  %v12507_v45 = vshll.u32 %v12506_v15, 16  ;;  %v12209_v62 = vshrl.u32 %v10607_v59, 16  ;;  %7942 = vmatpush3.bf16.msra.mxu1 %v4871_v29  ;;  %7877 = vmatprep.mubr.msk.bf16.mxu1 %vm3283_vm15, %v10425_v35 }
 0x32a   : > { %v10611_v6 = vrot.slane %v12505_v49, 1  ;;  %v12210_v47 = vshll.u32 %v10607_v59, 16  ;;  %v5922_v37 = vshrl.u32 %v10562_v32, 16  ;;  %v10628_v63 = vsel %vm1330_vm10, %v3172_v2, %v12508_v18  ;;  %7943 = vmatprep.subr.bf16.mxu1 %v8108_v51 }
 0x32b   : > { %v10621_v39 = vrot.slane %v12507_v45, 1  ;;  %v3684_v33 = vsel %vm572_vm1, %v12509_v60, %v10477_v36  ;;  %v4769_v24 = vrot.slane %v4767_v48, 1  ;;  %v4770_v46 = vrot.slane %v12211_v0, 2  ;;  %v7743_v60 = vpop.f32.mrf.mxu1 }
 0x32c   : > { %v3716_v49 = vsel %vm1330_vm10, %v3684_v33, %v3590_v5  ;;  %v12510_v2 = vshll.u32 %v10379_v19, 16  ;;  %v10646_v36 = vrot.slane %v12209_v62, 1  ;;  %v10650_v48 = vrot.slane %v12210_v47, 2  ;;  %v10659_v5 = vpop.permute.xlu1 %3653  ;;  %v10665_v33 = vld [vmem:[%s12006_s7] sm:$0x3]  ;;  %1578 = vst.msk [vmem:[#allocation2 + $0x50] sm:$0xff] %vm1330_vm10, %v7743_v60 }
 0x32d   : > { %v3748_v30 = vsel %vm1370_vm11, %v3716_v49, %v3622_v38  ;;  %v4771_v45 = vor.u32 %v4770_v46, %v4769_v24  ;;  %v10654_v29 = vmax.bf16 %v7290_v10, %v12498_v54  ;;  %v10657_v35 = vmax.bf16 %v7291_v42, %v12399_v11  ;;  %v3138_v11 = vpop.permute.xlu0 %3137  ;;  %v1473_v38 = vpop.f32.mrf.mxu1  ;;  %7944 = vmatpush3.bf16.msra.mxu1 %v8108_v51  ;;  %v12520_v62 = vld [vmem:[#allocation11_spill] sm:$0xff] }
 0x32e   : > { %v10642_v15 = vrot.slane %v12510_v2, 1  ;;  %v3232_v18 = vsel %vm1370_vm11, %v3200_v22, %v3106_v43  ;;  %v5924_v24 = vrot.slane %v5922_v37, 7  ;;  %v5925_v54 = vshll.u32 %v10562_v32, 16  ;;  %v12515_v43 = vld [vmem:[#allocation15_spill] sm:$0xff]  ;;  %1576 = vst.msk [vmem:[#allocation2 + $0x40] sm:$0xff] %vm1330_vm10, %v1473_v38  ;;  %8056 = vmatprep.subr.msk.bf16.mxu1 %vm621_vm0, %v10665_v33 }
 0x32f   : > { %12511 = vst [vmem:[#allocation6_spill] sm:$0xff] %v10654_v29  ;;  %12512 = vst [vmem:[#allocation4_spill] sm:$0xff] %v10657_v35  ;;  %v12513_v10 = vor.u32 %v10319_v4, %v10315_v26  ;;  %v7276_v46 = vcombine.low %v10538_v40, %v10538_v40  ;;  %v12516_v49 = vshrl.u32 %v12515_v43, 16  ;;  %v10684_v32 = vsel %vm3239_vm13, %v3232_v18, %v3138_v11 }
 0x330   : > { %v5927_v60 = vor.u32 %v5925_v54, %v5924_v24  ;;  %v6055_v4 = vrot.slane %v5925_v54, 1  ;;  %v12517_v26 = vshll.u32 %v12515_v43, 16  ;;  %v12212_v42 = vshrl.u32 %v10684_v32, 16  ;;  %7861 = vmatprep.mubr.msk.bf16.mxu0 %vm3283_vm15, %v10684_v32  ;;  %v7744_v24 = vpop.f32.mrf.mxu1  ;;  %7878 = vmatmul.mubr.msk.bf16.gmra.mxu1 %vm3283_vm15, %v10436_v16 }
 0x331   : > { %v10675_v22 = vsel %vm4664_vm14, %v12513_v10, %v4771_v45  ;;  %v5931_v2 = vrot.slane %v12516_v49, 7  ;;  %v10690_v10 = vsel %vm3239_vm13, %v3748_v30, %v10659_v5  ;;  %v12213_v49 = vshll.u32 %v10684_v32, 16  ;;  %7862 = vmatmul.mubr.msk.bf16.gmra.mxu0 %vm3283_vm15, %v10607_v59  ;;  %1579 = vst.msk [vmem:[#allocation2 + $0x58] sm:$0xff] %vm1330_vm10, %v7744_v24  ;;  %7881 = vmatprep.mubr.msk.bf16.mxu1 %vm3283_vm15, %v10482_v34  ;;  %v12524_v24 = vld [vmem:[#allocation14_spill] sm:$0xff] }
 0x332   : > { %12514 = vst [vmem:[#allocation8_spill] sm:$0xff] %v10675_v22  ;;  %v6057_v45 = vrot.slane %v12517_v26, 1  ;;  %v12518_v51 = vmov %v12517_v26  ;;  %v6037_v30 = vsel %vm8299_vm6, %v10532_v20, %v5927_v60  ;;  %v6056_v38 = vor.u32 %v6055_v4, %v5922_v37  ;;  %v8113_v26 = vld [vmem:[%s8224_s28 + $0x20] sm:$0xf] }
 0x333   : > { %v5934_v18 = vor.u32 %v12518_v51, %v5931_v2  ;;  %v12519_v54 = vshrl.u32 %v12515_v43, 16  ;;  %v12521_v47 = vmax.bf16 %v12520_v62, %v12482_v53  ;;  %v3553_v2 = vpop.permute.xlu0 %3552  ;;  %v12522_v51 = vshll.u32 %v10489_v56, 16  ;;  %v12523_v53 = vld [vmem:[#allocation13_spill] sm:$0xff] }
 0x334   : > { %v10721_v37 = vrot.slane %v12212_v42, 1  ;;  %v10725_v43 = vrot.slane %v12213_v49, 2  ;;  %v4794_v4 = vshrl.u32 %v10690_v10, 16  ;;  %v6135_v16 = vsel %vm8309_vm7, %v6056_v38, %v7276_v46  ;;  %v12526_v42 = vld [vmem:[#allocation12_spill] sm:$0xff] }
 0x335   : > { %v6058_v11 = vor.u32 %v6057_v45, %v12519_v54  ;;  %v10712_v0 = vmax.bf16 %v8113_v26, %v12521_v47  ;;  %v3890_v60 = vrot.slane %v12522_v51, 1  ;;  %v6038_v47 = vsel %vm8299_vm6, %v12523_v53, %v5934_v18  ;;  %v1476_v45 = vpop.f32.mrf.mxu1  ;;  %v8114_v51 = vld [vmem:[%s8224_s28 + $0x24] sm:$0xf] }
 0x336   : > { %v12525_v54 = vcombine.low %v12524_v24, %v12524_v24  ;;  %v12527_v49 = vmax.bf16 %v12526_v42, %v12485_v28  ;;  %v5165_v58 = vrot.slane %v10603_v14, 2  ;;  %1577 = vst.msk [vmem:[#allocation2 + $0x48] sm:$0xff] %vm1330_vm10, %v1476_v45  ;;  %v6151_v46 = vmax.bf16 %v6135_v16, %v6037_v30 }
 0x337   : > { %v3680_v35 = vsel %vm572_vm1, %v12528_v57, %v3553_v2  ;;  %v3586_v31 = vpop.permute.xlu0 %3585 }
 0x338   : > { %v6136_v26 = vsel %vm8309_vm7, %v6058_v11, %v12525_v54  ;;  %v10744_v18 = vmax.bf16 %v8114_v51, %v12527_v49  ;;  %v12529_v54 = vld [vmem:[#allocation25_spill] sm:$0xff]  ;;  %v7294_v22 = vcombine.low %v6151_v46, %v6151_v46  ;;  %v7295_v45 = vcombine.high %v6151_v46, %v6151_v46  ;;  %7882 = vmatmul.mubr.msk.bf16.gmra.mxu1 %vm3283_vm15, %v10485_v27  ;;  %v12537_v27 = vld [vmem:[#allocation22_spill] sm:$0xff] }
 0x339   : > { %v6152_v38 = vmax.bf16 %v6136_v26, %v6038_v47  ;;  %v12530_v29 = vshrl.u32 %v12529_v54, 16  ;;  %v12531_v49 = vshll.u32 %v12529_v54, 16  ;;  %7885 = vmatprep.mubr.msk.bf16.mxu1 %vm3283_vm15, %v10511_v12 }
 0x33a   : > { %v7262_v11 = vcombine.low %v10712_v0, %v10744_v18  ;;  %v7278_v47 = vcombine.low %v10744_v18, %v10744_v18  ;;  %v10763_v16 = vmax.bf16 %v7294_v22, %v10532_v20  ;;  %v3712_v20 = vsel %vm1330_vm10, %v3680_v35, %v3586_v31 }
 0x33b   : > { %v5945_v28 = vrot.slane %v12530_v29, 7  ;;  %v6061_v51 = vrot.slane %v12531_v49, 1  ;;  %v7296_v7 = vcombine.low %v6152_v38, %v6152_v38  ;;  %v7297_v56 = vcombine.high %v6152_v38, %v6152_v38 }
 0x33c   : > { %v5936_v34 = vshrl.u32 %v7262_v11, 16  ;;  %v5939_v30 = vshll.u32 %v7262_v11, 16  ;;  %v12532_v57 = vmov %v12531_v49  ;;  %v10766_v29 = vmax.bf16 %v7295_v45, %v10538_v40  ;;  %v12533_v49 = vld [vmem:[#allocation18_spill] sm:$0xff]  ;;  %v3618_v40 = vpop.permute.xlu0 %3617  ;;  %v12539_v45 = vld [vmem:[#allocation84_spill] sm:$0xff] }
 0x33d   : > { %v5948_v2 = vor.u32 %v12532_v57, %v5945_v28  ;;  %v10769_v26 = vmax.bf16 %v7296_v7, %v12523_v53  ;;  %v10772_v46 = vmax.bf16 %v7297_v56, %v12524_v24  ;;  %v12534_v28 = vshrl.u32 %v12529_v54, 16 }
 0x33e   : > { %v5938_v38 = vrot.slane %v5936_v34, 7  ;;  %v6059_v11 = vrot.slane %v5939_v30, 1  ;;  %v12535_v22 = vrot.slane %v10292_v25, 2  ;;  %v3744_v24 = vsel %vm1370_vm11, %v3712_v20, %v3618_v40 }
 0x33f   : > { %v6040_v41 = vsel %vm8299_vm6, %v12533_v49, %v5948_v2  ;;  %v6062_v57 = vor.u32 %v6061_v51, %v12534_v28  ;;  %v12538_v54 = vcombine.low %v12537_v27, %v12537_v27  ;;  %v10801_v2 = vsel %vm3239_vm13, %v3744_v24, %v12539_v45 }
 0x340   : > { %v10789_v53 = vsel %vm1403_vm9, %v12535_v22, %v5165_v58  ;;  %v5941_v31 = vor.u32 %v5939_v30, %v5938_v38  ;;  %v6060_v35 = vor.u32 %v6059_v11, %v5936_v34  ;;  %v12540_v58 = vshrl.u32 %v10379_v19, 16  ;;  %7886 = vmatmul.mubr.msk.bf16.gmra.mxu1 %vm3283_vm15, %v10568_v21 }
 0x341   : > { %12536 = vst [vmem:[#allocation5_spill] sm:$0xff] %v10789_v53  ;;  %v6138_v51 = vsel %vm8309_vm7, %v6062_v57, %v12538_v54  ;;  %v12541_v20 = vshrl.u32 %v10292_v25, 16  ;;  %v12220_v30 = vshll.u32 %v10801_v2, 16  ;;  %v4776_v38 = vshrl.u32 %v10801_v2, 16  ;;  %7889 = vmatprep.mubr.msk.bf16.mxu1 %vm3283_vm15, %v10600_v23 }
 0x342   : > { %v3887_v28 = vor.u32 %v10642_v15, %v12540_v58  ;;  %v6154_v34 = vmax.bf16 %v6138_v51, %v6040_v41  ;;  %v10814_v11 = vsel %vm1761_vm3, %v10574_v9, %v10621_v39  ;;  %v6039_v57 = vsel %vm8299_vm6, %v10712_v0, %v5941_v31  ;;  %v3620_v15 = vpop.permute.xlu0 %3619  ;;  %v8115_v39 = vld [vmem:[%s8224_s28 + $0x30] sm:$0xf]  ;;  %v12542_v51 = vld [vmem:[#allocation19_spill] sm:$0xff] }
 0x343   : > { %v3897_v12 = vor.u32 %v10611_v6, %v12541_v20  ;;  %v6137_v41 = vsel %vm8309_vm7, %v6060_v35, %v7278_v47  ;;  %v12219_v24 = vshll.u32 %v10690_v10, 16  ;;  %v10825_v54 = vrot.slane %v4794_v4, 1  ;;  %v8116_v20 = vld [vmem:[%s8224_s28 + $0x34] sm:$0xf] }
 0x344   : > { %v10820_v40 = vsel %vm1761_vm3, %v3887_v28, %v3890_v60  ;;  %v7300_v6 = vcombine.low %v6154_v34, %v6154_v34  ;;  %v7301_v22 = vcombine.high %v6154_v34, %v6154_v34  ;;  %v4778_v9 = vrot.slane %v4776_v38, 1  ;;  %v12547_v34 = vld [vmem:[#allocation20_spill] sm:$0xff] }
 0x345   : > { %v12543_v45 = vmax.bf16 %v12542_v51, %v12520_v62  ;;  %v4779_v60 = vrot.slane %v12220_v30, 2  ;;  %v6153_v58 = vmax.bf16 %v6137_v41, %v6039_v57  ;;  %v12546_v4 = vshll.u32 %v10603_v14, 16  ;;  %v7777_v57 = vpop.f32.mrf.mxu0  ;;  %v2152_v41 = vld [vmem:[#allocation2 + $0x50] sm:$0xff]  ;;  %v2153_v30 = vld [vmem:[#allocation2 + $0x58] sm:$0xff] }
 0x346   : > { %v10836_v28 = vmax.bf16 %v7300_v6, %v12533_v49  ;;  %v10839_v47 = vmax.bf16 %v7301_v22, %v12537_v27  ;;  %v12548_v38 = vmax.bf16 %v12547_v34, %v12526_v42  ;;  %v3047_v49 = vpop.permute.xlu0 %3046  ;;  %v10857_v42 = vrot.slane %v12219_v24, 2 }
 0x347   : > { %v10831_v31 = vmax.bf16 %v8115_v39, %v12543_v45  ;;  %v3900_v35 = vrot.slane %v12546_v4, 1  ;;  %v5167_v39 = vrot.slane %v10684_v32, 2  ;;  %v5168_v45 = vrot.slane %v10801_v2, 2 }
 0x348   : > { %12544 = vst [vmem:[#allocation90_spill] sm:$0xff] %v10836_v28  ;;  %12545 = vst [vmem:[#allocation92_spill] sm:$0xff] %v10839_v47  ;;  %v10847_v62 = vmax.bf16 %v8116_v20, %v12548_v38  ;;  %v4780_v27 = vor.u32 %v4779_v60, %v4778_v9  ;;  %v7298_v6 = vcombine.low %v6153_v58, %v6153_v58  ;;  %v2047_v9 = vpop.f32.mrf.mxu0  ;;  %v2150_v60 = vld [vmem:[#allocation2 + $0x40] sm:$0xff]  ;;  %7890 = vmatmul.mubr.msk.bf16.gmra.mxu1 %vm3283_vm15, %v10814_v11 }
 0x349   : > { %v7299_v22 = vcombine.high %v6153_v58, %v6153_v58  ;;  %v2184_v20 = vadd.f32 %v7777_v57, %v2152_v41  ;;  %v10864_v21 = vsel %vm1403_vm9, %v5167_v39, %v5168_v45  ;;  %v12550_v58 = vshll.u32 %v10607_v59, 16  ;;  %7893 = vmatprep.mubr.msk.bf16.mxu1 %vm3283_vm15, %v10820_v40 }
 0x34a   : > { %v7264_v38 = vcombine.low %v10831_v31, %v10847_v62  ;;  %12549 = vst [vmem:[#allocation17_spill] sm:$0xff] %v10864_v21  ;;  %v12551_v4 = vor.u32 %v10725_v43, %v10721_v37  ;;  %v10875_v57 = vmax.bf16 %v7298_v6, %v10712_v0  ;;  %v2182_v39 = vadd.f32 %v2150_v60, %v2047_v9  ;;  %v7778_v24 = vpop.f32.mrf.mxu0  ;;  %v7747_v37 = vpop.f32.mrf.mxu1  ;;  %v12554_v6 = vld [vmem:[#allocation31_spill] sm:$0xff] }
 0x34b   : > { %v3916_v56 = vrot.slane %v12550_v58, 1  ;;  %v10878_v23 = vmax.bf16 %v7299_v22, %v10744_v18  ;;  %2216 = vst.msk [vmem:[#allocation2 + $0x50] sm:$0xff] %vm1330_vm10, %v2184_v20  ;;  %v10882_v45 = vsel %vm1761_vm3, %v3897_v12, %v3900_v35  ;;  %v12553_v43 = vshll.u32 %v10684_v32, 16  ;;  %1582 = vst.msk [vmem:[#allocation2 + $0x70] sm:$0xff] %vm1330_vm10, %v7747_v37 }
 0x34c   : > { %v10872_v7 = vsel %vm4664_vm14, %v12551_v4, %v4780_v27  ;;  %v5950_v41 = vshrl.u32 %v7264_v38, 16  ;;  %v5953_v58 = vshll.u32 %v7264_v38, 16  ;;  %v12555_v18 = vshrl.u32 %v12554_v6, 16  ;;  %2214 = vst.msk [vmem:[#allocation2 + $0x40] sm:$0xff] %vm1330_vm10, %v2182_v39  ;;  %v3652_v38 = vpop.permute.xlu0 %3651  ;;  %v2050_v0 = vpop.f32.mrf.mxu0 }
 0x34d   : > { %12552 = vst [vmem:[#allocation16_spill] sm:$0xff] %v10878_v23  ;;  %v3906_v27 = vrot.slane %v12553_v43, 1  ;;  %v12556_v4 = vshll.u32 %v12554_v6, 16  ;;  %v3746_v12 = vsel %vm1370_vm11, %v10578_v61, %v3620_v15  ;;  %v2185_v35 = vadd.f32 %v7778_v24, %v2153_v30  ;;  %v1489_v21 = vpop.f32.mrf.mxu1  ;;  %v12558_v30 = vld [vmem:[#allocation75_spill] sm:$0xff] }
 0x34e   : > { %v5959_v22 = vrot.slane %v12555_v18, 7  ;;  %v5952_v9 = vrot.slane %v5950_v41, 7  ;;  %v6063_v60 = vrot.slane %v5953_v58, 1  ;;  %v10897_v43 = vsel %vm3239_vm13, %v3746_v12, %v3652_v38  ;;  %v2151_v38 = vld [vmem:[#allocation2 + $0x48] sm:$0xff]  ;;  %1580 = vst.msk [vmem:[#allocation2 + $0x60] sm:$0xff] %vm1330_vm10, %v1489_v21 }
 0x34f   : > { %v6065_v20 = vrot.slane %v12556_v4, 1  ;;  %v7280_v18 = vcombine.low %v10847_v62, %v10847_v62  ;;  %v12557_v61 = vshrl.u32 %v12554_v6, 16  ;;  %v3174_v24 = vsel %vm572_vm1, %v12558_v30, %v3047_v49  ;;  %2217 = vst.msk [vmem:[#allocation2 + $0x58] sm:$0xff] %vm1330_vm10, %v2185_v35  ;;  %v7748_v28 = vpop.f32.mrf.mxu1 }
 0x350   : > { %v5962_v53 = vor.u32 %v12556_v4, %v5959_v22  ;;  %v3918_v39 = vshll.u32 %v10897_v43, 16  ;;  %v4785_v37 = vshrl.u32 %v10897_v43, 16  ;;  %v5171_v12 = vrot.slane %v10897_v43, 2  ;;  %1583 = vst.msk [vmem:[#allocation2 + $0x78] sm:$0xff] %vm1330_vm10, %v7748_v28  ;;  %7894 = vmatmul.mubr.msk.bf16.gmra.mxu1 %vm3283_vm15, %v10882_v45  ;;  %v12572_v45 = vld [vmem:[#allocation49_spill] sm:$0xff] }
 0x351   : > { %v6066_v15 = vor.u32 %v6065_v20, %v12557_v61  ;;  %v2183_v47 = vadd.f32 %v2151_v38, %v2050_v0  ;;  %v5955_v6 = vor.u32 %v5953_v58, %v5952_v9  ;;  %v6064_v22 = vor.u32 %v6063_v60, %v5950_v41  ;;  %v12559_v20 = vld [vmem:[#allocation26_spill] sm:$0xff]  ;;  %v3110_v61 = vpop.permute.xlu0 %3109  ;;  %v12561_v58 = vld [vmem:[#allocation27_spill] sm:$0xff] }
 0x352   : > { %v6042_v49 = vsel %vm8299_vm6, %v12559_v20, %v5962_v53  ;;  %v4787_v35 = vrot.slane %v4785_v37, 1  ;;  %v4788_v4 = vrot.slane %v3918_v39, 2  ;;  %v12560_v21 = vshrl.u32 %v10607_v59, 16  ;;  %v1492_v53 = vpop.f32.mrf.mxu1 }
 0x353   : > { %v5170_v11 = vrot.slane %v10607_v59, 2  ;;  %v3206_v41 = vsel %vm1330_vm10, %v3174_v24, %v10376_v3  ;;  %2215 = vst.msk [vmem:[#allocation2 + $0x48] sm:$0xff] %vm1330_vm10, %v2183_v47  ;;  %v6041_v28 = vsel %vm8299_vm6, %v10831_v31, %v5955_v6  ;;  %v6139_v40 = vsel %vm8309_vm7, %v6064_v22, %v7280_v18  ;;  %1581 = vst.msk [vmem:[#allocation2 + $0x68] sm:$0xff] %vm1330_vm10, %v1492_v53  ;;  %v8117_v18 = vld [vmem:[%s8224_s28 + $0x40] sm:$0xf]  ;;  %v12566_v22 = vld [vmem:[#allocation23_spill] sm:$0xff] }
 0x354   : > { %v3917_v0 = vor.u32 %v3916_v56, %v12560_v21  ;;  %v12562_v9 = vcombine.low %v12561_v58, %v12561_v58  ;;  %v4789_v60 = vor.u32 %v4788_v4, %v4787_v35  ;;  %v12563_v3 = vshll.u32 %v10801_v2, 16  ;;  %v12568_v35 = vld [vmem:[#allocation24_spill] sm:$0xff] }
 0x355   : > { %v6155_v30 = vmax.bf16 %v6139_v40, %v6041_v28  ;;  %v12564_v37 = vshrl.u32 %v10684_v32, 16  ;;  %v10942_v6 = vsel %vm1403_vm9, %v5170_v11, %v5171_v12  ;;  %v12567_v21 = vmax.bf16 %v12566_v22, %v12542_v51  ;;  %v3142_v12 = vpop.permute.xlu0 %3141 }
 0x356   : > { %v6140_v56 = vsel %vm8309_vm7, %v6066_v15, %v12562_v9  ;;  %v3910_v47 = vrot.slane %v12563_v3, 1  ;;  %12565 = vst [vmem:[#allocation7_spill] sm:$0xff] %v10942_v6  ;;  %v8118_v15 = vld [vmem:[%s8224_s28 + $0x44] sm:$0xf]  ;;  %v12569_v4 = vmax.bf16 %v12568_v35, %v12547_v34  ;;  %v12570_v11 = vor.u32 %v10650_v48, %v10646_v36  ;;  %v12582_v6 = vld [vmem:[#allocation74_spill] sm:$0xff] }
 0x357   : > { %v6156_v24 = vmax.bf16 %v6140_v56, %v6042_v49  ;;  %v3907_v38 = vor.u32 %v3906_v27, %v12564_v37  ;;  %v10948_v23 = vmax.bf16 %v8117_v18, %v12567_v21  ;;  %v3236_v49 = vsel %vm1370_vm11, %v10628_v63, %v3110_v61 }
 0x358   : > { %v10954_v53 = vmax.bf16 %v8118_v15, %v12569_v4  ;;  %v3238_v27 = vsel %vm1370_vm11, %v3206_v41, %v10433_v44  ;;  %v10964_v51 = vsel %vm4664_vm14, %v12570_v11, %v4789_v60  ;;  %v7302_v28 = vcombine.low %v6155_v30, %v6155_v30 }
 0x359   : > { %v3920_v40 = vrot.slane %v3918_v39, 1  ;;  %v10967_v9 = vsel %vm3239_vm13, %v3236_v49, %v3142_v12  ;;  %v10970_v34 = vsel %vm3239_vm13, %v3238_v27, %v3142_v12  ;;  %v3911_v36 = vsel %vm1761_vm3, %v3907_v38, %v3910_v47  ;;  %v3559_v47 = vpop.permute.xlu0 %3558  ;;  %v12573_v49 = vld [vmem:[#allocation67_spill] sm:$0xff] }
 0x35a   : > { %v7266_v63 = vcombine.low %v10948_v23, %v10954_v53  ;;  %v3922_v44 = vshrl.u32 %v10967_v9, 16  ;;  %v3924_v61 = vshll.u32 %v10967_v9, 16  ;;  %7865 = vmatprep.mubr.msk.bf16.mxu0 %vm3283_vm15, %v10967_v9  ;;  %v7303_v48 = vcombine.high %v6155_v30, %v6155_v30  ;;  %7897 = vmatprep.mubr.msk.bf16.mxu1 %vm3283_vm15, %v3911_v36 }
 0x35b   : > { %7866 = vmatmul.mubr.msk.bf16.gmra.mxu0 %vm3283_vm15, %v10970_v34  ;;  %v10985_v41 = vmax.bf16 %v7302_v28, %v10831_v31  ;;  %v7304_v56 = vcombine.low %v6156_v24, %v6156_v24  ;;  %v7305_v60 = vcombine.high %v6156_v24, %v6156_v24  ;;  %v12571_v3 = vshll.u32 %v10690_v10, 16 }
 0x35c   : > { %v5174_v18 = vrot.slane %v10690_v10, 2  ;;  %7909 = vmatprep.mubr.msk.bf16.mxu0 %vm3283_vm15, %v10366_v55  ;;  %v3926_v30 = vrot.slane %v3924_v61, 1  ;;  %v5241_v38 = vsel %vm621_vm0, %v12572_v45, 0  ;;  %v3921_v31 = vsel %vm1761_vm3, %v3917_v0, %v3920_v40 }
 0x35d   : > { %v3930_v37 = vrot.slane %v12571_v3, 1  ;;  %v4791_v21 = vrot.slane %v3922_v44, 1  ;;  %v4792_v15 = vrot.slane %v3924_v61, 2  ;;  %v4798_v24 = vor.u32 %v10857_v42, %v10825_v54  ;;  %v3592_v61 = vpop.permute.xlu0 %3591  ;;  %v12574_v3 = vld [vmem:[#allocation36_spill] sm:$0xff]  ;;  %7898 = vmatmul.mubr.msk.bf16.gmra.mxu1 %vm3283_vm15, %v3921_v31  ;;  %v12580_v42 = vld [vmem:[#allocation33_spill] sm:$0xff] }
 0x35e   : > { %v3686_v27 = vsel %vm572_vm1, %v12573_v49, %v3559_v47  ;;  %v3927_v55 = vor.u32 %v3926_v30, %v3922_v44  ;;  %v11002_v12 = vmax.bf16 %v7303_v48, %v10847_v62  ;;  %v11005_v28 = vmax.bf16 %v7304_v56, %v12559_v20  ;;  %v8110_v56 = vld [vmem:[%s12004_s5 + $0x30] sm:$0xff]  }
 0x35f   : > { %v4793_v11 = vor.u32 %v4792_v15, %v4791_v21  ;;  %v11008_v0 = vmax.bf16 %v7305_v60, %v12561_v58  ;;  %v5964_v40 = vshrl.u32 %v7266_v63, 16  ;;  %v5967_v36 = vshll.u32 %v7266_v63, 16  ;;  %v7781_v15 = vpop.f32.mrf.mxu0  ;;  %v12577_v49 = vld [vmem:[#allocation62_spill] sm:$0xff] }
 0x360   : > { %v3931_v54 = vsel %vm1761_vm3, %v3927_v55, %v3930_v37  ;;  %v7282_v44 = vcombine.low %v10954_v53, %v10954_v53  ;;  %v3718_v62 = vsel %vm1330_vm10, %v3686_v27, %v3592_v61  ;;  %v5173_v63 = vrot.slane %v10967_v9, 2  ;;  %v8119_v55 = vld [vmem:[%s8224_s28 + $0x50] sm:$0xf] }
 0x361   : > { %v11017_v20 = vsel %vm4664_vm14, %v4793_v11, %v4798_v24  ;;  %v5966_v48 = vrot.slane %v5964_v40, 7  ;;  %v6067_v60 = vrot.slane %v5967_v36, 1  ;;  %v12575_v37 = vshrl.u32 %v12574_v3, 16  ;;  %v2156_v24 = vld [vmem:[#allocation2 + $0x70] sm:$0xff]  ;;  %7901 = vmatprep.mubr.msk.bf16.mxu1 %vm3283_vm15, %v3931_v54 }
 0x362   : > { %v12576_v30 = vshll.u32 %v12574_v3, 16  ;;  %v4317_v21 = vrot.slane %v10095_v1, 1  ;;  %v12578_v11 = vld [vmem:[#allocation30_spill] sm:$0xff]  ;;  %v2188_v4 = vadd.f32 %v7781_v15, %v2156_v24  ;;  %v12583_v31 = vshll.u32 %v10970_v34, 16 }
 0x363   : > { %v5973_v47 = vrot.slane %v12575_v37, 7  ;;  %7910 = vmatmul.mubr.msk.bf16.vlgmr.msra.gmra.mxu0 %vm3283_vm15, %v12577_v49  ;;  %v5969_v27 = vor.u32 %v5967_v36, %v5966_v48  ;;  %v12579_v61 = vmax.bf16 %v12578_v11, %v12566_v22  ;;  %v8120_v37 = vld [vmem:[%s8224_s28 + $0x54] sm:$0xf]  ;;  %v3624_v49 = vpop.permute.xlu0 %3623  ;;  %v6068_v48 = vor.u32 %v6067_v60, %v5964_v40 }
 0x364   : > { %v6069_v45 = vrot.slane %v12576_v30, 1  ;;  %v12581_v30 = vmax.bf16 %v12580_v42, %v12568_v35  ;;  %7913 = vmatprep.mubr.msk.bf16.mxu0 %vm3283_vm15, %v12582_v6  ;;  %v3936_v36 = vrot.slane %v12583_v31, 1  ;;  %v11051_v22 = vsel %vm1403_vm9, %v5173_v63, %v5174_v18  ;;  %v2154_v35 = vld [vmem:[#allocation2 + $0x60] sm:$0xff]  ;;  %7978 = vmatpush3.bf16.msra.mxu0 %v5241_v38  ;;  %2220 = vst.msk [vmem:[#allocation2 + $0x70] sm:$0xff] %vm1330_vm10, %v2188_v4  ;;  %v2157_v4 = vld [vmem:[#allocation2 + $0x78] sm:$0xff] }
 0x365   : > { %v11037_v58 = vmax.bf16 %v8119_v55, %v12579_v61  ;;  %12584 = vst [vmem:[#allocation21_spill] sm:$0xff] %v11051_v22  ;;  %v3750_v55 = vsel %vm1370_vm11, %v3718_v62, %v3624_v49  ;;  %v2063_v61 = vpop.f32.mrf.mxu0  ;;  %v6043_v15 = vsel %vm8299_vm6, %v10948_v23, %v5969_v27  ;;  %v12585_v6 = vshll.u32 %v12574_v3, 16  ;;  %7979 = vmatprep.subr.bf16.mxu0 %v8110_v56  ;;  %v12588_v49 = vld [vmem:[#allocation32_spill] sm:$0xff] }
 0x366   : > { %v11043_v39 = vmax.bf16 %v8120_v37, %v12581_v30  ;;  %v12586_v54 = vshrl.u32 %v12574_v3, 16  ;;  %v11064_v18 = vsel %vm3239_vm13, %v3750_v55, %v10659_v5  ;;  %v2186_v40 = vadd.f32 %v2154_v35, %v2063_v61 }
 0x367   : > { %v5976_v24 = vor.u32 %v12585_v6, %v5973_v47  ;;  %v6141_v38 = vsel %vm8309_vm7, %v6068_v48, %v7282_v44  ;;  %v12224_v60 = vshrl.u32 %v10970_v34, 16  ;;  %v12225_v63 = vshll.u32 %v11064_v18, 16  ;;  %v7782_v47 = vpop.f32.mrf.mxu0  ;;  %v12589_v48 = vld [vmem:[#allocation34_spill] sm:$0xff]  ;;  %v2155_v6 = vld [vmem:[#allocation2 + $0x68] sm:$0xff] }
 0x368   : > { %v6070_v37 = vor.u32 %v6069_v45, %v12586_v54  ;;  %v7268_v62 = vcombine.low %v11037_v58, %v11043_v39  ;;  %v5177_v3 = vrot.slane %v11064_v18, 2  ;;  %v7751_v45 = vpop.f32.mrf.mxu1  ;;  %v12587_v5 = vrot.slane %v12432_v13, 1  ;;  %2218 = vst.msk [vmem:[#allocation2 + $0x60] sm:$0xff] %vm1330_vm10, %v2186_v40  ;;  %7980 = vmatpush3.bf16.msra.mxu0 %v8110_v56 }
 0x369   : > { %v2189_v44 = vadd.f32 %v7782_v47, %v2157_v4  ;;  %1586 = vst.msk [vmem:[#allocation2 + $0x90] sm:$0xff] %vm1330_vm10, %v7751_v45  ;;  %v6157_v30 = vmax.bf16 %v6141_v38, %v6043_v15  ;;  %v6044_v31 = vsel %vm8299_vm6, %v12588_v49, %v5976_v24  ;;  %v12590_v55 = vcombine.low %v12589_v48, %v12589_v48  ;;  %v12591_v38 = vld [vmem:[#allocation41_spill] sm:$0xff] }
 0x36a   : > { %v11076_v27 = vsel %vm2270_vm12, %v12587_v5, %v4317_v21  ;;  %v5176_v35 = vrot.slane %v10970_v34, 2  ;;  %v2066_v21 = vpop.f32.mrf.mxu0  ;;  %v1505_v54 = vpop.f32.mrf.mxu1  ;;  %v3937_v40 = vor.u32 %v3936_v36, %v12224_v60  ;;  %v3940_v15 = vrot.slane %v12225_v63, 1 }
 0x36b   : > { %v6142_v61 = vsel %vm8309_vm7, %v6070_v37, %v12590_v55  ;;  %v12592_v24 = vshrl.u32 %v12591_v38, 16  ;;  %2221 = vst.msk [vmem:[#allocation2 + $0x78] sm:$0xff] %vm1330_vm10, %v2189_v44  ;;  %v2187_v4 = vadd.f32 %v2155_v6, %v2066_v21  ;;  %1584 = vst.msk [vmem:[#allocation2 + $0x80] sm:$0xff] %vm1330_vm10, %v1505_v54  ;;  %v7306_v37 = vcombine.low %v6157_v30, %v6157_v30  ;;  %v12593_v55 = vld [vmem:[#allocation57_spill] sm:$0xff] }
 0x36c   : > { %v7307_v45 = vcombine.high %v6157_v30, %v6157_v30  ;;  %v6158_v5 = vmax.bf16 %v6142_v61, %v6044_v31  ;;  %7914 = vmatmul.mubr.msk.bf16.gmra.mxu0 %vm3283_vm15, %v12593_v55  ;;  %v7752_v22 = vpop.f32.mrf.mxu1  ;;  %v3941_v36 = vsel %vm1761_vm3, %v3937_v40, %v3940_v15  ;;  %v11101_v60 = vsel %vm1403_vm9, %v5176_v35, %v5177_v3  ;;  %v12596_v61 = vld [vmem:[#allocation81_spill] sm:$0xff] }
 0x36d   : > { %v5987_v47 = vrot.slane %v12592_v24, 7  ;;  %12594 = vst [vmem:[#allocation51_spill] sm:$0xff] %v11101_v60  ;;  %v5978_v56 = vshrl.u32 %v7268_v62, 16  ;;  %v12595_v24 = vshll.u32 %v12591_v38, 16  ;;  %2219 = vst.msk [vmem:[#allocation2 + $0x68] sm:$0xff] %vm1330_vm10, %v2187_v4  ;;  %7902 = vmatmul.mubr.msk.bf16.gmra.mxu1 %vm3283_vm15, %v3941_v36  ;;  %7917 = vmatprep.mubr.msk.bf16.mxu0 %vm3283_vm15, %v10466_v8  ;;  %v11111_v44 = vmax.bf16 %v7306_v37, %v10948_v23 }
 0x36e   : > { %1587 = vst.msk [vmem:[#allocation2 + $0x98] sm:$0xff] %vm1330_vm10, %v7752_v22  ;;  %v11114_v30 = vmax.bf16 %v7307_v45, %v10954_v53  ;;  %v7308_v3 = vcombine.low %v6158_v5, %v6158_v5  ;;  %v5981_v31 = vshll.u32 %v7268_v62, 16  ;;  %7945 = vmatprep.mubr.msk.bf16.mxu1 %vm3283_vm15, %v12596_v61  ;;  %v1508_v35 = vpop.f32.mrf.mxu1  ;;  %v6446_v22 = vsel %vm621_vm0, %v10665_v33, 0  ;;  %v8121_v45 = vld [vmem:[%s8224_s28 + $0x60] sm:$0xf]  ;;  %v12604_v61 = vld [vmem:[#allocation37_spill] sm:$0xff] }
 0x36f   : > { %v6073_v63 = vrot.slane %v12595_v24, 1  ;;  %v7309_v21 = vcombine.high %v6158_v5, %v6158_v5  ;;  %v5980_v6 = vrot.slane %v5978_v56, 7  ;;  %v7284_v8 = vcombine.low %v11043_v39, %v11043_v39  ;;  %1585 = vst.msk [vmem:[#allocation2 + $0x88] sm:$0xff] %vm1330_vm10, %v1508_v35  ;;  %v12601_v5 = vld [vmem:[#allocation35_spill] sm:$0xff] }
 0x370   : > { %v11126_v53 = vmax.bf16 %v7308_v3, %v12588_v49  ;;  %v6071_v62 = vrot.slane %v5981_v31, 1  ;;  %v12598_v54 = vmov %v12595_v24  ;;  %v12600_v4 = vshrl.u32 %v12591_v38, 16  ;;  %v12603_v49 = vld [vmem:[#allocation38_spill] sm:$0xff]  ;;  %v12606_v38 = vld [vmem:[#allocation45_spill] sm:$0xff] }
 0x371   : > { %v5990_v40 = vor.u32 %v12598_v54, %v5987_v47  ;;  %v11131_v33 = vmax.bf16 %v7309_v21, %v12589_v48  ;;  %v5983_v15 = vor.u32 %v5981_v31, %v5980_v6  ;;  %v12602_v55 = vmax.bf16 %v12601_v5, %v12578_v11  ;;  %v8122_v47 = vld [vmem:[%s8224_s28 + $0x64] sm:$0xf]  ;;  %v12608_v21 = vld [vmem:[#allocation39_spill] sm:$0xff] }
 0x372   : > { %12597 = vst [vmem:[#allocation60_spill] sm:$0xff] %v11126_v53  ;;  %v6074_v37 = vor.u32 %v6073_v63, %v12600_v4  ;;  %v6072_v24 = vor.u32 %v6071_v62, %v5978_v56  ;;  %v12605_v48 = vmax.bf16 %v12604_v61, %v12580_v42  ;;  %v12607_v63 = vshrl.u32 %v12606_v38, 16 }
 0x373   : > { %12599 = vst [vmem:[#allocation69_spill] sm:$0xff] %v11131_v33  ;;  %v11139_v36 = vmax.bf16 %v8121_v45, %v12602_v55  ;;  %v6046_v3 = vsel %vm8299_vm6, %v12603_v49, %v5990_v40  ;;  %v6045_v56 = vsel %vm8299_vm6, %v11037_v58, %v5983_v15  ;;  %v12609_v6 = vcombine.low %v12608_v21, %v12608_v21 }
 0x374   : > { %v11148_v31 = vmax.bf16 %v8122_v47, %v12605_v48  ;;  %v6001_v35 = vrot.slane %v12607_v63, 7  ;;  %v12610_v42 = vshll.u32 %v12606_v38, 16  ;;  %v6143_v40 = vsel %vm8309_vm7, %v6072_v24, %v7284_v8  ;;  %7918 = vmatmul.mubr.msk.bf16.gmra.mxu0 %vm3283_vm15, %v10494_v17  ;;  %v12617_v38 = vld [vmem:[#allocation91_spill] sm:$0xff] }
 0x375   : > { %v6144_v62 = vsel %vm8309_vm7, %v6074_v37, %v12609_v6  ;;  %v6159_v15 = vmax.bf16 %v6143_v40, %v6045_v56  ;;  %v12612_v48 = vmov %v12607_v63  ;;  %v8123_v6 = vld [vmem:[%s8224_s28 + $0x70] sm:$0xf] }
 0x376   : > { %v6077_v54 = vrot.slane %v12610_v42, 1  ;;  %v6160_v4 = vmax.bf16 %v6144_v62, %v6046_v3  ;;  %v7270_v45 = vcombine.low %v11139_v36, %v11148_v31  ;;  %v7286_v55 = vcombine.low %v11148_v31, %v11148_v31  ;;  %v12615_v3 = vld [vmem:[#allocation78_spill] sm:$0xff]  ;;  %v12616_v62 = vld [vmem:[#allocation83_spill] sm:$0xff] }
 0x377   : > { %v12611_v47 = vmov %v12610_v42  ;;  %v12613_v42 = vld [vmem:[#allocation40_spill] sm:$0xff]  ;;  %7921 = vmatprep.mubr.msk.bf16.mxu0 %vm3283_vm15, %v12615_v3  ;;  %7946 = vmatmul.mubr.msk.bf16.vlgmr.msra.gmra.mxu1 %vm3283_vm15, %v12616_v62  ;;  %v2160_v3 = vld [vmem:[#allocation2 + $0x90] sm:$0xff] }
 0x378   : > { %v6004_v37 = vor.u32 %v12611_v47, %v6001_v35  ;;  %v6078_v63 = vor.u32 %v6077_v54, %v12612_v48  ;;  %v12614_v8 = vmax.bf16 %v12613_v42, %v12601_v5  ;;  %v7312_v17 = vcombine.low %v6160_v4, %v6160_v4  ;;  %8014 = vmatpush3.bf16.msra.mxu1 %v6446_v22  ;;  %v12618_v35 = vld [vmem:[#allocation55_spill] sm:$0xff]  ;;  %v7785_v22 = vpop.f32.mrf.mxu0 }
 0x379   : > { %v7313_v56 = vcombine.high %v6160_v4, %v6160_v4  ;;  %v5992_v40 = vshrl.u32 %v7270_v45, 16  ;;  %v5995_v11 = vshll.u32 %v7270_v45, 16  ;;  %7949 = vmatprep.mubr.msk.bf16.mxu1 %vm3283_vm15, %v12617_v38  ;;  %v7310_v5 = vcombine.low %v6159_v15, %v6159_v15  ;;  %v12619_v48 = vld [vmem:[#allocation43_spill] sm:$0xff] }
 0x37a   : > { %v11180_v24 = vmax.bf16 %v8123_v6, %v12614_v8  ;;  %v7311_v47 = vcombine.high %v6159_v15, %v6159_v15  ;;  %v6048_v6 = vsel %vm8299_vm6, %v12619_v48, %v6004_v37  ;;  %v11193_v42 = vmax.bf16 %v7312_v17, %v12603_v49  ;;  %v12620_v15 = vld [vmem:[#allocation44_spill] sm:$0xff]  ;;  %v8124_v37 = vld [vmem:[%s8224_s28 + $0x74] sm:$0xf] }
 0x37b   : > { %v11196_v4 = vmax.bf16 %v7313_v56, %v12608_v21  ;;  %v5994_v45 = vrot.slane %v5992_v40, 7  ;;  %v6075_v8 = vrot.slane %v5995_v11, 1  ;;  %v11199_v62 = vmax.bf16 %v7310_v5, %v11037_v58  ;;  %v12622_v17 = vld [vmem:[#allocation42_spill] sm:$0xff] }
 0x37c   : > { %v11202_v38 = vmax.bf16 %v7311_v47, %v11043_v39  ;;  %v12621_v23 = vcombine.low %v12620_v15, %v12620_v15  ;;  %v12623_v21 = vmax.bf16 %v12622_v17, %v12604_v61  ;;  %v2192_v54 = vadd.f32 %v7785_v22, %v2160_v3  ;;  %v2079_v39 = vpop.f32.mrf.mxu0  ;;  %v2158_v47 = vld [vmem:[#allocation2 + $0x80] sm:$0xff]  ;;  %7922 = vmatmul.mubr.msk.bf16.gmra.mxu0 %vm3283_vm15, %v11076_v27 }
 0x37d   : > { %v5997_v5 = vor.u32 %v5995_v11, %v5994_v45  ;;  %v6076_v60 = vor.u32 %v6075_v8, %v5992_v40  ;;  %v12624_v45 = vld [vmem:[#allocation72_spill] sm:$0xff] }
 0x37e   : > { %v6146_v49 = vsel %vm8309_vm7, %v6078_v63, %v12621_v23  ;;  %v11213_v56 = vmax.bf16 %v8124_v37, %v12623_v21  ;;  %v7333_v33 = vcombine.low %v11199_v62, %v11202_v38  ;;  %2224 = vst.msk [vmem:[#allocation2 + $0x90] sm:$0xff] %vm1330_vm10, %v2192_v54  ;;  %v2190_v63 = vadd.f32 %v2158_v47, %v2079_v39  ;;  %v12625_v8 = vld [vmem:[#allocation48_spill] sm:$0xff]  ;;  %v7786_v3 = vpop.f32.mrf.mxu0  ;;  %v7755_v37 = vpop.f32.mrf.mxu1 }
 0x37f   : > { %v6162_v53 = vmax.bf16 %v6146_v49, %v6048_v6  ;;  %v6047_v11 = vsel %vm8299_vm6, %v11139_v36, %v5997_v5  ;;  %v6145_v40 = vsel %vm8309_vm7, %v6076_v60, %v7286_v55  ;;  %v12626_v22 = vshll.u32 %v12625_v8, 16  ;;  %v2161_v49 = vld [vmem:[#allocation2 + $0x98] sm:$0xff]  ;;  %1590 = vst.msk [vmem:[#allocation2 + $0xb0] sm:$0xff] %vm1330_vm10, %v7755_v37  ;;  %v12627_v60 = vld [vmem:[#allocation77_spill] sm:$0xff] }
 0x380   : > { %v7272_v23 = vcombine.low %v11180_v24, %v11213_v56  ;;  %v7288_v61 = vcombine.low %v11213_v56, %v11213_v56  ;;  %v6161_v17 = vmax.bf16 %v6145_v40, %v6047_v11  ;;  %2222 = vst.msk [vmem:[#allocation2 + $0x80] sm:$0xff] %vm1330_vm10, %v2190_v63  ;;  %v2193_v5 = vadd.f32 %v7786_v3, %v2161_v49  ;;  %v12628_v55 = vld [vmem:[#allocation93_spill] sm:$0xff]  ;;  %v1521_v49 = vpop.f32.mrf.mxu1 }
 0x381   : > { %v6018_v6 = vor.u32 %v12626_v22, %v12624_v45  ;;  %v7316_v54 = vcombine.low %v6162_v53, %v6162_v53  ;;  %v7317_v21 = vcombine.high %v6162_v53, %v6162_v53  ;;  %7925 = vmatprep.mubr.msk.bf16.mxu0 %vm3283_vm15, %v12627_v60  ;;  %7950 = vmatmul.mubr.msk.bf16.gmra.mxu1 %vm3283_vm15, %v12628_v55  ;;  %v12629_v45 = vld [vmem:[#allocation46_spill] sm:$0xff]  ;;  %v12630_v11 = vshrl.u32 %v12625_v8, 16  ;;  %v2082_v22 = vpop.f32.mrf.mxu0  ;;  %v2159_v63 = vld [vmem:[#allocation2 + $0x88] sm:$0xff] }
 0x382   : > { %v6006_v39 = vshrl.u32 %v7272_v23, 16  ;;  %v6009_v47 = vshll.u32 %v7272_v23, 16  ;;  %v12631_v53 = vld [vmem:[#allocation10_spill] sm:$0xff]  ;;  %v12632_v3 = vld [vmem:[#allocation53_spill] sm:$0xff]  ;;  %v7314_v37 = vcombine.low %v6161_v17, %v6161_v17  ;;  %v7315_v60 = vcombine.high %v6161_v17, %v6161_v17  ;;  %2225 = vst.msk [vmem:[#allocation2 + $0x98] sm:$0xff] %vm1330_vm10, %v2193_v5  ;;  %1588 = vst.msk [vmem:[#allocation2 + $0xa0] sm:$0xff] %vm1330_vm10, %v1521_v49  ;;  %v7756_v17 = vpop.f32.mrf.mxu1 }
 0x383   : > { %v6050_v27 = vsel %vm8299_vm6, %v12629_v45, %v6018_v6  ;;  %v6082_v40 = vor.u32 %v12631_v53, %v12630_v11  ;;  %7953 = vmatprep.mubr.msk.bf16.mxu1 %vm3283_vm15, %v12632_v3  ;;  %v11249_v58 = vmax.bf16 %v7316_v54, %v12619_v48  ;;  %v11252_v23 = vmax.bf16 %v7317_v21, %v12620_v15  ;;  %v12633_v11 = vld [vmem:[#allocation47_spill] sm:$0xff] }
 0x384   : > { %v2191_v6 = vadd.f32 %v2159_v63, %v2082_v22  ;;  %v6008_v8 = vrot.slane %v6006_v39, 7  ;;  %v6079_v55 = vrot.slane %v6009_v47, 1  ;;  %v12634_v53 = vcombine.low %v12633_v11, %v12633_v11  ;;  %1591 = vst.msk [vmem:[#allocation2 + $0xb8] sm:$0xff] %vm1330_vm10, %v7756_v17  ;;  %v1524_v63 = vpop.f32.mrf.mxu1 }
 0x385   : > { %v11262_v48 = vmax.bf16 %v7314_v37, %v11139_v36  ;;  %v11265_v15 = vmax.bf16 %v7315_v60, %v11148_v31  ;;  %v7336_v54 = vcombine.low %v11249_v58, %v11252_v23  ;;  %1589 = vst.msk [vmem:[#allocation2 + $0xa8] sm:$0xff] %vm1330_vm10, %v1524_v63  ;;  %v12635_v60 = vld [vmem:[#allocation63_spill] sm:$0xff]  ;;  %v4328_v17 = vrot.slane %v10292_v25, 1 }
 0x386   : > { %v6148_v3 = vsel %vm8309_vm7, %v6082_v40, %v12634_v53  ;;  %2223 = vst.msk [vmem:[#allocation2 + $0x88] sm:$0xff] %vm1330_vm10, %v2191_v6  ;;  %v6011_v5 = vor.u32 %v6009_v47, %v6008_v8  ;;  %v6080_v22 = vor.u32 %v6079_v55, %v6006_v39  ;;  %v4325_v40 = vrot.slane %v10379_v19, 1  ;;  %7926 = vmatmul.mubr.msk.bf16.gmra.mxu0 %vm3283_vm15, %v12635_v60  ;;  %v2164_v63 = vld [vmem:[#allocation2 + $0xb0] sm:$0xff] }
 0x387   : > { %v6164_v21 = vmax.bf16 %v6148_v3, %v6050_v27  ;;  %v7335_v36 = vcombine.low %v11262_v48, %v11265_v15  ;;  %v12636_v39 = vrot.slane %v12618_v35, 1  ;;  %v4329_v53 = vrot.slane %v10603_v14, 1 }
 0x388   : > { %v6049_v31 = vsel %vm8299_vm6, %v11180_v24, %v6011_v5  ;;  %v6147_v27 = vsel %vm8309_vm7, %v6080_v22, %v7288_v61  ;;  %v7789_v22 = vpop.f32.mrf.mxu0 }
 0x389   : > { %v7320_v49 = vcombine.low %v6164_v21, %v6164_v21  ;;  %v7321_v37 = vcombine.high %v6164_v21, %v6164_v21  ;;  %v4327_v19 = vsel %vm2270_vm12, %v4325_v40, %v12636_v39  ;;  %v6163_v47 = vmax.bf16 %v6147_v27, %v6049_v31  ;;  %7954 = vmatmul.mubr.msk.bf16.gmra.mxu1 %vm3283_vm15, %v12637_v52 }
 0x38a   : > { %7929 = vmatprep.mubr.msk.bf16.mxu0 %vm3283_vm15, %v4327_v19  ;;  %7957 = vmatprep.mubr.msk.bf16.mxu1 %vm3283_vm15, %v12638_v50  ;;  %v4331_v21 = vrot.slane %v10684_v32, 1  ;;  %v4330_v40 = vsel %vm2270_vm12, %v4328_v17, %v4329_v53  ;;  %v2196_v14 = vadd.f32 %v7789_v22, %v2164_v63  ;;  %v2095_v25 = vpop.f32.mrf.mxu0  ;;  %v4337_v39 = vrot.slane %v10967_v9, 1  ;;  %v12641_v9 = vld [vmem:[#allocation9_spill] sm:$0xff]  ;;  %v12642_v53 = vld [vmem:[#allocation94_spill] sm:$0xff] }
 0x38b   : > { %v11286_v6 = vmax.bf16 %v7320_v49, %v12629_v45  ;;  %v11289_v8 = vmax.bf16 %v7321_v37, %v12633_v11  ;;  %v7318_v61 = vcombine.low %v6163_v47, %v6163_v47  ;;  %v7319_v55 = vcombine.high %v6163_v47, %v6163_v47  ;;  %v12640_v49 = vld [vmem:[#allocation56_spill] sm:$0xff]  ;;  %v2165_v27 = vld [vmem:[#allocation2 + $0xb8] sm:$0xff] }
 0x38c   : > { %v4332_v45 = vrot.slane %v10801_v2, 1  ;;  %2228 = vst.msk [vmem:[#allocation2 + $0xb0] sm:$0xff] %vm1330_vm10, %v2196_v14  ;;  %v4335_v37 = vrot.slane %v10897_v43, 1  ;;  %v7790_v31 = vpop.f32.mrf.mxu0  ;;  %v2163_v47 = vld [vmem:[#allocation2 + $0xa8] sm:$0xff]  ;;  %v4334_v52 = vrot.slane %v10607_v59, 1  ;;  %v4338_v50 = vrot.slane %v10690_v10, 1 }
 0x38d   : > { %v7338_v35 = vcombine.low %v11286_v6, %v11289_v8  ;;  %v11301_v11 = vmax.bf16 %v7318_v61, %v11180_v24  ;;  %v11304_v3 = vmax.bf16 %v7319_v55, %v11213_v56  ;;  %v12639_v24 = vld [vmem:[#allocation59_spill] sm:$0xff]  ;;  %v2162_v56 = vld [vmem:[#allocation2 + $0xa0] sm:$0xff]  ;;  %v2197_v60 = vadd.f32 %v7790_v31, %v2165_v27 }
 0x38e   : > { %7930 = vmatmul.mubr.msk.bf16.gmra.mxu0 %vm3283_vm15, %v4330_v40  ;;  %v4333_v2 = vsel %vm2270_vm12, %v4331_v21, %v4332_v45  ;;  %v2194_v32 = vadd.f32 %v2162_v56, %v2095_v25  ;;  %v2098_v19 = vpop.f32.mrf.mxu0  ;;  %v4336_v55 = vsel %vm2270_vm12, %v4334_v52, %v4335_v37  ;;  %v4339_v43 = vsel %vm2270_vm12, %v4337_v39, %v4338_v50  ;;  %v12643_v10 = vld [vmem:[#allocation79_spill] sm:$0xff]  ;;  %v12644_v21 = vld [vmem:[#allocation76_spill] sm:$0xff] }
 0x38f   : > { %v7337_v5 = vcombine.low %v11301_v11, %v11304_v3  ;;  %7933 = vmatprep.mubr.msk.bf16.mxu0 %vm3283_vm15, %v4333_v2  ;;  %2229 = vst.msk [vmem:[#allocation2 + $0xb8] sm:$0xff] %vm1330_vm10, %v2197_v60  ;;  %v2195_v61 = vadd.f32 %v2163_v47, %v2098_v19  ;;  %v4341_v59 = vrot.slane %v11064_v18, 1  ;;  %v5132_v45 = vrot.slane %v12643_v10, 2  ;;  %v12645_v14 = vld [vmem:[#allocation8_spill] sm:$0xff]  ;;  %v12646_v2 = vld [vmem:[#allocation82_spill] sm:$0xff]  ;;  %v12649_v31 = vld [vmem:[#allocation87_spill] sm:$0xff] }
 0x390   : > { %2226 = vst.msk [vmem:[#allocation2 + $0xa0] sm:$0xff] %vm1330_vm10, %v2194_v32  ;;  %v4340_v17 = vrot.slane %v10970_v34, 1  ;;  %v5131_v22 = vrot.slane %v12644_v21, 2  ;;  %v4803_v25 = vshrl.u32 %v11064_v18, 16  ;;  %v12647_v56 = vld [vmem:[#allocation88_spill] sm:$0xff]  ;;  %v5138_v27 = vrot.slane %v12649_v31, 2 }
 0x391   : > { %7958 = vmatmul.mubr.msk.bf16.gmra.mxu1 %vm3283_vm15, %v12639_v24  ;;  %2227 = vst.msk [vmem:[#allocation2 + $0xa8] sm:$0xff] %vm1330_vm10, %v2195_v61  ;;  %v5135_v24 = vrot.slane %v12646_v2, 2  ;;  %v5137_v32 = vrot.slane %v12647_v56, 2  ;;  %v7759_v60 = vpop.f32.mrf.mxu1  ;;  %v12650_v47 = vshll.u32 %v11064_v18, 16  ;;  %v12651_v61 = vshrl.u32 %v10970_v34, 16 }
 0x392   : > { %7961 = vmatprep.mubr.msk.bf16.mxu1 %vm3283_vm15, %v12640_v49  ;;  %v4342_v63 = vsel %vm2270_vm12, %v4340_v17, %v4341_v59  ;;  %v5133_v40 = vsel %vm1403_vm9, %v5131_v22, %v5132_v45  ;;  %v12648_v49 = vld [vmem:[#allocation80_spill] sm:$0xff]  ;;  %1594 = vst.msk [vmem:[#allocation2 + $0xd0] sm:$0xff] %vm1330_vm10, %v7759_v60  ;;  %v4805_v19 = vrot.slane %v4803_v25, 1  ;;  %v12654_v17 = vld [vmem:[#allocation58_spill] sm:$0xff]  ;;  %v12655_v22 = vld [vmem:[#allocation85_spill] sm:$0xff] }
 0x393   : > { %v5134_v37 = vrot.slane %v12648_v49, 2  ;;  %v4806_v52 = vrot.slane %v12650_v47, 2  ;;  %v5139_v50 = vsel %vm1403_vm9, %v5137_v32, %v5138_v27  ;;  %v12658_v47 = vld [vmem:[#allocation4_spill] sm:$0xff] }
 0x395   : > { %v5136_v39 = vsel %vm1403_vm9, %v5134_v37, %v5135_v24  ;;  %v4807_v45 = vor.u32 %v4806_v52, %v4805_v19  ;;  %v12657_v19 = vld [vmem:[#allocation6_spill] sm:$0xff] }
 0x396   : > { %7934 = vmatmul.mubr.msk.bf16.gmra.mxu0 %vm3283_vm15, %v4336_v55  ;;  %v4800_v55 = vrot.slane %v12651_v61, 1  ;;  %v12659_v52 = vcombine.low %v12657_v19, %v12658_v47 }
 0x397   : > { %7937 = vmatprep.mubr.msk.bf16.mxu0 %vm3283_vm15, %v4339_v43  ;;  %v12652_v43 = vshll.u32 %v10970_v34, 16 }
 0x398   : > { %v7793_v21 = vpop.f32.mrf.mxu0 }
 0x399   : > { %7962 = vmatmul.mubr.msk.bf16.gmra.mxu1 %vm3283_vm15, %v12641_v9  ;;  %v4801_v9 = vrot.slane %v12652_v43, 2  ;;  %v12661_v43 = vld [vmem:[#allocation68_spill] sm:$0xff] }
 0x39a   : > { %7965 = vmatprep.mubr.msk.bf16.mxu1 %vm3283_vm15, %v12642_v53  ;;  %v12653_v53 = vld [vmem:[#allocation89_spill] sm:$0xff] }
 0x39b   : > { %v5141_v59 = vrot.slane %v12653_v53, 2  ;;  %v4802_v2 = vor.u32 %v4801_v9, %v4800_v55  ;;  %v5150_v9 = vrot.slane %v12661_v43, 2  ;;  %v5152_v43 = vrot.slane %v12432_v13, 2 }
 0x39d   : > { %v4808_v49 = vsel %vm4664_vm14, %v4802_v2, %v4807_v45 }
 0x39e   : > { %7938 = vmatmul.mubr.msk.bf16.gmra.mxu0 %vm3283_vm15, %v4342_v63  ;;  %v5140_v63 = vrot.slane %v12655_v22, 2 }
 0x39f   : > { %7981 = vmatprep.mubr.msk.bf16.mxu0 %vm3283_vm15, %v5133_v40  ;;  %v12656_v40 = vld [vmem:[#allocation54_spill] sm:$0xff] }
 0x3a0   : > { %v5144_v34 = vrot.slane %v12656_v40, 2  ;;  %v5142_v25 = vsel %vm1403_vm9, %v5140_v63, %v5141_v59 }
 0x3a1   : > { %7966 = vmatmul.mubr.msk.bf16.gmra.mxu1 %vm3283_vm15, %v12645_v14  ;;  %v2168_v14 = vld [vmem:[#allocation2 + $0xd0] sm:$0xff] }
 0x3a2   : > { %7969 = vmatprep.mubr.msk.bf16.mxu1 %vm3283_vm15, %v10872_v7  ;;  %v1537_v7 = vpop.f32.mrf.mxu1  ;;  %v2200_v24 = vadd.f32 %v7793_v21, %v2168_v14  ;;  %v2541_v14 = vld [vmem:[#allocation2 + $0x10] sm:$0xff] }
 0x3a3   : > { %1592 = vst.msk [vmem:[#allocation2 + $0xc0] sm:$0xff] %vm1330_vm10, %v1537_v7  ;;  %v12660_v7 = vld [vmem:[#allocation73_spill] sm:$0xff] }
 0x3a4   : > { %v7760_v18 = vpop.f32.mrf.mxu1  ;;  %2232 = vst.msk [vmem:[#allocation2 + $0xd0] sm:$0xff] %vm1330_vm10, %v2200_v24 }
 0x3a5   : > { %1595 = vst.msk [vmem:[#allocation2 + $0xd8] sm:$0xff] %vm1330_vm10, %v7760_v18 }
 0x3a6   : > { %7982 = vmatmul.mubr.msk.bf16.vlgmr.msra.gmra.mxu0 %vm3283_vm15, %v5136_v39  ;;  %v1540_v10 = vpop.f32.mrf.mxu1 }
 0x3a7   : > { %7985 = vmatprep.mubr.msk.bf16.mxu0 %vm3283_vm15, %v5139_v50  ;;  %1593 = vst.msk [vmem:[#allocation2 + $0xc8] sm:$0xff] %vm1330_vm10, %v1540_v10  ;;  %v5147_v50 = vrot.slane %v12660_v7, 2  ;;  %v12662_v10 = vld [vmem:[#allocation97_spill] sm:$0xff] }
 0x3a8   : > { %v7763_v32 = vpop.f32.mrf.mxu1  ;;  %v5146_v45 = vrot.slane %v12662_v10, 2 }
 0x3a9   : > { %7970 = vmatmul.mubr.msk.bf16.gmra.mxu1 %vm3283_vm15, %v10964_v51  ;;  %v5143_v51 = vrot.slane %v12654_v17, 2  ;;  %1598 = vst.msk [vmem:[#allocation2 + $0xf0] sm:$0xff] %vm1330_vm10, %v7763_v32 }
 0x3aa   : > { %7973 = vmatprep.mubr.msk.bf16.mxu1 %vm3283_vm15, %v11017_v20  ;;  %v2111_v20 = vpop.f32.mrf.mxu0  ;;  %v2166_v56 = vld [vmem:[#allocation2 + $0xc0] sm:$0xff]  ;;  %v1553_v39 = vpop.f32.mrf.mxu1  ;;  %v5148_v63 = vsel %vm1403_vm9, %v5146_v45, %v5147_v50 }
 0x3ab   : > { %v5145_v37 = vsel %vm1403_vm9, %v5143_v51, %v5144_v34  ;;  %v2198_v31 = vadd.f32 %v2166_v56, %v2111_v20  ;;  %1596 = vst.msk [vmem:[#allocation2 + $0xe0] sm:$0xff] %vm1330_vm10, %v1553_v39  ;;  %v12663_v51 = vld [vmem:[#allocation64_spill] sm:$0xff]  ;;  %v12665_v56 = vld [vmem:[#allocation29_spill] sm:$0xff]  ;;  %v5153_v39 = vrot.slane %v10095_v1, 2 }
 0x3ac   : > { %v7794_v27 = vpop.f32.mrf.mxu0  ;;  %v2169_v60 = vld [vmem:[#allocation2 + $0xd8] sm:$0xff]  ;;  %v7764_v53 = vpop.f32.mrf.mxu1  ;;  %v5149_v21 = vrot.slane %v12663_v51, 2  ;;  %v2545_v51 = vld [vmem:[#allocation2 + $0x30] sm:$0xff] }
 0x3ad   : > { %2230 = vst.msk [vmem:[#allocation2 + $0xc0] sm:$0xff] %vm1330_vm10, %v2198_v31  ;;  %v2201_v61 = vadd.f32 %v7794_v27, %v2169_v60  ;;  %1599 = vst.msk [vmem:[#allocation2 + $0xf8] sm:$0xff] %vm1330_vm10, %v7764_v53  ;;  %v2539_v27 = vld [vmem:[#allocation2] sm:$0xff]  ;;  %v12667_v60 = vcombine.low %v10763_v16, %v10766_v29  ;;  %v5154_v45 = vsel %vm1403_vm9, %v5152_v43, %v5153_v39  ;;  %v2549_v43 = vld [vmem:[#allocation2 + $0x50] sm:$0xff] }
 0x3ae   : > { %7986 = vmatmul.mubr.msk.bf16.gmra.mxu0 %vm3283_vm15, %v5142_v25  ;;  %v2114_v55 = vpop.f32.mrf.mxu0  ;;  %v2167_v18 = vld [vmem:[#allocation2 + $0xc8] sm:$0xff]  ;;  %v1556_v17 = vpop.f32.mrf.mxu1  ;;  %v5151_v2 = vsel %vm1403_vm9, %v5149_v21, %v5150_v9  ;;  %v12664_v25 = vld [vmem:[#allocation28_spill] sm:$0xff] }
 0x3af   : > { %7989 = vmatprep.mubr.msk.bf16.mxu0 %vm3283_vm15, %v5145_v37  ;;  %2233 = vst.msk [vmem:[#allocation2 + $0xd8] sm:$0xff] %vm1330_vm10, %v2201_v61  ;;  %v2199_v59 = vadd.f32 %v2167_v18, %v2114_v55  ;;  %1597 = vst.msk [vmem:[#allocation2 + $0xe8] sm:$0xff] %vm1330_vm10, %v1556_v17  ;;  %v12666_v32 = vcombine.low %v12664_v25, %v12665_v56  ;;  %v2542_v61 = vld [vmem:[#allocation2 + $0x18] sm:$0xff]  ;;  %v2540_v18 = vld [vmem:[#allocation2 + $0x8] sm:$0xff] }
 0x3b0   : > { %v7797_v22 = vpop.f32.mrf.mxu0  ;;  %v2172_v40 = vld [vmem:[#allocation2 + $0xf0] sm:$0xff]  ;;  %v7803_v34 = vpop.f32.mrf.mxu1  ;;  %v11419_v17 = vld [vmem:[%s12003_s4] ss:$0 sm:$0xff] }
 0x3b1   : > { %7974 = vmatmul.mubr.msk.bf16.gmra.mxu1 %vm3283_vm15, %v4808_v49  ;;  %2231 = vst.msk [vmem:[#allocation2 + $0xc8] sm:$0xff] %vm1330_vm10, %v2199_v59  ;;  %v2204_v24 = vadd.f32 %v7797_v22, %v2172_v40  ;;  %v2573_v20 = vadd.f32 %v7803_v34, %v2541_v14  ;;  %v12668_v22 = vld [vmem:[#allocation50_spill] sm:$0xff] }
 0x3b2   : > { %8015 = vmatprep.mubr.msk.bf16.mxu1 %vm572_vm1, %v12659_v52  ;;  %v2127_v49 = vpop.f32.mrf.mxu0  ;;  %v2170_v37 = vld [vmem:[#allocation2 + $0xe0] sm:$0xff]  ;;  %v2412_v31 = vpop.f32.mrf.mxu1 }
 0x3b3   : > { %2236 = vst.msk [vmem:[#allocation2 + $0xf0] sm:$0xff] %vm1330_vm10, %v2204_v24  ;;  %2605 = vst.msk [vmem:[#allocation2 + $0x10] sm:$0xff] %vm1330_vm10, %v2573_v20  ;;  %v2202_v19 = vadd.f32 %v2170_v37, %v2127_v49  ;;  %v2571_v47 = vadd.f32 %v2539_v27, %v2412_v31  ;;  %v12670_v24 = vld [vmem:[#allocation16_spill] sm:$0xff]  ;;  %v2546_v49 = vld [vmem:[#allocation2 + $0x38] sm:$0xff] }
 0x3b4   : > { %v7798_v52 = vpop.f32.mrf.mxu0  ;;  %v2173_v7 = vld [vmem:[#allocation2 + $0xf8] sm:$0xff]  ;;  %v7804_v50 = vpop.f32.mrf.mxu1  ;;  %v12671_v20 = vcombine.low %v10875_v57, %v12670_v24 }
 0x3b5   : > { %2234 = vst.msk [vmem:[#allocation2 + $0xe0] sm:$0xff] %vm1330_vm10, %v2202_v19  ;;  %2603 = vst.msk [vmem:[#allocation2] sm:$0xff] %vm1330_vm10, %v2571_v47  ;;  %v2205_v55 = vadd.f32 %v7798_v52, %v2173_v7  ;;  %v2574_v16 = vadd.f32 %v7804_v50, %v2542_v61  ;;  %v2544_v19 = vld [vmem:[#allocation2 + $0x28] sm:$0xff] }
 0x3b6   : > { %7990 = vmatmul.mubr.msk.bf16.gmra.mxu0 %vm3283_vm15, %v5148_v63  ;;  %v2130_v29 = vpop.f32.mrf.mxu0  ;;  %v2171_v1 = vld [vmem:[#allocation2 + $0xe8] sm:$0xff]  ;;  %v2415_v9 = vpop.f32.mrf.mxu1  ;;  %v12669_v63 = vcombine.low %v10769_v26, %v10772_v46 }
 0x3b7   : > { %7993 = vmatprep.mubr.msk.bf16.mxu0 %vm3283_vm15, %v5151_v2  ;;  %2237 = vst.msk [vmem:[#allocation2 + $0xf8] sm:$0xff] %vm1330_vm10, %v2205_v55  ;;  %2606 = vst.msk [vmem:[#allocation2 + $0x18] sm:$0xff] %vm1330_vm10, %v2574_v16  ;;  %v2203_v53 = vadd.f32 %v2171_v1, %v2130_v29  ;;  %v2572_v59 = vadd.f32 %v2540_v18, %v2415_v9  ;;  %v2543_v2 = vld [vmem:[#allocation2 + $0x20] sm:$0xff]  ;;  %v12672_v16 = vld [vmem:[#allocation71_spill] sm:$0xff] }
 0x3b8   : > { %v7839_v10 = vpop.f32.mrf.mxu0  ;;  %v7807_v13 = vpop.f32.mrf.mxu1 }
 0x3b9   : > { %8016 = vmatmul.mubr.msk.bf16.vlgmr.msra.gmra.mxu1 %vm572_vm1, %v12666_v32  ;;  %3482 = vst.msk [vmem:[#allocation3 + $0x10] sm:$0xff] %vm1330_vm10, %v7839_v10  ;;  %2235 = vst.msk [vmem:[#allocation2 + $0xe8] sm:$0xff] %vm1330_vm10, %v2203_v53  ;;  %v2577_v21 = vadd.f32 %v7807_v13, %v2545_v51  ;;  %v12674_v10 = vld [vmem:[#allocation90_spill] sm:$0xff] }
 0x3ba   : > { %8019 = vmatprep.mubr.msk.bf16.mxu1 %vm572_vm1, %v12667_v60  ;;  %2604 = vst.msk [vmem:[#allocation2 + $0x8] sm:$0xff] %vm1330_vm10, %v2572_v59  ;;  %v3353_v40 = vpop.f32.mrf.mxu0  ;;  %v2637_v34 = vld [vmem:[#allocation2 + $0x10] sm:$0xff]  ;;  %v2428_v14 = vpop.f32.mrf.mxu1 }
 0x3bb   : > { %3480 = vst.msk [vmem:[#allocation3] sm:$0xff] %vm1330_vm10, %v3353_v40  ;;  %v2676_v25 = vadd.f32 %v11419_v17, %v2637_v34  ;;  %2609 = vst.msk [vmem:[#allocation2 + $0x30] sm:$0xff] %vm1330_vm10, %v2577_v21  ;;  %v2575_v56 = vadd.f32 %v2543_v2, %v2428_v14  ;;  %v12673_v59 = vld [vmem:[#allocation86_spill] sm:$0xff]  ;;  %v12677_v40 = vcombine.low %v10985_v41, %v11002_v12 }
 0x3bc   : > { %v7840_v26 = vpop.f32.mrf.mxu0  ;;  %v2635_v46 = vld [vmem:[#allocation2] sm:$0xff]  ;;  %v7808_v32 = vpop.f32.mrf.mxu1 }
 0x3bd   : > { %3483 = vst.msk [vmem:[#allocation3 + $0x18] sm:$0xff] %vm1330_vm10, %v7840_v26  ;;  %v2708_v37 = vmax.f32 %v2676_v25, 0.0  ;;  %v2674_v31 = vadd.f32 %v11419_v17, %v2635_v46  ;;  %2607 = vst.msk [vmem:[#allocation2 + $0x20] sm:$0xff] %vm1330_vm10, %v2575_v56  ;;  %v2578_v27 = vadd.f32 %v7808_v32, %v2546_v49  ;;  %v2550_v26 = vld [vmem:[#allocation2 + $0x58] sm:$0xff] }
 0x3be   : > { %7994 = vmatmul.mubr.msk.bf16.gmra.mxu0 %vm3283_vm15, %v5154_v45  ;;  %v3356_v57 = vpop.f32.mrf.mxu0  ;;  %v2638_v60 = vld [vmem:[#allocation2 + $0x18] sm:$0xff]  ;;  %v2431_v39 = vpop.f32.mrf.mxu1  ;;  %v12675_v45 = vld [vmem:[#allocation92_spill] sm:$0xff] }
 0x3bf   : > { %7997 = vmatprep.mubr.msk.bf16.mxu0 %vm3283_vm15, %v12668_v22  ;;  %3481 = vst.msk [vmem:[#allocation3 + $0x8] sm:$0xff] %vm1330_vm10, %v3356_v57  ;;  %v7428_v47 = vpack.c.bf16 %v2708_v37, %v2708_v37  ;;  %v2706_v52 = vmax.f32 %v2674_v31, 0.0  ;;  %v2677_v7 = vadd.f32 %v11419_v17, %v2638_v60  ;;  %2610 = vst.msk [vmem:[#allocation2 + $0x38] sm:$0xff] %vm1330_vm10, %v2578_v27  ;;  %v2548_v27 = vld [vmem:[#allocation2 + $0x48] sm:$0xff] }
 0x3c0   : > { %v2576_v50 = vadd.f32 %v2544_v19, %v2431_v39  ;;  %v7843_v61 = vpop.f32.mrf.mxu0  ;;  %v7811_v29 = vpop.f32.mrf.mxu1  ;;  %v12676_v13 = vcombine.low %v12674_v10, %v12675_v45  ;;  %v2551_v10 = vld [vmem:[#allocation2 + $0x60] sm:$0xff]  ;;  %v12681_v45 = vcombine.low %v11111_v44, %v11114_v30 }
 0x3c1   : > { %8020 = vmatmul.mubr.msk.bf16.gmra.mxu1 %vm572_vm1, %v12669_v63  ;;  %v2636_v55 = vld [vmem:[#allocation2 + $0x8] sm:$0xff]  ;;  %3486 = vst.msk [vmem:[#allocation3 + $0x30] sm:$0xff] %vm1330_vm10, %v7843_v61  ;;  %v7426_v1 = vpack.c.bf16 %v2706_v52, %v2706_v52  ;;  %v2709_v9 = vmax.f32 %v2677_v7, 0.0  ;;  %v2581_v53 = vadd.f32 %v7811_v29, %v2549_v43  ;;  %v2547_v63 = vld [vmem:[#allocation2 + $0x40] sm:$0xff]  ;;  %v2553_v61 = vld [vmem:[#allocation2 + $0x70] sm:$0xff] }
 0x3c2   : > { %8023 = vmatprep.mubr.msk.bf16.mxu1 %vm572_vm1, %v12671_v20  ;;  %2868 = vst.msk [vmem:[%s11445_s20 + $0x8] sm:$0xf] %vm946_vm8, %v7428_v47  ;;  %v2675_v18 = vadd.f32 %v11419_v17, %v2636_v55  ;;  %v3369_v51 = vpop.f32.mrf.mxu0  ;;  %v2641_v21 = vld [vmem:[#allocation2 + $0x30] sm:$0xff]  ;;  %v2444_v22 = vpop.f32.mrf.mxu1  ;;  %v12678_v7 = vld [vmem:[#allocation5_spill] sm:$0xff] }
 0x3c3   : > { %2608 = vst.msk [vmem:[#allocation2 + $0x28] sm:$0xff] %vm1330_vm10, %v2576_v50  ;;  %3484 = vst.msk [vmem:[#allocation3 + $0x20] sm:$0xff] %vm1330_vm10, %v3369_v51  ;;  %v7429_v34 = vpack.c.bf16 %v2709_v9, %v2709_v9  ;;  %v2680_v2 = vadd.f32 %v11419_v17, %v2641_v21  ;;  %v2579_v24 = vadd.f32 %v2547_v63, %v2444_v22 }
 0x3c4   : > { %2866 = vst.msk [vmem:[%s11445_s20] sm:$0xf] %vm946_vm8, %v7426_v1  ;;  %v2707_v14 = vmax.f32 %v2675_v18, 0.0  ;;  %v7844_v20 = vpop.f32.mrf.mxu0  ;;  %v2639_v25 = vld [vmem:[#allocation2 + $0x20] sm:$0xff]  ;;  %v7812_v56 = vpop.f32.mrf.mxu1  ;;  %v12679_v1 = vld [vmem:[#allocation17_spill] sm:$0xff]  ;;  %v12680_v9 = vcombine.low %v11005_v28, %v11008_v0 }
 0x3c5   : > { %2613 = vst.msk [vmem:[#allocation2 + $0x50] sm:$0xff] %vm1330_vm10, %v2581_v53  ;;  %3487 = vst.msk [vmem:[#allocation3 + $0x38] sm:$0xff] %vm1330_vm10, %v7844_v20  ;;  %v2712_v12 = vmax.f32 %v2680_v2, 0.0  ;;  %v2678_v46 = vadd.f32 %v11419_v17, %v2639_v25  ;;  %v2582_v32 = vadd.f32 %v7812_v56, %v2550_v26  ;;  %v2552_v25 = vld [vmem:[#allocation2 + $0x68] sm:$0xff] }
 0x3c6   : > { %7998 = vmatmul.mubr.msk.bf16.gmra.mxu0 %vm3283_vm15, %v12672_v16  ;;  %2869 = vst.msk [vmem:[%s11445_s20 + $0xc] sm:$0xf] %vm946_vm8, %v7429_v34  ;;  %v7427_v41 = vpack.c.bf16 %v2707_v14, %v2707_v14  ;;  %v3372_v49 = vpop.f32.mrf.mxu0  ;;  %v2642_v37 = vld [vmem:[#allocation2 + $0x38] sm:$0xff]  ;;  %v2447_v31 = vpop.f32.mrf.mxu1 }
 0x3c7   : > { %8001 = vmatprep.mubr.msk.bf16.mxu0 %vm3283_vm15, %v12673_v59  ;;  %2611 = vst.msk [vmem:[#allocation2 + $0x40] sm:$0xff] %vm1330_vm10, %v2579_v24  ;;  %3485 = vst.msk [vmem:[#allocation3 + $0x28] sm:$0xff] %vm1330_vm10, %v3372_v49  ;;  %v7432_v57 = vpack.c.bf16 %v2712_v12, %v2712_v12  ;;  %v2710_v60 = vmax.f32 %v2678_v46, 0.0  ;;  %v2681_v39 = vadd.f32 %v11419_v17, %v2642_v37  ;;  %v12682_v49 = vld [vmem:[#allocation7_spill] sm:$0xff] }
 0x3c8   : > { %2867 = vst.msk [vmem:[%s11445_s20 + $0x4] sm:$0xf] %vm946_vm8, %v7427_v41  ;;  %v2580_v19 = vadd.f32 %v2548_v27, %v2447_v31  ;;  %v7847_v47 = vpop.f32.mrf.mxu0  ;;  %v7815_v50 = vpop.f32.mrf.mxu1  ;;  %v2557_v31 = vld [vmem:[#allocation2 + $0x90] sm:$0xff] }
 0x3c9   : > { %8024 = vmatmul.mubr.msk.bf16.gmra.mxu1 %vm572_vm1, %v12676_v13  ;;  %2614 = vst.msk [vmem:[#allocation2 + $0x58] sm:$0xff] %vm1330_vm10, %v2582_v32  ;;  %3490 = vst.msk [vmem:[#allocation3 + $0x50] sm:$0xff] %vm1330_vm10, %v7847_v47  ;;  %v7430_v55 = vpack.c.bf16 %v2710_v60, %v2710_v60  ;;  %v2713_v16 = vmax.f32 %v2681_v39, 0.0  ;;  %v2585_v43 = vadd.f32 %v7815_v50, %v2553_v61  ;;  %v12684_v47 = vld [vmem:[#allocation60_spill] sm:$0xff] }
 0x3ca   : > { %8027 = vmatprep.mubr.msk.bf16.mxu1 %vm572_vm1, %v12677_v40  ;;  %v2640_v52 = vld [vmem:[#allocation2 + $0x28] sm:$0xff]  ;;  %2872 = vst.msk [vmem:[%s11445_s20 + $0x18] sm:$0xf] %vm946_vm8, %v7432_v57  ;;  %v3385_v18 = vpop.f32.mrf.mxu0  ;;  %v2460_v59 = vpop.f32.mrf.mxu1  ;;  %v2554_v40 = vld [vmem:[#allocation2 + $0x78] sm:$0xff] }
 0x3cb   : > { %v2679_v29 = vadd.f32 %v11419_v17, %v2640_v52  ;;  %2612 = vst.msk [vmem:[#allocation2 + $0x48] sm:$0xff] %vm1330_vm10, %v2580_v19  ;;  %3488 = vst.msk [vmem:[#allocation3 + $0x40] sm:$0xff] %vm1330_vm10, %v3385_v18  ;;  %v7433_v13 = vpack.c.bf16 %v2713_v16, %v2713_v16  ;;  %v2583_v0 = vadd.f32 %v2551_v10, %v2460_v59  ;;  %v12683_v19 = vld [vmem:[#allocation21_spill] sm:$0xff]  ;;  %v2555_v16 = vld [vmem:[#allocation2 + $0x80] sm:$0xff] }
 0x3cc   : > { %v2645_v53 = vld [vmem:[#allocation2 + $0x50] sm:$0xff]  ;;  %2870 = vst.msk [vmem:[%s11445_s20 + $0x10] sm:$0xf] %vm946_vm8, %v7430_v55  ;;  %v7848_v21 = vpop.f32.mrf.mxu0  ;;  %v7816_v63 = vpop.f32.mrf.mxu1  ;;  %v12685_v52 = vld [vmem:[#allocation69_spill] sm:$0xff]  ;;  %v2558_v10 = vld [vmem:[#allocation2 + $0x98] sm:$0xff] }
 0x3cd   : > { %v2711_v51 = vmax.f32 %v2679_v29, 0.0  ;;  %v2684_v28 = vadd.f32 %v11419_v17, %v2645_v53  ;;  %2617 = vst.msk [vmem:[#allocation2 + $0x70] sm:$0xff] %vm1330_vm10, %v2585_v43  ;;  %3491 = vst.msk [vmem:[#allocation3 + $0x58] sm:$0xff] %vm1330_vm10, %v7848_v21  ;;  %v2586_v14 = vadd.f32 %v7816_v63, %v2554_v40 }
 0x3ce   : > { %8002 = vmatmul.mubr.msk.bf16.gmra.mxu0 %vm3283_vm15, %v12678_v7  ;;  %v2643_v22 = vld [vmem:[#allocation2 + $0x40] sm:$0xff]  ;;  %2873 = vst.msk [vmem:[%s11445_s20 + $0x1c] sm:$0xf] %vm946_vm8, %v7433_v13  ;;  %v3388_v2 = vpop.f32.mrf.mxu0  ;;  %v2463_v20 = vpop.f32.mrf.mxu1  ;;  %v12686_v7 = vcombine.low %v12684_v47, %v12685_v52 }
 0x3cf   : > { %8005 = vmatprep.mubr.msk.bf16.mxu0 %vm3283_vm15, %v12679_v1  ;;  %v7431_v44 = vpack.c.bf16 %v2711_v51, %v2711_v51  ;;  %v2716_v30 = vmax.f32 %v2684_v28, 0.0  ;;  %v2682_v34 = vadd.f32 %v11419_v17, %v2643_v22  ;;  %2615 = vst.msk [vmem:[#allocation2 + $0x60] sm:$0xff] %vm1330_vm10, %v2583_v0  ;;  %3489 = vst.msk [vmem:[#allocation3 + $0x48] sm:$0xff] %vm1330_vm10, %v3388_v2  ;;  %v2556_v0 = vld [vmem:[#allocation2 + $0x88] sm:$0xff]  ;;  %v2561_v2 = vld [vmem:[#allocation2 + $0xb0] sm:$0xff] }
 0x3d0   : > { %v2646_v24 = vld [vmem:[#allocation2 + $0x58] sm:$0xff]  ;;  %2618 = vst.msk [vmem:[#allocation2 + $0x78] sm:$0xff] %vm1330_vm10, %v2586_v14  ;;  %v2584_v12 = vadd.f32 %v2552_v25, %v2463_v20  ;;  %v7851_v46 = vpop.f32.mrf.mxu0  ;;  %v7819_v37 = vpop.f32.mrf.mxu1 }
 0x3d1   : > { %8028 = vmatmul.mubr.msk.bf16.gmra.mxu1 %vm572_vm1, %v12680_v9  ;;  %2871 = vst.msk [vmem:[%s11445_s20 + $0x14] sm:$0xf] %vm946_vm8, %v7431_v44  ;;  %v7436_v56 = vpack.c.bf16 %v2716_v30, %v2716_v30  ;;  %v2714_v26 = vmax.f32 %v2682_v34, 0.0  ;;  %v2685_v41 = vadd.f32 %v11419_v17, %v2646_v24  ;;  %v2589_v39 = vadd.f32 %v7819_v37, %v2557_v31  ;;  %v12687_v34 = vld [vmem:[#allocation51_spill] sm:$0xff] }
 0x3d2   : > { %8031 = vmatprep.mubr.msk.bf16.mxu1 %vm572_vm1, %v12681_v45  ;;  %v2644_v32 = vld [vmem:[#allocation2 + $0x48] sm:$0xff]  ;;  %3494 = vst.msk [vmem:[#allocation3 + $0x70] sm:$0xff] %vm1330_vm10, %v7851_v46  ;;  %2616 = vst.msk [vmem:[#allocation2 + $0x68] sm:$0xff] %vm1330_vm10, %v2584_v12  ;;  %v3401_v50 = vpop.f32.mrf.mxu0  ;;  %v2476_v55 = vpop.f32.mrf.mxu1 }
 0x3d3   : > { %2876 = vst.msk [vmem:[%s11445_s20 + $0x28] sm:$0xf] %vm946_vm8, %v7436_v56  ;;  %v7434_v27 = vpack.c.bf16 %v2714_v26, %v2714_v26  ;;  %v2717_v57 = vmax.f32 %v2685_v41, 0.0  ;;  %v2683_v60 = vadd.f32 %v11419_v17, %v2644_v32  ;;  %v2587_v9 = vadd.f32 %v2555_v16, %v2476_v55  ;;  %v2559_v32 = vld [vmem:[#allocation2 + $0xa0] sm:$0xff] }
 0x3d4   : > { %v2649_v61 = vld [vmem:[#allocation2 + $0x70] sm:$0xff]  ;;  %3492 = vst.msk [vmem:[#allocation3 + $0x60] sm:$0xff] %vm1330_vm10, %v3401_v50  ;;  %2621 = vst.msk [vmem:[#allocation2 + $0x90] sm:$0xff] %vm1330_vm10, %v2589_v39  ;;  %v7852_v18 = vpop.f32.mrf.mxu0  ;;  %v7820_v59 = vpop.f32.mrf.mxu1  ;;  %v12688_v26 = vcombine.low %v11193_v42, %v11196_v4 }
 0x3d5   : > { %2874 = vst.msk [vmem:[%s11445_s20 + $0x20] sm:$0xf] %vm946_vm8, %v7434_v27  ;;  %v7437_v29 = vpack.c.bf16 %v2717_v57, %v2717_v57  ;;  %v2715_v43 = vmax.f32 %v2683_v60, 0.0  ;;  %v2688_v1 = vadd.f32 %v11419_v17, %v2649_v61  ;;  %v2590_v45 = vadd.f32 %v7820_v59, %v2558_v10  ;;  %v2562_v60 = vld [vmem:[#allocation2 + $0xb8] sm:$0xff] }
 0x3d6   : > { %8006 = vmatmul.mubr.msk.bf16.gmra.mxu0 %vm3283_vm15, %v12682_v49  ;;  %v2647_v53 = vld [vmem:[#allocation2 + $0x60] sm:$0xff]  ;;  %3495 = vst.msk [vmem:[#allocation3 + $0x78] sm:$0xff] %vm1330_vm10, %v7852_v18  ;;  %2619 = vst.msk [vmem:[#allocation2 + $0x80] sm:$0xff] %vm1330_vm10, %v2587_v9  ;;  %v3404_v13 = vpop.f32.mrf.mxu0  ;;  %v2479_v28 = vpop.f32.mrf.mxu1  ;;  %v2565_v9 = vld [vmem:[#allocation2 + $0xd0] sm:$0xff] }
 0x3d7   : > { %8009 = vmatprep.mubr.msk.bf16.mxu0 %vm3283_vm15, %v12683_v19  ;;  %2877 = vst.msk [vmem:[%s11445_s20 + $0x2c] sm:$0xf] %vm946_vm8, %v7437_v29  ;;  %v7435_v62 = vpack.c.bf16 %v2715_v43, %v2715_v43  ;;  %v2686_v38 = vadd.f32 %v11419_v17, %v2647_v53  ;;  %v2650_v51 = vld [vmem:[#allocation2 + $0x78] sm:$0xff]  ;;  %v2588_v40 = vadd.f32 %v2556_v0, %v2479_v28 }
 0x3d8   : > { %3493 = vst.msk [vmem:[#allocation3 + $0x68] sm:$0xff] %vm1330_vm10, %v3404_v13  ;;  %v2689_v63 = vadd.f32 %v11419_v17, %v2650_v51  ;;  %2622 = vst.msk [vmem:[#allocation2 + $0x98] sm:$0xff] %vm1330_vm10, %v2590_v45  ;;  %v7855_v44 = vpop.f32.mrf.mxu0  ;;  %v7823_v14 = vpop.f32.mrf.mxu1  ;;  %v2563_v45 = vld [vmem:[#allocation2 + $0xc0] sm:$0xff] }
 0x3d9   : > { %8032 = vmatmul.mubr.msk.bf16.gmra.mxu1 %vm572_vm1, %v12686_v7  ;;  %2875 = vst.msk [vmem:[%s11445_s20 + $0x24] sm:$0xf] %vm946_vm8, %v7435_v62  ;;  %v2718_v22 = vmax.f32 %v2686_v38, 0.0  ;;  %v2648_v30 = vld [vmem:[#allocation2 + $0x68] sm:$0xff]  ;;  %v2593_v56 = vadd.f32 %v7823_v14, %v2561_v2 }
 0x3da   : > { %8035 = vmatprep.mubr.msk.bf16.mxu1 %vm572_vm1, %v7333_v33  ;;  %v2720_v33 = vmax.f32 %v2688_v1, 0.0  ;;  %3498 = vst.msk [vmem:[#allocation3 + $0x90] sm:$0xff] %vm1330_vm10, %v7855_v44  ;;  %v2721_v20 = vmax.f32 %v2689_v63, 0.0  ;;  %v2687_v25 = vadd.f32 %v11419_v17, %v2648_v30  ;;  %2620 = vst.msk [vmem:[#allocation2 + $0x88] sm:$0xff] %vm1330_vm10, %v2588_v40  ;;  %v3417_v41 = vpop.f32.mrf.mxu0  ;;  %v2492_v46 = vpop.f32.mrf.mxu1  ;;  %v2560_v7 = vld [vmem:[#allocation2 + $0xa8] sm:$0xff] }
 0x3db   : > { %v7438_v24 = vpack.c.bf16 %v2718_v22, %v2718_v22  ;;  %v2653_v12 = vld [vmem:[#allocation2 + $0x90] sm:$0xff]  ;;  %3496 = vst.msk [vmem:[#allocation3 + $0x80] sm:$0xff] %vm1330_vm10, %v3417_v41  ;;  %2625 = vst.msk [vmem:[#allocation2 + $0xb0] sm:$0xff] %vm1330_vm10, %v2593_v56  ;;  %v2591_v4 = vadd.f32 %v2559_v32, %v2492_v46  ;;  %v2564_v30 = vld [vmem:[#allocation2 + $0xc8] sm:$0xff] }
 0x3dc   : > { %v7440_v21 = vpack.c.bf16 %v2720_v33, %v2720_v33  ;;  %v7441_v49 = vpack.c.bf16 %v2721_v20, %v2721_v20  ;;  %v2719_v37 = vmax.f32 %v2687_v25, 0.0  ;;  %v2692_v42 = vadd.f32 %v11419_v17, %v2653_v12  ;;  %v7856_v31 = vpop.f32.mrf.mxu0  ;;  %v7824_v57 = vpop.f32.mrf.mxu1  ;;  %v2569_v56 = vld [vmem:[#allocation2 + $0xf0] sm:$0xff] }
 0x3dd   : > { %2878 = vst.msk [vmem:[%s11445_s20 + $0x30] sm:$0xf] %vm946_vm8, %v7438_v24  ;;  %v2651_v27 = vld [vmem:[#allocation2 + $0x80] sm:$0xff]  ;;  %v2594_v39 = vadd.f32 %v7824_v57, %v2562_v60 }
 0x3de   : > { %8010 = vmatmul.mubr.msk.bf16.gmra.mxu0 %vm3283_vm15, %v12687_v34  ;;  %2880 = vst.msk [vmem:[%s11445_s20 + $0x38] sm:$0xf] %vm946_vm8, %v7440_v21  ;;  %2881 = vst.msk [vmem:[%s11445_s20 + $0x3c] sm:$0xf] %vm946_vm8, %v7441_v49  ;;  %v7439_v48 = vpack.c.bf16 %v2719_v37, %v2719_v37  ;;  %v2724_v15 = vmax.f32 %v2692_v42, 0.0  ;;  %v3420_v19 = vpop.f32.mrf.mxu0  ;;  %v2495_v52 = vpop.f32.mrf.mxu1  ;;  %v2566_v21 = vld [vmem:[#allocation2 + $0xd8] sm:$0xff] }
 0x3df   : > { %3499 = vst.msk [vmem:[#allocation3 + $0x98] sm:$0xff] %vm1330_vm10, %v7856_v31  ;;  %2623 = vst.msk [vmem:[#allocation2 + $0xa0] sm:$0xff] %vm1330_vm10, %v2591_v4  ;;  %v2654_v47 = vld [vmem:[#allocation2 + $0x98] sm:$0xff]  ;;  %v2592_v16 = vadd.f32 %v2560_v7, %v2495_v52  ;;  %v2567_v37 = vld [vmem:[#allocation2 + $0xe0] sm:$0xff] }
 0x3e0   : > { %3497 = vst.msk [vmem:[#allocation3 + $0x88] sm:$0xff] %vm1330_vm10, %v3420_v19  ;;  %v7444_v50 = vpack.c.bf16 %v2724_v15, %v2724_v15  ;;  %v2693_v55 = vadd.f32 %v11419_v17, %v2654_v47  ;;  %2626 = vst.msk [vmem:[#allocation2 + $0xb8] sm:$0xff] %vm1330_vm10, %v2594_v39  ;;  %v7859_v29 = vpop.f32.mrf.mxu0  ;;  %v7827_v1 = vpop.f32.mrf.mxu1  ;;  %v2568_v19 = vld [vmem:[#allocation2 + $0xe8] sm:$0xff] }
 0x3e1   : > { %8036 = vmatmul.mubr.msk.bf16.gmra.mxu1 %vm572_vm1, %v12688_v26  ;;  %2879 = vst.msk [vmem:[%s11445_s20 + $0x34] sm:$0xf] %vm946_vm8, %v7439_v48  ;;  %v2652_v43 = vld [vmem:[#allocation2 + $0x88] sm:$0xff]  ;;  %v2597_v10 = vadd.f32 %v7827_v1, %v2565_v9  ;;  %v2570_v48 = vld [vmem:[#allocation2 + $0xf8] sm:$0xff] }
 0x3e2   : > { %8039 = vmatprep.mubr.msk.bf16.mxu1 %vm572_vm1, %v7335_v36  ;;  %v2690_v36 = vadd.f32 %v11419_v17, %v2651_v27  ;;  %3502 = vst.msk [vmem:[#allocation3 + $0xb0] sm:$0xff] %vm1330_vm10, %v7859_v29  ;;  %v2725_v53 = vmax.f32 %v2693_v55, 0.0  ;;  %v2691_v59 = vadd.f32 %v11419_v17, %v2652_v43  ;;  %2624 = vst.msk [vmem:[#allocation2 + $0xa8] sm:$0xff] %vm1330_vm10, %v2592_v16  ;;  %v3433_v62 = vpop.f32.mrf.mxu0  ;;  %v2657_v33 = vld [vmem:[#allocation2 + $0xb0] sm:$0xff]  ;;  %v2508_v38 = vpop.f32.mrf.mxu1 }
 0x3e3   : > { %2884 = vst.msk [vmem:[%s11445_s20 + $0x48] sm:$0xf] %vm946_vm8, %v7444_v50  ;;  %v2696_v58 = vadd.f32 %v11419_v17, %v2657_v33  ;;  %v2595_v23 = vadd.f32 %v2563_v45, %v2508_v38  ;;  %v4169_v16 = vld [vmem:[#allocation3 + $0x10] sm:$0xff] }
 0x3e4   : > { %v2722_v61 = vmax.f32 %v2690_v36, 0.0  ;;  %3500 = vst.msk [vmem:[#allocation3 + $0xa0] sm:$0xff] %vm1330_vm10, %v3433_v62  ;;  %v7445_v13 = vpack.c.bf16 %v2725_v53, %v2725_v53  ;;  %v2723_v51 = vmax.f32 %v2691_v59, 0.0  ;;  %2629 = vst.msk [vmem:[#allocation2 + $0xd0] sm:$0xff] %vm1330_vm10, %v2597_v10  ;;  %v7828_v0 = vpop.f32.mrf.mxu1  ;;  %v4167_v59 = vld [vmem:[#allocation3] sm:$0xff] }
 0x3e5   : > { %v2728_v3 = vmax.f32 %v2696_v58, 0.0  ;;  %2627 = vst.msk [vmem:[#allocation2 + $0xc0] sm:$0xff] %vm1330_vm10, %v2595_v23  ;;  %v2598_v22 = vadd.f32 %v7828_v0, %v2566_v21 }
 0x3e6   : > { %v7442_v18 = vpack.c.bf16 %v2722_v61, %v2722_v61  ;;  %v2655_v28 = vld [vmem:[#allocation2 + $0xa0] sm:$0xff]  ;;  %2885 = vst.msk [vmem:[%s11445_s20 + $0x4c] sm:$0xf] %vm946_vm8, %v7445_v13  ;;  %v7443_v11 = vpack.c.bf16 %v2723_v51, %v2723_v51  ;;  %v2511_v44 = vpop.f32.mrf.mxu1  ;;  %v4170_v51 = vld [vmem:[#allocation3 + $0x18] sm:$0xff] }
 0x3e7   : > { %v2658_v40 = vld [vmem:[#allocation2 + $0xb8] sm:$0xff]  ;;  %v7448_v34 = vpack.c.bf16 %v2728_v3, %v2728_v3  ;;  %2630 = vst.msk [vmem:[#allocation2 + $0xd8] sm:$0xff] %vm1330_vm10, %v2598_v22  ;;  %v2596_v24 = vadd.f32 %v2564_v30, %v2511_v44 }
 0x3e8   : > { %2882 = vst.msk [vmem:[%s11445_s20 + $0x40] sm:$0xf] %vm946_vm8, %v7442_v18  ;;  %2883 = vst.msk [vmem:[%s11445_s20 + $0x44] sm:$0xf] %vm946_vm8, %v7443_v11  ;;  %v2697_v2 = vadd.f32 %v11419_v17, %v2658_v40  ;;  %v7831_v25 = vpop.f32.mrf.mxu1  ;;  %v4168_v11 = vld [vmem:[#allocation3 + $0x8] sm:$0xff] }
 0x3e9   : > { %8040 = vmatmul.mubr.msk.bf16.gmra.mxu1 %vm572_vm1, %v7336_v54  ;;  %v7860_v54 = vpop.f32.mrf.mxu0  ;;  %v2656_v20 = vld [vmem:[#allocation2 + $0xa8] sm:$0xff]  ;;  %2888 = vst.msk [vmem:[%s11445_s20 + $0x58] sm:$0xf] %vm946_vm8, %v7448_v34  ;;  %v2601_v46 = vadd.f32 %v7831_v25, %v2569_v56  ;;  %v4173_v34 = vld [vmem:[#allocation3 + $0x30] sm:$0xff] }
 0x3ea   : > { %8043 = vmatprep.mubr.msk.bf16.mxu1 %vm572_vm1, %v7337_v5  ;;  %3503 = vst.msk [vmem:[#allocation3 + $0xb8] sm:$0xff] %vm1330_vm10, %v7860_v54  ;;  %v2694_v5 = vadd.f32 %v11419_v17, %v2655_v28  ;;  %v2729_v41 = vmax.f32 %v2697_v2, 0.0  ;;  %v2695_v12 = vadd.f32 %v11419_v17, %v2656_v20  ;;  %2628 = vst.msk [vmem:[#allocation2 + $0xc8] sm:$0xff] %vm1330_vm10, %v2596_v24  ;;  %v2524_v49 = vpop.f32.mrf.mxu1 }
 0x3eb   : > { %v3436_v63 = vpop.f32.mrf.mxu0  ;;  %v2661_v32 = vld [vmem:[#allocation2 + $0xd0] sm:$0xff]  ;;  %2633 = vst.msk [vmem:[#allocation2 + $0xf0] sm:$0xff] %vm1330_vm10, %v2601_v46  ;;  %v2599_v27 = vadd.f32 %v2567_v37, %v2524_v49  ;;  %v4174_v49 = vld [vmem:[#allocation3 + $0x38] sm:$0xff] }
 0x3ec   : > { %3501 = vst.msk [vmem:[#allocation3 + $0xa8] sm:$0xff] %vm1330_vm10, %v3436_v63  ;;  %v2726_v14 = vmax.f32 %v2694_v5, 0.0  ;;  %v7449_v42 = vpack.c.bf16 %v2729_v41, %v2729_v41  ;;  %v2727_v4 = vmax.f32 %v2695_v12, 0.0  ;;  %v2700_v31 = vadd.f32 %v11419_v17, %v2661_v32  ;;  %v2659_v57 = vld [vmem:[#allocation2 + $0xc0] sm:$0xff]  ;;  %v7832_v60 = vpop.f32.mrf.mxu1 }
 0x3ed   : > { %2631 = vst.msk [vmem:[#allocation2 + $0xe0] sm:$0xff] %vm1330_vm10, %v2599_v27  ;;  %v2602_v15 = vadd.f32 %v7832_v60, %v2570_v48  ;;  %v4172_v27 = vld [vmem:[#allocation3 + $0x28] sm:$0xff]  ;;  %v4177_v48 = vld [vmem:[#allocation3 + $0x50] sm:$0xff] }
 0x3ee   : > { %v7446_v26 = vpack.c.bf16 %v2726_v14, %v2726_v14  ;;  %2889 = vst.msk [vmem:[%s11445_s20 + $0x5c] sm:$0xf] %vm946_vm8, %v7449_v42  ;;  %v7447_v6 = vpack.c.bf16 %v2727_v4, %v2727_v4  ;;  %v2732_v8 = vmax.f32 %v2700_v31, 0.0  ;;  %v2662_v36 = vld [vmem:[#allocation2 + $0xd8] sm:$0xff]  ;;  %v2527_v39 = vpop.f32.mrf.mxu1 }
 0x3ef   : > { %v2701_v7 = vadd.f32 %v11419_v17, %v2662_v36  ;;  %2634 = vst.msk [vmem:[#allocation2 + $0xf8] sm:$0xff] %vm1330_vm10, %v2602_v15  ;;  %v2600_v50 = vadd.f32 %v2568_v19, %v2527_v39  ;;  %v4178_v39 = vld [vmem:[#allocation3 + $0x58] sm:$0xff] }
 0x3f0   : > { %2886 = vst.msk [vmem:[%s11445_s20 + $0x50] sm:$0xf] %vm946_vm8, %v7446_v26  ;;  %2887 = vst.msk [vmem:[%s11445_s20 + $0x54] sm:$0xf] %vm946_vm8, %v7447_v6  ;;  %v7452_v47 = vpack.c.bf16 %v2732_v8, %v2732_v8  ;;  %v7875_v55 = vpop.f32.mrf.mxu1  ;;  %v4171_v26 = vld [vmem:[#allocation3 + $0x20] sm:$0xff] }
 0x3f1   : > { %8044 = vmatmul.mubr.msk.bf16.gmra.mxu1 %vm572_vm1, %v7338_v35  ;;  %v2698_v35 = vadd.f32 %v11419_v17, %v2659_v57  ;;  %v2660_v61 = vld [vmem:[#allocation2 + $0xc8] sm:$0xff]  ;;  %v2733_v43 = vmax.f32 %v2701_v7, 0.0  ;;  %2632 = vst.msk [vmem:[#allocation2 + $0xe8] sm:$0xff] %vm1330_vm10, %v2600_v50  ;;  %v4201_v9 = vadd.f32 %v7875_v55, %v4169_v16  ;;  %v7863_v40 = vpop.f32.mrf.mxu0 }
 0x3f2   : > { %2892 = vst.msk [vmem:[%s11445_s20 + $0x68] sm:$0xf] %vm946_vm8, %v7452_v47  ;;  %v2699_v1 = vadd.f32 %v11419_v17, %v2660_v61  ;;  %v2665_v18 = vld [vmem:[#allocation2 + $0xf0] sm:$0xff]  ;;  %v4040_v53 = vpop.f32.mrf.mxu1 }
 0x3f3   : > { %v2730_v52 = vmax.f32 %v2698_v35, 0.0  ;;  %v7453_v10 = vpack.c.bf16 %v2733_v43, %v2733_v43  ;;  %v2704_v33 = vadd.f32 %v11419_v17, %v2665_v18  ;;  %4233 = vst.msk [vmem:[#allocation3 + $0x10] sm:$0xff] %vm1330_vm10, %v4201_v9  ;;  %v4199_v38 = vadd.f32 %v4167_v59, %v4040_v53  ;;  %3506 = vst.msk [vmem:[#allocation3 + $0xd0] sm:$0xff] %vm1330_vm10, %v7863_v40  ;;  %v3449_v25 = vpop.f32.mrf.mxu0  ;;  %v4175_v35 = vld [vmem:[#allocation3 + $0x40] sm:$0xff]  ;;  %v4181_v61 = vld [vmem:[#allocation3 + $0x70] sm:$0xff] }
 0x3f4   : > { %v2731_v62 = vmax.f32 %v2699_v1, 0.0  ;;  %v2663_v45 = vld [vmem:[#allocation2 + $0xe0] sm:$0xff]  ;;  %v7876_v13 = vpop.f32.mrf.mxu1  ;;  %3504 = vst.msk [vmem:[#allocation3 + $0xc0] sm:$0xff] %vm1330_vm10, %v3449_v25  ;;  %v4182_v9 = vld [vmem:[#allocation3 + $0x78] sm:$0xff]  ;;  %v4180_v59 = vld [vmem:[#allocation3 + $0x68] sm:$0xff] }
 0x3f5   : > { %v7450_v29 = vpack.c.bf16 %v2730_v52, %v2730_v52  ;;  %2893 = vst.msk [vmem:[%s11445_s20 + $0x6c] sm:$0xf] %vm946_vm8, %v7453_v10  ;;  %v2736_v23 = vmax.f32 %v2704_v33, 0.0  ;;  %v2702_v54 = vadd.f32 %v11419_v17, %v2663_v45  ;;  %v4202_v28 = vadd.f32 %v7876_v13, %v4170_v51  ;;  %v7864_v32 = vpop.f32.mrf.mxu0  ;;  %v4176_v52 = vld [vmem:[#allocation3 + $0x48] sm:$0xff]  ;;  %v4185_v33 = vld [vmem:[#allocation3 + $0x90] sm:$0xff]  ;;  %v4183_v13 = vld [vmem:[#allocation3 + $0x80] sm:$0xff] }
 0x3f6   : > { %v7451_v58 = vpack.c.bf16 %v2731_v62, %v2731_v62  ;;  %4231 = vst.msk [vmem:[#allocation3] sm:$0xff] %vm1330_vm10, %v4199_v38  ;;  %v2666_v0 = vld [vmem:[#allocation2 + $0xf8] sm:$0xff]  ;;  %v4043_v21 = vpop.f32.mrf.mxu1  ;;  %3507 = vst.msk [vmem:[#allocation3 + $0xd8] sm:$0xff] %vm1330_vm10, %v7864_v32 }
 0x3f7   : > { %2890 = vst.msk [vmem:[%s11445_s20 + $0x60] sm:$0xf] %vm946_vm8, %v7450_v29  ;;  %v7456_v3 = vpack.c.bf16 %v2736_v23, %v2736_v23  ;;  %v2734_v5 = vmax.f32 %v2702_v54, 0.0  ;;  %v2705_v22 = vadd.f32 %v11419_v17, %v2666_v0  ;;  %v4200_v63 = vadd.f32 %v4168_v11, %v4043_v21  ;;  %v3452_v4 = vpop.f32.mrf.mxu0  ;;  %v4179_v29 = vld [vmem:[#allocation3 + $0x60] sm:$0xff]  ;;  %v4186_v23 = vld [vmem:[#allocation3 + $0x98] sm:$0xff]  ;;  %v4184_v0 = vld [vmem:[#allocation3 + $0x88] sm:$0xff] }
 0x3f8   : > { %2891 = vst.msk [vmem:[%s11445_s20 + $0x64] sm:$0xf] %vm946_vm8, %v7451_v58  ;;  %v2664_v44 = vld [vmem:[#allocation2 + $0xe8] sm:$0xff]  ;;  %v7879_v30 = vpop.f32.mrf.mxu1 }
 0x3f9   : > { %4234 = vst.msk [vmem:[#allocation3 + $0x18] sm:$0xff] %vm1330_vm10, %v4202_v28  ;;  %v7454_v14 = vpack.c.bf16 %v2734_v5, %v2734_v5  ;;  %v2737_v2 = vmax.f32 %v2705_v22, 0.0  ;;  %v2703_v24 = vadd.f32 %v11419_v17, %v2664_v44  ;;  %4232 = vst.msk [vmem:[#allocation3 + $0x8] sm:$0xff] %vm1330_vm10, %v4200_v63  ;;  %v4205_v20 = vadd.f32 %v7879_v30, %v4173_v34  ;;  %v4189_v5 = vld [vmem:[#allocation3 + $0xb0] sm:$0xff]  ;;  %v4187_v44 = vld [vmem:[#allocation3 + $0xa0] sm:$0xff] }
 0x3fa   : > { %2896 = vst.msk [vmem:[%s11445_s20 + $0x78] sm:$0xf] %vm946_vm8, %v7456_v3  ;;  %v4056_v56 = vpop.f32.mrf.mxu1  ;;  %v4193_v32 = vld [vmem:[#allocation3 + $0xd0] sm:$0xff] }
 0x3fb   : > { %2894 = vst.msk [vmem:[%s11445_s20 + $0x70] sm:$0xf] %vm946_vm8, %v7454_v14  ;;  %v7457_v41 = vpack.c.bf16 %v2737_v2, %v2737_v2  ;;  %v2735_v12 = vmax.f32 %v2703_v24, 0.0  ;;  %v4203_v46 = vadd.f32 %v4171_v26, %v4056_v56  ;;  %v4190_v2 = vld [vmem:[#allocation3 + $0xb8] sm:$0xff]  ;;  %v4188_v56 = vld [vmem:[#allocation3 + $0xa8] sm:$0xff] }
 0x3fc   : > { %4237 = vst.msk [vmem:[#allocation3 + $0x30] sm:$0xff] %vm1330_vm10, %v4205_v20  ;;  %v7880_v17 = vpop.f32.mrf.mxu1  ;;  %3505 = vst.msk [vmem:[#allocation3 + $0xc8] sm:$0xff] %vm1330_vm10, %v3452_v4 }
 0x3fd   : > { %2897 = vst.msk [vmem:[%s11445_s20 + $0x7c] sm:$0xf] %vm946_vm8, %v7457_v41  ;;  %v7455_v37 = vpack.c.bf16 %v2735_v12, %v2735_v12  ;;  %v4206_v42 = vadd.f32 %v7880_v17, %v4174_v49  ;;  %v4570_v12 = vld [vmem:[#allocation3 + $0x10] sm:$0xff] }
 0x3fe   : > { %4235 = vst.msk [vmem:[#allocation3 + $0x20] sm:$0xff] %vm1330_vm10, %v4203_v46  ;;  %v4059_v31 = vpop.f32.mrf.mxu1 }
 0x3ff   : > { %2895 = vst.msk [vmem:[%s11445_s20 + $0x74] sm:$0xf] %vm946_vm8, %v7455_v37  ;;  %v4204_v57 = vadd.f32 %v4172_v27, %v4059_v31  ;;  %v4191_v31 = vld [vmem:[#allocation3 + $0xc0] sm:$0xff] }
 0x400   : > { %4238 = vst.msk [vmem:[#allocation3 + $0x38] sm:$0xff] %vm1330_vm10, %v4206_v42  ;;  %v7883_v60 = vpop.f32.mrf.mxu1  ;;  %v4568_v42 = vld [vmem:[#allocation3] sm:$0xff] }
 0x401   : > { %4236 = vst.msk [vmem:[#allocation3 + $0x28] sm:$0xff] %vm1330_vm10, %v4204_v57  ;;  %v4209_v6 = vadd.f32 %v7883_v60, %v4177_v48  ;;  %v4571_v48 = vld [vmem:[#allocation3 + $0x18] sm:$0xff] }
 0x402   : > { %v4072_v8 = vpop.f32.mrf.mxu1 }
 0x403   : > { %4241 = vst.msk [vmem:[#allocation3 + $0x50] sm:$0xff] %vm1330_vm10, %v4209_v6  ;;  %v4207_v15 = vadd.f32 %v4175_v35, %v4072_v8  ;;  %v4194_v8 = vld [vmem:[#allocation3 + $0xd8] sm:$0xff] }
 0x404   : > { %v7884_v36 = vpop.f32.mrf.mxu1 }
 0x405   : > { %4239 = vst.msk [vmem:[#allocation3 + $0x40] sm:$0xff] %vm1330_vm10, %v4207_v15  ;;  %v4210_v19 = vadd.f32 %v7884_v36, %v4178_v39  ;;  %v4569_v39 = vld [vmem:[#allocation3 + $0x8] sm:$0xff] }
 0x406   : > { %v4075_v47 = vpop.f32.mrf.mxu1 }
 0x407   : > { %4242 = vst.msk [vmem:[#allocation3 + $0x58] sm:$0xff] %vm1330_vm10, %v4210_v19  ;;  %v4208_v7 = vadd.f32 %v4176_v52, %v4075_v47  ;;  %v4192_v47 = vld [vmem:[#allocation3 + $0xc8] sm:$0xff] }
 0x408   : > { %v7887_v50 = vpop.f32.mrf.mxu1 }
 0x409   : > { %4240 = vst.msk [vmem:[#allocation3 + $0x48] sm:$0xff] %vm1330_vm10, %v4208_v7  ;;  %v4213_v55 = vadd.f32 %v7887_v50, %v4181_v61  ;;  %v4574_v61 = vld [vmem:[#allocation3 + $0x30] sm:$0xff] }
 0x40a   : > { %v4088_v16 = vpop.f32.mrf.mxu1 }
 0x40b   : > { %4245 = vst.msk [vmem:[#allocation3 + $0x70] sm:$0xff] %vm1330_vm10, %v4213_v55  ;;  %v4211_v43 = vadd.f32 %v4179_v29, %v4088_v16 }
 0x40c   : > { %v7888_v1 = vpop.f32.mrf.mxu1 }
 0x40d   : > { %4243 = vst.msk [vmem:[#allocation3 + $0x60] sm:$0xff] %vm1330_vm10, %v4211_v43  ;;  %v4214_v18 = vadd.f32 %v7888_v1, %v4182_v9  ;;  %v4572_v9 = vld [vmem:[#allocation3 + $0x20] sm:$0xff] }
 0x40e   : > { %v4091_v53 = vpop.f32.mrf.mxu1 }
 0x40f   : > { %4246 = vst.msk [vmem:[#allocation3 + $0x78] sm:$0xff] %vm1330_vm10, %v4214_v18  ;;  %v4212_v10 = vadd.f32 %v4180_v59, %v4091_v53 }
 0x410   : > { %v7891_v62 = vpop.f32.mrf.mxu1 }
 0x411   : > { %4244 = vst.msk [vmem:[#allocation3 + $0x68] sm:$0xff] %vm1330_vm10, %v4212_v10  ;;  %v4217_v38 = vadd.f32 %v7891_v62, %v4185_v33  ;;  %v4575_v33 = vld [vmem:[#allocation3 + $0x38] sm:$0xff] }
 0x412   : > { %v4104_v45 = vpop.f32.mrf.mxu1 }
 0x413   : > { %4249 = vst.msk [vmem:[#allocation3 + $0x90] sm:$0xff] %vm1330_vm10, %v4217_v38  ;;  %v4215_v51 = vadd.f32 %v4183_v13, %v4104_v45 }
 0x414   : > { %v7892_v58 = vpop.f32.mrf.mxu1 }
 0x415   : > { %4247 = vst.msk [vmem:[#allocation3 + $0x80] sm:$0xff] %vm1330_vm10, %v4215_v51  ;;  %v4218_v54 = vadd.f32 %v7892_v58, %v4186_v23  ;;  %v4573_v23 = vld [vmem:[#allocation3 + $0x28] sm:$0xff] }
 0x416   : > { %v4107_v28 = vpop.f32.mrf.mxu1 }
 0x417   : > { %4250 = vst.msk [vmem:[#allocation3 + $0x98] sm:$0xff] %vm1330_vm10, %v4218_v54  ;;  %v4216_v21 = vadd.f32 %v4184_v0, %v4107_v28 }
 0x418   : > { %v7895_v3 = vpop.f32.mrf.mxu1 }
 0x419   : > { %4248 = vst.msk [vmem:[#allocation3 + $0x88] sm:$0xff] %vm1330_vm10, %v4216_v21  ;;  %v4221_v22 = vadd.f32 %v7895_v3, %v4189_v5  ;;  %v4578_v3 = vld [vmem:[#allocation3 + $0x50] sm:$0xff] }
 0x41a   : > { %v4120_v40 = vpop.f32.mrf.mxu1 }
 0x41b   : > { %v7867_v11 = vpop.f32.mrf.mxu0  ;;  %4253 = vst.msk [vmem:[#allocation3 + $0xb0] sm:$0xff] %vm1330_vm10, %v4221_v22  ;;  %v4219_v30 = vadd.f32 %v4187_v44, %v4120_v40 }
 0x41c   : > { %3510 = vst.msk [vmem:[#allocation3 + $0xf0] sm:$0xff] %vm1330_vm10, %v7867_v11  ;;  %v7896_v14 = vpop.f32.mrf.mxu1 }
 0x41d   : > { %v3465_v63 = vpop.f32.mrf.mxu0  ;;  %4251 = vst.msk [vmem:[#allocation3 + $0xa0] sm:$0xff] %vm1330_vm10, %v4219_v30  ;;  %v4222_v24 = vadd.f32 %v7896_v14, %v4190_v2  ;;  %v4576_v30 = vld [vmem:[#allocation3 + $0x40] sm:$0xff] }
 0x41e   : > { %3508 = vst.msk [vmem:[#allocation3 + $0xe0] sm:$0xff] %vm1330_vm10, %v3465_v63  ;;  %v4123_v25 = vpop.f32.mrf.mxu1 }
 0x41f   : > { %v7868_v34 = vpop.f32.mrf.mxu0  ;;  %4254 = vst.msk [vmem:[#allocation3 + $0xb8] sm:$0xff] %vm1330_vm10, %v4222_v24  ;;  %v4220_v26 = vadd.f32 %v4188_v56, %v4123_v25  ;;  %v4579_v25 = vld [vmem:[#allocation3 + $0x58] sm:$0xff] }
 0x420   : > { %3511 = vst.msk [vmem:[#allocation3 + $0xf8] sm:$0xff] %vm1330_vm10, %v7868_v34  ;;  %v7899_v46 = vpop.f32.mrf.mxu1 }
 0x421   : > { %v3468_v20 = vpop.f32.mrf.mxu0  ;;  %4252 = vst.msk [vmem:[#allocation3 + $0xa8] sm:$0xff] %vm1330_vm10, %v4220_v26  ;;  %v4225_v49 = vadd.f32 %v7899_v46, %v4193_v32  ;;  %v4577_v32 = vld [vmem:[#allocation3 + $0x48] sm:$0xff] }
 0x422   : > { %3509 = vst.msk [vmem:[#allocation3 + $0xe8] sm:$0xff] %vm1330_vm10, %v3468_v20  ;;  %v4136_v4 = vpop.f32.mrf.mxu1 }
 0x423   : > { %v7911_v41 = vpop.f32.mrf.mxu0  ;;  %4257 = vst.msk [vmem:[#allocation3 + $0xd0] sm:$0xff] %vm1330_vm10, %v4225_v49  ;;  %v4223_v57 = vadd.f32 %v4191_v31, %v4136_v4  ;;  %v4197_v29 = vld [vmem:[#allocation3 + $0xf0] sm:$0xff] }
 0x424   : > { %v4602_v17 = vadd.f32 %v7911_v41, %v4570_v12  ;;  %v7900_v6 = vpop.f32.mrf.mxu1  ;;  %v4582_v31 = vld [vmem:[#allocation3 + $0x70] sm:$0xff] }
 0x425   : > { %v4441_v37 = vpop.f32.mrf.mxu0  ;;  %4255 = vst.msk [vmem:[#allocation3 + $0xc0] sm:$0xff] %vm1330_vm10, %v4223_v57  ;;  %v4226_v15 = vadd.f32 %v7900_v6, %v4194_v8  ;;  %v4195_v59 = vld [vmem:[#allocation3 + $0xe0] sm:$0xff] }
 0x426   : > { %4634 = vst.msk [vmem:[#allocation3 + $0x10] sm:$0xff] %vm1330_vm10, %v4602_v17  ;;  %v4600_v27 = vadd.f32 %v4568_v42, %v4441_v37  ;;  %v4139_v19 = vpop.f32.mrf.mxu1  ;;  %v4580_v8 = vld [vmem:[#allocation3 + $0x60] sm:$0xff] }
 0x427   : > { %v7912_v60 = vpop.f32.mrf.mxu0  ;;  %4258 = vst.msk [vmem:[#allocation3 + $0xd8] sm:$0xff] %vm1330_vm10, %v4226_v15  ;;  %v4224_v7 = vadd.f32 %v4192_v47, %v4139_v19  ;;  %v4198_v13 = vld [vmem:[#allocation3 + $0xf8] sm:$0xff] }
 0x428   : > { %4632 = vst.msk [vmem:[#allocation3] sm:$0xff] %vm1330_vm10, %v4600_v27  ;;  %v4603_v35 = vadd.f32 %v7912_v60, %v4571_v48  ;;  %v4583_v47 = vld [vmem:[#allocation3 + $0x78] sm:$0xff] }
 0x429   : > { %v4444_v36 = vpop.f32.mrf.mxu0  ;;  %4256 = vst.msk [vmem:[#allocation3 + $0xc8] sm:$0xff] %vm1330_vm10, %v4224_v7  ;;  %v4196_v0 = vld [vmem:[#allocation3 + $0xe8] sm:$0xff] }
 0x42a   : > { %4635 = vst.msk [vmem:[#allocation3 + $0x18] sm:$0xff] %vm1330_vm10, %v4603_v35  ;;  %v4601_v52 = vadd.f32 %v4569_v39, %v4444_v36 }
 0x42c   : > { %v7915_v50 = vpop.f32.mrf.mxu0  ;;  %4633 = vst.msk [vmem:[#allocation3 + $0x8] sm:$0xff] %vm1330_vm10, %v4601_v52 }
 0x42d   : > { %v4606_v55 = vadd.f32 %v7915_v50, %v4574_v61  ;;  %v7903_v16 = vpop.f32.mrf.mxu1  ;;  %v5036_v63 = vld [vmem:[#allocation3 + $0x10] sm:$0xff] }
 0x42e   : > { %v4229_v43 = vadd.f32 %v7903_v16, %v4197_v29  ;;  %v4457_v1 = vpop.f32.mrf.mxu0  ;;  %v4581_v16 = vld [vmem:[#allocation3 + $0x68] sm:$0xff] }
 0x42f   : > { %4638 = vst.msk [vmem:[#allocation3 + $0x30] sm:$0xff] %vm1330_vm10, %v4606_v55  ;;  %v4604_v18 = vadd.f32 %v4572_v9, %v4457_v1  ;;  %v4152_v53 = vpop.f32.mrf.mxu1  ;;  %v5034_v2 = vld [vmem:[#allocation3] sm:$0xff] }
 0x430   : > { %4261 = vst.msk [vmem:[#allocation3 + $0xf0] sm:$0xff] %vm1330_vm10, %v4229_v43  ;;  %v4227_v10 = vadd.f32 %v4195_v59, %v4152_v53  ;;  %v7916_v62 = vpop.f32.mrf.mxu0  ;;  %v4586_v53 = vld [vmem:[#allocation3 + $0x90] sm:$0xff] }
 0x431   : > { %4636 = vst.msk [vmem:[#allocation3 + $0x20] sm:$0xff] %vm1330_vm10, %v4604_v18  ;;  %v4607_v38 = vadd.f32 %v7916_v62, %v4575_v33  ;;  %v7904_v45 = vpop.f32.mrf.mxu1  ;;  %v5037_v41 = vld [vmem:[#allocation3 + $0x18] sm:$0xff] }
 0x432   : > { %4259 = vst.msk [vmem:[#allocation3 + $0xe0] sm:$0xff] %vm1330_vm10, %v4227_v10  ;;  %v4230_v51 = vadd.f32 %v7904_v45, %v4198_v13  ;;  %v4460_v58 = vpop.f32.mrf.mxu0  ;;  %v4584_v45 = vld [vmem:[#allocation3 + $0x80] sm:$0xff] }
 0x433   : > { %4639 = vst.msk [vmem:[#allocation3 + $0x38] sm:$0xff] %vm1330_vm10, %v4607_v38  ;;  %v4605_v54 = vadd.f32 %v4573_v23, %v4460_v58  ;;  %v4155_v28 = vpop.f32.mrf.mxu1  ;;  %v5035_v37 = vld [vmem:[#allocation3 + $0x8] sm:$0xff] }
 0x434   : > { %4262 = vst.msk [vmem:[#allocation3 + $0xf8] sm:$0xff] %vm1330_vm10, %v4230_v51  ;;  %v4228_v21 = vadd.f32 %v4196_v0, %v4155_v28  ;;  %v7919_v11 = vpop.f32.mrf.mxu0  ;;  %v4587_v28 = vld [vmem:[#allocation3 + $0x98] sm:$0xff] }
 0x435   : > { %4637 = vst.msk [vmem:[#allocation3 + $0x28] sm:$0xff] %vm1330_vm10, %v4605_v54  ;;  %v4610_v5 = vadd.f32 %v7919_v11, %v4578_v3 }
 0x436   : > { %4260 = vst.msk [vmem:[#allocation3 + $0xe8] sm:$0xff] %vm1330_vm10, %v4228_v21  ;;  %v4473_v44 = vpop.f32.mrf.mxu0  ;;  %v5040_v60 = vld [vmem:[#allocation3 + $0x30] sm:$0xff] }
 0x437   : > { %v7947_v22 = vpop.f32.mrf.mxu1  ;;  %4642 = vst.msk [vmem:[#allocation3 + $0x50] sm:$0xff] %vm1330_vm10, %v4610_v5  ;;  %v4608_v34 = vadd.f32 %v4576_v30, %v4473_v44 }
 0x438   : > { %v5068_v40 = vadd.f32 %v7947_v22, %v5036_v63  ;;  %v7920_v20 = vpop.f32.mrf.mxu0  ;;  %v5038_v36 = vld [vmem:[#allocation3 + $0x20] sm:$0xff]  ;;  %v4585_v22 = vld [vmem:[#allocation3 + $0x88] sm:$0xff] }
 0x439   : > { %v4907_v14 = vpop.f32.mrf.mxu1  ;;  %4640 = vst.msk [vmem:[#allocation3 + $0x40] sm:$0xff] %vm1330_vm10, %v4608_v34  ;;  %v4611_v56 = vadd.f32 %v7920_v20, %v4579_v25 }
 0x43a   : > { %5100 = vst.msk [vmem:[#allocation3 + $0x10] sm:$0xff] %vm1330_vm10, %v5068_v40  ;;  %v5066_v24 = vadd.f32 %v5034_v2, %v4907_v14  ;;  %v4476_v46 = vpop.f32.mrf.mxu0  ;;  %v5041_v50 = vld [vmem:[#allocation3 + $0x38] sm:$0xff]  ;;  %v4590_v14 = vld [vmem:[#allocation3 + $0xb0] sm:$0xff] }
 0x43b   : > { %v7948_v26 = vpop.f32.mrf.mxu1  ;;  %4643 = vst.msk [vmem:[#allocation3 + $0x58] sm:$0xff] %vm1330_vm10, %v4611_v56  ;;  %v4609_v17 = vadd.f32 %v4577_v32, %v4476_v46 }
 0x43c   : > { %5098 = vst.msk [vmem:[#allocation3] sm:$0xff] %vm1330_vm10, %v5066_v24  ;;  %v5069_v12 = vadd.f32 %v7948_v26, %v5037_v41  ;;  %v7923_v4 = vpop.f32.mrf.mxu0  ;;  %v5039_v1 = vld [vmem:[#allocation3 + $0x28] sm:$0xff]  ;;  %v4588_v26 = vld [vmem:[#allocation3 + $0xa0] sm:$0xff] }
 0x43d   : > { %v4910_v49 = vpop.f32.mrf.mxu1  ;;  %4641 = vst.msk [vmem:[#allocation3 + $0x48] sm:$0xff] %vm1330_vm10, %v4609_v17  ;;  %v4614_v27 = vadd.f32 %v7923_v4, %v4582_v31 }
 0x43e   : > { %5101 = vst.msk [vmem:[#allocation3 + $0x18] sm:$0xff] %vm1330_vm10, %v5069_v12  ;;  %v5067_v42 = vadd.f32 %v5035_v37, %v4910_v49  ;;  %v4489_v6 = vpop.f32.mrf.mxu0  ;;  %v5044_v62 = vld [vmem:[#allocation3 + $0x50] sm:$0xff]  ;;  %v4591_v49 = vld [vmem:[#allocation3 + $0xb8] sm:$0xff] }
 0x43f   : > { %4646 = vst.msk [vmem:[#allocation3 + $0x70] sm:$0xff] %vm1330_vm10, %v4614_v27  ;;  %v4612_v35 = vadd.f32 %v4580_v8, %v4489_v6 }
 0x440   : > { %5099 = vst.msk [vmem:[#allocation3 + $0x8] sm:$0xff] %vm1330_vm10, %v5067_v42  ;;  %v7924_v19 = vpop.f32.mrf.mxu0  ;;  %v5042_v58 = vld [vmem:[#allocation3 + $0x40] sm:$0xff] }
 0x441   : > { %v7951_v57 = vpop.f32.mrf.mxu1  ;;  %4644 = vst.msk [vmem:[#allocation3 + $0x60] sm:$0xff] %vm1330_vm10, %v4612_v35  ;;  %v4615_v52 = vadd.f32 %v7924_v19, %v4583_v47 }
 0x442   : > { %v5072_v48 = vadd.f32 %v7951_v57, %v5040_v60  ;;  %v4492_v55 = vpop.f32.mrf.mxu0  ;;  %v5045_v11 = vld [vmem:[#allocation3 + $0x58] sm:$0xff]  ;;  %v4589_v57 = vld [vmem:[#allocation3 + $0xa8] sm:$0xff] }
 0x443   : > { %v4923_v15 = vpop.f32.mrf.mxu1  ;;  %4647 = vst.msk [vmem:[#allocation3 + $0x78] sm:$0xff] %vm1330_vm10, %v4615_v52  ;;  %v4613_v29 = vadd.f32 %v4581_v16, %v4492_v55 }
 0x444   : > { %5104 = vst.msk [vmem:[#allocation3 + $0x30] sm:$0xff] %vm1330_vm10, %v5072_v48  ;;  %v5070_v39 = vadd.f32 %v5038_v36, %v4923_v15  ;;  %v5043_v44 = vld [vmem:[#allocation3 + $0x48] sm:$0xff]  ;;  %v4594_v15 = vld [vmem:[#allocation3 + $0xd0] sm:$0xff] }
 0x445   : > { %v7952_v7 = vpop.f32.mrf.mxu1  ;;  %4645 = vst.msk [vmem:[#allocation3 + $0x68] sm:$0xff] %vm1330_vm10, %v4613_v29 }
 0x446   : > { %5102 = vst.msk [vmem:[#allocation3 + $0x20] sm:$0xff] %vm1330_vm10, %v5070_v39  ;;  %v5073_v61 = vadd.f32 %v7952_v7, %v5041_v50  ;;  %v7927_v18 = vpop.f32.mrf.mxu0  ;;  %v5048_v20 = vld [vmem:[#allocation3 + $0x70] sm:$0xff]  ;;  %v4592_v7 = vld [vmem:[#allocation3 + $0xc0] sm:$0xff] }
 0x447   : > { %v4926_v43 = vpop.f32.mrf.mxu1  ;;  %v4618_v59 = vadd.f32 %v7927_v18, %v4586_v53 }
 0x448   : > { %5105 = vst.msk [vmem:[#allocation3 + $0x38] sm:$0xff] %vm1330_vm10, %v5073_v61  ;;  %v5071_v9 = vadd.f32 %v5039_v1, %v4926_v43  ;;  %v4505_v38 = vpop.f32.mrf.mxu0  ;;  %v5046_v46 = vld [vmem:[#allocation3 + $0x60] sm:$0xff]  ;;  %v4595_v43 = vld [vmem:[#allocation3 + $0xd8] sm:$0xff] }
 0x449   : > { %v7955_v10 = vpop.f32.mrf.mxu1  ;;  %4650 = vst.msk [vmem:[#allocation3 + $0x90] sm:$0xff] %vm1330_vm10, %v4618_v59  ;;  %v4616_v13 = vadd.f32 %v4584_v45, %v4505_v38 }
 0x44a   : > { %5103 = vst.msk [vmem:[#allocation3 + $0x28] sm:$0xff] %vm1330_vm10, %v5071_v9  ;;  %v5076_v33 = vadd.f32 %v7955_v10, %v5044_v62  ;;  %v7928_v54 = vpop.f32.mrf.mxu0  ;;  %v5049_v4 = vld [vmem:[#allocation3 + $0x78] sm:$0xff]  ;;  %v4593_v10 = vld [vmem:[#allocation3 + $0xc8] sm:$0xff] }
 0x44b   : > { %v4939_v51 = vpop.f32.mrf.mxu1  ;;  %4648 = vst.msk [vmem:[#allocation3 + $0x80] sm:$0xff] %vm1330_vm10, %v4616_v13  ;;  %v4619_v0 = vadd.f32 %v7928_v54, %v4587_v28 }
 0x44c   : > { %5108 = vst.msk [vmem:[#allocation3 + $0x50] sm:$0xff] %vm1330_vm10, %v5076_v33  ;;  %v5074_v23 = vadd.f32 %v5042_v58, %v4939_v51  ;;  %v4508_v5 = vpop.f32.mrf.mxu0  ;;  %v5047_v6 = vld [vmem:[#allocation3 + $0x68] sm:$0xff]  ;;  %v4598_v51 = vld [vmem:[#allocation3 + $0xf0] sm:$0xff] }
 0x44d   : > { %v7956_v21 = vpop.f32.mrf.mxu1  ;;  %4651 = vst.msk [vmem:[#allocation3 + $0x98] sm:$0xff] %vm1330_vm10, %v4619_v0  ;;  %v4617_v63 = vadd.f32 %v4585_v22, %v4508_v5 }
 0x44e   : > { %5106 = vst.msk [vmem:[#allocation3 + $0x40] sm:$0xff] %vm1330_vm10, %v5074_v23  ;;  %v5077_v3 = vadd.f32 %v7956_v21, %v5045_v11  ;;  %v7931_v34 = vpop.f32.mrf.mxu0  ;;  %v4596_v21 = vld [vmem:[#allocation3 + $0xe0] sm:$0xff] }
 0x44f   : > { %v4942_v40 = vpop.f32.mrf.mxu1  ;;  %4649 = vst.msk [vmem:[#allocation3 + $0x88] sm:$0xff] %vm1330_vm10, %v4617_v63  ;;  %v4622_v2 = vadd.f32 %v7931_v34, %v4590_v14 }
 0x450   : > { %5109 = vst.msk [vmem:[#allocation3 + $0x58] sm:$0xff] %vm1330_vm10, %v5077_v3  ;;  %v5075_v30 = vadd.f32 %v5043_v44, %v4942_v40  ;;  %v4521_v56 = vpop.f32.mrf.mxu0  ;;  %v5052_v19 = vld [vmem:[#allocation3 + $0x90] sm:$0xff]  ;;  %v4599_v40 = vld [vmem:[#allocation3 + $0xf8] sm:$0xff] }
 0x451   : > { %v7959_v24 = vpop.f32.mrf.mxu1  ;;  %4654 = vst.msk [vmem:[#allocation3 + $0xb0] sm:$0xff] %vm1330_vm10, %v4622_v2  ;;  %v4620_v41 = vadd.f32 %v4588_v26, %v4521_v56 }
 0x452   : > { %5107 = vst.msk [vmem:[#allocation3 + $0x48] sm:$0xff] %vm1330_vm10, %v5075_v30  ;;  %v5080_v25 = vadd.f32 %v7959_v24, %v5048_v20  ;;  %v7932_v17 = vpop.f32.mrf.mxu0  ;;  %v5050_v55 = vld [vmem:[#allocation3 + $0x80] sm:$0xff]  ;;  %v4597_v24 = vld [vmem:[#allocation3 + $0xe8] sm:$0xff] }
 0x453   : > { %v4955_v12 = vpop.f32.mrf.mxu1  ;;  %4652 = vst.msk [vmem:[#allocation3 + $0xa0] sm:$0xff] %vm1330_vm10, %v4620_v41  ;;  %v4623_v37 = vadd.f32 %v7932_v17, %v4591_v49 }
 0x454   : > { %5112 = vst.msk [vmem:[#allocation3 + $0x70] sm:$0xff] %vm1330_vm10, %v5080_v25  ;;  %v5078_v32 = vadd.f32 %v5046_v46, %v4955_v12  ;;  %v4524_v27 = vpop.f32.mrf.mxu0  ;;  %v5053_v18 = vld [vmem:[#allocation3 + $0x98] sm:$0xff]  ;;  %v5406_v12 = vld [vmem:[#allocation3 + $0x10] sm:$0xff] }
 0x455   : > { %v7960_v42 = vpop.f32.mrf.mxu1  ;;  %4655 = vst.msk [vmem:[#allocation3 + $0xb8] sm:$0xff] %vm1330_vm10, %v4623_v37  ;;  %v4621_v60 = vadd.f32 %v4589_v57, %v4524_v27 }
 0x456   : > { %5110 = vst.msk [vmem:[#allocation3 + $0x60] sm:$0xff] %vm1330_vm10, %v5078_v32  ;;  %v5081_v31 = vadd.f32 %v7960_v42, %v5049_v4  ;;  %v7935_v35 = vpop.f32.mrf.mxu0  ;;  %v5051_v38 = vld [vmem:[#allocation3 + $0x88] sm:$0xff]  ;;  %v5404_v42 = vld [vmem:[#allocation3] sm:$0xff] }
 0x457   : > { %v4958_v48 = vpop.f32.mrf.mxu1  ;;  %4653 = vst.msk [vmem:[#allocation3 + $0xa8] sm:$0xff] %vm1330_vm10, %v4621_v60  ;;  %v4626_v36 = vadd.f32 %v7935_v35, %v4594_v15 }
 0x458   : > { %5113 = vst.msk [vmem:[#allocation3 + $0x78] sm:$0xff] %vm1330_vm10, %v5081_v31  ;;  %v5079_v8 = vadd.f32 %v5047_v6, %v4958_v48  ;;  %v4537_v52 = vpop.f32.mrf.mxu0  ;;  %v5056_v54 = vld [vmem:[#allocation3 + $0xb0] sm:$0xff]  ;;  %v5407_v48 = vld [vmem:[#allocation3 + $0x18] sm:$0xff] }
 0x459   : > { %v7963_v39 = vpop.f32.mrf.mxu1  ;;  %4658 = vst.msk [vmem:[#allocation3 + $0xd0] sm:$0xff] %vm1330_vm10, %v4626_v36  ;;  %v4624_v50 = vadd.f32 %v4592_v7, %v4537_v52  ;;  %v11750_v7 = vld [vmem:[%s12005_s6] ss:$0 sm:$0xff] }
 0x45a   : > { %5111 = vst.msk [vmem:[#allocation3 + $0x68] sm:$0xff] %vm1330_vm10, %v5079_v8  ;;  %v5084_v47 = vadd.f32 %v7963_v39, %v5052_v19  ;;  %v7936_v29 = vpop.f32.mrf.mxu0  ;;  %v5054_v5 = vld [vmem:[#allocation3 + $0xa0] sm:$0xff]  ;;  %v5405_v39 = vld [vmem:[#allocation3 + $0x8] sm:$0xff] }
 0x45b   : > { %v4971_v61 = vpop.f32.mrf.mxu1  ;;  %4656 = vst.msk [vmem:[#allocation3 + $0xc0] sm:$0xff] %vm1330_vm10, %v4624_v50  ;;  %v4627_v1 = vadd.f32 %v7936_v29, %v4595_v43 }
 0x45c   : > { %5116 = vst.msk [vmem:[#allocation3 + $0x90] sm:$0xff] %vm1330_vm10, %v5084_v47  ;;  %v5082_v16 = vadd.f32 %v5050_v55, %v4971_v61  ;;  %v4540_v59 = vpop.f32.mrf.mxu0  ;;  %v5057_v34 = vld [vmem:[#allocation3 + $0xb8] sm:$0xff]  ;;  %v5410_v55 = vld [vmem:[#allocation3 + $0x30] sm:$0xff] }
 0x45d   : > { %v7964_v9 = vpop.f32.mrf.mxu1  ;;  %4659 = vst.msk [vmem:[#allocation3 + $0xd8] sm:$0xff] %vm1330_vm10, %v4627_v1  ;;  %v4625_v62 = vadd.f32 %v4593_v10, %v4540_v59 }
 0x45e   : > { %5114 = vst.msk [vmem:[#allocation3 + $0x80] sm:$0xff] %vm1330_vm10, %v5082_v16  ;;  %v5085_v53 = vadd.f32 %v7964_v9, %v5053_v18  ;;  %v7939_v13 = vpop.f32.mrf.mxu0  ;;  %v5055_v56 = vld [vmem:[#allocation3 + $0xa8] sm:$0xff] }
 0x45f   : > { %v4974_v33 = vpop.f32.mrf.mxu1  ;;  %4657 = vst.msk [vmem:[#allocation3 + $0xc8] sm:$0xff] %vm1330_vm10, %v4625_v62  ;;  %v4630_v58 = vadd.f32 %v7939_v13, %v4598_v51  ;;  %v5411_v51 = vld [vmem:[#allocation3 + $0x38] sm:$0xff] }
 0x460   : > { %5117 = vst.msk [vmem:[#allocation3 + $0x98] sm:$0xff] %vm1330_vm10, %v5085_v53  ;;  %v5083_v45 = vadd.f32 %v5051_v38, %v4974_v33  ;;  %v4553_v0 = vpop.f32.mrf.mxu0  ;;  %v5060_v17 = vld [vmem:[#allocation3 + $0xd0] sm:$0xff]  ;;  %v5408_v53 = vld [vmem:[#allocation3 + $0x20] sm:$0xff] }
 0x461   : > { %v7967_v23 = vpop.f32.mrf.mxu1  ;;  %4662 = vst.msk [vmem:[#allocation3 + $0xf0] sm:$0xff] %vm1330_vm10, %v4630_v58  ;;  %v4628_v11 = vadd.f32 %v4596_v21, %v4553_v0 }
 0x462   : > { %5115 = vst.msk [vmem:[#allocation3 + $0x88] sm:$0xff] %vm1330_vm10, %v5083_v45  ;;  %v5088_v28 = vadd.f32 %v7967_v23, %v5056_v54  ;;  %v7940_v63 = vpop.f32.mrf.mxu0  ;;  %v5058_v27 = vld [vmem:[#allocation3 + $0xc0] sm:$0xff] }
 0x463   : > { %v4987_v3 = vpop.f32.mrf.mxu1  ;;  %4660 = vst.msk [vmem:[#allocation3 + $0xe0] sm:$0xff] %vm1330_vm10, %v4628_v11  ;;  %v4631_v44 = vadd.f32 %v7940_v63, %v4599_v40 }
 0x464   : > { %5120 = vst.msk [vmem:[#allocation3 + $0xb0] sm:$0xff] %vm1330_vm10, %v5088_v28  ;;  %v5086_v22 = vadd.f32 %v5054_v5, %v4987_v3  ;;  %v4556_v2 = vpop.f32.mrf.mxu0  ;;  %v5061_v35 = vld [vmem:[#allocation3 + $0xd8] sm:$0xff]  ;;  %v5409_v5 = vld [vmem:[#allocation3 + $0x28] sm:$0xff] }
 0x465   : > { %v7968_v30 = vpop.f32.mrf.mxu1  ;;  %4663 = vst.msk [vmem:[#allocation3 + $0xf8] sm:$0xff] %vm1330_vm10, %v4631_v44  ;;  %v4629_v20 = vadd.f32 %v4597_v24, %v4556_v2 }
 0x466   : > { %5118 = vst.msk [vmem:[#allocation3 + $0xa0] sm:$0xff] %vm1330_vm10, %v5086_v22  ;;  %v5089_v14 = vadd.f32 %v7968_v30, %v5057_v34  ;;  %v7983_v41 = vpop.f32.mrf.mxu0  ;;  %v5059_v52 = vld [vmem:[#allocation3 + $0xc8] sm:$0xff] }
 0x467   : > { %v4990_v25 = vpop.f32.mrf.mxu1  ;;  %4661 = vst.msk [vmem:[#allocation3 + $0xe8] sm:$0xff] %vm1330_vm10, %v4629_v20  ;;  %v5438_v46 = vadd.f32 %v7983_v41, %v5406_v12 }
 0x468   : > { %5121 = vst.msk [vmem:[#allocation3 + $0xb8] sm:$0xff] %vm1330_vm10, %v5089_v14  ;;  %v5087_v26 = vadd.f32 %v5055_v56, %v4990_v25  ;;  %v5277_v37 = vpop.f32.mrf.mxu0  ;;  %v5064_v43 = vld [vmem:[#allocation3 + $0xf0] sm:$0xff]  ;;  %v11772_v14 = vld [vmem:[%s12007_s8] ss:$0 sm:$0xff] }
 0x469   : > { %v7971_v32 = vpop.f32.mrf.mxu1  ;;  %5470 = vst.msk [vmem:[#allocation3 + $0x10] sm:$0xff] %vm1330_vm10, %v5438_v46  ;;  %v5436_v4 = vadd.f32 %v5404_v42, %v5277_v37  ;;  %v5414_v25 = vld [vmem:[#allocation3 + $0x50] sm:$0xff]  ;;  %v5412_v37 = vld [vmem:[#allocation3 + $0x40] sm:$0xff] }
 0x46a   : > { %5119 = vst.msk [vmem:[#allocation3 + $0xa8] sm:$0xff] %vm1330_vm10, %v5087_v26  ;;  %v5092_v49 = vadd.f32 %v7971_v32, %v5060_v17  ;;  %v7984_v60 = vpop.f32.mrf.mxu0  ;;  %v5062_v33 = vld [vmem:[#allocation3 + $0xe0] sm:$0xff] }
 0x46b   : > { %v5003_v31 = vpop.f32.mrf.mxu1  ;;  %5468 = vst.msk [vmem:[#allocation3] sm:$0xff] %vm1330_vm10, %v5436_v4  ;;  %v5439_v6 = vadd.f32 %v7984_v60, %v5407_v48 }
 0x46c   : > { %5124 = vst.msk [vmem:[#allocation3 + $0xd0] sm:$0xff] %vm1330_vm10, %v5092_v49  ;;  %v5090_v57 = vadd.f32 %v5058_v27, %v5003_v31  ;;  %v5280_v36 = vpop.f32.mrf.mxu0  ;;  %v5065_v0 = vld [vmem:[#allocation3 + $0xf8] sm:$0xff] }
 0x46d   : > { %v7972_v8 = vpop.f32.mrf.mxu1  ;;  %5471 = vst.msk [vmem:[#allocation3 + $0x18] sm:$0xff] %vm1330_vm10, %v5439_v6  ;;  %v5437_v19 = vadd.f32 %v5405_v39, %v5280_v36 }
 0x46e   : > { %5122 = vst.msk [vmem:[#allocation3 + $0xc0] sm:$0xff] %vm1330_vm10, %v5090_v57  ;;  %v5093_v15 = vadd.f32 %v7972_v8, %v5061_v35  ;;  %v7987_v61 = vpop.f32.mrf.mxu0  ;;  %v5063_v34 = vld [vmem:[#allocation3 + $0xe8] sm:$0xff]  ;;  %v5415_v35 = vld [vmem:[#allocation3 + $0x58] sm:$0xff] }
 0x46f   : > { %v5006_v47 = vpop.f32.mrf.mxu1  ;;  %5469 = vst.msk [vmem:[#allocation3 + $0x8] sm:$0xff] %vm1330_vm10, %v5437_v19  ;;  %v5442_v16 = vadd.f32 %v7987_v61, %v5410_v55 }
 0x470   : > { %5125 = vst.msk [vmem:[#allocation3 + $0xd8] sm:$0xff] %vm1330_vm10, %v5093_v15  ;;  %v5091_v50 = vadd.f32 %v5059_v52, %v5006_v47  ;;  %v5502_v1 = vld [vmem:[#allocation3 + $0x10] sm:$0xff]  ;;  %v5293_v18 = vpop.f32.mrf.mxu0 }
 0x471   : > { %v7975_v29 = vpop.f32.mrf.mxu1  ;;  %v5541_v59 = vadd.f32 %v11750_v7, %v5502_v1  ;;  %5474 = vst.msk [vmem:[#allocation3 + $0x30] sm:$0xff] %vm1330_vm10, %v5442_v16  ;;  %v5440_v10 = vadd.f32 %v5408_v53, %v5293_v18 }
 0x472   : > { %5123 = vst.msk [vmem:[#allocation3 + $0xc8] sm:$0xff] %vm1330_vm10, %v5091_v50  ;;  %v5096_v9 = vadd.f32 %v7975_v29, %v5064_v43  ;;  %v5500_v38 = vld [vmem:[#allocation3] sm:$0xff]  ;;  %v7988_v13 = vpop.f32.mrf.mxu0  ;;  %v5413_v29 = vld [vmem:[#allocation3 + $0x48] sm:$0xff] }
 0x473   : > { %v5019_v62 = vpop.f32.mrf.mxu1  ;;  %v5573_v58 = vmax.f32 %v5541_v59, 0.0  ;;  %v5539_v23 = vadd.f32 %v11750_v7, %v5500_v38  ;;  %5472 = vst.msk [vmem:[#allocation3 + $0x20] sm:$0xff] %vm1330_vm10, %v5440_v10  ;;  %v5443_v54 = vadd.f32 %v7988_v13, %v5411_v51 }
 0x474   : > { %5128 = vst.msk [vmem:[#allocation3 + $0xf0] sm:$0xff] %vm1330_vm10, %v5096_v9  ;;  %v5094_v45 = vadd.f32 %v5062_v33, %v5019_v62  ;;  %v5503_v21 = vld [vmem:[#allocation3 + $0x18] sm:$0xff]  ;;  %v5296_v3 = vpop.f32.mrf.mxu0 }
 0x475   : > { %v7976_v28 = vpop.f32.mrf.mxu1  ;;  %v7460_v22 = vpack.c.bf16 %v5573_v58, %v5573_v58  ;;  %v5571_v63 = vmax.f32 %v5539_v23, 0.0  ;;  %v5542_v40 = vadd.f32 %v11750_v7, %v5503_v21  ;;  %5475 = vst.msk [vmem:[#allocation3 + $0x38] sm:$0xff] %vm1330_vm10, %v5443_v54  ;;  %v5441_v44 = vadd.f32 %v5409_v5, %v5296_v3  ;;  %v5416_v5 = vld [vmem:[#allocation3 + $0x60] sm:$0xff] }
 0x476   : > { %5126 = vst.msk [vmem:[#allocation3 + $0xe0] sm:$0xff] %vm1330_vm10, %v5094_v45  ;;  %v5097_v11 = vadd.f32 %v7976_v28, %v5065_v0  ;;  %v5501_v2 = vld [vmem:[#allocation3 + $0x8] sm:$0xff]  ;;  %v7991_v20 = vpop.f32.mrf.mxu0  ;;  %v5418_v45 = vld [vmem:[#allocation3 + $0x70] sm:$0xff] }
 0x477   : > { %v5022_v30 = vpop.f32.mrf.mxu1  ;;  %5733 = vst.msk [vmem:[%s11764_s15 + $0x8] sm:$0xf] %vm946_vm8, %v7460_v22  ;;  %v7458_v56 = vpack.c.bf16 %v5571_v63, %v5571_v63  ;;  %v5574_v26 = vmax.f32 %v5542_v40, 0.0  ;;  %v5540_v41 = vadd.f32 %v11750_v7, %v5501_v2  ;;  %v5446_v12 = vadd.f32 %v7991_v20, %v5414_v25 }
 0x478   : > { %5129 = vst.msk [vmem:[#allocation3 + $0xf8] sm:$0xff] %vm1330_vm10, %v5097_v11  ;;  %v5095_v24 = vadd.f32 %v5063_v34, %v5022_v30  ;;  %5473 = vst.msk [vmem:[#allocation3 + $0x28] sm:$0xff] %vm1330_vm10, %v5441_v44  ;;  %v5506_v32 = vld [vmem:[#allocation3 + $0x30] sm:$0xff]  ;;  %v5309_v49 = vpop.f32.mrf.mxu0 }
 0x479   : > { %v8017_v46 = vpop.f32.mrf.mxu1  ;;  %5731 = vst.msk [vmem:[%s11764_s15] sm:$0xf] %vm946_vm8, %v7458_v56  ;;  %v7461_v42 = vpack.c.bf16 %v5574_v26, %v5574_v26  ;;  %v5572_v4 = vmax.f32 %v5540_v41, 0.0  ;;  %v5545_v31 = vadd.f32 %v11750_v7, %v5506_v32  ;;  %v5444_v27 = vadd.f32 %v5412_v37, %v5309_v49  ;;  %v5419_v56 = vld [vmem:[#allocation3 + $0x78] sm:$0xff] }
 0x47a   : > { %5127 = vst.msk [vmem:[#allocation3 + $0xe8] sm:$0xff] %vm1330_vm10, %v5095_v24  ;;  %v6491_v17 = vadd.f32 %v8017_v46, %v11772_v14  ;;  %5478 = vst.msk [vmem:[#allocation3 + $0x50] sm:$0xff] %vm1330_vm10, %v5446_v12  ;;  %v5504_v60 = vld [vmem:[#allocation3 + $0x20] sm:$0xff]  ;;  %v7992_v8 = vpop.f32.mrf.mxu0 }
 0x47b   : > { %v6482_v57 = vpop.f32.mrf.mxu1  ;;  %5734 = vst.msk [vmem:[%s11764_s15 + $0xc] sm:$0xf] %vm946_vm8, %v7461_v42  ;;  %v7459_v15 = vpack.c.bf16 %v5572_v4, %v5572_v4  ;;  %v5577_v36 = vmax.f32 %v5545_v31, 0.0  ;;  %v5543_v39 = vadd.f32 %v11750_v7, %v5504_v60  ;;  %v5447_v19 = vadd.f32 %v7992_v8, %v5415_v35  ;;  %v5417_v31 = vld [vmem:[#allocation3 + $0x68] sm:$0xff] }
 0x47c   : > { %v6611_v48 = vmax.f32 %v6491_v17, 0.0  ;;  %v6483_v6 = vadd.f32 %v11772_v14, %v6482_v57  ;;  %5476 = vst.msk [vmem:[#allocation3 + $0x40] sm:$0xff] %vm1330_vm10, %v5444_v27  ;;  %v5507_v52 = vld [vmem:[#allocation3 + $0x38] sm:$0xff]  ;;  %v5312_v16 = vpop.f32.mrf.mxu0 }
 0x47d   : > { %v8018_v47 = vpop.f32.mrf.mxu1  ;;  %5732 = vst.msk [vmem:[%s11764_s15 + $0x4] sm:$0xf] %vm946_vm8, %v7459_v15  ;;  %v7464_v43 = vpack.c.bf16 %v5577_v36, %v5577_v36  ;;  %v5575_v1 = vmax.f32 %v5543_v39, 0.0  ;;  %v5546_v9 = vadd.f32 %v11750_v7, %v5507_v52  ;;  %v5445_v18 = vadd.f32 %v5413_v29, %v5312_v16 }
 0x47e   : > { %v7492_v50 = vpack.c.bf16 %v6611_v48, %v6611_v48  ;;  %v6609_v61 = vmax.f32 %v6483_v6, 0.0  ;;  %v6494_v55 = vadd.f32 %v8018_v47, %v11772_v14  ;;  %5479 = vst.msk [vmem:[#allocation3 + $0x58] sm:$0xff] %vm1330_vm10, %v5447_v19  ;;  %v7995_v38 = vpop.f32.mrf.mxu0  ;;  %v5422_v19 = vld [vmem:[#allocation3 + $0x90] sm:$0xff] }
 0x47f   : > { %v6485_v53 = vpop.f32.mrf.mxu1  ;;  %v5505_v59 = vld [vmem:[#allocation3 + $0x28] sm:$0xff]  ;;  %5737 = vst.msk [vmem:[%s11764_s15 + $0x18] sm:$0xf] %vm946_vm8, %v7464_v43  ;;  %v7462_v13 = vpack.c.bf16 %v5575_v1, %v5575_v1  ;;  %v5578_v51 = vmax.f32 %v5546_v9, 0.0  ;;  %v5450_v23 = vadd.f32 %v7995_v38, %v5418_v45 }
 0x480   : > { %6771 = vst.msk [vmem:[%s11793_s23 + $0x8] sm:$0xf] %vm946_vm8, %v7492_v50  ;;  %v7490_v10 = vpack.c.bf16 %v6609_v61, %v6609_v61  ;;  %v6612_v62 = vmax.f32 %v6494_v55, 0.0  ;;  %v6486_v33 = vadd.f32 %v11772_v14, %v6485_v53  ;;  %v5544_v58 = vadd.f32 %v11750_v7, %v5505_v59  ;;  %v5325_v3 = vpop.f32.mrf.mxu0 }
 0x481   : > { %5477 = vst.msk [vmem:[#allocation3 + $0x48] sm:$0xff] %vm1330_vm10, %v5445_v18  ;;  %v8021_v54 = vpop.f32.mrf.mxu1  ;;  %v5510_v28 = vld [vmem:[#allocation3 + $0x50] sm:$0xff]  ;;  %v7465_v22 = vpack.c.bf16 %v5578_v51, %v5578_v51  ;;  %5482 = vst.msk [vmem:[#allocation3 + $0x70] sm:$0xff] %vm1330_vm10, %v5450_v23  ;;  %v5448_v44 = vadd.f32 %v5416_v5, %v5325_v3  ;;  %v5420_v18 = vld [vmem:[#allocation3 + $0x80] sm:$0xff] }
 0x482   : > { %6769 = vst.msk [vmem:[%s11793_s23] sm:$0xf] %vm946_vm8, %v7490_v10  ;;  %v7493_v0 = vpack.c.bf16 %v6612_v62, %v6612_v62  ;;  %v6610_v21 = vmax.f32 %v6486_v33, 0.0  ;;  %v6507_v11 = vadd.f32 %v8021_v54, %v11772_v14  ;;  %5735 = vst.msk [vmem:[%s11764_s15 + $0x10] sm:$0xf] %vm946_vm8, %v7462_v13  ;;  %v5576_v63 = vmax.f32 %v5544_v58, 0.0  ;;  %v7996_v25 = vpop.f32.mrf.mxu0 }
 0x483   : > { %v5549_v40 = vadd.f32 %v11750_v7, %v5510_v28  ;;  %v6498_v30 = vpop.f32.mrf.mxu1  ;;  %v5508_v34 = vld [vmem:[#allocation3 + $0x40] sm:$0xff]  ;;  %5738 = vst.msk [vmem:[%s11764_s15 + $0x1c] sm:$0xf] %vm946_vm8, %v7465_v22  ;;  %v5451_v46 = vadd.f32 %v7996_v25, %v5419_v56  ;;  %v5423_v23 = vld [vmem:[#allocation3 + $0x98] sm:$0xff] }
 0x484   : > { %6772 = vst.msk [vmem:[%s11793_s23 + $0xc] sm:$0xf] %vm946_vm8, %v7493_v0  ;;  %v7491_v2 = vpack.c.bf16 %v6610_v21, %v6610_v21  ;;  %v6615_v24 = vmax.f32 %v6507_v11, 0.0  ;;  %v6499_v20 = vadd.f32 %v11772_v14, %v6498_v30  ;;  %v7463_v26 = vpack.c.bf16 %v5576_v63, %v5576_v63  ;;  %v5328_v4 = vpop.f32.mrf.mxu0 }
 0x485   : > { %v5581_v41 = vmax.f32 %v5549_v40, 0.0  ;;  %v5547_v12 = vadd.f32 %v11750_v7, %v5508_v34  ;;  %5480 = vst.msk [vmem:[#allocation3 + $0x60] sm:$0xff] %vm1330_vm10, %v5448_v44  ;;  %v8022_v32 = vpop.f32.mrf.mxu1  ;;  %v5511_v17 = vld [vmem:[#allocation3 + $0x58] sm:$0xff]  ;;  %5483 = vst.msk [vmem:[#allocation3 + $0x78] sm:$0xff] %vm1330_vm10, %v5451_v46  ;;  %v5449_v48 = vadd.f32 %v5417_v31, %v5328_v4  ;;  %v5421_v44 = vld [vmem:[#allocation3 + $0x88] sm:$0xff] }
 0x486   : > { %6770 = vst.msk [vmem:[%s11793_s23 + $0x4] sm:$0xf] %vm946_vm8, %v7491_v2  ;;  %v7496_v49 = vpack.c.bf16 %v6615_v24, %v6615_v24  ;;  %v6613_v37 = vmax.f32 %v6499_v20, 0.0  ;;  %v6510_v42 = vadd.f32 %v8022_v32, %v11772_v14  ;;  %5736 = vst.msk [vmem:[%s11764_s15 + $0x14] sm:$0xf] %vm946_vm8, %v7463_v26  ;;  %v5550_v60 = vadd.f32 %v11750_v7, %v5511_v17  ;;  %v7999_v39 = vpop.f32.mrf.mxu0  ;;  %v5426_v46 = vld [vmem:[#allocation3 + $0xb0] sm:$0xff] }
 0x487   : > { %v7468_v27 = vpack.c.bf16 %v5581_v41, %v5581_v41  ;;  %v5579_v57 = vmax.f32 %v5547_v12, 0.0  ;;  %v6501_v6 = vpop.f32.mrf.mxu1  ;;  %5481 = vst.msk [vmem:[#allocation3 + $0x68] sm:$0xff] %vm1330_vm10, %v5449_v48  ;;  %v5454_v61 = vadd.f32 %v7999_v39, %v5422_v19  ;;  %v5424_v48 = vld [vmem:[#allocation3 + $0xa0] sm:$0xff] }
 0x488   : > { %v5509_v8 = vld [vmem:[#allocation3 + $0x48] sm:$0xff]  ;;  %6775 = vst.msk [vmem:[%s11793_s23 + $0x18] sm:$0xf] %vm946_vm8, %v7496_v49  ;;  %v7494_v35 = vpack.c.bf16 %v6613_v37, %v6613_v37  ;;  %v6616_v15 = vmax.f32 %v6510_v42, 0.0  ;;  %v6502_v36 = vadd.f32 %v11772_v14, %v6501_v6  ;;  %v5582_v52 = vmax.f32 %v5550_v60, 0.0  ;;  %v5514_v16 = vld [vmem:[#allocation3 + $0x70] sm:$0xff]  ;;  %v5341_v9 = vpop.f32.mrf.mxu0 }
 0x489   : > { %5741 = vst.msk [vmem:[%s11764_s15 + $0x28] sm:$0xf] %vm946_vm8, %v7468_v27  ;;  %v7466_v47 = vpack.c.bf16 %v5579_v57, %v5579_v57  ;;  %v5548_v50 = vadd.f32 %v11750_v7, %v5509_v8  ;;  %v8025_v55 = vpop.f32.mrf.mxu1  ;;  %v5553_v10 = vadd.f32 %v11750_v7, %v5514_v16  ;;  %v5452_v62 = vadd.f32 %v5420_v18, %v5341_v9 }
 0x48a   : > { %6773 = vst.msk [vmem:[%s11793_s23 + $0x10] sm:$0xf] %vm946_vm8, %v7494_v35  ;;  %v7497_v29 = vpack.c.bf16 %v6616_v15, %v6616_v15  ;;  %v6614_v43 = vmax.f32 %v6502_v36, 0.0  ;;  %v6523_v1 = vadd.f32 %v8025_v55, %v11772_v14  ;;  %v7469_v53 = vpack.c.bf16 %v5582_v52, %v5582_v52  ;;  %v8000_v58 = vpop.f32.mrf.mxu0 }
 0x48b   : > { %5739 = vst.msk [vmem:[%s11764_s15 + $0x20] sm:$0xf] %vm946_vm8, %v7466_v47  ;;  %v5580_v59 = vmax.f32 %v5548_v50, 0.0  ;;  %v6514_v33 = vpop.f32.mrf.mxu1  ;;  %v5585_v28 = vmax.f32 %v5553_v10, 0.0  ;;  %v5455_v21 = vadd.f32 %v8000_v58, %v5423_v23 }
 0x48c   : > { %5486 = vst.msk [vmem:[#allocation3 + $0x90] sm:$0xff] %vm1330_vm10, %v5454_v61  ;;  %v5512_v38 = vld [vmem:[#allocation3 + $0x60] sm:$0xff]  ;;  %v7495_v45 = vpack.c.bf16 %v6614_v43, %v6614_v43  ;;  %v6619_v13 = vmax.f32 %v6523_v1, 0.0  ;;  %v6515_v51 = vadd.f32 %v11772_v14, %v6514_v33  ;;  %5484 = vst.msk [vmem:[#allocation3 + $0x80] sm:$0xff] %vm1330_vm10, %v5452_v62  ;;  %v5515_v3 = vld [vmem:[#allocation3 + $0x78] sm:$0xff]  ;;  %v5344_v40 = vpop.f32.mrf.mxu0 }
 0x48d   : > { %6776 = vst.msk [vmem:[%s11793_s23 + $0x1c] sm:$0xf] %vm946_vm8, %v7497_v29  ;;  %5742 = vst.msk [vmem:[%s11764_s15 + $0x2c] sm:$0xf] %vm946_vm8, %v7469_v53  ;;  %v7467_v54 = vpack.c.bf16 %v5580_v59, %v5580_v59  ;;  %v5551_v0 = vadd.f32 %v11750_v7, %v5512_v38  ;;  %v8026_v11 = vpop.f32.mrf.mxu1  ;;  %v7472_v30 = vpack.c.bf16 %v5585_v28, %v5585_v28  ;;  %v5427_v61 = vld [vmem:[#allocation3 + $0xb8] sm:$0xff]  ;;  %v5425_v62 = vld [vmem:[#allocation3 + $0xa8] sm:$0xff] }
 0x48e   : > { %6774 = vst.msk [vmem:[%s11793_s23 + $0x14] sm:$0xf] %vm946_vm8, %v7495_v45  ;;  %v7500_v5 = vpack.c.bf16 %v6619_v13, %v6619_v13  ;;  %v6617_v22 = vmax.f32 %v6515_v51, 0.0  ;;  %v6526_v63 = vadd.f32 %v8026_v11, %v11772_v14  ;;  %v5554_v2 = vadd.f32 %v11750_v7, %v5515_v3  ;;  %v5513_v25 = vld [vmem:[#allocation3 + $0x68] sm:$0xff]  ;;  %v8003_v12 = vpop.f32.mrf.mxu0 }
 0x48f   : > { %5740 = vst.msk [vmem:[%s11764_s15 + $0x24] sm:$0xf] %vm946_vm8, %v7467_v54  ;;  %v5583_v34 = vmax.f32 %v5551_v0, 0.0  ;;  %v5453_v24 = vadd.f32 %v5421_v44, %v5344_v40  ;;  %v6517_v20 = vpop.f32.mrf.mxu1  ;;  %5745 = vst.msk [vmem:[%s11764_s15 + $0x38] sm:$0xf] %vm946_vm8, %v7472_v30  ;;  %v5552_v49 = vadd.f32 %v11750_v7, %v5513_v25  ;;  %v5458_v37 = vadd.f32 %v8003_v12, %v5426_v46 }
 0x490   : > { %5487 = vst.msk [vmem:[#allocation3 + $0x98] sm:$0xff] %vm1330_vm10, %v5455_v21  ;;  %v7498_v56 = vpack.c.bf16 %v6617_v22, %v6617_v22  ;;  %v6620_v26 = vmax.f32 %v6526_v63, 0.0  ;;  %v6518_v41 = vadd.f32 %v11772_v14, %v6517_v20  ;;  %v5586_v17 = vmax.f32 %v5554_v2, 0.0  ;;  %v5357_v60 = vpop.f32.mrf.mxu0  ;;  %v5430_v21 = vld [vmem:[#allocation3 + $0xd0] sm:$0xff] }
 0x491   : > { %6779 = vst.msk [vmem:[%s11793_s23 + $0x28] sm:$0xf] %vm946_vm8, %v7500_v5  ;;  %v7470_v32 = vpack.c.bf16 %v5583_v34, %v5583_v34  ;;  %v8029_v42 = vpop.f32.mrf.mxu1  ;;  %v5584_v8 = vmax.f32 %v5552_v49, 0.0  ;;  %v5456_v15 = vadd.f32 %v5424_v48, %v5357_v60 }
 0x492   : > { %5485 = vst.msk [vmem:[#allocation3 + $0x88] sm:$0xff] %vm1330_vm10, %v5453_v24  ;;  %v7501_v31 = vpack.c.bf16 %v6620_v26, %v6620_v26  ;;  %v6618_v27 = vmax.f32 %v6518_v41, 0.0  ;;  %v6539_v57 = vadd.f32 %v8029_v42, %v11772_v14  ;;  %v7473_v6 = vpack.c.bf16 %v5586_v17, %v5586_v17  ;;  %5490 = vst.msk [vmem:[#allocation3 + $0xb0] sm:$0xff] %vm1330_vm10, %v5458_v37  ;;  %v8004_v50 = vpop.f32.mrf.mxu0  ;;  %v5428_v24 = vld [vmem:[#allocation3 + $0xc0] sm:$0xff]  ;;  %v5431_v37 = vld [vmem:[#allocation3 + $0xd8] sm:$0xff] }
 0x493   : > { %v5518_v4 = vld [vmem:[#allocation3 + $0x90] sm:$0xff]  ;;  %6777 = vst.msk [vmem:[%s11793_s23 + $0x20] sm:$0xf] %vm946_vm8, %v7498_v56  ;;  %5743 = vst.msk [vmem:[%s11764_s15 + $0x30] sm:$0xf] %vm946_vm8, %v7470_v32  ;;  %v6530_v36 = vpop.f32.mrf.mxu1  ;;  %v5516_v39 = vld [vmem:[#allocation3 + $0x80] sm:$0xff]  ;;  %v7471_v55 = vpack.c.bf16 %v5584_v8, %v5584_v8  ;;  %v5459_v43 = vadd.f32 %v8004_v50, %v5427_v61 }
 0x494   : > { %v5557_v35 = vadd.f32 %v11750_v7, %v5518_v4  ;;  %6780 = vst.msk [vmem:[%s11793_s23 + $0x2c] sm:$0xf] %vm946_vm8, %v7501_v31  ;;  %v7499_v19 = vpack.c.bf16 %v6618_v27, %v6618_v27  ;;  %v6623_v47 = vmax.f32 %v6539_v57, 0.0  ;;  %v6531_v52 = vadd.f32 %v11772_v14, %v6530_v36  ;;  %5746 = vst.msk [vmem:[%s11764_s15 + $0x3c] sm:$0xf] %vm946_vm8, %v7473_v6  ;;  %v5360_v10 = vpop.f32.mrf.mxu0 }
 0x495   : > { %v5555_v29 = vadd.f32 %v11750_v7, %v5516_v39  ;;  %5488 = vst.msk [vmem:[#allocation3 + $0xa0] sm:$0xff] %vm1330_vm10, %v5456_v15  ;;  %v8030_v1 = vpop.f32.mrf.mxu1  ;;  %5491 = vst.msk [vmem:[#allocation3 + $0xb8] sm:$0xff] %vm1330_vm10, %v5459_v43  ;;  %v5457_v13 = vadd.f32 %v5425_v62, %v5360_v10  ;;  %v5429_v15 = vld [vmem:[#allocation3 + $0xc8] sm:$0xff]  ;;  %v5434_v43 = vld [vmem:[#allocation3 + $0xf0] sm:$0xff] }
 0x496   : > { %v5589_v16 = vmax.f32 %v5557_v35, 0.0  ;;  %6778 = vst.msk [vmem:[%s11793_s23 + $0x24] sm:$0xf] %vm946_vm8, %v7499_v19  ;;  %v7504_v18 = vpack.c.bf16 %v6623_v47, %v6623_v47  ;;  %v6621_v53 = vmax.f32 %v6531_v52, 0.0  ;;  %v6542_v59 = vadd.f32 %v8030_v1, %v11772_v14  ;;  %5744 = vst.msk [vmem:[%s11764_s15 + $0x34] sm:$0xf] %vm946_vm8, %v7471_v55  ;;  %v8007_v0 = vpop.f32.mrf.mxu0 }
 0x497   : > { %v5519_v9 = vld [vmem:[#allocation3 + $0x98] sm:$0xff]  ;;  %v5587_v38 = vmax.f32 %v5555_v29, 0.0  ;;  %v6533_v51 = vpop.f32.mrf.mxu1  ;;  %5489 = vst.msk [vmem:[#allocation3 + $0xa8] sm:$0xff] %vm1330_vm10, %v5457_v13  ;;  %v5462_v22 = vadd.f32 %v8007_v0, %v5430_v21  ;;  %v5432_v13 = vld [vmem:[#allocation3 + $0xe0] sm:$0xff] }
 0x498   : > { %v7476_v33 = vpack.c.bf16 %v5589_v16, %v5589_v16  ;;  %v5558_v45 = vadd.f32 %v11750_v7, %v5519_v9  ;;  %6783 = vst.msk [vmem:[%s11793_s23 + $0x38] sm:$0xf] %vm946_vm8, %v7504_v18  ;;  %v7502_v23 = vpack.c.bf16 %v6621_v53, %v6621_v53  ;;  %v6624_v54 = vmax.f32 %v6542_v59, 0.0  ;;  %v5373_v2 = vpop.f32.mrf.mxu0 }
 0x499   : > { %v5517_v58 = vld [vmem:[#allocation3 + $0x88] sm:$0xff]  ;;  %v6534_v28 = vadd.f32 %v11772_v14, %v6533_v51  ;;  %v7474_v11 = vpack.c.bf16 %v5587_v38, %v5587_v38  ;;  %v8033_v63 = vpop.f32.mrf.mxu1  ;;  %v5522_v40 = vld [vmem:[#allocation3 + $0xb0] sm:$0xff]  ;;  %5494 = vst.msk [vmem:[#allocation3 + $0xd0] sm:$0xff] %vm1330_vm10, %v5462_v22  ;;  %v5460_v26 = vadd.f32 %v5428_v24, %v5373_v2  ;;  %v5435_v22 = vld [vmem:[#allocation3 + $0xf8] sm:$0xff] }
 0x49a   : > { %5749 = vst.msk [vmem:[%s11764_s15 + $0x48] sm:$0xf] %vm946_vm8, %v7476_v33  ;;  %v5590_v3 = vmax.f32 %v5558_v45, 0.0  ;;  %v5556_v5 = vadd.f32 %v11750_v7, %v5517_v58  ;;  %6781 = vst.msk [vmem:[%s11793_s23 + $0x30] sm:$0xf] %vm946_vm8, %v7502_v23  ;;  %v7505_v44 = vpack.c.bf16 %v6624_v54, %v6624_v54  ;;  %v6555_v34 = vadd.f32 %v8033_v63, %v11772_v14  ;;  %v8008_v49 = vpop.f32.mrf.mxu0 }
 0x49b   : > { %v6622_v30 = vmax.f32 %v6534_v28, 0.0  ;;  %5747 = vst.msk [vmem:[%s11764_s15 + $0x40] sm:$0xf] %vm946_vm8, %v7474_v11  ;;  %v5561_v56 = vadd.f32 %v11750_v7, %v5522_v40  ;;  %v6546_v41 = vpop.f32.mrf.mxu1  ;;  %v5463_v27 = vadd.f32 %v8008_v49, %v5431_v37 }
 0x49c   : > { %v7477_v20 = vpack.c.bf16 %v5590_v3, %v5590_v3  ;;  %v5588_v25 = vmax.f32 %v5556_v5, 0.0  ;;  %v5520_v12 = vld [vmem:[#allocation3 + $0xa0] sm:$0xff]  ;;  %6784 = vst.msk [vmem:[%s11793_s23 + $0x3c] sm:$0xf] %vm946_vm8, %v7505_v44  ;;  %v6627_v32 = vmax.f32 %v6555_v34, 0.0  ;;  %v6547_v17 = vadd.f32 %v11772_v14, %v6546_v41  ;;  %v5523_v60 = vld [vmem:[#allocation3 + $0xb8] sm:$0xff]  ;;  %v5376_v35 = vpop.f32.mrf.mxu0 }
 0x49d   : > { %v7503_v46 = vpack.c.bf16 %v6622_v30, %v6622_v30  ;;  %v5593_v4 = vmax.f32 %v5561_v56, 0.0  ;;  %v5559_v31 = vadd.f32 %v11750_v7, %v5520_v12  ;;  %5492 = vst.msk [vmem:[#allocation3 + $0xc0] sm:$0xff] %vm1330_vm10, %v5460_v26  ;;  %v8034_v57 = vpop.f32.mrf.mxu1  ;;  %v5562_v19 = vadd.f32 %v11750_v7, %v5523_v60  ;;  %5495 = vst.msk [vmem:[#allocation3 + $0xd8] sm:$0xff] %vm1330_vm10, %v5463_v27  ;;  %v5433_v26 = vld [vmem:[#allocation3 + $0xe8] sm:$0xff] }
 0x49e   : > { %5750 = vst.msk [vmem:[%s11764_s15 + $0x4c] sm:$0xf] %vm946_vm8, %v7477_v20  ;;  %v7475_v42 = vpack.c.bf16 %v5588_v25, %v5588_v25  ;;  %v7508_v48 = vpack.c.bf16 %v6627_v32, %v6627_v32  ;;  %v6625_v6 = vmax.f32 %v6547_v17, 0.0  ;;  %v6558_v8 = vadd.f32 %v8034_v57, %v11772_v14  ;;  %v5521_v50 = vld [vmem:[#allocation3 + $0xa8] sm:$0xff]  ;;  %v8011_v29 = vpop.f32.mrf.mxu0 }
 0x49f   : > { %6782 = vst.msk [vmem:[%s11793_s23 + $0x34] sm:$0xf] %vm946_vm8, %v7503_v46  ;;  %v7480_v36 = vpack.c.bf16 %v5593_v4, %v5593_v4  ;;  %v5591_v39 = vmax.f32 %v5559_v31, 0.0  ;;  %v5461_v47 = vadd.f32 %v5429_v15, %v5376_v35  ;;  %v6549_v52 = vpop.f32.mrf.mxu1  ;;  %v5594_v9 = vmax.f32 %v5562_v19, 0.0 }
 0x4a0   : > { %5748 = vst.msk [vmem:[%s11764_s15 + $0x44] sm:$0xf] %vm946_vm8, %v7475_v42  ;;  %6787 = vst.msk [vmem:[%s11793_s23 + $0x48] sm:$0xf] %vm946_vm8, %v7508_v48  ;;  %v7506_v61 = vpack.c.bf16 %v6625_v6, %v6625_v6  ;;  %v6628_v55 = vmax.f32 %v6558_v8, 0.0  ;;  %v6550_v16 = vadd.f32 %v11772_v14, %v6549_v52  ;;  %v5560_v18 = vadd.f32 %v11750_v7, %v5521_v50  ;;  %v5526_v10 = vld [vmem:[#allocation3 + $0xd0] sm:$0xff]  ;;  %v5389_v45 = vpop.f32.mrf.mxu0 }
 0x4a1   : > { %5753 = vst.msk [vmem:[%s11764_s15 + $0x58] sm:$0xf] %vm946_vm8, %v7480_v36  ;;  %v7478_v1 = vpack.c.bf16 %v5591_v39, %v5591_v39  ;;  %v5466_v53 = vadd.f32 %v8011_v29, %v5434_v43  ;;  %v8037_v59 = vpop.f32.mrf.mxu1  ;;  %v7481_v51 = vpack.c.bf16 %v5594_v9, %v5594_v9  ;;  %v5565_v23 = vadd.f32 %v11750_v7, %v5526_v10 }
 0x4a2   : > { %5493 = vst.msk [vmem:[#allocation3 + $0xc8] sm:$0xff] %vm1330_vm10, %v5461_v47  ;;  %v7509_v62 = vpack.c.bf16 %v6628_v55, %v6628_v55  ;;  %v6626_v33 = vmax.f32 %v6550_v16, 0.0  ;;  %v6571_v38 = vadd.f32 %v8037_v59, %v11772_v14  ;;  %v5592_v58 = vmax.f32 %v5560_v18, 0.0  ;;  %v8012_v5 = vpop.f32.mrf.mxu0 }
 0x4a3   : > { %6785 = vst.msk [vmem:[%s11793_s23 + $0x40] sm:$0xf] %vm946_vm8, %v7506_v61  ;;  %5751 = vst.msk [vmem:[%s11764_s15 + $0x50] sm:$0xf] %vm946_vm8, %v7478_v1  ;;  %v5464_v54 = vadd.f32 %v5432_v13, %v5389_v45  ;;  %v6562_v28 = vpop.f32.mrf.mxu1  ;;  %v5597_v40 = vmax.f32 %v5565_v23, 0.0  ;;  %v5467_v30 = vadd.f32 %v8012_v5, %v5435_v22 }
 0x4a4   : > { %5498 = vst.msk [vmem:[#allocation3 + $0xf0] sm:$0xff] %vm1330_vm10, %v5466_v53  ;;  %v5524_v0 = vld [vmem:[#allocation3 + $0xc0] sm:$0xff]  ;;  %v7507_v21 = vpack.c.bf16 %v6626_v33, %v6626_v33  ;;  %v6631_v11 = vmax.f32 %v6571_v38, 0.0  ;;  %v6563_v3 = vadd.f32 %v11772_v14, %v6562_v28  ;;  %v7479_v63 = vpack.c.bf16 %v5592_v58, %v5592_v58  ;;  %v5527_v2 = vld [vmem:[#allocation3 + $0xd8] sm:$0xff]  ;;  %v5392_v56 = vpop.f32.mrf.mxu0 }
 0x4a5   : > { %6788 = vst.msk [vmem:[%s11793_s23 + $0x4c] sm:$0xf] %vm946_vm8, %v7509_v62  ;;  %5754 = vst.msk [vmem:[%s11764_s15 + $0x5c] sm:$0xf] %vm946_vm8, %v7481_v51  ;;  %v5563_v44 = vadd.f32 %v11750_v7, %v5524_v0  ;;  %v8038_v34 = vpop.f32.mrf.mxu1  ;;  %v7484_v41 = vpack.c.bf16 %v5597_v40, %v5597_v40  ;;  %v5566_v46 = vadd.f32 %v11750_v7, %v5527_v2 }
 0x4a6   : > { %5496 = vst.msk [vmem:[#allocation3 + $0xe0] sm:$0xff] %vm1330_vm10, %v5464_v54  ;;  %v7512_v24 = vpack.c.bf16 %v6631_v11, %v6631_v11  ;;  %v6629_v20 = vmax.f32 %v6563_v3, 0.0  ;;  %v6574_v25 = vadd.f32 %v8038_v34, %v11772_v14  ;;  %5499 = vst.msk [vmem:[#allocation3 + $0xf8] sm:$0xff] %vm1330_vm10, %v5467_v30  ;;  %v5465_v32 = vadd.f32 %v5433_v26, %v5392_v56 }
 0x4a7   : > { %6786 = vst.msk [vmem:[%s11793_s23 + $0x44] sm:$0xf] %vm946_vm8, %v7507_v21  ;;  %5752 = vst.msk [vmem:[%s11764_s15 + $0x54] sm:$0xf] %vm946_vm8, %v7479_v63  ;;  %v5595_v12 = vmax.f32 %v5563_v44, 0.0  ;;  %v6565_v17 = vpop.f32.mrf.mxu1  ;;  %v5598_v27 = vmax.f32 %v5566_v46, 0.0 }
 0x4a8   : > { %6791 = vst.msk [vmem:[%s11793_s23 + $0x58] sm:$0xf] %vm946_vm8, %v7512_v24  ;;  %v7510_v37 = vpack.c.bf16 %v6629_v20, %v6629_v20  ;;  %v6632_v42 = vmax.f32 %v6574_v25, 0.0  ;;  %v6566_v4 = vadd.f32 %v11772_v14, %v6565_v17  ;;  %5757 = vst.msk [vmem:[%s11764_s15 + $0x68] sm:$0xf] %vm946_vm8, %v7484_v41 }
 0x4a9   : > { %v5525_v49 = vld [vmem:[#allocation3 + $0xc8] sm:$0xff]  ;;  %v7482_v31 = vpack.c.bf16 %v5595_v12, %v5595_v12  ;;  %5497 = vst.msk [vmem:[#allocation3 + $0xe8] sm:$0xff] %vm1330_vm10, %v5465_v32  ;;  %v8041_v60 = vpop.f32.mrf.mxu1  ;;  %v7485_v15 = vpack.c.bf16 %v5598_v27, %v5598_v27 }
 0x4aa   : > { %v5564_v57 = vadd.f32 %v11750_v7, %v5525_v49  ;;  %6789 = vst.msk [vmem:[%s11793_s23 + $0x50] sm:$0xf] %vm946_vm8, %v7510_v37  ;;  %v7513_v6 = vpack.c.bf16 %v6632_v42, %v6632_v42  ;;  %v6630_v8 = vmax.f32 %v6566_v4, 0.0  ;;  %v6587_v35 = vadd.f32 %v8041_v60, %v11772_v14 }
 0x4ab   : > { %v5530_v48 = vld [vmem:[#allocation3 + $0xf0] sm:$0xff]  ;;  %5755 = vst.msk [vmem:[%s11764_s15 + $0x60] sm:$0xf] %vm946_vm8, %v7482_v31  ;;  %v6578_v19 = vpop.f32.mrf.mxu1  ;;  %5758 = vst.msk [vmem:[%s11764_s15 + $0x6c] sm:$0xf] %vm946_vm8, %v7485_v15 }
 0x4ac   : > { %v5596_v36 = vmax.f32 %v5564_v57, 0.0  ;;  %v5569_v39 = vadd.f32 %v11750_v7, %v5530_v48  ;;  %6792 = vst.msk [vmem:[%s11793_s23 + $0x5c] sm:$0xf] %vm946_vm8, %v7513_v6  ;;  %v7511_v52 = vpack.c.bf16 %v6630_v8, %v6630_v8  ;;  %v6635_v50 = vmax.f32 %v6587_v35, 0.0 }
 0x4ad   : > { %v5528_v47 = vld [vmem:[#allocation3 + $0xe0] sm:$0xff]  ;;  %v6579_v61 = vadd.f32 %v11772_v14, %v6578_v19  ;;  %v8042_v43 = vpop.f32.mrf.mxu1  ;;  %v5531_v1 = vld [vmem:[#allocation3 + $0xf8] sm:$0xff] }
 0x4ae   : > { %v7483_v55 = vpack.c.bf16 %v5596_v36, %v5596_v36  ;;  %v5601_v16 = vmax.f32 %v5569_v39, 0.0  ;;  %v5567_v29 = vadd.f32 %v11750_v7, %v5528_v47  ;;  %6790 = vst.msk [vmem:[%s11793_s23 + $0x54] sm:$0xf] %vm946_vm8, %v7511_v52  ;;  %v7516_v9 = vpack.c.bf16 %v6635_v50, %v6635_v50 }
 0x4af   : > { %v6633_v18 = vmax.f32 %v6579_v61, 0.0  ;;  %v6590_v53 = vadd.f32 %v8042_v43, %v11772_v14  ;;  %v5570_v62 = vadd.f32 %v11750_v7, %v5531_v1  ;;  %v6581_v33 = vpop.f32.mrf.mxu1 }
 0x4b0   : > { %5756 = vst.msk [vmem:[%s11764_s15 + $0x64] sm:$0xf] %vm946_vm8, %v7483_v55  ;;  %v7488_v59 = vpack.c.bf16 %v5601_v16, %v5601_v16  ;;  %v5599_v10 = vmax.f32 %v5567_v29, 0.0  ;;  %v5529_v38 = vld [vmem:[#allocation3 + $0xe8] sm:$0xff]  ;;  %6795 = vst.msk [vmem:[%s11793_s23 + $0x68] sm:$0xf] %vm946_vm8, %v7516_v9  ;;  %v6582_v51 = vadd.f32 %v11772_v14, %v6581_v33 }
 0x4b1   : > { %v7514_v45 = vpack.c.bf16 %v6633_v18, %v6633_v18  ;;  %v6636_v13 = vmax.f32 %v6590_v53, 0.0  ;;  %v5602_v23 = vmax.f32 %v5570_v62, 0.0  ;;  %v5568_v54 = vadd.f32 %v11750_v7, %v5529_v38  ;;  %v8045_v28 = vpop.f32.mrf.mxu1 }
 0x4b2   : > { %5761 = vst.msk [vmem:[%s11764_s15 + $0x78] sm:$0xf] %vm946_vm8, %v7488_v59  ;;  %v7486_v58 = vpack.c.bf16 %v5599_v10, %v5599_v10  ;;  %v6634_v21 = vmax.f32 %v6582_v51, 0.0  ;;  %v6603_v11 = vadd.f32 %v8045_v28, %v11772_v14 }
 0x4b3   : > { %6793 = vst.msk [vmem:[%s11793_s23 + $0x60] sm:$0xf] %vm946_vm8, %v7514_v45  ;;  %v7517_v0 = vpack.c.bf16 %v6636_v13, %v6636_v13  ;;  %v7489_v3 = vpack.c.bf16 %v5602_v23, %v5602_v23  ;;  %v5600_v5 = vmax.f32 %v5568_v54, 0.0  ;;  %v6594_v22 = vpop.f32.mrf.mxu1 }
 0x4b4   : > { %5759 = vst.msk [vmem:[%s11764_s15 + $0x70] sm:$0xf] %vm946_vm8, %v7486_v58  ;;  %v7515_v63 = vpack.c.bf16 %v6634_v21, %v6634_v21  ;;  %v6639_v7 = vmax.f32 %v6603_v11, 0.0  ;;  %v6595_v40 = vadd.f32 %v11772_v14, %v6594_v22 }
 0x4b5   : > { %6796 = vst.msk [vmem:[%s11793_s23 + $0x6c] sm:$0xf] %vm946_vm8, %v7517_v0  ;;  %5762 = vst.msk [vmem:[%s11764_s15 + $0x7c] sm:$0xf] %vm946_vm8, %v7489_v3  ;;  %v7487_v44 = vpack.c.bf16 %v5600_v5, %v5600_v5  ;;  %v8046_v30 = vpop.f32.mrf.mxu1 }
 0x4b6   : > { %6794 = vst.msk [vmem:[%s11793_s23 + $0x64] sm:$0xf] %vm946_vm8, %v7515_v63  ;;  %v7520_v34 = vpack.c.bf16 %v6639_v7, %v6639_v7  ;;  %v6637_v2 = vmax.f32 %v6595_v40, 0.0  ;;  %v6606_v24 = vadd.f32 %v8046_v30, %v11772_v14 }
 0x4b7   : > { %5760 = vst.msk [vmem:[%s11764_s15 + $0x74] sm:$0xf] %vm946_vm8, %v7487_v44  ;;  %v6597_v20 = vpop.f32.mrf.mxu1 }
 0x4b8   : > { %6799 = vst.msk [vmem:[%s11793_s23 + $0x78] sm:$0xf] %vm946_vm8, %v7520_v34  ;;  %v7518_v25 = vpack.c.bf16 %v6637_v2, %v6637_v2  ;;  %v6640_v56 = vmax.f32 %v6606_v24, 0.0  ;;  %v6598_v26 = vadd.f32 %v11772_v14, %v6597_v20 }
 0x4ba   : > { %6797 = vst.msk [vmem:[%s11793_s23 + $0x70] sm:$0xf] %vm946_vm8, %v7518_v25  ;;  %v7521_v41 = vpack.c.bf16 %v6640_v56, %v6640_v56  ;;  %v6638_v12 = vmax.f32 %v6598_v26, 0.0 }
 0x4bc   : > { %6800 = vst.msk [vmem:[%s11793_s23 + $0x7c] sm:$0xf] %vm946_vm8, %v7521_v41  ;;  %v7519_v46 = vpack.c.bf16 %v6638_v12, %v6638_v12 }
 0x4be   : > { %6798 = vst.msk [vmem:[%s11793_s23 + $0x74] sm:$0xf] %vm946_vm8, %v7519_v46 }
 0x4bf PF: > { %s23_s21 = sadd.s32 1, %s8131_s21  }
 0x4c0   : > { %p20_p4 = scmp.ge.s32.totalorder %s23_s21, 4  }
 0x4c2   :  { %22 = sbr.rel (!%p20_p4) target bundleno = 1 (0x1), region = 128 }

</bundles_post_ra>
